<compile_context>
chip_gen: v7x
topology: tpu7x:2x2x1
jax: 0.10.0
libtpu: 0.0.40
codegen_flags: <defaults>
</compile_context>

<pallas_src>
import jax
import jax.numpy as jnp
from jax.experimental import pallas as pl
from jax.experimental.pallas import tpu as pltpu

EPS = 1e-3
MOMENTUM = 1e-2  # module spec: BatchNorm2d(..., momentum=0.01)


def _bn_train_kernel(x_ref, w_ref, b_ref, o_ref, mean_ref, var_ref):
    # x_ref / o_ref: (Ct, S);  w_ref / b_ref / mean_ref / var_ref: (Ct, 1)
    x = x_ref[...]
    xf = x if x.dtype == jnp.float32 else x.astype(jnp.float32)

    inv_n = 1.0 / x.shape[-1]  # per-channel element count (N == 1 -> H*W)

    # Two-pass (shifted) statistics.
    mean = jnp.sum(xf, axis=-1, keepdims=True) * inv_n            # (Ct, 1)
    diff = xf - mean                                               # (Ct, S)
    var = jnp.sum(diff * diff, axis=-1, keepdims=True) * inv_n     # (Ct, 1), biased

    w = w_ref[...]
    b = b_ref[...]
    wf = w if w.dtype == jnp.float32 else w.astype(jnp.float32)
    bf = b if b.dtype == jnp.float32 else b.astype(jnp.float32)

    scale = wf * jax.lax.rsqrt(var + EPS)                          # (Ct, 1), rsqrt -> EUP

    # Single broadcasted FMA pass; store in output dtype.
    o_ref[...] = (diff * scale + bf).astype(o_ref.dtype)
    mean_ref[...] = mean
    var_ref[...] = var


def _num_tensorcores():
    """Best-effort TensorCores-per-device count; defaults to 1 (safe: grid=(1,))."""
    try:
        info = pltpu.get_tpu_info()
        for attr in ("num_cores", "core_count", "num_tensorcores", "tensorcore_count"):
            v = getattr(info, attr, None)
            if v:
                return int(v)
    except Exception:
        pass
    try:
        dev = jax.devices()[0]
        for attr in ("num_cores", "core_count"):
            v = getattr(dev, attr, None)
            if v:
                return int(v)
    except Exception:
        pass
    return 1


def _pick_channel_tiling(C):
    """Single block on 1-TC chips (v5e/v6e); 2-way channel split only when a
    second TensorCore exists (v7x / megacore) and tiles stay multiples of 8."""
    if _num_tensorcores() >= 2 and C % 16 == 0:
        return C // 2, 2
    return C, 1


def batchnorm2d_train(x, weight, bias, running_mean=None, running_var=None,
                      momentum=MOMENTUM):
    """Training-mode BatchNorm2d forward.

    x: (N, C, H, W) with N == 1 (module spec); weight/bias: (C,).
    Returns y, or (y, new_running_mean, new_running_var) when running stats
    are provided (PyTorch buffer update done functionally in the wrapper).
    """
    N, C, H, W = x.shape
    if N != 1:
        # TODO(synk): batched (N > 1) inputs need a 3-D (N, Ct, S) block variant;
        # the translated module always runs with N == 1.
        raise NotImplementedError("kernel specialized for N == 1")
    S = H * W
    n = N * H * W

    Ct, num_tiles = _pick_channel_tiling(C)

    # Free layout changes only: (1, C, H, W) -> (C, S); params -> (C, 1).
    x2 = x.reshape(C, S)
    w2 = weight.reshape(C, 1)
    b2 = bias.reshape(C, 1)

    cost = pl.CostEstimate(
        flops=6 * C * S + 10 * C,
        transcendentals=C,
        bytes_accessed=2 * C * S * x.dtype.itemsize + 4 * C * 4,
    )

    y2, mean2, var2 = pl.pallas_call(
        _bn_train_kernel,
        out_shape=(
            jax.ShapeDtypeStruct((C, S), x.dtype),
            jax.ShapeDtypeStruct((C, 1), jnp.float32),
            jax.ShapeDtypeStruct((C, 1), jnp.float32),
        ),
        grid=(num_tiles,),
        in_specs=[
            pl.BlockSpec((Ct, S), lambda i: (i, 0)),
            pl.BlockSpec((Ct, 1), lambda i: (i, 0)),
            pl.BlockSpec((Ct, 1), lambda i: (i, 0)),
        ],
        out_specs=(
            pl.BlockSpec((Ct, S), lambda i: (i, 0)),
            pl.BlockSpec((Ct, 1), lambda i: (i, 0)),
            pl.BlockSpec((Ct, 1), lambda i: (i, 0)),
        ),
        compiler_params=pltpu.CompilerParams(
            dimension_semantics=("parallel",),
        ),
        cost_estimate=cost,
    )(x2, w2, b2)

    y = y2.reshape(N, C, H, W)

    if running_mean is None or running_var is None:
        return y

    batch_mean = mean2.reshape(C)
    batch_var = var2.reshape(C)
    unbiased_var = batch_var * (n / (n - 1)) if n > 1 else batch_var
    new_rm = (1.0 - momentum) * running_mean + momentum * batch_mean
    new_rv = (1.0 - momentum) * running_var + momentum * unbiased_var
    return y, new_rm, new_rv


if __name__ == "__main__":
    key = jax.random.PRNGKey(0)
    N, C, H, W = 1, 1824, 7, 7          # shape implied by the module
    x = jax.random.normal(key, (N, C, H, W), dtype=jnp.float32)

    # PyTorch BatchNorm2d default init: weight=1, bias=0, running_mean=0, running_var=1.
    weight = jnp.ones((C,), dtype=jnp.float32)
    bias = jnp.zeros((C,), dtype=jnp.float32)
    running_mean = jnp.zeros((C,), dtype=jnp.float32)
    running_var = jnp.ones((C,), dtype=jnp.float32)

    y, new_rm, new_rv = batchnorm2d_train(x, weight, bias, running_mean, running_var)
    y = jax.block_until_ready(y)

    # Reference: training-mode batch norm in plain JAX.
    xf = x.astype(jnp.float32)
    mean = jnp.mean(xf, axis=(0, 2, 3), keepdims=True)
    var = jnp.mean((xf - mean) ** 2, axis=(0, 2, 3), keepdims=True)
    ref = (xf - mean) * jax.lax.rsqrt(var + EPS) * weight[None, :, None, None] \
          + bias[None, :, None, None]

    n = N * H * W
    ref_rm = (1.0 - MOMENTUM) * running_mean + MOMENTUM * mean.reshape(C)
    ref_rv = (1.0 - MOMENTUM) * running_var + MOMENTUM * var.reshape(C) * (n / (n - 1))

    assert y.shape == (N, C, H, W)
    assert jnp.allclose(y, ref, atol=1e-4, rtol=1e-4)
    assert jnp.allclose(new_rm, ref_rm, atol=1e-5, rtol=1e-5)
    assert jnp.allclose(new_rv, ref_rv, atol=1e-5, rtol=1e-5)

    print("KERNEL_OK")
</pallas_src>

<mosaic_0001>
module attributes {stable_mosaic.version = 11 : i64} {
  func.func @_bn_train_kernel(%arg0: i32, %arg1: memref<1824x49xf32, #tpu.memory_space<vmem>>, %arg2: memref<1824x1xf32, #tpu.memory_space<vmem>>, %arg3: memref<1824x1xf32, #tpu.memory_space<vmem>>, %arg4: memref<1824x49xf32, #tpu.memory_space<vmem>>, %arg5: memref<1824x1xf32, #tpu.memory_space<vmem>>, %arg6: memref<1824x1xf32, #tpu.memory_space<vmem>>) attributes {dimension_semantics = [#tpu.dimension_semantics<parallel>], iteration_bounds = array<i64: 1>, scalar_prefetch = 0 : i64, scratch_operands = 0 : i64, tpu.core_type = #tpu.core_type<tc>, window_params = [{transform_indices = @transform_0, window_bounds = array<i64: 1824, 49>}, {transform_indices = @transform_1, window_bounds = array<i64: 1824, 1>}, {transform_indices = @transform_2, window_bounds = array<i64: 1824, 1>}, {transform_indices = @transform_3, window_bounds = array<i64: 1824, 49>}, {transform_indices = @transform_4, window_bounds = array<i64: 1824, 1>}, {transform_indices = @transform_5, window_bounds = array<i64: 1824, 1>}]} {
    %c0 = arith.constant 0 : index
    %c0_0 = arith.constant 0 : index
    %0 = vector.load %arg1[%c0, %c0_0] : memref<1824x49xf32, #tpu.memory_space<vmem>>, vector<1824x49xf32>
    %cst = arith.constant dense<0.000000e+00> : vector<1824xf32>
    %1 = vector.multi_reduction <add>, %0, %cst [1] : vector<1824x49xf32> to vector<1824xf32>
    %2 = vector.shape_cast %1 : vector<1824xf32> to vector<1824x1xf32>
    %cst_1 = arith.constant 0.0204081628 : f32
    %3 = vector.broadcast %cst_1 : f32 to vector<1824x1xf32>
    %4 = arith.mulf %2, %3 : vector<1824x1xf32>
    %5 = vector.broadcast %4 : vector<1824x1xf32> to vector<1824x49xf32>
    %6 = arith.subf %0, %5 : vector<1824x49xf32>
    %7 = arith.mulf %6, %6 : vector<1824x49xf32>
    %cst_2 = arith.constant dense<0.000000e+00> : vector<1824xf32>
    %8 = vector.multi_reduction <add>, %7, %cst_2 [1] : vector<1824x49xf32> to vector<1824xf32>
    %9 = vector.shape_cast %8 : vector<1824xf32> to vector<1824x1xf32>
    %cst_3 = arith.constant 0.0204081628 : f32
    %10 = vector.broadcast %cst_3 : f32 to vector<1824x1xf32>
    %11 = arith.mulf %9, %10 : vector<1824x1xf32>
    %c0_4 = arith.constant 0 : index
    %c0_5 = arith.constant 0 : index
    %12 = vector.load %arg2[%c0_4, %c0_5] : memref<1824x1xf32, #tpu.memory_space<vmem>>, vector<1824x1xf32>
    %c0_6 = arith.constant 0 : index
    %c0_7 = arith.constant 0 : index
    %13 = vector.load %arg3[%c0_6, %c0_7] : memref<1824x1xf32, #tpu.memory_space<vmem>>, vector<1824x1xf32>
    %cst_8 = arith.constant 1.000000e-03 : f32
    %14 = vector.broadcast %cst_8 : f32 to vector<1824x1xf32>
    %15 = arith.addf %11, %14 : vector<1824x1xf32>
    %16 = math.rsqrt %15 : vector<1824x1xf32>
    %17 = arith.mulf %12, %16 : vector<1824x1xf32>
    %18 = vector.broadcast %17 : vector<1824x1xf32> to vector<1824x49xf32>
    %19 = arith.mulf %6, %18 : vector<1824x49xf32>
    %20 = vector.broadcast %13 : vector<1824x1xf32> to vector<1824x49xf32>
    %21 = arith.addf %19, %20 : vector<1824x49xf32>
    %c0_9 = arith.constant 0 : index
    %c0_10 = arith.constant 0 : index
    %22 = vector.load %arg4[%c0_9, %c0_10] : memref<1824x49xf32, #tpu.memory_space<vmem>>, vector<1824x49xf32>
    tpu.vector_store %arg4[%c0_9, %c0_10], %21 {strides = array<i32>} : memref<1824x49xf32, #tpu.memory_space<vmem>>, vector<1824x49xf32>,
    %c0_11 = arith.constant 0 : index
    %c0_12 = arith.constant 0 : index
    %23 = vector.load %arg5[%c0_11, %c0_12] : memref<1824x1xf32, #tpu.memory_space<vmem>>, vector<1824x1xf32>
    tpu.vector_store %arg5[%c0_11, %c0_12], %4 {strides = array<i32>} : memref<1824x1xf32, #tpu.memory_space<vmem>>, vector<1824x1xf32>,
    %c0_13 = arith.constant 0 : index
    %c0_14 = arith.constant 0 : index
    %24 = vector.load %arg6[%c0_13, %c0_14] : memref<1824x1xf32, #tpu.memory_space<vmem>>, vector<1824x1xf32>
    tpu.vector_store %arg6[%c0_13, %c0_14], %11 {strides = array<i32>} : memref<1824x1xf32, #tpu.memory_space<vmem>>, vector<1824x1xf32>,
    return
  }
  func.func @transform_0(%arg0: i32) -> (i32, i32) {
    %c0_i32 = arith.constant 0 : i32
    %c0_i32_0 = arith.constant 0 : i32
    return %arg0, %c0_i32 : i32, i32
  }
  func.func @transform_1(%arg0: i32) -> (i32, i32) {
    %c0_i32 = arith.constant 0 : i32
    %c0_i32_0 = arith.constant 0 : i32
    return %arg0, %c0_i32 : i32, i32
  }
  func.func @transform_2(%arg0: i32) -> (i32, i32) {
    %c0_i32 = arith.constant 0 : i32
    %c0_i32_0 = arith.constant 0 : i32
    return %arg0, %c0_i32 : i32, i32
  }
  func.func @transform_3(%arg0: i32) -> (i32, i32) {
    %c0_i32 = arith.constant 0 : i32
    %c0_i32_0 = arith.constant 0 : i32
    return %arg0, %c0_i32 : i32, i32
  }
  func.func @transform_4(%arg0: i32) -> (i32, i32) {
    %c0_i32 = arith.constant 0 : i32
    %c0_i32_0 = arith.constant 0 : i32
    return %arg0, %c0_i32 : i32, i32
  }
  func.func @transform_5(%arg0: i32) -> (i32, i32) {
    %c0_i32 = arith.constant 0 : i32
    %c0_i32_0 = arith.constant 0 : i32
    return %arg0, %c0_i32 : i32, i32
  }
}

</mosaic_0001>

<bundles_post_ra>
// kernel: tpu_custom_call.1
= control target key start
LH: loop header
LB: loop body
LE: loop exit
PB: predicated region body
PF: predicated region fallthrough
CT: control target
= control target key end

     0   :  { %vm245_vm0 = vcmask 400384   ;;  %vm6630_vm1 = vcmask 7168   ;;  %s17393_s0 = inlined_call_operand.vmem [shape: f32[1824,49], index: 0, kind: input, shape index: {}]   ;;  %s17394_s4 = inlined_call_operand.vmem [shape: f32[1824,1], index: 4, kind: output, shape index: {1}]   ;;  %s17395_s5 = inlined_call_operand.vmem [shape: f32[1824,1], index: 5, kind: output, shape index: {2}]   ;;  %s17396_s1 = inlined_call_operand.vmem [shape: f32[1824,1], index: 1, kind: input, shape index: {}]   ;;  %s17397_s2 = inlined_call_operand.vmem [shape: f32[1824,1], index: 2, kind: input, shape index: {}]   ;;  %s17398_s3 = inlined_call_operand.vmem [shape: f32[1824,49], index: 3, kind: output, shape index: {0}]  }
   0x1   :  { %v19_v0 = vld [vmem:[%s17393_s0 + $0x10] sm:$0xff]  ;;  %v17_v1 = vld [vmem:[%s17393_s0] sm:$0xff]  ;;  %v20_v2 = vld [vmem:[%s17393_s0 + $0x18] sm:$0xff] }
   0x2   :  { %v252_v3 = vsel %vm245_vm0, %v19_v0, 0.0  ;;  %v246_v4 = vsel %vm245_vm0, %v17_v1, 0.0  ;;  %v18_v5 = vld [vmem:[%s17393_s0 + $0x8] sm:$0xff]  ;;  %v255_v6 = vsel %vm245_vm0, %v20_v2, 0.0  ;;  %v21_v9 = vld [vmem:[%s17393_s0 + $0x20] sm:$0xff]  ;;  %v24_v12 = vld [vmem:[%s17393_s0 + $0x38] sm:$0xff] }
   0x3   :  { %253 = vadd.xlane.f32.xlu1 %v252_v3  ;;  %247 = vadd.xlane.f32.xlu0 %v246_v4  ;;  %v249_v7 = vsel %vm245_vm0, %v18_v5, 0.0  ;;  %v22_v8 = vld [vmem:[%s17393_s0 + $0x28] sm:$0xff]  ;;  %v258_v11 = vsel %vm245_vm0, %v21_v9, 0.0  ;;  %v23_v13 = vld [vmem:[%s17393_s0 + $0x30] sm:$0xff]  ;;  %v267_v14 = vsel %vm245_vm0, %v24_v12, 0.0  ;;  %v25_v17 = vld [vmem:[%s17393_s0 + $0x40] sm:$0xff] }
   0x4   :  { %v261_v10 = vsel %vm245_vm0, %v22_v8, 0.0  ;;  %v264_v15 = vsel %vm245_vm0, %v23_v13, 0.0  ;;  %v26_v16 = vld [vmem:[%s17393_s0 + $0x48] sm:$0xff]  ;;  %v270_v19 = vsel %vm245_vm0, %v25_v17, 0.0  ;;  %v28_v20 = vld [vmem:[%s17393_s0 + $0x58] sm:$0xff]  ;;  %v27_v21 = vld [vmem:[%s17393_s0 + $0x50] sm:$0xff] }
   0x5   :  { %v273_v18 = vsel %vm245_vm0, %v26_v16, 0.0  ;;  %v279_v22 = vsel %vm245_vm0, %v28_v20, 0.0  ;;  %v276_v23 = vsel %vm245_vm0, %v27_v21, 0.0  ;;  %v30_v24 = vld [vmem:[%s17393_s0 + $0x68] sm:$0xff]  ;;  %v29_v25 = vld [vmem:[%s17393_s0 + $0x60] sm:$0xff]  ;;  %v32_v28 = vld [vmem:[%s17393_s0 + $0x78] sm:$0xff] }
   0x6   :  { %v285_v26 = vsel %vm245_vm0, %v30_v24, 0.0  ;;  %v282_v27 = vsel %vm245_vm0, %v29_v25, 0.0  ;;  %v31_v29 = vld [vmem:[%s17393_s0 + $0x70] sm:$0xff]  ;;  %v291_v30 = vsel %vm245_vm0, %v32_v28, 0.0  ;;  %v34_v32 = vld [vmem:[%s17393_s0 + $0x88] sm:$0xff]  ;;  %v33_v33 = vld [vmem:[%s17393_s0 + $0x80] sm:$0xff] }
   0x7   :  { %256 = vadd.xlane.f32.xlu1 %v255_v6  ;;  %250 = vadd.xlane.f32.xlu0 %v249_v7  ;;  %v288_v31 = vsel %vm245_vm0, %v31_v29, 0.0  ;;  %v297_v34 = vsel %vm245_vm0, %v34_v32, 0.0  ;;  %v294_v35 = vsel %vm245_vm0, %v33_v33, 0.0  ;;  %v36_v36 = vld [vmem:[%s17393_s0 + $0x98] sm:$0xff]  ;;  %v35_v37 = vld [vmem:[%s17393_s0 + $0x90] sm:$0xff]  ;;  %v38_v40 = vld [vmem:[%s17393_s0 + $0xa8] sm:$0xff] }
   0x8   :  { %v303_v38 = vsel %vm245_vm0, %v36_v36, 0.0  ;;  %v300_v39 = vsel %vm245_vm0, %v35_v37, 0.0  ;;  %v37_v41 = vld [vmem:[%s17393_s0 + $0xa0] sm:$0xff]  ;;  %v309_v42 = vsel %vm245_vm0, %v38_v40, 0.0  ;;  %v40_v44 = vld [vmem:[%s17393_s0 + $0xb8] sm:$0xff]  ;;  %v39_v45 = vld [vmem:[%s17393_s0 + $0xb0] sm:$0xff] }
   0x9   :  { %v306_v43 = vsel %vm245_vm0, %v37_v41, 0.0  ;;  %v315_v46 = vsel %vm245_vm0, %v40_v44, 0.0  ;;  %v312_v47 = vsel %vm245_vm0, %v39_v45, 0.0  ;;  %v42_v48 = vld [vmem:[%s17393_s0 + $0xc8] sm:$0xff]  ;;  %v41_v49 = vld [vmem:[%s17393_s0 + $0xc0] sm:$0xff]  ;;  %v44_v52 = vld [vmem:[%s17393_s0 + $0xd8] sm:$0xff] }
   0xa   :  { %v321_v50 = vsel %vm245_vm0, %v42_v48, 0.0  ;;  %v318_v51 = vsel %vm245_vm0, %v41_v49, 0.0  ;;  %v43_v53 = vld [vmem:[%s17393_s0 + $0xd0] sm:$0xff]  ;;  %v327_v54 = vsel %vm245_vm0, %v44_v52, 0.0  ;;  %v46_v56 = vld [vmem:[%s17393_s0 + $0xe8] sm:$0xff]  ;;  %v45_v57 = vld [vmem:[%s17393_s0 + $0xe0] sm:$0xff] }
   0xb   :  { %262 = vadd.xlane.f32.xlu1 %v261_v10  ;;  %259 = vadd.xlane.f32.xlu0 %v258_v11  ;;  %v324_v55 = vsel %vm245_vm0, %v43_v53, 0.0  ;;  %v333_v58 = vsel %vm245_vm0, %v46_v56, 0.0  ;;  %v330_v59 = vsel %vm245_vm0, %v45_v57, 0.0  ;;  %v48_v60 = vld [vmem:[%s17393_s0 + $0xf8] sm:$0xff]  ;;  %v47_v61 = vld [vmem:[%s17393_s0 + $0xf0] sm:$0xff]  ;;  %v50_v0 = vld [vmem:[%s17393_s0 + $0x108] sm:$0xff] }
   0xc   :  { %v339_v62 = vsel %vm245_vm0, %v48_v60, 0.0  ;;  %v336_v63 = vsel %vm245_vm0, %v47_v61, 0.0  ;;  %v49_v1 = vld [vmem:[%s17393_s0 + $0x100] sm:$0xff]  ;;  %v345_v2 = vsel %vm245_vm0, %v50_v0, 0.0  ;;  %v52_v4 = vld [vmem:[%s17393_s0 + $0x118] sm:$0xff]  ;;  %v51_v5 = vld [vmem:[%s17393_s0 + $0x110] sm:$0xff] }
   0xd   :  { %v342_v3 = vsel %vm245_vm0, %v49_v1, 0.0  ;;  %v351_v6 = vsel %vm245_vm0, %v52_v4, 0.0  ;;  %v348_v7 = vsel %vm245_vm0, %v51_v5, 0.0  ;;  %v54_v8 = vld [vmem:[%s17393_s0 + $0x128] sm:$0xff]  ;;  %v53_v9 = vld [vmem:[%s17393_s0 + $0x120] sm:$0xff]  ;;  %v56_v12 = vld [vmem:[%s17393_s0 + $0x138] sm:$0xff] }
   0xe   :  { %v357_v10 = vsel %vm245_vm0, %v54_v8, 0.0  ;;  %v354_v11 = vsel %vm245_vm0, %v53_v9, 0.0  ;;  %v55_v13 = vld [vmem:[%s17393_s0 + $0x130] sm:$0xff]  ;;  %v58_v16 = vld [vmem:[%s17393_s0 + $0x148] sm:$0xff]  ;;  %v57_v17 = vld [vmem:[%s17393_s0 + $0x140] sm:$0xff] }
   0xf   :  { %268 = vadd.xlane.f32.xlu1 %v267_v14  ;;  %265 = vadd.xlane.f32.xlu0 %v264_v15  ;;  %v363_v14 = vsel %vm245_vm0, %v56_v12, 0.0  ;;  %v360_v15 = vsel %vm245_vm0, %v55_v13, 0.0  ;;  %v60_v20 = vld [vmem:[%s17393_s0 + $0x158] sm:$0xff]  ;;  %v59_v21 = vld [vmem:[%s17393_s0 + $0x150] sm:$0xff]  ;;  %v62_v24 = vld [vmem:[%s17393_s0 + $0x168] sm:$0xff] }
  0x10   :  { %v61_v25 = vld [vmem:[%s17393_s0 + $0x160] sm:$0xff]  ;;  %v64_v28 = vld [vmem:[%s17393_s0 + $0x178] sm:$0xff]  ;;  %v63_v29 = vld [vmem:[%s17393_s0 + $0x170] sm:$0xff] }
  0x11   :  { %v66_v32 = vld [vmem:[%s17393_s0 + $0x188] sm:$0xff]  ;;  %v65_v33 = vld [vmem:[%s17393_s0 + $0x180] sm:$0xff]  ;;  %v68_v36 = vld [vmem:[%s17393_s0 + $0x198] sm:$0xff] }
  0x12   :  { %v67_v37 = vld [vmem:[%s17393_s0 + $0x190] sm:$0xff]  ;;  %v70_v40 = vld [vmem:[%s17393_s0 + $0x1a8] sm:$0xff]  ;;  %v69_v41 = vld [vmem:[%s17393_s0 + $0x1a0] sm:$0xff] }
  0x13   :  { %274 = vadd.xlane.f32.xlu1 %v273_v18  ;;  %271 = vadd.xlane.f32.xlu0 %v270_v19  ;;  %v369_v18 = vsel %vm245_vm0, %v58_v16, 0.0  ;;  %v366_v19 = vsel %vm245_vm0, %v57_v17, 0.0  ;;  %v72_v44 = vld [vmem:[%s17393_s0 + $0x1b8] sm:$0xff]  ;;  %v71_v45 = vld [vmem:[%s17393_s0 + $0x1b0] sm:$0xff]  ;;  %v74_v48 = vld [vmem:[%s17393_s0 + $0x1c8] sm:$0xff] }
  0x14   :  { %v73_v49 = vld [vmem:[%s17393_s0 + $0x1c0] sm:$0xff]  ;;  %v76_v52 = vld [vmem:[%s17393_s0 + $0x1d8] sm:$0xff]  ;;  %v75_v53 = vld [vmem:[%s17393_s0 + $0x1d0] sm:$0xff] }
  0x15   :  { %v78_v56 = vld [vmem:[%s17393_s0 + $0x1e8] sm:$0xff]  ;;  %v77_v57 = vld [vmem:[%s17393_s0 + $0x1e0] sm:$0xff]  ;;  %v80_v60 = vld [vmem:[%s17393_s0 + $0x1f8] sm:$0xff] }
  0x16   :  { %v79_v61 = vld [vmem:[%s17393_s0 + $0x1f0] sm:$0xff]  ;;  %v82_v0 = vld [vmem:[%s17393_s0 + $0x208] sm:$0xff]  ;;  %v81_v1 = vld [vmem:[%s17393_s0 + $0x200] sm:$0xff] }
  0x17   :  { %280 = vadd.xlane.f32.xlu1 %v279_v22  ;;  %277 = vadd.xlane.f32.xlu0 %v276_v23  ;;  %v375_v22 = vsel %vm245_vm0, %v60_v20, 0.0  ;;  %v372_v23 = vsel %vm245_vm0, %v59_v21, 0.0  ;;  %v84_v4 = vld [vmem:[%s17393_s0 + $0x218] sm:$0xff]  ;;  %v83_v5 = vld [vmem:[%s17393_s0 + $0x210] sm:$0xff]  ;;  %v86_v8 = vld [vmem:[%s17393_s0 + $0x228] sm:$0xff] }
  0x18   :  { %v85_v9 = vld [vmem:[%s17393_s0 + $0x220] sm:$0xff]  ;;  %v88_v12 = vld [vmem:[%s17393_s0 + $0x238] sm:$0xff]  ;;  %v87_v13 = vld [vmem:[%s17393_s0 + $0x230] sm:$0xff] }
  0x19   :  { %v90_v16 = vld [vmem:[%s17393_s0 + $0x248] sm:$0xff]  ;;  %v89_v17 = vld [vmem:[%s17393_s0 + $0x240] sm:$0xff] }
  0x1a   :  { %v465_v20 = vsel %vm245_vm0, %v90_v16, 0.0  ;;  %v462_v21 = vsel %vm245_vm0, %v89_v17, 0.0  ;;  %v106_v16 = vld [vmem:[%s17393_s0 + $0x2c8] sm:$0xff]  ;;  %v105_v17 = vld [vmem:[%s17393_s0 + $0x2c0] sm:$0xff] }
  0x1b   :  { %286 = vadd.xlane.f32.xlu1 %v285_v26  ;;  %283 = vadd.xlane.f32.xlu0 %v282_v27  ;;  %v381_v26 = vsel %vm245_vm0, %v62_v24, 0.0  ;;  %v378_v27 = vsel %vm245_vm0, %v61_v25, 0.0  ;;  %v92_v24 = vld [vmem:[%s17393_s0 + $0x258] sm:$0xff]  ;;  %v91_v25 = vld [vmem:[%s17393_s0 + $0x250] sm:$0xff] }
  0x1f   :  { %292 = vadd.xlane.f32.xlu1 %v291_v30  ;;  %289 = vadd.xlane.f32.xlu0 %v288_v31  ;;  %v387_v30 = vsel %vm245_vm0, %v64_v28, 0.0  ;;  %v384_v31 = vsel %vm245_vm0, %v63_v29, 0.0  ;;  %v471_v28 = vsel %vm245_vm0, %v92_v24, 0.0  ;;  %v468_v29 = vsel %vm245_vm0, %v91_v25, 0.0 }
  0x23   :  { %298 = vadd.xlane.f32.xlu1 %v297_v34  ;;  %295 = vadd.xlane.f32.xlu0 %v294_v35  ;;  %v393_v34 = vsel %vm245_vm0, %v66_v32, 0.0  ;;  %v390_v35 = vsel %vm245_vm0, %v65_v33, 0.0  ;;  %v94_v32 = vld [vmem:[%s17393_s0 + $0x268] sm:$0xff]  ;;  %v93_v33 = vld [vmem:[%s17393_s0 + $0x260] sm:$0xff] }
  0x27   :  { %304 = vadd.xlane.f32.xlu1 %v303_v38  ;;  %301 = vadd.xlane.f32.xlu0 %v300_v39  ;;  %v399_v38 = vsel %vm245_vm0, %v68_v36, 0.0  ;;  %v396_v39 = vsel %vm245_vm0, %v67_v37, 0.0  ;;  %v477_v36 = vsel %vm245_vm0, %v94_v32, 0.0  ;;  %v474_v37 = vsel %vm245_vm0, %v93_v33, 0.0 }
  0x2b   :  { %310 = vadd.xlane.f32.xlu1 %v309_v42  ;;  %307 = vadd.xlane.f32.xlu0 %v306_v43  ;;  %v405_v42 = vsel %vm245_vm0, %v70_v40, 0.0  ;;  %v402_v43 = vsel %vm245_vm0, %v69_v41, 0.0  ;;  %v96_v40 = vld [vmem:[%s17393_s0 + $0x278] sm:$0xff]  ;;  %v95_v41 = vld [vmem:[%s17393_s0 + $0x270] sm:$0xff] }
  0x2f   :  { %316 = vadd.xlane.f32.xlu1 %v315_v46  ;;  %313 = vadd.xlane.f32.xlu0 %v312_v47  ;;  %v411_v46 = vsel %vm245_vm0, %v72_v44, 0.0  ;;  %v408_v47 = vsel %vm245_vm0, %v71_v45, 0.0  ;;  %v483_v44 = vsel %vm245_vm0, %v96_v40, 0.0  ;;  %v480_v45 = vsel %vm245_vm0, %v95_v41, 0.0 }
  0x33   :  { %322 = vadd.xlane.f32.xlu1 %v321_v50  ;;  %319 = vadd.xlane.f32.xlu0 %v318_v51  ;;  %v417_v50 = vsel %vm245_vm0, %v74_v48, 0.0  ;;  %v414_v51 = vsel %vm245_vm0, %v73_v49, 0.0  ;;  %v98_v48 = vld [vmem:[%s17393_s0 + $0x288] sm:$0xff]  ;;  %v97_v49 = vld [vmem:[%s17393_s0 + $0x280] sm:$0xff] }
  0x37   :  { %328 = vadd.xlane.f32.xlu1 %v327_v54  ;;  %325 = vadd.xlane.f32.xlu0 %v324_v55  ;;  %v423_v54 = vsel %vm245_vm0, %v76_v52, 0.0  ;;  %v420_v55 = vsel %vm245_vm0, %v75_v53, 0.0  ;;  %v489_v52 = vsel %vm245_vm0, %v98_v48, 0.0  ;;  %v486_v53 = vsel %vm245_vm0, %v97_v49, 0.0  ;;  %v112_v48 = vld [vmem:[%s17393_s0 + $0x2f8] sm:$0xff]  ;;  %v111_v49 = vld [vmem:[%s17393_s0 + $0x2f0] sm:$0xff] }
  0x3b   :  { %334 = vadd.xlane.f32.xlu1 %v333_v58  ;;  %331 = vadd.xlane.f32.xlu0 %v330_v59  ;;  %v429_v58 = vsel %vm245_vm0, %v78_v56, 0.0  ;;  %v426_v59 = vsel %vm245_vm0, %v77_v57, 0.0  ;;  %v100_v56 = vld [vmem:[%s17393_s0 + $0x298] sm:$0xff]  ;;  %v99_v57 = vld [vmem:[%s17393_s0 + $0x290] sm:$0xff] }
  0x3f   :  { %340 = vadd.xlane.f32.xlu1 %v339_v62  ;;  %337 = vadd.xlane.f32.xlu0 %v336_v63  ;;  %v435_v62 = vsel %vm245_vm0, %v80_v60, 0.0  ;;  %v432_v63 = vsel %vm245_vm0, %v79_v61, 0.0  ;;  %v495_v60 = vsel %vm245_vm0, %v100_v56, 0.0  ;;  %v492_v61 = vsel %vm245_vm0, %v99_v57, 0.0 }
  0x43   :  { %346 = vadd.xlane.f32.xlu1 %v345_v2  ;;  %343 = vadd.xlane.f32.xlu0 %v342_v3  ;;  %v441_v2 = vsel %vm245_vm0, %v82_v0, 0.0  ;;  %v438_v3 = vsel %vm245_vm0, %v81_v1, 0.0  ;;  %v102_v0 = vld [vmem:[%s17393_s0 + $0x2a8] sm:$0xff]  ;;  %v101_v1 = vld [vmem:[%s17393_s0 + $0x2a0] sm:$0xff] }
  0x47   :  { %352 = vadd.xlane.f32.xlu1 %v351_v6  ;;  %349 = vadd.xlane.f32.xlu0 %v348_v7  ;;  %v447_v6 = vsel %vm245_vm0, %v84_v4, 0.0  ;;  %v444_v7 = vsel %vm245_vm0, %v83_v5, 0.0  ;;  %v501_v4 = vsel %vm245_vm0, %v102_v0, 0.0  ;;  %v498_v5 = vsel %vm245_vm0, %v101_v1, 0.0 }
  0x4b   :  { %358 = vadd.xlane.f32.xlu1 %v357_v10  ;;  %355 = vadd.xlane.f32.xlu0 %v354_v11  ;;  %v453_v10 = vsel %vm245_vm0, %v86_v8, 0.0  ;;  %v450_v11 = vsel %vm245_vm0, %v85_v9, 0.0  ;;  %v104_v8 = vld [vmem:[%s17393_s0 + $0x2b8] sm:$0xff]  ;;  %v103_v9 = vld [vmem:[%s17393_s0 + $0x2b0] sm:$0xff] }
  0x4f   :  { %364 = vadd.xlane.f32.xlu1 %v363_v14  ;;  %361 = vadd.xlane.f32.xlu0 %v360_v15  ;;  %v459_v14 = vsel %vm245_vm0, %v88_v12, 0.0  ;;  %v456_v15 = vsel %vm245_vm0, %v87_v13, 0.0  ;;  %v507_v12 = vsel %vm245_vm0, %v104_v8, 0.0  ;;  %v504_v13 = vsel %vm245_vm0, %v103_v9, 0.0 }
  0x53   :  { %370 = vadd.xlane.f32.xlu1 %v369_v18  ;;  %367 = vadd.xlane.f32.xlu0 %v366_v19 }
  0x57   :  { %376 = vadd.xlane.f32.xlu1 %v375_v22  ;;  %373 = vadd.xlane.f32.xlu0 %v372_v23 }
  0x5b   :  { %382 = vadd.xlane.f32.xlu1 %v381_v26  ;;  %379 = vadd.xlane.f32.xlu0 %v378_v27 }
  0x5f   :  { %388 = vadd.xlane.f32.xlu1 %v387_v30  ;;  %385 = vadd.xlane.f32.xlu0 %v384_v31 }
  0x63   :  { %394 = vadd.xlane.f32.xlu1 %v393_v34  ;;  %391 = vadd.xlane.f32.xlu0 %v390_v35 }
  0x67   :  { %400 = vadd.xlane.f32.xlu1 %v399_v38  ;;  %397 = vadd.xlane.f32.xlu0 %v396_v39 }
  0x6b   :  { %406 = vadd.xlane.f32.xlu1 %v405_v42  ;;  %403 = vadd.xlane.f32.xlu0 %v402_v43 }
  0x6f   :  { %412 = vadd.xlane.f32.xlu1 %v411_v46  ;;  %409 = vadd.xlane.f32.xlu0 %v408_v47 }
  0x73   :  { %418 = vadd.xlane.f32.xlu1 %v417_v50  ;;  %415 = vadd.xlane.f32.xlu0 %v414_v51 }
  0x77   :  { %424 = vadd.xlane.f32.xlu1 %v423_v54  ;;  %421 = vadd.xlane.f32.xlu0 %v420_v55 }
  0x7b   :  { %430 = vadd.xlane.f32.xlu1 %v429_v58  ;;  %427 = vadd.xlane.f32.xlu0 %v426_v59 }
  0x7f   :  { %436 = vadd.xlane.f32.xlu1 %v435_v62  ;;  %433 = vadd.xlane.f32.xlu0 %v432_v63 }
  0x83   :  { %442 = vadd.xlane.f32.xlu1 %v441_v2  ;;  %439 = vadd.xlane.f32.xlu0 %v438_v3 }
  0x87   :  { %448 = vadd.xlane.f32.xlu1 %v447_v6  ;;  %445 = vadd.xlane.f32.xlu0 %v444_v7 }
  0x8b   :  { %454 = vadd.xlane.f32.xlu1 %v453_v10  ;;  %451 = vadd.xlane.f32.xlu0 %v450_v11 }
  0x8f   :  { %460 = vadd.xlane.f32.xlu1 %v459_v14  ;;  %457 = vadd.xlane.f32.xlu0 %v456_v15 }
  0x90   :  { %v254_v18 = vpop.xlane.xlu1 %253  ;;  %v248_v19 = vpop.xlane.xlu0 %247 }
  0x91   :  { %v8113_v22 = vmul.f32 0.020408163, %v254_v18  ;;  %v8115_v23 = vmul.f32 0.020408163, %v248_v19 }
  0x93   :  { %6633 = vst.msk [vmem:[%s17394_s4 + $0x10] sm:$0xff] %vm6630_vm1, %v8113_v22  ;;  %6631 = vst.msk [vmem:[%s17394_s4] sm:$0xff] %vm6630_vm1, %v8115_v23  ;;  %466 = vadd.xlane.f32.xlu1 %v465_v20  ;;  %463 = vadd.xlane.f32.xlu0 %v462_v21  ;;  %v513_v20 = vsel %vm245_vm0, %v106_v16, 0.0  ;;  %v510_v21 = vsel %vm245_vm0, %v105_v17, 0.0  ;;  %v118_v16 = vld [vmem:[%s17393_s0 + $0x328] sm:$0xff]  ;;  %v117_v17 = vld [vmem:[%s17393_s0 + $0x320] sm:$0xff] }
  0x94   :  { %v257_v26 = vpop.xlane.xlu1 %256  ;;  %v251_v27 = vpop.xlane.xlu0 %250 }
  0x95   :  { %v8135_v30 = vmul.f32 0.020408163, %v257_v26  ;;  %v8137_v31 = vmul.f32 0.020408163, %v251_v27  ;;  %v108_v26 = vld [vmem:[%s17393_s0 + $0x2d8] sm:$0xff]  ;;  %v107_v27 = vld [vmem:[%s17393_s0 + $0x2d0] sm:$0xff] }
  0x96   :  { %v519_v32 = vsel %vm245_vm0, %v108_v26, 0.0  ;;  %v516_v33 = vsel %vm245_vm0, %v107_v27, 0.0 }
  0x97   :  { %6634 = vst.msk [vmem:[%s17394_s4 + $0x18] sm:$0xff] %vm6630_vm1, %v8135_v30  ;;  %6632 = vst.msk [vmem:[%s17394_s4 + $0x8] sm:$0xff] %vm6630_vm1, %v8137_v31  ;;  %472 = vadd.xlane.f32.xlu1 %v471_v28  ;;  %469 = vadd.xlane.f32.xlu0 %v468_v29 }
  0x98   :  { %v263_v34 = vpop.xlane.xlu1 %262  ;;  %v260_v35 = vpop.xlane.xlu0 %259 }
  0x99   :  { %v8157_v38 = vmul.f32 0.020408163, %v263_v34  ;;  %v8159_v39 = vmul.f32 0.020408163, %v260_v35 }
  0x9b   :  { %6636 = vst.msk [vmem:[%s17394_s4 + $0x28] sm:$0xff] %vm6630_vm1, %v8157_v38  ;;  %6635 = vst.msk [vmem:[%s17394_s4 + $0x20] sm:$0xff] %vm6630_vm1, %v8159_v39  ;;  %478 = vadd.xlane.f32.xlu1 %v477_v36  ;;  %475 = vadd.xlane.f32.xlu0 %v474_v37  ;;  %v110_v36 = vld [vmem:[%s17393_s0 + $0x2e8] sm:$0xff]  ;;  %v109_v37 = vld [vmem:[%s17393_s0 + $0x2e0] sm:$0xff] }
  0x9c   :  { %v269_v42 = vpop.xlane.xlu1 %268  ;;  %v266_v43 = vpop.xlane.xlu0 %265 }
  0x9d   :  { %v8179_v46 = vmul.f32 0.020408163, %v269_v42  ;;  %v8181_v47 = vmul.f32 0.020408163, %v266_v43  ;;  %v525_v42 = vsel %vm245_vm0, %v110_v36, 0.0  ;;  %v522_v43 = vsel %vm245_vm0, %v109_v37, 0.0 }
  0x9f   :  { %6638 = vst.msk [vmem:[%s17394_s4 + $0x38] sm:$0xff] %vm6630_vm1, %v8179_v46  ;;  %6637 = vst.msk [vmem:[%s17394_s4 + $0x30] sm:$0xff] %vm6630_vm1, %v8181_v47  ;;  %484 = vadd.xlane.f32.xlu1 %v483_v44  ;;  %481 = vadd.xlane.f32.xlu0 %v480_v45 }
  0xa0   :  { %v275_v50 = vpop.xlane.xlu1 %274  ;;  %v272_v51 = vpop.xlane.xlu0 %271 }
  0xa1   :  { %v8201_v54 = vmul.f32 0.020408163, %v275_v50  ;;  %v8203_v55 = vmul.f32 0.020408163, %v272_v51 }
  0xa3   :  { %6640 = vst.msk [vmem:[%s17394_s4 + $0x48] sm:$0xff] %vm6630_vm1, %v8201_v54  ;;  %6639 = vst.msk [vmem:[%s17394_s4 + $0x40] sm:$0xff] %vm6630_vm1, %v8203_v55  ;;  %490 = vadd.xlane.f32.xlu1 %v489_v52  ;;  %487 = vadd.xlane.f32.xlu0 %v486_v53  ;;  %v531_v52 = vsel %vm245_vm0, %v112_v48, 0.0  ;;  %v528_v53 = vsel %vm245_vm0, %v111_v49, 0.0 }
  0xa4   :  { %v281_v58 = vpop.xlane.xlu1 %280  ;;  %v278_v59 = vpop.xlane.xlu0 %277 }
  0xa5   :  { %v8223_v62 = vmul.f32 0.020408163, %v281_v58  ;;  %v8225_v63 = vmul.f32 0.020408163, %v278_v59  ;;  %v114_v58 = vld [vmem:[%s17393_s0 + $0x308] sm:$0xff]  ;;  %v113_v59 = vld [vmem:[%s17393_s0 + $0x300] sm:$0xff] }
  0xa6   :  { %v537_v0 = vsel %vm245_vm0, %v114_v58, 0.0  ;;  %v534_v1 = vsel %vm245_vm0, %v113_v59, 0.0  ;;  %v124_v58 = vld [vmem:[%s17393_s0 + $0x358] sm:$0xff]  ;;  %v123_v59 = vld [vmem:[%s17393_s0 + $0x350] sm:$0xff] }
  0xa7   :  { %6642 = vst.msk [vmem:[%s17394_s4 + $0x58] sm:$0xff] %vm6630_vm1, %v8223_v62  ;;  %6641 = vst.msk [vmem:[%s17394_s4 + $0x50] sm:$0xff] %vm6630_vm1, %v8225_v63  ;;  %496 = vadd.xlane.f32.xlu1 %v495_v60  ;;  %493 = vadd.xlane.f32.xlu0 %v492_v61 }
  0xa8   :  { %v287_v2 = vpop.xlane.xlu1 %286  ;;  %v284_v3 = vpop.xlane.xlu0 %283 }
  0xa9   :  { %v8245_v6 = vmul.f32 0.020408163, %v287_v2  ;;  %v8247_v7 = vmul.f32 0.020408163, %v284_v3 }
  0xab   :  { %6644 = vst.msk [vmem:[%s17394_s4 + $0x68] sm:$0xff] %vm6630_vm1, %v8245_v6  ;;  %6643 = vst.msk [vmem:[%s17394_s4 + $0x60] sm:$0xff] %vm6630_vm1, %v8247_v7  ;;  %502 = vadd.xlane.f32.xlu1 %v501_v4  ;;  %499 = vadd.xlane.f32.xlu0 %v498_v5  ;;  %v116_v4 = vld [vmem:[%s17393_s0 + $0x318] sm:$0xff]  ;;  %v115_v5 = vld [vmem:[%s17393_s0 + $0x310] sm:$0xff] }
  0xac   :  { %v293_v10 = vpop.xlane.xlu1 %292  ;;  %v290_v11 = vpop.xlane.xlu0 %289 }
  0xad   :  { %v8267_v14 = vmul.f32 0.020408163, %v293_v10  ;;  %v8269_v15 = vmul.f32 0.020408163, %v290_v11  ;;  %v543_v10 = vsel %vm245_vm0, %v116_v4, 0.0  ;;  %v540_v11 = vsel %vm245_vm0, %v115_v5, 0.0 }
  0xaf   :  { %6646 = vst.msk [vmem:[%s17394_s4 + $0x78] sm:$0xff] %vm6630_vm1, %v8267_v14  ;;  %6645 = vst.msk [vmem:[%s17394_s4 + $0x70] sm:$0xff] %vm6630_vm1, %v8269_v15  ;;  %508 = vadd.xlane.f32.xlu1 %v507_v12  ;;  %505 = vadd.xlane.f32.xlu0 %v504_v13 }
  0xb0   :  { %v299_v18 = vpop.xlane.xlu1 %298  ;;  %v296_v19 = vpop.xlane.xlu0 %295 }
  0xb1   :  { %v8289_v24 = vmul.f32 0.020408163, %v299_v18  ;;  %v8291_v25 = vmul.f32 0.020408163, %v296_v19 }
  0xb3   :  { %6648 = vst.msk [vmem:[%s17394_s4 + $0x88] sm:$0xff] %vm6630_vm1, %v8289_v24  ;;  %6647 = vst.msk [vmem:[%s17394_s4 + $0x80] sm:$0xff] %vm6630_vm1, %v8291_v25  ;;  %514 = vadd.xlane.f32.xlu1 %v513_v20  ;;  %511 = vadd.xlane.f32.xlu0 %v510_v21  ;;  %v549_v20 = vsel %vm245_vm0, %v118_v16, 0.0  ;;  %v546_v21 = vsel %vm245_vm0, %v117_v17, 0.0 }
  0xb4   :  { %v305_v28 = vpop.xlane.xlu1 %304  ;;  %v302_v29 = vpop.xlane.xlu0 %301 }
  0xb5   :  { %v8311_v34 = vmul.f32 0.020408163, %v305_v28  ;;  %v8313_v35 = vmul.f32 0.020408163, %v302_v29  ;;  %v120_v28 = vld [vmem:[%s17393_s0 + $0x338] sm:$0xff]  ;;  %v119_v29 = vld [vmem:[%s17393_s0 + $0x330] sm:$0xff] }
  0xb6   :  { %v555_v36 = vsel %vm245_vm0, %v120_v28, 0.0  ;;  %v552_v37 = vsel %vm245_vm0, %v119_v29, 0.0 }
  0xb7   :  { %6650 = vst.msk [vmem:[%s17394_s4 + $0x98] sm:$0xff] %vm6630_vm1, %v8311_v34  ;;  %6649 = vst.msk [vmem:[%s17394_s4 + $0x90] sm:$0xff] %vm6630_vm1, %v8313_v35  ;;  %520 = vadd.xlane.f32.xlu1 %v519_v32  ;;  %517 = vadd.xlane.f32.xlu0 %v516_v33 }
  0xb8   :  { %v311_v40 = vpop.xlane.xlu1 %310  ;;  %v308_v41 = vpop.xlane.xlu0 %307 }
  0xb9   :  { %v8333_v44 = vmul.f32 0.020408163, %v311_v40  ;;  %v8335_v45 = vmul.f32 0.020408163, %v308_v41 }
  0xbb   :  { %6652 = vst.msk [vmem:[%s17394_s4 + $0xa8] sm:$0xff] %vm6630_vm1, %v8333_v44  ;;  %6651 = vst.msk [vmem:[%s17394_s4 + $0xa0] sm:$0xff] %vm6630_vm1, %v8335_v45  ;;  %526 = vadd.xlane.f32.xlu1 %v525_v42  ;;  %523 = vadd.xlane.f32.xlu0 %v522_v43  ;;  %v122_v42 = vld [vmem:[%s17393_s0 + $0x348] sm:$0xff]  ;;  %v121_v43 = vld [vmem:[%s17393_s0 + $0x340] sm:$0xff] }
  0xbc   :  { %v317_v50 = vpop.xlane.xlu1 %316  ;;  %v314_v51 = vpop.xlane.xlu0 %313 }
  0xbd   :  { %v8355_v56 = vmul.f32 0.020408163, %v317_v50  ;;  %v8357_v57 = vmul.f32 0.020408163, %v314_v51  ;;  %v561_v50 = vsel %vm245_vm0, %v122_v42, 0.0  ;;  %v558_v51 = vsel %vm245_vm0, %v121_v43, 0.0 }
  0xbe   :  { %v130_v42 = vld [vmem:[%s17393_s0 + $0x388] sm:$0xff]  ;;  %v129_v43 = vld [vmem:[%s17393_s0 + $0x380] sm:$0xff] }
  0xbf   :  { %6654 = vst.msk [vmem:[%s17394_s4 + $0xb8] sm:$0xff] %vm6630_vm1, %v8355_v56  ;;  %6653 = vst.msk [vmem:[%s17394_s4 + $0xb0] sm:$0xff] %vm6630_vm1, %v8357_v57  ;;  %532 = vadd.xlane.f32.xlu1 %v531_v52  ;;  %529 = vadd.xlane.f32.xlu0 %v528_v53 }
  0xc0   :  { %v323_v60 = vpop.xlane.xlu1 %322  ;;  %v320_v61 = vpop.xlane.xlu0 %319 }
  0xc1   :  { %v8377_v2 = vmul.f32 0.020408163, %v323_v60  ;;  %v8379_v3 = vmul.f32 0.020408163, %v320_v61 }
  0xc3   :  { %6656 = vst.msk [vmem:[%s17394_s4 + $0xc8] sm:$0xff] %vm6630_vm1, %v8377_v2  ;;  %6655 = vst.msk [vmem:[%s17394_s4 + $0xc0] sm:$0xff] %vm6630_vm1, %v8379_v3  ;;  %538 = vadd.xlane.f32.xlu1 %v537_v0  ;;  %535 = vadd.xlane.f32.xlu0 %v534_v1  ;;  %v567_v0 = vsel %vm245_vm0, %v124_v58, 0.0  ;;  %v564_v1 = vsel %vm245_vm0, %v123_v59, 0.0 }
  0xc4   :  { %v329_v8 = vpop.xlane.xlu1 %328  ;;  %v326_v9 = vpop.xlane.xlu0 %325 }
  0xc5   :  { %v8399_v12 = vmul.f32 0.020408163, %v329_v8  ;;  %v8401_v13 = vmul.f32 0.020408163, %v326_v9  ;;  %v126_v8 = vld [vmem:[%s17393_s0 + $0x368] sm:$0xff]  ;;  %v125_v9 = vld [vmem:[%s17393_s0 + $0x360] sm:$0xff] }
  0xc6   :  { %v573_v16 = vsel %vm245_vm0, %v126_v8, 0.0  ;;  %v570_v17 = vsel %vm245_vm0, %v125_v9, 0.0 }
  0xc7   :  { %6658 = vst.msk [vmem:[%s17394_s4 + $0xd8] sm:$0xff] %vm6630_vm1, %v8399_v12  ;;  %6657 = vst.msk [vmem:[%s17394_s4 + $0xd0] sm:$0xff] %vm6630_vm1, %v8401_v13  ;;  %544 = vadd.xlane.f32.xlu1 %v543_v10  ;;  %541 = vadd.xlane.f32.xlu0 %v540_v11 }
  0xc8   :  { %v335_v18 = vpop.xlane.xlu1 %334  ;;  %v332_v19 = vpop.xlane.xlu0 %331 }
  0xc9   :  { %v8421_v26 = vmul.f32 0.020408163, %v335_v18  ;;  %v8423_v27 = vmul.f32 0.020408163, %v332_v19 }
  0xcb   :  { %6660 = vst.msk [vmem:[%s17394_s4 + $0xe8] sm:$0xff] %vm6630_vm1, %v8421_v26  ;;  %6659 = vst.msk [vmem:[%s17394_s4 + $0xe0] sm:$0xff] %vm6630_vm1, %v8423_v27  ;;  %550 = vadd.xlane.f32.xlu1 %v549_v20  ;;  %547 = vadd.xlane.f32.xlu0 %v546_v21  ;;  %v128_v20 = vld [vmem:[%s17393_s0 + $0x378] sm:$0xff]  ;;  %v127_v21 = vld [vmem:[%s17393_s0 + $0x370] sm:$0xff] }
  0xcc   :  { %v341_v32 = vpop.xlane.xlu1 %340  ;;  %v338_v33 = vpop.xlane.xlu0 %337 }
  0xcd   :  { %v8443_v40 = vmul.f32 0.020408163, %v341_v32  ;;  %v8445_v41 = vmul.f32 0.020408163, %v338_v33  ;;  %v579_v32 = vsel %vm245_vm0, %v128_v20, 0.0  ;;  %v576_v33 = vsel %vm245_vm0, %v127_v21, 0.0 }
  0xcf   :  { %6662 = vst.msk [vmem:[%s17394_s4 + $0xf8] sm:$0xff] %vm6630_vm1, %v8443_v40  ;;  %6661 = vst.msk [vmem:[%s17394_s4 + $0xf0] sm:$0xff] %vm6630_vm1, %v8445_v41  ;;  %556 = vadd.xlane.f32.xlu1 %v555_v36  ;;  %553 = vadd.xlane.f32.xlu0 %v552_v37 }
  0xd0   :  { %v347_v48 = vpop.xlane.xlu1 %346  ;;  %v344_v49 = vpop.xlane.xlu0 %343 }
  0xd1   :  { %v8465_v52 = vmul.f32 0.020408163, %v347_v48  ;;  %v8467_v53 = vmul.f32 0.020408163, %v344_v49 }
  0xd3   :  { %6664 = vst.msk [vmem:[%s17394_s4 + $0x108] sm:$0xff] %vm6630_vm1, %v8465_v52  ;;  %6663 = vst.msk [vmem:[%s17394_s4 + $0x100] sm:$0xff] %vm6630_vm1, %v8467_v53  ;;  %562 = vadd.xlane.f32.xlu1 %v561_v50  ;;  %559 = vadd.xlane.f32.xlu0 %v558_v51  ;;  %v585_v50 = vsel %vm245_vm0, %v130_v42, 0.0  ;;  %v582_v51 = vsel %vm245_vm0, %v129_v43, 0.0  ;;  %v136_v42 = vld [vmem:[%s17393_s0 + $0x3b8] sm:$0xff]  ;;  %v135_v43 = vld [vmem:[%s17393_s0 + $0x3b0] sm:$0xff] }
  0xd4   :  { %v353_v60 = vpop.xlane.xlu1 %352  ;;  %v350_v61 = vpop.xlane.xlu0 %349 }
  0xd5   :  { %v8487_v4 = vmul.f32 0.020408163, %v353_v60  ;;  %v8489_v5 = vmul.f32 0.020408163, %v350_v61  ;;  %v132_v60 = vld [vmem:[%s17393_s0 + $0x398] sm:$0xff]  ;;  %v131_v61 = vld [vmem:[%s17393_s0 + $0x390] sm:$0xff] }
  0xd6   :  { %v591_v8 = vsel %vm245_vm0, %v132_v60, 0.0  ;;  %v588_v9 = vsel %vm245_vm0, %v131_v61, 0.0 }
  0xd7   :  { %6666 = vst.msk [vmem:[%s17394_s4 + $0x118] sm:$0xff] %vm6630_vm1, %v8487_v4  ;;  %6665 = vst.msk [vmem:[%s17394_s4 + $0x110] sm:$0xff] %vm6630_vm1, %v8489_v5  ;;  %568 = vadd.xlane.f32.xlu1 %v567_v0  ;;  %565 = vadd.xlane.f32.xlu0 %v564_v1 }
  0xd8   :  { %v359_v10 = vpop.xlane.xlu1 %358  ;;  %v356_v11 = vpop.xlane.xlu0 %355 }
  0xd9   :  { %v8509_v18 = vmul.f32 0.020408163, %v359_v10  ;;  %v8511_v19 = vmul.f32 0.020408163, %v356_v11 }
  0xdb   :  { %6668 = vst.msk [vmem:[%s17394_s4 + $0x128] sm:$0xff] %vm6630_vm1, %v8509_v18  ;;  %6667 = vst.msk [vmem:[%s17394_s4 + $0x120] sm:$0xff] %vm6630_vm1, %v8511_v19  ;;  %574 = vadd.xlane.f32.xlu1 %v573_v16  ;;  %571 = vadd.xlane.f32.xlu0 %v570_v17  ;;  %v134_v16 = vld [vmem:[%s17393_s0 + $0x3a8] sm:$0xff]  ;;  %v133_v17 = vld [vmem:[%s17393_s0 + $0x3a0] sm:$0xff] }
  0xdc   :  { %v365_v28 = vpop.xlane.xlu1 %364  ;;  %v362_v29 = vpop.xlane.xlu0 %361 }
  0xdd   :  { %v8531_v36 = vmul.f32 0.020408163, %v365_v28  ;;  %v8533_v37 = vmul.f32 0.020408163, %v362_v29  ;;  %v597_v28 = vsel %vm245_vm0, %v134_v16, 0.0  ;;  %v594_v29 = vsel %vm245_vm0, %v133_v17, 0.0 }
  0xdf   :  { %6670 = vst.msk [vmem:[%s17394_s4 + $0x138] sm:$0xff] %vm6630_vm1, %v8531_v36  ;;  %6669 = vst.msk [vmem:[%s17394_s4 + $0x130] sm:$0xff] %vm6630_vm1, %v8533_v37  ;;  %580 = vadd.xlane.f32.xlu1 %v579_v32  ;;  %577 = vadd.xlane.f32.xlu0 %v576_v33 }
  0xe0   :  { %v371_v48 = vpop.xlane.xlu1 %370  ;;  %v368_v49 = vpop.xlane.xlu0 %367 }
  0xe1   :  { %v8553_v58 = vmul.f32 0.020408163, %v371_v48  ;;  %v8555_v59 = vmul.f32 0.020408163, %v368_v49 }
  0xe3   :  { %6672 = vst.msk [vmem:[%s17394_s4 + $0x148] sm:$0xff] %vm6630_vm1, %v8553_v58  ;;  %6671 = vst.msk [vmem:[%s17394_s4 + $0x140] sm:$0xff] %vm6630_vm1, %v8555_v59  ;;  %586 = vadd.xlane.f32.xlu1 %v585_v50  ;;  %583 = vadd.xlane.f32.xlu0 %v582_v51  ;;  %v603_v50 = vsel %vm245_vm0, %v136_v42, 0.0  ;;  %v600_v51 = vsel %vm245_vm0, %v135_v43, 0.0 }
  0xe4   :  { %v377_v0 = vpop.xlane.xlu1 %376  ;;  %v374_v1 = vpop.xlane.xlu0 %373 }
  0xe5   :  { %v8575_v10 = vmul.f32 0.020408163, %v377_v0  ;;  %v8577_v11 = vmul.f32 0.020408163, %v374_v1  ;;  %v138_v0 = vld [vmem:[%s17393_s0 + $0x3c8] sm:$0xff]  ;;  %v137_v1 = vld [vmem:[%s17393_s0 + $0x3c0] sm:$0xff] }
  0xe6   :  { %v609_v16 = vsel %vm245_vm0, %v138_v0, 0.0  ;;  %v606_v17 = vsel %vm245_vm0, %v137_v1, 0.0  ;;  %v142_v0 = vld [vmem:[%s17393_s0 + $0x3e8] sm:$0xff]  ;;  %v141_v1 = vld [vmem:[%s17393_s0 + $0x3e0] sm:$0xff] }
  0xe7   :  { %6674 = vst.msk [vmem:[%s17394_s4 + $0x158] sm:$0xff] %vm6630_vm1, %v8575_v10  ;;  %6673 = vst.msk [vmem:[%s17394_s4 + $0x150] sm:$0xff] %vm6630_vm1, %v8577_v11  ;;  %592 = vadd.xlane.f32.xlu1 %v591_v8  ;;  %589 = vadd.xlane.f32.xlu0 %v588_v9 }
  0xe8   :  { %v383_v20 = vpop.xlane.xlu1 %382  ;;  %v380_v21 = vpop.xlane.xlu0 %379 }
  0xe9   :  { %v8597_v32 = vmul.f32 0.020408163, %v383_v20  ;;  %v8599_v33 = vmul.f32 0.020408163, %v380_v21 }
  0xeb   :  { %6676 = vst.msk [vmem:[%s17394_s4 + $0x168] sm:$0xff] %vm6630_vm1, %v8597_v32  ;;  %6675 = vst.msk [vmem:[%s17394_s4 + $0x160] sm:$0xff] %vm6630_vm1, %v8599_v33  ;;  %598 = vadd.xlane.f32.xlu1 %v597_v28  ;;  %595 = vadd.xlane.f32.xlu0 %v594_v29  ;;  %v140_v28 = vld [vmem:[%s17393_s0 + $0x3d8] sm:$0xff]  ;;  %v139_v29 = vld [vmem:[%s17393_s0 + $0x3d0] sm:$0xff] }
  0xec   :  { %v389_v48 = vpop.xlane.xlu1 %388  ;;  %v386_v49 = vpop.xlane.xlu0 %385 }
  0xed   :  { %v8619_v60 = vmul.f32 0.020408163, %v389_v48  ;;  %v8621_v61 = vmul.f32 0.020408163, %v386_v49  ;;  %v615_v48 = vsel %vm245_vm0, %v140_v28, 0.0  ;;  %v612_v49 = vsel %vm245_vm0, %v139_v29, 0.0 }
  0xef   :  { %6678 = vst.msk [vmem:[%s17394_s4 + $0x178] sm:$0xff] %vm6630_vm1, %v8619_v60  ;;  %6677 = vst.msk [vmem:[%s17394_s4 + $0x170] sm:$0xff] %vm6630_vm1, %v8621_v61  ;;  %604 = vadd.xlane.f32.xlu1 %v603_v50  ;;  %601 = vadd.xlane.f32.xlu0 %v600_v51 }
  0xf0   :  { %v395_v8 = vpop.xlane.xlu1 %394  ;;  %v392_v9 = vpop.xlane.xlu0 %391 }
  0xf1   :  { %v8641_v20 = vmul.f32 0.020408163, %v395_v8  ;;  %v8643_v21 = vmul.f32 0.020408163, %v392_v9 }
  0xf3   :  { %6680 = vst.msk [vmem:[%s17394_s4 + $0x188] sm:$0xff] %vm6630_vm1, %v8641_v20  ;;  %6679 = vst.msk [vmem:[%s17394_s4 + $0x180] sm:$0xff] %vm6630_vm1, %v8643_v21  ;;  %610 = vadd.xlane.f32.xlu1 %v609_v16  ;;  %607 = vadd.xlane.f32.xlu0 %v606_v17  ;;  %v621_v16 = vsel %vm245_vm0, %v142_v0, 0.0  ;;  %v618_v17 = vsel %vm245_vm0, %v141_v1, 0.0 }
  0xf4   :  { %v401_v42 = vpop.xlane.xlu1 %400  ;;  %v398_v43 = vpop.xlane.xlu0 %397 }
  0xf5   :  { %v8663_v50 = vmul.f32 0.020408163, %v401_v42  ;;  %v8665_v51 = vmul.f32 0.020408163, %v398_v43  ;;  %v144_v42 = vld [vmem:[%s17393_s0 + $0x3f8] sm:$0xff]  ;;  %v143_v43 = vld [vmem:[%s17393_s0 + $0x3f0] sm:$0xff] }
  0xf6   :  { %v627_v0 = vsel %vm245_vm0, %v144_v42, 0.0  ;;  %v624_v1 = vsel %vm245_vm0, %v143_v43, 0.0 }
  0xf7   :  { %17936 = vst [vmem:[#allocation2_spill] sm:$0xff] %v8665_v51  ;;  %6682 = vst.msk [vmem:[%s17394_s4 + $0x198] sm:$0xff] %vm6630_vm1, %v8663_v50  ;;  %616 = vadd.xlane.f32.xlu1 %v615_v48  ;;  %613 = vadd.xlane.f32.xlu0 %v612_v49 }
  0xf8   :  { %6681 = vst.msk [vmem:[%s17394_s4 + $0x190] sm:$0xff] %vm6630_vm1, %v8665_v51  ;;  %v407_v8 = vpop.xlane.xlu1 %406  ;;  %v404_v9 = vpop.xlane.xlu0 %403 }
  0xf9   :  { %v8685_v28 = vmul.f32 0.020408163, %v407_v8  ;;  %v8687_v29 = vmul.f32 0.020408163, %v404_v9 }
  0xfb   :  { %17937 = vst [vmem:[#allocation3_spill] sm:$0xff] %v8685_v28  ;;  %17938 = vst [vmem:[#allocation4_spill] sm:$0xff] %v8687_v29  ;;  %622 = vadd.xlane.f32.xlu1 %v621_v16  ;;  %619 = vadd.xlane.f32.xlu0 %v618_v17 }
  0xfc   :  { %6684 = vst.msk [vmem:[%s17394_s4 + $0x1a8] sm:$0xff] %vm6630_vm1, %v8685_v28  ;;  %6683 = vst.msk [vmem:[%s17394_s4 + $0x1a0] sm:$0xff] %vm6630_vm1, %v8687_v29  ;;  %v413_v48 = vpop.xlane.xlu1 %412  ;;  %v410_v49 = vpop.xlane.xlu0 %409  ;;  %v146_v28 = vld [vmem:[%s17393_s0 + $0x408] sm:$0xff]  ;;  %v145_v29 = vld [vmem:[%s17393_s0 + $0x400] sm:$0xff] }
  0xfd   :  { %v8707_v8 = vmul.f32 0.020408163, %v413_v48  ;;  %v8709_v9 = vmul.f32 0.020408163, %v410_v49  ;;  %v633_v42 = vsel %vm245_vm0, %v146_v28, 0.0  ;;  %v630_v43 = vsel %vm245_vm0, %v145_v29, 0.0 }
  0xff   :  { %17939 = vst [vmem:[#allocation5_spill] sm:$0xff] %v8707_v8  ;;  %17940 = vst [vmem:[#allocation6_spill] sm:$0xff] %v8709_v9  ;;  %628 = vadd.xlane.f32.xlu1 %v627_v0  ;;  %625 = vadd.xlane.f32.xlu0 %v624_v1 }
 0x100   :  { %6686 = vst.msk [vmem:[%s17394_s4 + $0x1b8] sm:$0xff] %vm6630_vm1, %v8707_v8  ;;  %6685 = vst.msk [vmem:[%s17394_s4 + $0x1b0] sm:$0xff] %vm6630_vm1, %v8709_v9  ;;  %v419_v16 = vpop.xlane.xlu1 %418  ;;  %v416_v17 = vpop.xlane.xlu0 %415  ;;  %v148_v8 = vld [vmem:[%s17393_s0 + $0x418] sm:$0xff]  ;;  %v147_v9 = vld [vmem:[%s17393_s0 + $0x410] sm:$0xff] }
 0x101   :  { %v8729_v48 = vmul.f32 0.020408163, %v419_v16  ;;  %v8731_v49 = vmul.f32 0.020408163, %v416_v17  ;;  %v639_v0 = vsel %vm245_vm0, %v148_v8, 0.0  ;;  %v636_v1 = vsel %vm245_vm0, %v147_v9, 0.0 }
 0x103   :  { %17941 = vst [vmem:[#allocation7_spill] sm:$0xff] %v8729_v48  ;;  %17942 = vst [vmem:[#allocation8_spill] sm:$0xff] %v8731_v49  ;;  %634 = vadd.xlane.f32.xlu1 %v633_v42  ;;  %631 = vadd.xlane.f32.xlu0 %v630_v43 }
 0x104   :  { %6688 = vst.msk [vmem:[%s17394_s4 + $0x1c8] sm:$0xff] %vm6630_vm1, %v8729_v48  ;;  %6687 = vst.msk [vmem:[%s17394_s4 + $0x1c0] sm:$0xff] %vm6630_vm1, %v8731_v49  ;;  %v425_v28 = vpop.xlane.xlu1 %424  ;;  %v422_v29 = vpop.xlane.xlu0 %421  ;;  %v150_v48 = vld [vmem:[%s17393_s0 + $0x428] sm:$0xff]  ;;  %v149_v49 = vld [vmem:[%s17393_s0 + $0x420] sm:$0xff] }
 0x105   :  { %v8751_v16 = vmul.f32 0.020408163, %v425_v28  ;;  %v8753_v17 = vmul.f32 0.020408163, %v422_v29  ;;  %v645_v42 = vsel %vm245_vm0, %v150_v48, 0.0  ;;  %v642_v43 = vsel %vm245_vm0, %v149_v49, 0.0 }
 0x107   :  { %17943 = vst [vmem:[#allocation9_spill] sm:$0xff] %v8751_v16  ;;  %17944 = vst [vmem:[#allocation10_spill] sm:$0xff] %v8753_v17  ;;  %640 = vadd.xlane.f32.xlu1 %v639_v0  ;;  %637 = vadd.xlane.f32.xlu0 %v636_v1 }
 0x108   :  { %6690 = vst.msk [vmem:[%s17394_s4 + $0x1d8] sm:$0xff] %vm6630_vm1, %v8751_v16  ;;  %6689 = vst.msk [vmem:[%s17394_s4 + $0x1d0] sm:$0xff] %vm6630_vm1, %v8753_v17  ;;  %v431_v8 = vpop.xlane.xlu1 %430  ;;  %v428_v9 = vpop.xlane.xlu0 %427  ;;  %v152_v16 = vld [vmem:[%s17393_s0 + $0x438] sm:$0xff]  ;;  %v151_v17 = vld [vmem:[%s17393_s0 + $0x430] sm:$0xff] }
 0x109   :  { %v8773_v28 = vmul.f32 0.020408163, %v431_v8  ;;  %v8775_v29 = vmul.f32 0.020408163, %v428_v9  ;;  %v651_v0 = vsel %vm245_vm0, %v152_v16, 0.0  ;;  %v648_v1 = vsel %vm245_vm0, %v151_v17, 0.0 }
 0x10b   :  { %17945 = vst [vmem:[#allocation11_spill] sm:$0xff] %v8773_v28  ;;  %17946 = vst [vmem:[#allocation12_spill] sm:$0xff] %v8775_v29  ;;  %646 = vadd.xlane.f32.xlu1 %v645_v42  ;;  %643 = vadd.xlane.f32.xlu0 %v642_v43 }
 0x10c   :  { %6692 = vst.msk [vmem:[%s17394_s4 + $0x1e8] sm:$0xff] %vm6630_vm1, %v8773_v28  ;;  %6691 = vst.msk [vmem:[%s17394_s4 + $0x1e0] sm:$0xff] %vm6630_vm1, %v8775_v29  ;;  %v437_v48 = vpop.xlane.xlu1 %436  ;;  %v434_v49 = vpop.xlane.xlu0 %433  ;;  %v154_v28 = vld [vmem:[%s17393_s0 + $0x448] sm:$0xff]  ;;  %v153_v29 = vld [vmem:[%s17393_s0 + $0x440] sm:$0xff] }
 0x10d   :  { %v8795_v8 = vmul.f32 0.020408163, %v437_v48  ;;  %v8797_v9 = vmul.f32 0.020408163, %v434_v49  ;;  %v657_v42 = vsel %vm245_vm0, %v154_v28, 0.0  ;;  %v654_v43 = vsel %vm245_vm0, %v153_v29, 0.0 }
 0x10f   :  { %17947 = vst [vmem:[#allocation13_spill] sm:$0xff] %v8795_v8  ;;  %17948 = vst [vmem:[#allocation14_spill] sm:$0xff] %v8797_v9  ;;  %652 = vadd.xlane.f32.xlu1 %v651_v0  ;;  %649 = vadd.xlane.f32.xlu0 %v648_v1 }
 0x110   :  { %6694 = vst.msk [vmem:[%s17394_s4 + $0x1f8] sm:$0xff] %vm6630_vm1, %v8795_v8  ;;  %6693 = vst.msk [vmem:[%s17394_s4 + $0x1f0] sm:$0xff] %vm6630_vm1, %v8797_v9  ;;  %v443_v16 = vpop.xlane.xlu1 %442  ;;  %v440_v17 = vpop.xlane.xlu0 %439  ;;  %v156_v8 = vld [vmem:[%s17393_s0 + $0x458] sm:$0xff]  ;;  %v155_v9 = vld [vmem:[%s17393_s0 + $0x450] sm:$0xff] }
 0x111   :  { %v8817_v48 = vmul.f32 0.020408163, %v443_v16  ;;  %v8819_v49 = vmul.f32 0.020408163, %v440_v17  ;;  %v663_v0 = vsel %vm245_vm0, %v156_v8, 0.0  ;;  %v660_v1 = vsel %vm245_vm0, %v155_v9, 0.0 }
 0x113   :  { %17949 = vst [vmem:[#allocation15_spill] sm:$0xff] %v8817_v48  ;;  %17950 = vst [vmem:[#allocation16_spill] sm:$0xff] %v8819_v49  ;;  %658 = vadd.xlane.f32.xlu1 %v657_v42  ;;  %655 = vadd.xlane.f32.xlu0 %v654_v43 }
 0x114   :  { %6696 = vst.msk [vmem:[%s17394_s4 + $0x208] sm:$0xff] %vm6630_vm1, %v8817_v48  ;;  %6695 = vst.msk [vmem:[%s17394_s4 + $0x200] sm:$0xff] %vm6630_vm1, %v8819_v49  ;;  %v449_v28 = vpop.xlane.xlu1 %448  ;;  %v446_v29 = vpop.xlane.xlu0 %445  ;;  %v158_v48 = vld [vmem:[%s17393_s0 + $0x468] sm:$0xff]  ;;  %v157_v49 = vld [vmem:[%s17393_s0 + $0x460] sm:$0xff] }
 0x115   :  { %v8839_v16 = vmul.f32 0.020408163, %v449_v28  ;;  %v8841_v17 = vmul.f32 0.020408163, %v446_v29  ;;  %v669_v42 = vsel %vm245_vm0, %v158_v48, 0.0  ;;  %v666_v43 = vsel %vm245_vm0, %v157_v49, 0.0 }
 0x117   :  { %17951 = vst [vmem:[#allocation17_spill] sm:$0xff] %v8839_v16  ;;  %17952 = vst [vmem:[#allocation18_spill] sm:$0xff] %v8841_v17  ;;  %664 = vadd.xlane.f32.xlu1 %v663_v0  ;;  %661 = vadd.xlane.f32.xlu0 %v660_v1 }
 0x118   :  { %6698 = vst.msk [vmem:[%s17394_s4 + $0x218] sm:$0xff] %vm6630_vm1, %v8839_v16  ;;  %6697 = vst.msk [vmem:[%s17394_s4 + $0x210] sm:$0xff] %vm6630_vm1, %v8841_v17  ;;  %v455_v8 = vpop.xlane.xlu1 %454  ;;  %v452_v9 = vpop.xlane.xlu0 %451  ;;  %v160_v16 = vld [vmem:[%s17393_s0 + $0x478] sm:$0xff]  ;;  %v159_v17 = vld [vmem:[%s17393_s0 + $0x470] sm:$0xff] }
 0x119   :  { %v8861_v28 = vmul.f32 0.020408163, %v455_v8  ;;  %v8863_v29 = vmul.f32 0.020408163, %v452_v9  ;;  %v675_v0 = vsel %vm245_vm0, %v160_v16, 0.0  ;;  %v672_v1 = vsel %vm245_vm0, %v159_v17, 0.0 }
 0x11b   :  { %17953 = vst [vmem:[#allocation19_spill] sm:$0xff] %v8861_v28  ;;  %17954 = vst [vmem:[#allocation20_spill] sm:$0xff] %v8863_v29  ;;  %670 = vadd.xlane.f32.xlu1 %v669_v42  ;;  %667 = vadd.xlane.f32.xlu0 %v666_v43 }
 0x11c   :  { %6700 = vst.msk [vmem:[%s17394_s4 + $0x228] sm:$0xff] %vm6630_vm1, %v8861_v28  ;;  %6699 = vst.msk [vmem:[%s17394_s4 + $0x220] sm:$0xff] %vm6630_vm1, %v8863_v29  ;;  %v461_v48 = vpop.xlane.xlu1 %460  ;;  %v458_v49 = vpop.xlane.xlu0 %457  ;;  %v162_v28 = vld [vmem:[%s17393_s0 + $0x488] sm:$0xff]  ;;  %v161_v29 = vld [vmem:[%s17393_s0 + $0x480] sm:$0xff] }
 0x11d   :  { %v8883_v8 = vmul.f32 0.020408163, %v461_v48  ;;  %v8885_v9 = vmul.f32 0.020408163, %v458_v49  ;;  %v681_v42 = vsel %vm245_vm0, %v162_v28, 0.0  ;;  %v678_v43 = vsel %vm245_vm0, %v161_v29, 0.0 }
 0x11f   :  { %17955 = vst [vmem:[#allocation21_spill] sm:$0xff] %v8883_v8  ;;  %17956 = vst [vmem:[#allocation22_spill] sm:$0xff] %v8885_v9  ;;  %676 = vadd.xlane.f32.xlu1 %v675_v0  ;;  %673 = vadd.xlane.f32.xlu0 %v672_v1 }
 0x120   :  { %6702 = vst.msk [vmem:[%s17394_s4 + $0x238] sm:$0xff] %vm6630_vm1, %v8883_v8  ;;  %6701 = vst.msk [vmem:[%s17394_s4 + $0x230] sm:$0xff] %vm6630_vm1, %v8885_v9  ;;  %v467_v16 = vpop.xlane.xlu1 %466  ;;  %v464_v17 = vpop.xlane.xlu0 %463  ;;  %v164_v8 = vld [vmem:[%s17393_s0 + $0x498] sm:$0xff]  ;;  %v163_v9 = vld [vmem:[%s17393_s0 + $0x490] sm:$0xff] }
 0x121   :  { %v8905_v48 = vmul.f32 0.020408163, %v467_v16  ;;  %v8907_v49 = vmul.f32 0.020408163, %v464_v17  ;;  %v687_v0 = vsel %vm245_vm0, %v164_v8, 0.0  ;;  %v684_v1 = vsel %vm245_vm0, %v163_v9, 0.0 }
 0x123   :  { %17957 = vst [vmem:[#allocation23_spill] sm:$0xff] %v8905_v48  ;;  %17958 = vst [vmem:[#allocation24_spill] sm:$0xff] %v8907_v49  ;;  %682 = vadd.xlane.f32.xlu1 %v681_v42  ;;  %679 = vadd.xlane.f32.xlu0 %v678_v43 }
 0x124   :  { %6704 = vst.msk [vmem:[%s17394_s4 + $0x248] sm:$0xff] %vm6630_vm1, %v8905_v48  ;;  %6703 = vst.msk [vmem:[%s17394_s4 + $0x240] sm:$0xff] %vm6630_vm1, %v8907_v49  ;;  %v473_v28 = vpop.xlane.xlu1 %472  ;;  %v470_v29 = vpop.xlane.xlu0 %469  ;;  %v166_v48 = vld [vmem:[%s17393_s0 + $0x4a8] sm:$0xff]  ;;  %v165_v49 = vld [vmem:[%s17393_s0 + $0x4a0] sm:$0xff] }
 0x125   :  { %v8927_v16 = vmul.f32 0.020408163, %v473_v28  ;;  %v8929_v17 = vmul.f32 0.020408163, %v470_v29  ;;  %v693_v42 = vsel %vm245_vm0, %v166_v48, 0.0  ;;  %v690_v43 = vsel %vm245_vm0, %v165_v49, 0.0 }
 0x127   :  { %17959 = vst [vmem:[#allocation25_spill] sm:$0xff] %v8927_v16  ;;  %17960 = vst [vmem:[#allocation26_spill] sm:$0xff] %v8929_v17  ;;  %688 = vadd.xlane.f32.xlu1 %v687_v0  ;;  %685 = vadd.xlane.f32.xlu0 %v684_v1 }
 0x128   :  { %6706 = vst.msk [vmem:[%s17394_s4 + $0x258] sm:$0xff] %vm6630_vm1, %v8927_v16  ;;  %6705 = vst.msk [vmem:[%s17394_s4 + $0x250] sm:$0xff] %vm6630_vm1, %v8929_v17  ;;  %v479_v8 = vpop.xlane.xlu1 %478  ;;  %v476_v9 = vpop.xlane.xlu0 %475  ;;  %v168_v16 = vld [vmem:[%s17393_s0 + $0x4b8] sm:$0xff]  ;;  %v167_v17 = vld [vmem:[%s17393_s0 + $0x4b0] sm:$0xff] }
 0x129   :  { %v8949_v28 = vmul.f32 0.020408163, %v479_v8  ;;  %v8951_v29 = vmul.f32 0.020408163, %v476_v9  ;;  %v699_v0 = vsel %vm245_vm0, %v168_v16, 0.0  ;;  %v696_v1 = vsel %vm245_vm0, %v167_v17, 0.0 }
 0x12b   :  { %17961 = vst [vmem:[#allocation27_spill] sm:$0xff] %v8949_v28  ;;  %17962 = vst [vmem:[#allocation28_spill] sm:$0xff] %v8951_v29  ;;  %694 = vadd.xlane.f32.xlu1 %v693_v42  ;;  %691 = vadd.xlane.f32.xlu0 %v690_v43 }
 0x12c   :  { %6708 = vst.msk [vmem:[%s17394_s4 + $0x268] sm:$0xff] %vm6630_vm1, %v8949_v28  ;;  %6707 = vst.msk [vmem:[%s17394_s4 + $0x260] sm:$0xff] %vm6630_vm1, %v8951_v29  ;;  %v485_v48 = vpop.xlane.xlu1 %484  ;;  %v482_v49 = vpop.xlane.xlu0 %481  ;;  %v170_v28 = vld [vmem:[%s17393_s0 + $0x4c8] sm:$0xff]  ;;  %v169_v29 = vld [vmem:[%s17393_s0 + $0x4c0] sm:$0xff] }
 0x12d   :  { %v8971_v8 = vmul.f32 0.020408163, %v485_v48  ;;  %v8973_v9 = vmul.f32 0.020408163, %v482_v49  ;;  %v705_v42 = vsel %vm245_vm0, %v170_v28, 0.0  ;;  %v702_v43 = vsel %vm245_vm0, %v169_v29, 0.0 }
 0x12f   :  { %17963 = vst [vmem:[#allocation29_spill] sm:$0xff] %v8971_v8  ;;  %17964 = vst [vmem:[#allocation30_spill] sm:$0xff] %v8973_v9  ;;  %700 = vadd.xlane.f32.xlu1 %v699_v0  ;;  %697 = vadd.xlane.f32.xlu0 %v696_v1 }
 0x130   :  { %6710 = vst.msk [vmem:[%s17394_s4 + $0x278] sm:$0xff] %vm6630_vm1, %v8971_v8  ;;  %6709 = vst.msk [vmem:[%s17394_s4 + $0x270] sm:$0xff] %vm6630_vm1, %v8973_v9  ;;  %v491_v16 = vpop.xlane.xlu1 %490  ;;  %v488_v17 = vpop.xlane.xlu0 %487  ;;  %v172_v8 = vld [vmem:[%s17393_s0 + $0x4d8] sm:$0xff]  ;;  %v171_v9 = vld [vmem:[%s17393_s0 + $0x4d0] sm:$0xff] }
 0x131   :  { %v8993_v48 = vmul.f32 0.020408163, %v491_v16  ;;  %v8995_v49 = vmul.f32 0.020408163, %v488_v17  ;;  %v711_v0 = vsel %vm245_vm0, %v172_v8, 0.0  ;;  %v708_v1 = vsel %vm245_vm0, %v171_v9, 0.0 }
 0x133   :  { %17965 = vst [vmem:[#allocation31_spill] sm:$0xff] %v8993_v48  ;;  %17966 = vst [vmem:[#allocation32_spill] sm:$0xff] %v8995_v49  ;;  %706 = vadd.xlane.f32.xlu1 %v705_v42  ;;  %703 = vadd.xlane.f32.xlu0 %v702_v43 }
 0x134   :  { %6712 = vst.msk [vmem:[%s17394_s4 + $0x288] sm:$0xff] %vm6630_vm1, %v8993_v48  ;;  %6711 = vst.msk [vmem:[%s17394_s4 + $0x280] sm:$0xff] %vm6630_vm1, %v8995_v49  ;;  %v497_v28 = vpop.xlane.xlu1 %496  ;;  %v494_v29 = vpop.xlane.xlu0 %493  ;;  %v174_v48 = vld [vmem:[%s17393_s0 + $0x4e8] sm:$0xff]  ;;  %v173_v49 = vld [vmem:[%s17393_s0 + $0x4e0] sm:$0xff] }
 0x135   :  { %v9015_v16 = vmul.f32 0.020408163, %v497_v28  ;;  %v9017_v17 = vmul.f32 0.020408163, %v494_v29  ;;  %v717_v42 = vsel %vm245_vm0, %v174_v48, 0.0  ;;  %v714_v43 = vsel %vm245_vm0, %v173_v49, 0.0 }
 0x137   :  { %17967 = vst [vmem:[#allocation33_spill] sm:$0xff] %v9015_v16  ;;  %17968 = vst [vmem:[#allocation34_spill] sm:$0xff] %v9017_v17  ;;  %712 = vadd.xlane.f32.xlu1 %v711_v0  ;;  %709 = vadd.xlane.f32.xlu0 %v708_v1 }
 0x138   :  { %6714 = vst.msk [vmem:[%s17394_s4 + $0x298] sm:$0xff] %vm6630_vm1, %v9015_v16  ;;  %6713 = vst.msk [vmem:[%s17394_s4 + $0x290] sm:$0xff] %vm6630_vm1, %v9017_v17  ;;  %v503_v8 = vpop.xlane.xlu1 %502  ;;  %v500_v9 = vpop.xlane.xlu0 %499  ;;  %v176_v16 = vld [vmem:[%s17393_s0 + $0x4f8] sm:$0xff]  ;;  %v175_v17 = vld [vmem:[%s17393_s0 + $0x4f0] sm:$0xff] }
 0x139   :  { %v9037_v28 = vmul.f32 0.020408163, %v503_v8  ;;  %v9039_v29 = vmul.f32 0.020408163, %v500_v9  ;;  %v723_v0 = vsel %vm245_vm0, %v176_v16, 0.0  ;;  %v720_v1 = vsel %vm245_vm0, %v175_v17, 0.0 }
 0x13b   :  { %17969 = vst [vmem:[#allocation35_spill] sm:$0xff] %v9037_v28  ;;  %17970 = vst [vmem:[#allocation36_spill] sm:$0xff] %v9039_v29  ;;  %718 = vadd.xlane.f32.xlu1 %v717_v42  ;;  %715 = vadd.xlane.f32.xlu0 %v714_v43 }
 0x13c   :  { %6716 = vst.msk [vmem:[%s17394_s4 + $0x2a8] sm:$0xff] %vm6630_vm1, %v9037_v28  ;;  %6715 = vst.msk [vmem:[%s17394_s4 + $0x2a0] sm:$0xff] %vm6630_vm1, %v9039_v29  ;;  %v509_v48 = vpop.xlane.xlu1 %508  ;;  %v506_v49 = vpop.xlane.xlu0 %505  ;;  %v178_v28 = vld [vmem:[%s17393_s0 + $0x508] sm:$0xff]  ;;  %v177_v29 = vld [vmem:[%s17393_s0 + $0x500] sm:$0xff] }
 0x13d   :  { %v9059_v8 = vmul.f32 0.020408163, %v509_v48  ;;  %v9061_v9 = vmul.f32 0.020408163, %v506_v49  ;;  %v729_v42 = vsel %vm245_vm0, %v178_v28, 0.0  ;;  %v726_v43 = vsel %vm245_vm0, %v177_v29, 0.0 }
 0x13f   :  { %17971 = vst [vmem:[#allocation37_spill] sm:$0xff] %v9059_v8  ;;  %17972 = vst [vmem:[#allocation38_spill] sm:$0xff] %v9061_v9  ;;  %724 = vadd.xlane.f32.xlu1 %v723_v0  ;;  %721 = vadd.xlane.f32.xlu0 %v720_v1 }
 0x140   :  { %6718 = vst.msk [vmem:[%s17394_s4 + $0x2b8] sm:$0xff] %vm6630_vm1, %v9059_v8  ;;  %6717 = vst.msk [vmem:[%s17394_s4 + $0x2b0] sm:$0xff] %vm6630_vm1, %v9061_v9  ;;  %v515_v16 = vpop.xlane.xlu1 %514  ;;  %v512_v17 = vpop.xlane.xlu0 %511  ;;  %v180_v8 = vld [vmem:[%s17393_s0 + $0x518] sm:$0xff]  ;;  %v179_v9 = vld [vmem:[%s17393_s0 + $0x510] sm:$0xff] }
 0x141   :  { %v9081_v48 = vmul.f32 0.020408163, %v515_v16  ;;  %v9083_v49 = vmul.f32 0.020408163, %v512_v17  ;;  %v735_v0 = vsel %vm245_vm0, %v180_v8, 0.0  ;;  %v732_v1 = vsel %vm245_vm0, %v179_v9, 0.0 }
 0x143   :  { %17973 = vst [vmem:[#allocation39_spill] sm:$0xff] %v9081_v48  ;;  %17974 = vst [vmem:[#allocation40_spill] sm:$0xff] %v9083_v49  ;;  %730 = vadd.xlane.f32.xlu1 %v729_v42  ;;  %727 = vadd.xlane.f32.xlu0 %v726_v43 }
 0x144   :  { %6720 = vst.msk [vmem:[%s17394_s4 + $0x2c8] sm:$0xff] %vm6630_vm1, %v9081_v48  ;;  %6719 = vst.msk [vmem:[%s17394_s4 + $0x2c0] sm:$0xff] %vm6630_vm1, %v9083_v49  ;;  %v521_v28 = vpop.xlane.xlu1 %520  ;;  %v518_v29 = vpop.xlane.xlu0 %517  ;;  %v182_v48 = vld [vmem:[%s17393_s0 + $0x528] sm:$0xff]  ;;  %v181_v49 = vld [vmem:[%s17393_s0 + $0x520] sm:$0xff] }
 0x145   :  { %v9103_v16 = vmul.f32 0.020408163, %v521_v28  ;;  %v9105_v17 = vmul.f32 0.020408163, %v518_v29  ;;  %v741_v42 = vsel %vm245_vm0, %v182_v48, 0.0  ;;  %v738_v43 = vsel %vm245_vm0, %v181_v49, 0.0 }
 0x147   :  { %17975 = vst [vmem:[#allocation41_spill] sm:$0xff] %v9103_v16  ;;  %17976 = vst [vmem:[#allocation42_spill] sm:$0xff] %v9105_v17  ;;  %736 = vadd.xlane.f32.xlu1 %v735_v0  ;;  %733 = vadd.xlane.f32.xlu0 %v732_v1 }
 0x148   :  { %6722 = vst.msk [vmem:[%s17394_s4 + $0x2d8] sm:$0xff] %vm6630_vm1, %v9103_v16  ;;  %6721 = vst.msk [vmem:[%s17394_s4 + $0x2d0] sm:$0xff] %vm6630_vm1, %v9105_v17  ;;  %v527_v8 = vpop.xlane.xlu1 %526  ;;  %v524_v9 = vpop.xlane.xlu0 %523  ;;  %v184_v16 = vld [vmem:[%s17393_s0 + $0x538] sm:$0xff]  ;;  %v183_v17 = vld [vmem:[%s17393_s0 + $0x530] sm:$0xff] }
 0x149   :  { %v9125_v28 = vmul.f32 0.020408163, %v527_v8  ;;  %v9127_v29 = vmul.f32 0.020408163, %v524_v9  ;;  %v747_v0 = vsel %vm245_vm0, %v184_v16, 0.0  ;;  %v744_v1 = vsel %vm245_vm0, %v183_v17, 0.0 }
 0x14b   :  { %17977 = vst [vmem:[#allocation43_spill] sm:$0xff] %v9125_v28  ;;  %17978 = vst [vmem:[#allocation44_spill] sm:$0xff] %v9127_v29  ;;  %742 = vadd.xlane.f32.xlu1 %v741_v42  ;;  %739 = vadd.xlane.f32.xlu0 %v738_v43 }
 0x14c   :  { %6724 = vst.msk [vmem:[%s17394_s4 + $0x2e8] sm:$0xff] %vm6630_vm1, %v9125_v28  ;;  %6723 = vst.msk [vmem:[%s17394_s4 + $0x2e0] sm:$0xff] %vm6630_vm1, %v9127_v29  ;;  %v533_v48 = vpop.xlane.xlu1 %532  ;;  %v530_v49 = vpop.xlane.xlu0 %529  ;;  %v186_v28 = vld [vmem:[%s17393_s0 + $0x548] sm:$0xff]  ;;  %v185_v29 = vld [vmem:[%s17393_s0 + $0x540] sm:$0xff] }
 0x14d   :  { %v9147_v8 = vmul.f32 0.020408163, %v533_v48  ;;  %v9149_v9 = vmul.f32 0.020408163, %v530_v49  ;;  %v753_v42 = vsel %vm245_vm0, %v186_v28, 0.0  ;;  %v750_v43 = vsel %vm245_vm0, %v185_v29, 0.0 }
 0x14f   :  { %17979 = vst [vmem:[#allocation45_spill] sm:$0xff] %v9147_v8  ;;  %17980 = vst [vmem:[#allocation46_spill] sm:$0xff] %v9149_v9  ;;  %748 = vadd.xlane.f32.xlu1 %v747_v0  ;;  %745 = vadd.xlane.f32.xlu0 %v744_v1 }
 0x150   :  { %6726 = vst.msk [vmem:[%s17394_s4 + $0x2f8] sm:$0xff] %vm6630_vm1, %v9147_v8  ;;  %6725 = vst.msk [vmem:[%s17394_s4 + $0x2f0] sm:$0xff] %vm6630_vm1, %v9149_v9  ;;  %v539_v16 = vpop.xlane.xlu1 %538  ;;  %v536_v17 = vpop.xlane.xlu0 %535  ;;  %v188_v8 = vld [vmem:[%s17393_s0 + $0x558] sm:$0xff]  ;;  %v187_v9 = vld [vmem:[%s17393_s0 + $0x550] sm:$0xff] }
 0x151   :  { %v9169_v48 = vmul.f32 0.020408163, %v539_v16  ;;  %v9171_v49 = vmul.f32 0.020408163, %v536_v17  ;;  %v759_v0 = vsel %vm245_vm0, %v188_v8, 0.0  ;;  %v756_v1 = vsel %vm245_vm0, %v187_v9, 0.0 }
 0x153   :  { %17981 = vst [vmem:[#allocation47_spill] sm:$0xff] %v9169_v48  ;;  %17982 = vst [vmem:[#allocation48_spill] sm:$0xff] %v9171_v49  ;;  %754 = vadd.xlane.f32.xlu1 %v753_v42  ;;  %751 = vadd.xlane.f32.xlu0 %v750_v43 }
 0x154   :  { %6728 = vst.msk [vmem:[%s17394_s4 + $0x308] sm:$0xff] %vm6630_vm1, %v9169_v48  ;;  %6727 = vst.msk [vmem:[%s17394_s4 + $0x300] sm:$0xff] %vm6630_vm1, %v9171_v49  ;;  %v545_v28 = vpop.xlane.xlu1 %544  ;;  %v542_v29 = vpop.xlane.xlu0 %541  ;;  %v190_v48 = vld [vmem:[%s17393_s0 + $0x568] sm:$0xff]  ;;  %v189_v49 = vld [vmem:[%s17393_s0 + $0x560] sm:$0xff] }
 0x155   :  { %v9191_v16 = vmul.f32 0.020408163, %v545_v28  ;;  %v9193_v17 = vmul.f32 0.020408163, %v542_v29  ;;  %v765_v42 = vsel %vm245_vm0, %v190_v48, 0.0  ;;  %v762_v43 = vsel %vm245_vm0, %v189_v49, 0.0 }
 0x157   :  { %17983 = vst [vmem:[#allocation49_spill] sm:$0xff] %v9191_v16  ;;  %17984 = vst [vmem:[#allocation50_spill] sm:$0xff] %v9193_v17  ;;  %760 = vadd.xlane.f32.xlu1 %v759_v0  ;;  %757 = vadd.xlane.f32.xlu0 %v756_v1 }
 0x158   :  { %6730 = vst.msk [vmem:[%s17394_s4 + $0x318] sm:$0xff] %vm6630_vm1, %v9191_v16  ;;  %6729 = vst.msk [vmem:[%s17394_s4 + $0x310] sm:$0xff] %vm6630_vm1, %v9193_v17  ;;  %v551_v8 = vpop.xlane.xlu1 %550  ;;  %v548_v9 = vpop.xlane.xlu0 %547  ;;  %v192_v16 = vld [vmem:[%s17393_s0 + $0x578] sm:$0xff]  ;;  %v191_v17 = vld [vmem:[%s17393_s0 + $0x570] sm:$0xff] }
 0x159   :  { %v9213_v28 = vmul.f32 0.020408163, %v551_v8  ;;  %v9215_v29 = vmul.f32 0.020408163, %v548_v9  ;;  %v771_v0 = vsel %vm245_vm0, %v192_v16, 0.0  ;;  %v768_v1 = vsel %vm245_vm0, %v191_v17, 0.0 }
 0x15b   :  { %17985 = vst [vmem:[#allocation51_spill] sm:$0xff] %v9213_v28  ;;  %17986 = vst [vmem:[#allocation52_spill] sm:$0xff] %v9215_v29  ;;  %766 = vadd.xlane.f32.xlu1 %v765_v42  ;;  %763 = vadd.xlane.f32.xlu0 %v762_v43 }
 0x15c   :  { %6732 = vst.msk [vmem:[%s17394_s4 + $0x328] sm:$0xff] %vm6630_vm1, %v9213_v28  ;;  %6731 = vst.msk [vmem:[%s17394_s4 + $0x320] sm:$0xff] %vm6630_vm1, %v9215_v29  ;;  %v557_v48 = vpop.xlane.xlu1 %556  ;;  %v554_v49 = vpop.xlane.xlu0 %553  ;;  %v194_v28 = vld [vmem:[%s17393_s0 + $0x588] sm:$0xff]  ;;  %v193_v29 = vld [vmem:[%s17393_s0 + $0x580] sm:$0xff] }
 0x15d   :  { %v9235_v8 = vmul.f32 0.020408163, %v557_v48  ;;  %v9237_v9 = vmul.f32 0.020408163, %v554_v49  ;;  %v777_v42 = vsel %vm245_vm0, %v194_v28, 0.0  ;;  %v774_v43 = vsel %vm245_vm0, %v193_v29, 0.0 }
 0x15f   :  { %17987 = vst [vmem:[#allocation53_spill] sm:$0xff] %v9235_v8  ;;  %17988 = vst [vmem:[#allocation54_spill] sm:$0xff] %v9237_v9  ;;  %772 = vadd.xlane.f32.xlu1 %v771_v0  ;;  %769 = vadd.xlane.f32.xlu0 %v768_v1 }
 0x160   :  { %6734 = vst.msk [vmem:[%s17394_s4 + $0x338] sm:$0xff] %vm6630_vm1, %v9235_v8  ;;  %6733 = vst.msk [vmem:[%s17394_s4 + $0x330] sm:$0xff] %vm6630_vm1, %v9237_v9  ;;  %v563_v16 = vpop.xlane.xlu1 %562  ;;  %v560_v17 = vpop.xlane.xlu0 %559  ;;  %v196_v8 = vld [vmem:[%s17393_s0 + $0x598] sm:$0xff]  ;;  %v195_v9 = vld [vmem:[%s17393_s0 + $0x590] sm:$0xff] }
 0x161   :  { %v9257_v48 = vmul.f32 0.020408163, %v563_v16  ;;  %v9259_v49 = vmul.f32 0.020408163, %v560_v17  ;;  %v783_v0 = vsel %vm245_vm0, %v196_v8, 0.0  ;;  %v780_v1 = vsel %vm245_vm0, %v195_v9, 0.0 }
 0x163   :  { %17989 = vst [vmem:[#allocation55_spill] sm:$0xff] %v9257_v48  ;;  %17990 = vst [vmem:[#allocation56_spill] sm:$0xff] %v9259_v49  ;;  %778 = vadd.xlane.f32.xlu1 %v777_v42  ;;  %775 = vadd.xlane.f32.xlu0 %v774_v43 }
 0x164   :  { %6736 = vst.msk [vmem:[%s17394_s4 + $0x348] sm:$0xff] %vm6630_vm1, %v9257_v48  ;;  %6735 = vst.msk [vmem:[%s17394_s4 + $0x340] sm:$0xff] %vm6630_vm1, %v9259_v49  ;;  %v569_v28 = vpop.xlane.xlu1 %568  ;;  %v566_v29 = vpop.xlane.xlu0 %565  ;;  %v198_v48 = vld [vmem:[%s17393_s0 + $0x5a8] sm:$0xff]  ;;  %v197_v49 = vld [vmem:[%s17393_s0 + $0x5a0] sm:$0xff] }
 0x165   :  { %v9279_v16 = vmul.f32 0.020408163, %v569_v28  ;;  %v9281_v17 = vmul.f32 0.020408163, %v566_v29  ;;  %v789_v42 = vsel %vm245_vm0, %v198_v48, 0.0  ;;  %v786_v43 = vsel %vm245_vm0, %v197_v49, 0.0 }
 0x167   :  { %17991 = vst [vmem:[#allocation57_spill] sm:$0xff] %v9279_v16  ;;  %17992 = vst [vmem:[#allocation58_spill] sm:$0xff] %v9281_v17  ;;  %784 = vadd.xlane.f32.xlu1 %v783_v0  ;;  %781 = vadd.xlane.f32.xlu0 %v780_v1 }
 0x168   :  { %6738 = vst.msk [vmem:[%s17394_s4 + $0x358] sm:$0xff] %vm6630_vm1, %v9279_v16  ;;  %6737 = vst.msk [vmem:[%s17394_s4 + $0x350] sm:$0xff] %vm6630_vm1, %v9281_v17  ;;  %v575_v8 = vpop.xlane.xlu1 %574  ;;  %v572_v9 = vpop.xlane.xlu0 %571  ;;  %v200_v16 = vld [vmem:[%s17393_s0 + $0x5b8] sm:$0xff]  ;;  %v199_v17 = vld [vmem:[%s17393_s0 + $0x5b0] sm:$0xff] }
 0x169   :  { %v9301_v28 = vmul.f32 0.020408163, %v575_v8  ;;  %v9303_v29 = vmul.f32 0.020408163, %v572_v9  ;;  %v795_v0 = vsel %vm245_vm0, %v200_v16, 0.0  ;;  %v792_v1 = vsel %vm245_vm0, %v199_v17, 0.0 }
 0x16b   :  { %17993 = vst [vmem:[#allocation59_spill] sm:$0xff] %v9301_v28  ;;  %17994 = vst [vmem:[#allocation60_spill] sm:$0xff] %v9303_v29  ;;  %790 = vadd.xlane.f32.xlu1 %v789_v42  ;;  %787 = vadd.xlane.f32.xlu0 %v786_v43 }
 0x16c   :  { %6740 = vst.msk [vmem:[%s17394_s4 + $0x368] sm:$0xff] %vm6630_vm1, %v9301_v28  ;;  %6739 = vst.msk [vmem:[%s17394_s4 + $0x360] sm:$0xff] %vm6630_vm1, %v9303_v29  ;;  %v581_v48 = vpop.xlane.xlu1 %580  ;;  %v578_v49 = vpop.xlane.xlu0 %577  ;;  %v202_v28 = vld [vmem:[%s17393_s0 + $0x5c8] sm:$0xff]  ;;  %v201_v29 = vld [vmem:[%s17393_s0 + $0x5c0] sm:$0xff] }
 0x16d   :  { %v9323_v8 = vmul.f32 0.020408163, %v581_v48  ;;  %v9325_v9 = vmul.f32 0.020408163, %v578_v49  ;;  %v801_v42 = vsel %vm245_vm0, %v202_v28, 0.0  ;;  %v798_v43 = vsel %vm245_vm0, %v201_v29, 0.0 }
 0x16f   :  { %17995 = vst [vmem:[#allocation61_spill] sm:$0xff] %v9323_v8  ;;  %17996 = vst [vmem:[#allocation62_spill] sm:$0xff] %v9325_v9  ;;  %796 = vadd.xlane.f32.xlu1 %v795_v0  ;;  %793 = vadd.xlane.f32.xlu0 %v792_v1 }
 0x170   :  { %6742 = vst.msk [vmem:[%s17394_s4 + $0x378] sm:$0xff] %vm6630_vm1, %v9323_v8  ;;  %6741 = vst.msk [vmem:[%s17394_s4 + $0x370] sm:$0xff] %vm6630_vm1, %v9325_v9  ;;  %v587_v16 = vpop.xlane.xlu1 %586  ;;  %v584_v17 = vpop.xlane.xlu0 %583  ;;  %v204_v8 = vld [vmem:[%s17393_s0 + $0x5d8] sm:$0xff]  ;;  %v203_v9 = vld [vmem:[%s17393_s0 + $0x5d0] sm:$0xff] }
 0x171   :  { %v9345_v48 = vmul.f32 0.020408163, %v587_v16  ;;  %v9347_v49 = vmul.f32 0.020408163, %v584_v17  ;;  %v807_v0 = vsel %vm245_vm0, %v204_v8, 0.0  ;;  %v804_v1 = vsel %vm245_vm0, %v203_v9, 0.0 }
 0x173   :  { %17997 = vst [vmem:[#allocation63_spill] sm:$0xff] %v9345_v48  ;;  %17998 = vst [vmem:[#allocation64_spill] sm:$0xff] %v9347_v49  ;;  %802 = vadd.xlane.f32.xlu1 %v801_v42  ;;  %799 = vadd.xlane.f32.xlu0 %v798_v43 }
 0x174   :  { %6744 = vst.msk [vmem:[%s17394_s4 + $0x388] sm:$0xff] %vm6630_vm1, %v9345_v48  ;;  %6743 = vst.msk [vmem:[%s17394_s4 + $0x380] sm:$0xff] %vm6630_vm1, %v9347_v49  ;;  %v593_v28 = vpop.xlane.xlu1 %592  ;;  %v590_v29 = vpop.xlane.xlu0 %589  ;;  %v206_v48 = vld [vmem:[%s17393_s0 + $0x5e8] sm:$0xff]  ;;  %v205_v49 = vld [vmem:[%s17393_s0 + $0x5e0] sm:$0xff] }
 0x175   :  { %v9367_v16 = vmul.f32 0.020408163, %v593_v28  ;;  %v9369_v17 = vmul.f32 0.020408163, %v590_v29  ;;  %v813_v42 = vsel %vm245_vm0, %v206_v48, 0.0  ;;  %v810_v43 = vsel %vm245_vm0, %v205_v49, 0.0 }
 0x177   :  { %17999 = vst [vmem:[#allocation65_spill] sm:$0xff] %v9367_v16  ;;  %18000 = vst [vmem:[#allocation66_spill] sm:$0xff] %v9369_v17  ;;  %808 = vadd.xlane.f32.xlu1 %v807_v0  ;;  %805 = vadd.xlane.f32.xlu0 %v804_v1 }
 0x178   :  { %6746 = vst.msk [vmem:[%s17394_s4 + $0x398] sm:$0xff] %vm6630_vm1, %v9367_v16  ;;  %6745 = vst.msk [vmem:[%s17394_s4 + $0x390] sm:$0xff] %vm6630_vm1, %v9369_v17  ;;  %v599_v8 = vpop.xlane.xlu1 %598  ;;  %v596_v9 = vpop.xlane.xlu0 %595  ;;  %v208_v16 = vld [vmem:[%s17393_s0 + $0x5f8] sm:$0xff]  ;;  %v207_v17 = vld [vmem:[%s17393_s0 + $0x5f0] sm:$0xff] }
 0x179   :  { %v9389_v28 = vmul.f32 0.020408163, %v599_v8  ;;  %v9391_v29 = vmul.f32 0.020408163, %v596_v9  ;;  %v819_v0 = vsel %vm245_vm0, %v208_v16, 0.0  ;;  %v816_v1 = vsel %vm245_vm0, %v207_v17, 0.0 }
 0x17b   :  { %18001 = vst [vmem:[#allocation67_spill] sm:$0xff] %v9389_v28  ;;  %18002 = vst [vmem:[#allocation68_spill] sm:$0xff] %v9391_v29  ;;  %814 = vadd.xlane.f32.xlu1 %v813_v42  ;;  %811 = vadd.xlane.f32.xlu0 %v810_v43 }
 0x17c   :  { %6748 = vst.msk [vmem:[%s17394_s4 + $0x3a8] sm:$0xff] %vm6630_vm1, %v9389_v28  ;;  %6747 = vst.msk [vmem:[%s17394_s4 + $0x3a0] sm:$0xff] %vm6630_vm1, %v9391_v29  ;;  %v605_v48 = vpop.xlane.xlu1 %604  ;;  %v602_v49 = vpop.xlane.xlu0 %601  ;;  %v210_v28 = vld [vmem:[%s17393_s0 + $0x608] sm:$0xff]  ;;  %v209_v29 = vld [vmem:[%s17393_s0 + $0x600] sm:$0xff] }
 0x17d   :  { %v9411_v8 = vmul.f32 0.020408163, %v605_v48  ;;  %v9413_v9 = vmul.f32 0.020408163, %v602_v49  ;;  %v825_v42 = vsel %vm245_vm0, %v210_v28, 0.0  ;;  %v822_v43 = vsel %vm245_vm0, %v209_v29, 0.0 }
 0x17f   :  { %18003 = vst [vmem:[#allocation69_spill] sm:$0xff] %v9411_v8  ;;  %18004 = vst [vmem:[#allocation70_spill] sm:$0xff] %v9413_v9  ;;  %820 = vadd.xlane.f32.xlu1 %v819_v0  ;;  %817 = vadd.xlane.f32.xlu0 %v816_v1 }
 0x180   :  { %6750 = vst.msk [vmem:[%s17394_s4 + $0x3b8] sm:$0xff] %vm6630_vm1, %v9411_v8  ;;  %6749 = vst.msk [vmem:[%s17394_s4 + $0x3b0] sm:$0xff] %vm6630_vm1, %v9413_v9  ;;  %v611_v16 = vpop.xlane.xlu1 %610  ;;  %v608_v17 = vpop.xlane.xlu0 %607  ;;  %v212_v8 = vld [vmem:[%s17393_s0 + $0x618] sm:$0xff]  ;;  %v211_v9 = vld [vmem:[%s17393_s0 + $0x610] sm:$0xff] }
 0x181   :  { %v9433_v48 = vmul.f32 0.020408163, %v611_v16  ;;  %v9435_v49 = vmul.f32 0.020408163, %v608_v17  ;;  %v831_v0 = vsel %vm245_vm0, %v212_v8, 0.0  ;;  %v828_v1 = vsel %vm245_vm0, %v211_v9, 0.0 }
 0x183   :  { %18005 = vst [vmem:[#allocation71_spill] sm:$0xff] %v9433_v48  ;;  %18006 = vst [vmem:[#allocation72_spill] sm:$0xff] %v9435_v49  ;;  %826 = vadd.xlane.f32.xlu1 %v825_v42  ;;  %823 = vadd.xlane.f32.xlu0 %v822_v43 }
 0x184   :  { %6752 = vst.msk [vmem:[%s17394_s4 + $0x3c8] sm:$0xff] %vm6630_vm1, %v9433_v48  ;;  %6751 = vst.msk [vmem:[%s17394_s4 + $0x3c0] sm:$0xff] %vm6630_vm1, %v9435_v49  ;;  %v617_v28 = vpop.xlane.xlu1 %616  ;;  %v614_v29 = vpop.xlane.xlu0 %613  ;;  %v214_v48 = vld [vmem:[%s17393_s0 + $0x628] sm:$0xff]  ;;  %v213_v49 = vld [vmem:[%s17393_s0 + $0x620] sm:$0xff] }
 0x185   :  { %v9455_v16 = vmul.f32 0.020408163, %v617_v28  ;;  %v9457_v17 = vmul.f32 0.020408163, %v614_v29  ;;  %v837_v42 = vsel %vm245_vm0, %v214_v48, 0.0  ;;  %v834_v43 = vsel %vm245_vm0, %v213_v49, 0.0 }
 0x187   :  { %18007 = vst [vmem:[#allocation73_spill] sm:$0xff] %v9455_v16  ;;  %18008 = vst [vmem:[#allocation74_spill] sm:$0xff] %v9457_v17  ;;  %832 = vadd.xlane.f32.xlu1 %v831_v0  ;;  %829 = vadd.xlane.f32.xlu0 %v828_v1 }
 0x188   :  { %6754 = vst.msk [vmem:[%s17394_s4 + $0x3d8] sm:$0xff] %vm6630_vm1, %v9455_v16  ;;  %6753 = vst.msk [vmem:[%s17394_s4 + $0x3d0] sm:$0xff] %vm6630_vm1, %v9457_v17  ;;  %v623_v8 = vpop.xlane.xlu1 %622  ;;  %v620_v9 = vpop.xlane.xlu0 %619  ;;  %v216_v16 = vld [vmem:[%s17393_s0 + $0x638] sm:$0xff]  ;;  %v215_v17 = vld [vmem:[%s17393_s0 + $0x630] sm:$0xff] }
 0x189   :  { %v9477_v28 = vmul.f32 0.020408163, %v623_v8  ;;  %v9479_v29 = vmul.f32 0.020408163, %v620_v9  ;;  %v843_v0 = vsel %vm245_vm0, %v216_v16, 0.0  ;;  %v840_v1 = vsel %vm245_vm0, %v215_v17, 0.0 }
 0x18b   :  { %18009 = vst [vmem:[#allocation75_spill] sm:$0xff] %v9477_v28  ;;  %18010 = vst [vmem:[#allocation76_spill] sm:$0xff] %v9479_v29  ;;  %838 = vadd.xlane.f32.xlu1 %v837_v42  ;;  %835 = vadd.xlane.f32.xlu0 %v834_v43 }
 0x18c   :  { %6756 = vst.msk [vmem:[%s17394_s4 + $0x3e8] sm:$0xff] %vm6630_vm1, %v9477_v28  ;;  %6755 = vst.msk [vmem:[%s17394_s4 + $0x3e0] sm:$0xff] %vm6630_vm1, %v9479_v29  ;;  %v629_v48 = vpop.xlane.xlu1 %628  ;;  %v626_v49 = vpop.xlane.xlu0 %625  ;;  %v218_v28 = vld [vmem:[%s17393_s0 + $0x648] sm:$0xff]  ;;  %v217_v29 = vld [vmem:[%s17393_s0 + $0x640] sm:$0xff] }
 0x18d   :  { %v9499_v8 = vmul.f32 0.020408163, %v629_v48  ;;  %v9501_v9 = vmul.f32 0.020408163, %v626_v49  ;;  %v849_v42 = vsel %vm245_vm0, %v218_v28, 0.0  ;;  %v846_v43 = vsel %vm245_vm0, %v217_v29, 0.0 }
 0x18f   :  { %18011 = vst [vmem:[#allocation77_spill] sm:$0xff] %v9499_v8  ;;  %18012 = vst [vmem:[#allocation78_spill] sm:$0xff] %v9501_v9  ;;  %844 = vadd.xlane.f32.xlu1 %v843_v0  ;;  %841 = vadd.xlane.f32.xlu0 %v840_v1 }
 0x190   :  { %6758 = vst.msk [vmem:[%s17394_s4 + $0x3f8] sm:$0xff] %vm6630_vm1, %v9499_v8  ;;  %6757 = vst.msk [vmem:[%s17394_s4 + $0x3f0] sm:$0xff] %vm6630_vm1, %v9501_v9  ;;  %v635_v16 = vpop.xlane.xlu1 %634  ;;  %v632_v17 = vpop.xlane.xlu0 %631  ;;  %v220_v8 = vld [vmem:[%s17393_s0 + $0x658] sm:$0xff]  ;;  %v219_v9 = vld [vmem:[%s17393_s0 + $0x650] sm:$0xff] }
 0x191   :  { %v9521_v48 = vmul.f32 0.020408163, %v635_v16  ;;  %v9523_v49 = vmul.f32 0.020408163, %v632_v17  ;;  %v855_v0 = vsel %vm245_vm0, %v220_v8, 0.0  ;;  %v852_v1 = vsel %vm245_vm0, %v219_v9, 0.0 }
 0x193   :  { %18013 = vst [vmem:[#allocation79_spill] sm:$0xff] %v9521_v48  ;;  %18014 = vst [vmem:[#allocation80_spill] sm:$0xff] %v9523_v49  ;;  %850 = vadd.xlane.f32.xlu1 %v849_v42  ;;  %847 = vadd.xlane.f32.xlu0 %v846_v43 }
 0x194   :  { %6760 = vst.msk [vmem:[%s17394_s4 + $0x408] sm:$0xff] %vm6630_vm1, %v9521_v48  ;;  %6759 = vst.msk [vmem:[%s17394_s4 + $0x400] sm:$0xff] %vm6630_vm1, %v9523_v49  ;;  %v641_v28 = vpop.xlane.xlu1 %640  ;;  %v638_v29 = vpop.xlane.xlu0 %637  ;;  %v222_v48 = vld [vmem:[%s17393_s0 + $0x668] sm:$0xff]  ;;  %v221_v49 = vld [vmem:[%s17393_s0 + $0x660] sm:$0xff] }
 0x195   :  { %v9543_v16 = vmul.f32 0.020408163, %v641_v28  ;;  %v9545_v17 = vmul.f32 0.020408163, %v638_v29  ;;  %v861_v42 = vsel %vm245_vm0, %v222_v48, 0.0  ;;  %v858_v43 = vsel %vm245_vm0, %v221_v49, 0.0 }
 0x197   :  { %18015 = vst [vmem:[#allocation81_spill] sm:$0xff] %v9543_v16  ;;  %18016 = vst [vmem:[#allocation82_spill] sm:$0xff] %v9545_v17  ;;  %856 = vadd.xlane.f32.xlu1 %v855_v0  ;;  %853 = vadd.xlane.f32.xlu0 %v852_v1 }
 0x198   :  { %6762 = vst.msk [vmem:[%s17394_s4 + $0x418] sm:$0xff] %vm6630_vm1, %v9543_v16  ;;  %6761 = vst.msk [vmem:[%s17394_s4 + $0x410] sm:$0xff] %vm6630_vm1, %v9545_v17  ;;  %v647_v8 = vpop.xlane.xlu1 %646  ;;  %v644_v9 = vpop.xlane.xlu0 %643  ;;  %v224_v16 = vld [vmem:[%s17393_s0 + $0x678] sm:$0xff]  ;;  %v223_v17 = vld [vmem:[%s17393_s0 + $0x670] sm:$0xff] }
 0x199   :  { %v9565_v28 = vmul.f32 0.020408163, %v647_v8  ;;  %v9567_v29 = vmul.f32 0.020408163, %v644_v9  ;;  %v867_v0 = vsel %vm245_vm0, %v224_v16, 0.0  ;;  %v864_v1 = vsel %vm245_vm0, %v223_v17, 0.0 }
 0x19b   :  { %18017 = vst [vmem:[#allocation83_spill] sm:$0xff] %v9565_v28  ;;  %18018 = vst [vmem:[#allocation84_spill] sm:$0xff] %v9567_v29  ;;  %862 = vadd.xlane.f32.xlu1 %v861_v42  ;;  %859 = vadd.xlane.f32.xlu0 %v858_v43 }
 0x19c   :  { %6764 = vst.msk [vmem:[%s17394_s4 + $0x428] sm:$0xff] %vm6630_vm1, %v9565_v28  ;;  %6763 = vst.msk [vmem:[%s17394_s4 + $0x420] sm:$0xff] %vm6630_vm1, %v9567_v29  ;;  %v653_v48 = vpop.xlane.xlu1 %652  ;;  %v650_v49 = vpop.xlane.xlu0 %649  ;;  %v226_v28 = vld [vmem:[%s17393_s0 + $0x688] sm:$0xff]  ;;  %v225_v29 = vld [vmem:[%s17393_s0 + $0x680] sm:$0xff] }
 0x19d   :  { %v9587_v8 = vmul.f32 0.020408163, %v653_v48  ;;  %v9589_v9 = vmul.f32 0.020408163, %v650_v49  ;;  %v873_v42 = vsel %vm245_vm0, %v226_v28, 0.0  ;;  %v870_v43 = vsel %vm245_vm0, %v225_v29, 0.0 }
 0x19f   :  { %18019 = vst [vmem:[#allocation85_spill] sm:$0xff] %v9587_v8  ;;  %18020 = vst [vmem:[#allocation86_spill] sm:$0xff] %v9589_v9  ;;  %868 = vadd.xlane.f32.xlu1 %v867_v0  ;;  %865 = vadd.xlane.f32.xlu0 %v864_v1 }
 0x1a0   :  { %6766 = vst.msk [vmem:[%s17394_s4 + $0x438] sm:$0xff] %vm6630_vm1, %v9587_v8  ;;  %6765 = vst.msk [vmem:[%s17394_s4 + $0x430] sm:$0xff] %vm6630_vm1, %v9589_v9  ;;  %v659_v16 = vpop.xlane.xlu1 %658  ;;  %v656_v17 = vpop.xlane.xlu0 %655  ;;  %v228_v8 = vld [vmem:[%s17393_s0 + $0x698] sm:$0xff]  ;;  %v227_v9 = vld [vmem:[%s17393_s0 + $0x690] sm:$0xff] }
 0x1a1   :  { %v9609_v48 = vmul.f32 0.020408163, %v659_v16  ;;  %v9611_v49 = vmul.f32 0.020408163, %v656_v17  ;;  %v879_v0 = vsel %vm245_vm0, %v228_v8, 0.0  ;;  %v876_v1 = vsel %vm245_vm0, %v227_v9, 0.0 }
 0x1a3   :  { %18021 = vst [vmem:[#allocation87_spill] sm:$0xff] %v9609_v48  ;;  %18022 = vst [vmem:[#allocation88_spill] sm:$0xff] %v9611_v49  ;;  %874 = vadd.xlane.f32.xlu1 %v873_v42  ;;  %871 = vadd.xlane.f32.xlu0 %v870_v43 }
 0x1a4   :  { %6768 = vst.msk [vmem:[%s17394_s4 + $0x448] sm:$0xff] %vm6630_vm1, %v9609_v48  ;;  %6767 = vst.msk [vmem:[%s17394_s4 + $0x440] sm:$0xff] %vm6630_vm1, %v9611_v49  ;;  %v665_v28 = vpop.xlane.xlu1 %664  ;;  %v662_v29 = vpop.xlane.xlu0 %661  ;;  %v230_v48 = vld [vmem:[%s17393_s0 + $0x6a8] sm:$0xff]  ;;  %v229_v49 = vld [vmem:[%s17393_s0 + $0x6a0] sm:$0xff] }
 0x1a5   :  { %v9631_v16 = vmul.f32 0.020408163, %v665_v28  ;;  %v9633_v17 = vmul.f32 0.020408163, %v662_v29  ;;  %v885_v42 = vsel %vm245_vm0, %v230_v48, 0.0  ;;  %v882_v43 = vsel %vm245_vm0, %v229_v49, 0.0 }
 0x1a7   :  { %18023 = vst [vmem:[#allocation89_spill] sm:$0xff] %v9631_v16  ;;  %18024 = vst [vmem:[#allocation90_spill] sm:$0xff] %v9633_v17  ;;  %880 = vadd.xlane.f32.xlu1 %v879_v0  ;;  %877 = vadd.xlane.f32.xlu0 %v876_v1 }
 0x1a8   :  { %6770 = vst.msk [vmem:[%s17394_s4 + $0x458] sm:$0xff] %vm6630_vm1, %v9631_v16  ;;  %6769 = vst.msk [vmem:[%s17394_s4 + $0x450] sm:$0xff] %vm6630_vm1, %v9633_v17  ;;  %v671_v8 = vpop.xlane.xlu1 %670  ;;  %v668_v9 = vpop.xlane.xlu0 %667  ;;  %v232_v16 = vld [vmem:[%s17393_s0 + $0x6b8] sm:$0xff]  ;;  %v231_v17 = vld [vmem:[%s17393_s0 + $0x6b0] sm:$0xff] }
 0x1a9   :  { %v9653_v28 = vmul.f32 0.020408163, %v671_v8  ;;  %v9655_v29 = vmul.f32 0.020408163, %v668_v9  ;;  %v891_v0 = vsel %vm245_vm0, %v232_v16, 0.0  ;;  %v888_v1 = vsel %vm245_vm0, %v231_v17, 0.0 }
 0x1ab   :  { %18025 = vst [vmem:[#allocation91_spill] sm:$0xff] %v9653_v28  ;;  %18026 = vst [vmem:[#allocation92_spill] sm:$0xff] %v9655_v29  ;;  %886 = vadd.xlane.f32.xlu1 %v885_v42  ;;  %883 = vadd.xlane.f32.xlu0 %v882_v43 }
 0x1ac   :  { %6772 = vst.msk [vmem:[%s17394_s4 + $0x468] sm:$0xff] %vm6630_vm1, %v9653_v28  ;;  %6771 = vst.msk [vmem:[%s17394_s4 + $0x460] sm:$0xff] %vm6630_vm1, %v9655_v29  ;;  %v677_v48 = vpop.xlane.xlu1 %676  ;;  %v674_v49 = vpop.xlane.xlu0 %673  ;;  %v234_v28 = vld [vmem:[%s17393_s0 + $0x6c8] sm:$0xff]  ;;  %v233_v29 = vld [vmem:[%s17393_s0 + $0x6c0] sm:$0xff] }
 0x1ad   :  { %v9675_v8 = vmul.f32 0.020408163, %v677_v48  ;;  %v9677_v9 = vmul.f32 0.020408163, %v674_v49  ;;  %v897_v42 = vsel %vm245_vm0, %v234_v28, 0.0  ;;  %v894_v43 = vsel %vm245_vm0, %v233_v29, 0.0 }
 0x1af   :  { %18027 = vst [vmem:[#allocation93_spill] sm:$0xff] %v9675_v8  ;;  %18028 = vst [vmem:[#allocation94_spill] sm:$0xff] %v9677_v9  ;;  %892 = vadd.xlane.f32.xlu1 %v891_v0  ;;  %889 = vadd.xlane.f32.xlu0 %v888_v1 }
 0x1b0   :  { %6774 = vst.msk [vmem:[%s17394_s4 + $0x478] sm:$0xff] %vm6630_vm1, %v9675_v8  ;;  %6773 = vst.msk [vmem:[%s17394_s4 + $0x470] sm:$0xff] %vm6630_vm1, %v9677_v9  ;;  %v683_v16 = vpop.xlane.xlu1 %682  ;;  %v680_v17 = vpop.xlane.xlu0 %679  ;;  %v236_v8 = vld [vmem:[%s17393_s0 + $0x6d8] sm:$0xff]  ;;  %v235_v9 = vld [vmem:[%s17393_s0 + $0x6d0] sm:$0xff] }
 0x1b1   :  { %v9697_v48 = vmul.f32 0.020408163, %v683_v16  ;;  %v9699_v49 = vmul.f32 0.020408163, %v680_v17  ;;  %v903_v0 = vsel %vm245_vm0, %v236_v8, 0.0  ;;  %v900_v1 = vsel %vm245_vm0, %v235_v9, 0.0 }
 0x1b3   :  { %18029 = vst [vmem:[#allocation95_spill] sm:$0xff] %v9697_v48  ;;  %18030 = vst [vmem:[#allocation96_spill] sm:$0xff] %v9699_v49  ;;  %898 = vadd.xlane.f32.xlu1 %v897_v42  ;;  %895 = vadd.xlane.f32.xlu0 %v894_v43 }
 0x1b4   :  { %6776 = vst.msk [vmem:[%s17394_s4 + $0x488] sm:$0xff] %vm6630_vm1, %v9697_v48  ;;  %6775 = vst.msk [vmem:[%s17394_s4 + $0x480] sm:$0xff] %vm6630_vm1, %v9699_v49  ;;  %v689_v28 = vpop.xlane.xlu1 %688  ;;  %v686_v29 = vpop.xlane.xlu0 %685  ;;  %v238_v48 = vld [vmem:[%s17393_s0 + $0x6e8] sm:$0xff]  ;;  %v237_v49 = vld [vmem:[%s17393_s0 + $0x6e0] sm:$0xff] }
 0x1b5   :  { %v9719_v16 = vmul.f32 0.020408163, %v689_v28  ;;  %v9721_v17 = vmul.f32 0.020408163, %v686_v29  ;;  %v909_v42 = vsel %vm245_vm0, %v238_v48, 0.0  ;;  %v906_v43 = vsel %vm245_vm0, %v237_v49, 0.0 }
 0x1b7   :  { %18031 = vst [vmem:[#allocation97_spill] sm:$0xff] %v9719_v16  ;;  %18032 = vst [vmem:[#allocation98_spill] sm:$0xff] %v9721_v17  ;;  %904 = vadd.xlane.f32.xlu1 %v903_v0  ;;  %901 = vadd.xlane.f32.xlu0 %v900_v1 }
 0x1b8   :  { %6778 = vst.msk [vmem:[%s17394_s4 + $0x498] sm:$0xff] %vm6630_vm1, %v9719_v16  ;;  %6777 = vst.msk [vmem:[%s17394_s4 + $0x490] sm:$0xff] %vm6630_vm1, %v9721_v17  ;;  %v695_v8 = vpop.xlane.xlu1 %694  ;;  %v692_v9 = vpop.xlane.xlu0 %691  ;;  %v240_v16 = vld [vmem:[%s17393_s0 + $0x6f8] sm:$0xff]  ;;  %v239_v17 = vld [vmem:[%s17393_s0 + $0x6f0] sm:$0xff] }
 0x1b9   :  { %v9741_v28 = vmul.f32 0.020408163, %v695_v8  ;;  %v9743_v29 = vmul.f32 0.020408163, %v692_v9  ;;  %v915_v0 = vsel %vm245_vm0, %v240_v16, 0.0  ;;  %v912_v1 = vsel %vm245_vm0, %v239_v17, 0.0 }
 0x1bb   :  { %18033 = vst [vmem:[#allocation99_spill] sm:$0xff] %v9741_v28  ;;  %18034 = vst [vmem:[#allocation100_spill] sm:$0xff] %v9743_v29  ;;  %910 = vadd.xlane.f32.xlu1 %v909_v42  ;;  %907 = vadd.xlane.f32.xlu0 %v906_v43 }
 0x1bc   :  { %6780 = vst.msk [vmem:[%s17394_s4 + $0x4a8] sm:$0xff] %vm6630_vm1, %v9741_v28  ;;  %6779 = vst.msk [vmem:[%s17394_s4 + $0x4a0] sm:$0xff] %vm6630_vm1, %v9743_v29  ;;  %v701_v48 = vpop.xlane.xlu1 %700  ;;  %v698_v49 = vpop.xlane.xlu0 %697  ;;  %v242_v28 = vld [vmem:[%s17393_s0 + $0x708] sm:$0xff]  ;;  %v241_v29 = vld [vmem:[%s17393_s0 + $0x700] sm:$0xff] }
 0x1bd   :  { %v9763_v8 = vmul.f32 0.020408163, %v701_v48  ;;  %v9765_v9 = vmul.f32 0.020408163, %v698_v49  ;;  %v921_v42 = vsel %vm245_vm0, %v242_v28, 0.0  ;;  %v918_v43 = vsel %vm245_vm0, %v241_v29, 0.0 }
 0x1be   :  { %v7558_v48 = vld [vmem:[%s17393_s0] sm:$0xff]  ;;  %v243_v28 = vld [vmem:[%s17393_s0 + $0x710] sm:$0xff]  ;;  %v7559_v29 = vld [vmem:[%s17393_s0 + $0x8] sm:$0xff] }
 0x1bf   :  { %18035 = vst [vmem:[#allocation101_spill] sm:$0xff] %v9763_v8  ;;  %18036 = vst [vmem:[#allocation102_spill] sm:$0xff] %v9765_v9  ;;  %916 = vadd.xlane.f32.xlu1 %v915_v0  ;;  %913 = vadd.xlane.f32.xlu0 %v912_v1  ;;  %v9789_v49 = vsub.f32 %v7558_v48, %v8115_v23  ;;  %v244_v0 = vld [vmem:[%s17393_s0 + $0x718] sm:$0xff]  ;;  %v9805_v1 = vsub.f32 %v7559_v29, %v8137_v31  ;;  %v924_v31 = vsel %vm245_vm0, %v243_v28, 0.0  ;;  %v7560_v48 = vld [vmem:[%s17393_s0 + $0x10] sm:$0xff] }
 0x1c0   :  { %6782 = vst.msk [vmem:[%s17394_s4 + $0x4b8] sm:$0xff] %vm6630_vm1, %v9763_v8  ;;  %6781 = vst.msk [vmem:[%s17394_s4 + $0x4b0] sm:$0xff] %vm6630_vm1, %v9765_v9  ;;  %v707_v16 = vpop.xlane.xlu1 %706  ;;  %v704_v17 = vpop.xlane.xlu0 %703  ;;  %v9823_v29 = vsub.f32 %v7560_v48, %v8113_v22 }
 0x1c1   :  { %18037 = vst [vmem:[#allocation103_spill] sm:$0xff] %v9789_v49  ;;  %v9791_v8 = vmul.f32 0.020408163, %v707_v16  ;;  %v9793_v51 = vmul.f32 0.020408163, %v704_v17  ;;  %18039 = vst [vmem:[#allocation105_spill] sm:$0xff] %v9805_v1  ;;  %v1387_v28 = vmul.f32 %v9805_v1, %v9805_v1 }
 0x1c2   :  { %v927_v17 = vsel %vm245_vm0, %v244_v0, 0.0  ;;  %18040 = vst [vmem:[#allocation106_spill] sm:$0xff] %v9823_v29 }
 0x1c3   :  { %18038 = vst [vmem:[#allocation104_spill] sm:$0xff] %v9791_v8  ;;  %6784 = vst.msk [vmem:[%s17394_s4 + $0x4c8] sm:$0xff] %vm6630_vm1, %v9791_v8  ;;  %922 = vadd.xlane.f32.xlu1 %v921_v42  ;;  %919 = vadd.xlane.f32.xlu0 %v918_v43  ;;  %v1386_v42 = vmul.f32 %v9789_v49, %v9789_v49  ;;  %v7561_v43 = vld [vmem:[%s17393_s0 + $0x18] sm:$0xff]  ;;  %v7562_v49 = vld [vmem:[%s17393_s0 + $0x28] sm:$0xff] }
 0x1c4   :  { %6783 = vst.msk [vmem:[%s17394_s4 + $0x4c0] sm:$0xff] %vm6630_vm1, %v9793_v51  ;;  %v713_v23 = vpop.xlane.xlu1 %712  ;;  %v710_v16 = vpop.xlane.xlu0 %709  ;;  %v9835_v0 = vsub.f32 %v7561_v43, %v8135_v30  ;;  %v1388_v43 = vmul.f32 %v9823_v29, %v9823_v29  ;;  %v9860_v1 = vsub.f32 %v7562_v49, %v8157_v38  ;;  %v7564_v49 = vld [vmem:[%s17393_s0 + $0x38] sm:$0xff] }
 0x1c5   :  { %v9825_v8 = vmul.f32 0.020408163, %v713_v23  ;;  %v9827_v9 = vmul.f32 0.020408163, %v710_v16  ;;  %v1614_v48 = vsel %vm245_vm0, %v1386_v42, 0.0 }
 0x1c6   :  { %18041 = vst [vmem:[#allocation107_spill] sm:$0xff] %v9835_v0  ;;  %18043 = vst [vmem:[#allocation109_spill] sm:$0xff] %v9860_v1  ;;  %v1389_v42 = vmul.f32 %v9835_v0, %v9835_v0  ;;  %v1620_v0 = vsel %vm245_vm0, %v1388_v43, 0.0 }
 0x1c7   :  { %6786 = vst.msk [vmem:[%s17394_s4 + $0x4d8] sm:$0xff] %vm6630_vm1, %v9825_v8  ;;  %6785 = vst.msk [vmem:[%s17394_s4 + $0x4d0] sm:$0xff] %vm6630_vm1, %v9827_v9  ;;  %928 = vadd.xlane.f32.xlu1 %v927_v17  ;;  %925 = vadd.xlane.f32.xlu0 %v924_v31  ;;  %v7563_v17 = vld [vmem:[%s17393_s0 + $0x20] sm:$0xff] }
 0x1c8   :  { %v719_v22 = vpop.xlane.xlu1 %718  ;;  %v716_v30 = vpop.xlane.xlu0 %715  ;;  %v9866_v31 = vsub.f32 %v7563_v17, %v8159_v39 }
 0x1c9   :  { %v9849_v23 = vmul.f32 0.020408163, %v719_v22  ;;  %v9851_v16 = vmul.f32 0.020408163, %v716_v30  ;;  %v1617_v22 = vsel %vm245_vm0, %v1387_v28, 0.0  ;;  %v9885_v28 = vsub.f32 %v7564_v49, %v8179_v46  ;;  %v7565_v30 = vld [vmem:[%s17393_s0 + $0x30] sm:$0xff] }
 0x1ca   :  { %18044 = vst [vmem:[#allocation110_spill] sm:$0xff] %v9866_v31  ;;  %v9891_v17 = vsub.f32 %v7565_v30, %v8181_v47  ;;  %v1390_v46 = vmul.f32 %v9866_v31, %v9866_v31  ;;  %v7566_v30 = vld [vmem:[%s17393_s0 + $0x48] sm:$0xff] }
 0x1cb   :  { %18042 = vst [vmem:[#allocation108_spill] sm:$0xff] %v9851_v16  ;;  %6788 = vst.msk [vmem:[%s17394_s4 + $0x4e8] sm:$0xff] %vm6630_vm1, %v9849_v23  ;;  %1618 = vadd.xlane.f32.xlu1 %v1617_v22  ;;  %1615 = vadd.xlane.f32.xlu0 %v1614_v48  ;;  %v1623_v48 = vsel %vm245_vm0, %v1389_v42, 0.0  ;;  %v9925_v31 = vsub.f32 %v7566_v30, %v8201_v54 }
 0x1cc   :  { %6787 = vst.msk [vmem:[%s17394_s4 + $0x4e0] sm:$0xff] %vm6630_vm1, %v9851_v16  ;;  %v725_v38 = vpop.xlane.xlu1 %724  ;;  %v722_v39 = vpop.xlane.xlu0 %721  ;;  %18045 = vst [vmem:[#allocation111_spill] sm:$0xff] %v9885_v28  ;;  %v1391_v16 = vmul.f32 %v9860_v1, %v9860_v1  ;;  %v1392_v49 = vmul.f32 %v9891_v17, %v9891_v17 }
 0x1cd   :  { %18046 = vst [vmem:[#allocation112_spill] sm:$0xff] %v9891_v17  ;;  %v9893_v29 = vmul.f32 0.020408163, %v725_v38  ;;  %v9895_v22 = vmul.f32 0.020408163, %v722_v39  ;;  %v1393_v39 = vmul.f32 %v9885_v28, %v9885_v28  ;;  %18047 = vst [vmem:[#allocation113_spill] sm:$0xff] %v9925_v31 }
 0x1ce   :  { %v7568_v17 = vld [vmem:[%s17393_s0 + $0x58] sm:$0xff] }
 0x1cf   :  { %6790 = vst.msk [vmem:[%s17394_s4 + $0x4f8] sm:$0xff] %vm6630_vm1, %v9893_v29  ;;  %6789 = vst.msk [vmem:[%s17394_s4 + $0x4f0] sm:$0xff] %vm6630_vm1, %v9895_v22  ;;  %1624 = vadd.xlane.f32.xlu1 %v1623_v48  ;;  %1621 = vadd.xlane.f32.xlu0 %v1620_v0  ;;  %v7567_v0 = vld [vmem:[%s17393_s0 + $0x40] sm:$0xff]  ;;  %v9955_v28 = vsub.f32 %v7568_v17, %v8223_v62  ;;  %v7570_v17 = vld [vmem:[%s17393_s0 + $0x68] sm:$0xff] }
 0x1d0   :  { %v731_v47 = vpop.xlane.xlu1 %730  ;;  %v728_v43 = vpop.xlane.xlu0 %727  ;;  %v9931_v48 = vsub.f32 %v7567_v0, %v8203_v55  ;;  %v1632_v0 = vsel %vm245_vm0, %v1392_v49, 0.0  ;;  %v9981_v49 = vsub.f32 %v7570_v17, %v8245_v6 }
 0x1d1   :  { %v9913_v42 = vmul.f32 0.020408163, %v731_v47  ;;  %v9915_v38 = vmul.f32 0.020408163, %v728_v43  ;;  %v1629_v47 = vsel %vm245_vm0, %v1391_v16, 0.0  ;;  %v1626_v43 = vsel %vm245_vm0, %v1390_v46, 0.0 }
 0x1d2   :  { %18048 = vst [vmem:[#allocation114_spill] sm:$0xff] %v9931_v48  ;;  %v1635_v46 = vsel %vm245_vm0, %v1393_v39, 0.0  ;;  %18049 = vst [vmem:[#allocation115_spill] sm:$0xff] %v9955_v28  ;;  %v1394_v39 = vmul.f32 %v9931_v48, %v9931_v48  ;;  %v1397_v1 = vmul.f32 %v9955_v28, %v9955_v28 }
 0x1d3   :  { %6792 = vst.msk [vmem:[%s17394_s4 + $0x508] sm:$0xff] %vm6630_vm1, %v9913_v42  ;;  %6791 = vst.msk [vmem:[%s17394_s4 + $0x500] sm:$0xff] %vm6630_vm1, %v9915_v38  ;;  %1630 = vadd.xlane.f32.xlu1 %v1629_v47  ;;  %1627 = vadd.xlane.f32.xlu0 %v1626_v43  ;;  %v7569_v47 = vld [vmem:[%s17393_s0 + $0x50] sm:$0xff] }
 0x1d4   :  { %v737_v54 = vpop.xlane.xlu1 %736  ;;  %v734_v55 = vpop.xlane.xlu0 %733  ;;  %v9961_v43 = vsub.f32 %v7569_v47, %v8225_v63  ;;  %18051 = vst [vmem:[#allocation117_spill] sm:$0xff] %v9981_v49 }
 0x1d5   :  { %v9945_v30 = vmul.f32 0.020408163, %v737_v54  ;;  %v9947_v16 = vmul.f32 0.020408163, %v734_v55  ;;  %v1395_v54 = vmul.f32 %v9925_v31, %v9925_v31  ;;  %v7571_v55 = vld [vmem:[%s17393_s0 + $0x60] sm:$0xff]  ;;  %v1638_v31 = vsel %vm245_vm0, %v1394_v39, 0.0 }
 0x1d6   :  { %18050 = vst [vmem:[#allocation116_spill] sm:$0xff] %v9961_v43  ;;  %v9987_v47 = vsub.f32 %v7571_v55, %v8247_v7  ;;  %v1396_v6 = vmul.f32 %v9961_v43, %v9961_v43  ;;  %v7572_v55 = vld [vmem:[%s17393_s0 + $0x78] sm:$0xff] }
 0x1d7   :  { %6794 = vst.msk [vmem:[%s17394_s4 + $0x518] sm:$0xff] %vm6630_vm1, %v9945_v30  ;;  %6793 = vst.msk [vmem:[%s17394_s4 + $0x510] sm:$0xff] %vm6630_vm1, %v9947_v16  ;;  %1636 = vadd.xlane.f32.xlu1 %v1635_v46  ;;  %1633 = vadd.xlane.f32.xlu0 %v1632_v0  ;;  %v1641_v0 = vsel %vm245_vm0, %v1395_v54, 0.0  ;;  %v10021_v43 = vsub.f32 %v7572_v55, %v8267_v14 }
 0x1d8   :  { %v743_v62 = vpop.xlane.xlu1 %742  ;;  %v740_v63 = vpop.xlane.xlu0 %739  ;;  %18052 = vst [vmem:[#allocation118_spill] sm:$0xff] %v9987_v47  ;;  %v1398_v17 = vmul.f32 %v9987_v47, %v9987_v47  ;;  %v7574_v47 = vld [vmem:[%s17393_s0 + $0x88] sm:$0xff] }
 0x1d9   :  { %v9989_v48 = vmul.f32 0.020408163, %v743_v62  ;;  %v9991_v46 = vmul.f32 0.020408163, %v740_v63  ;;  %v1399_v63 = vmul.f32 %v9981_v49, %v9981_v49  ;;  %18053 = vst [vmem:[#allocation119_spill] sm:$0xff] %v10021_v43  ;;  %v10051_v49 = vsub.f32 %v7574_v47, %v8289_v24  ;;  %v7576_v47 = vld [vmem:[%s17393_s0 + $0x98] sm:$0xff] }
 0x1db   :  { %6796 = vst.msk [vmem:[%s17394_s4 + $0x528] sm:$0xff] %vm6630_vm1, %v9989_v48  ;;  %6795 = vst.msk [vmem:[%s17394_s4 + $0x520] sm:$0xff] %vm6630_vm1, %v9991_v46  ;;  %1642 = vadd.xlane.f32.xlu1 %v1641_v0  ;;  %1639 = vadd.xlane.f32.xlu0 %v1638_v31  ;;  %v7573_v31 = vld [vmem:[%s17393_s0 + $0x70] sm:$0xff]  ;;  %v1403_v28 = vmul.f32 %v10051_v49, %v10051_v49 }
 0x1dc   :  { %v749_v7 = vpop.xlane.xlu1 %748  ;;  %v746_v54 = vpop.xlane.xlu0 %745  ;;  %v10027_v0 = vsub.f32 %v7573_v31, %v8269_v15  ;;  %v1650_v31 = vsel %vm245_vm0, %v1398_v17, 0.0  ;;  %18055 = vst [vmem:[#allocation121_spill] sm:$0xff] %v10051_v49  ;;  %v10077_v17 = vsub.f32 %v7576_v47, %v8311_v34 }
 0x1dd   :  { %v10009_v39 = vmul.f32 0.020408163, %v749_v7  ;;  %v10011_v62 = vmul.f32 0.020408163, %v746_v54  ;;  %v1647_v7 = vsel %vm245_vm0, %v1397_v1, 0.0  ;;  %v1644_v54 = vsel %vm245_vm0, %v1396_v6, 0.0 }
 0x1de   :  { %18054 = vst [vmem:[#allocation120_spill] sm:$0xff] %v10027_v0  ;;  %v1653_v6 = vsel %vm245_vm0, %v1399_v63, 0.0  ;;  %v1400_v63 = vmul.f32 %v10027_v0, %v10027_v0  ;;  %18057 = vst [vmem:[#allocation123_spill] sm:$0xff] %v10077_v17 }
 0x1df   :  { %6798 = vst.msk [vmem:[%s17394_s4 + $0x538] sm:$0xff] %vm6630_vm1, %v10009_v39  ;;  %6797 = vst.msk [vmem:[%s17394_s4 + $0x530] sm:$0xff] %vm6630_vm1, %v10011_v62  ;;  %1648 = vadd.xlane.f32.xlu1 %v1647_v7  ;;  %1645 = vadd.xlane.f32.xlu0 %v1644_v54  ;;  %v7575_v7 = vld [vmem:[%s17393_s0 + $0x80] sm:$0xff] }
 0x1e0   :  { %v755_v14 = vpop.xlane.xlu1 %754  ;;  %v752_v15 = vpop.xlane.xlu0 %751  ;;  %v10057_v54 = vsub.f32 %v7575_v7, %v8291_v25 }
 0x1e1   :  { %v10041_v55 = vmul.f32 0.020408163, %v755_v14  ;;  %v10043_v1 = vmul.f32 0.020408163, %v752_v15  ;;  %v1401_v14 = vmul.f32 %v10021_v43, %v10021_v43  ;;  %v7577_v15 = vld [vmem:[%s17393_s0 + $0x90] sm:$0xff]  ;;  %v1656_v43 = vsel %vm245_vm0, %v1400_v63, 0.0 }
 0x1e2   :  { %18056 = vst [vmem:[#allocation122_spill] sm:$0xff] %v10057_v54  ;;  %v10083_v7 = vsub.f32 %v7577_v15, %v8313_v35  ;;  %v1402_v34 = vmul.f32 %v10057_v54, %v10057_v54  ;;  %v7578_v15 = vld [vmem:[%s17393_s0 + $0xa8] sm:$0xff] }
 0x1e3   :  { %6800 = vst.msk [vmem:[%s17394_s4 + $0x548] sm:$0xff] %vm6630_vm1, %v10041_v55  ;;  %6799 = vst.msk [vmem:[%s17394_s4 + $0x540] sm:$0xff] %vm6630_vm1, %v10043_v1  ;;  %1654 = vadd.xlane.f32.xlu1 %v1653_v6  ;;  %1651 = vadd.xlane.f32.xlu0 %v1650_v31  ;;  %v1659_v31 = vsel %vm245_vm0, %v1401_v14, 0.0  ;;  %v10117_v54 = vsub.f32 %v7578_v15, %v8333_v44 }
 0x1e4   :  { %v761_v24 = vpop.xlane.xlu1 %760  ;;  %v758_v25 = vpop.xlane.xlu0 %757  ;;  %18058 = vst [vmem:[#allocation124_spill] sm:$0xff] %v10083_v7  ;;  %v1404_v47 = vmul.f32 %v10083_v7, %v10083_v7  ;;  %v7580_v7 = vld [vmem:[%s17393_s0 + $0xb8] sm:$0xff] }
 0x1e5   :  { %v10085_v0 = vmul.f32 0.020408163, %v761_v24  ;;  %v10087_v6 = vmul.f32 0.020408163, %v758_v25  ;;  %v1405_v25 = vmul.f32 %v10077_v17, %v10077_v17  ;;  %18059 = vst [vmem:[#allocation125_spill] sm:$0xff] %v10117_v54  ;;  %v10147_v17 = vsub.f32 %v7580_v7, %v8355_v56  ;;  %v7582_v7 = vld [vmem:[%s17393_s0 + $0xc8] sm:$0xff] }
 0x1e7   :  { %6802 = vst.msk [vmem:[%s17394_s4 + $0x558] sm:$0xff] %vm6630_vm1, %v10085_v0  ;;  %6801 = vst.msk [vmem:[%s17394_s4 + $0x550] sm:$0xff] %vm6630_vm1, %v10087_v6  ;;  %1660 = vadd.xlane.f32.xlu1 %v1659_v31  ;;  %1657 = vadd.xlane.f32.xlu0 %v1656_v43  ;;  %v7579_v43 = vld [vmem:[%s17393_s0 + $0xa0] sm:$0xff]  ;;  %v1409_v49 = vmul.f32 %v10147_v17, %v10147_v17 }
 0x1e8   :  { %v767_v35 = vpop.xlane.xlu1 %766  ;;  %v764_v14 = vpop.xlane.xlu0 %763  ;;  %v10123_v31 = vsub.f32 %v7579_v43, %v8335_v45  ;;  %v1668_v43 = vsel %vm245_vm0, %v1404_v47, 0.0  ;;  %18061 = vst [vmem:[#allocation127_spill] sm:$0xff] %v10147_v17  ;;  %v10173_v47 = vsub.f32 %v7582_v7, %v8377_v2 }
 0x1e9   :  { %v10105_v63 = vmul.f32 0.020408163, %v767_v35  ;;  %v10107_v24 = vmul.f32 0.020408163, %v764_v14  ;;  %v1665_v35 = vsel %vm245_vm0, %v1403_v28, 0.0  ;;  %v1662_v14 = vsel %vm245_vm0, %v1402_v34, 0.0 }
 0x1ea   :  { %18060 = vst [vmem:[#allocation126_spill] sm:$0xff] %v10123_v31  ;;  %v1671_v34 = vsel %vm245_vm0, %v1405_v25, 0.0  ;;  %v1406_v25 = vmul.f32 %v10123_v31, %v10123_v31  ;;  %18063 = vst [vmem:[#allocation129_spill] sm:$0xff] %v10173_v47 }
 0x1eb   :  { %6804 = vst.msk [vmem:[%s17394_s4 + $0x568] sm:$0xff] %vm6630_vm1, %v10105_v63  ;;  %6803 = vst.msk [vmem:[%s17394_s4 + $0x560] sm:$0xff] %vm6630_vm1, %v10107_v24  ;;  %1666 = vadd.xlane.f32.xlu1 %v1665_v35  ;;  %1663 = vadd.xlane.f32.xlu0 %v1662_v14  ;;  %v7581_v35 = vld [vmem:[%s17393_s0 + $0xb0] sm:$0xff] }
 0x1ec   :  { %v773_v44 = vpop.xlane.xlu1 %772  ;;  %v770_v45 = vpop.xlane.xlu0 %769  ;;  %v10153_v14 = vsub.f32 %v7581_v35, %v8357_v57 }
 0x1ed   :  { %v10137_v15 = vmul.f32 0.020408163, %v773_v44  ;;  %v10139_v28 = vmul.f32 0.020408163, %v770_v45  ;;  %v1407_v44 = vmul.f32 %v10117_v54, %v10117_v54  ;;  %v7583_v45 = vld [vmem:[%s17393_s0 + $0xc0] sm:$0xff]  ;;  %v1674_v54 = vsel %vm245_vm0, %v1406_v25, 0.0 }
 0x1ee   :  { %18062 = vst [vmem:[#allocation128_spill] sm:$0xff] %v10153_v14  ;;  %v10179_v35 = vsub.f32 %v7583_v45, %v8379_v3  ;;  %v1408_v2 = vmul.f32 %v10153_v14, %v10153_v14  ;;  %v7584_v45 = vld [vmem:[%s17393_s0 + $0xd8] sm:$0xff] }
 0x1ef   :  { %6806 = vst.msk [vmem:[%s17394_s4 + $0x578] sm:$0xff] %vm6630_vm1, %v10137_v15  ;;  %6805 = vst.msk [vmem:[%s17394_s4 + $0x570] sm:$0xff] %vm6630_vm1, %v10139_v28  ;;  %1672 = vadd.xlane.f32.xlu1 %v1671_v34  ;;  %1669 = vadd.xlane.f32.xlu0 %v1668_v43  ;;  %v1677_v43 = vsel %vm245_vm0, %v1407_v44, 0.0  ;;  %v10213_v14 = vsub.f32 %v7584_v45, %v8399_v12 }
 0x1f0   :  { %v779_v56 = vpop.xlane.xlu1 %778  ;;  %v776_v57 = vpop.xlane.xlu0 %775  ;;  %18064 = vst [vmem:[#allocation130_spill] sm:$0xff] %v10179_v35  ;;  %v1410_v7 = vmul.f32 %v10179_v35, %v10179_v35  ;;  %v7586_v35 = vld [vmem:[%s17393_s0 + $0xe8] sm:$0xff] }
 0x1f1   :  { %v10181_v31 = vmul.f32 0.020408163, %v779_v56  ;;  %v10183_v34 = vmul.f32 0.020408163, %v776_v57  ;;  %v1411_v57 = vmul.f32 %v10173_v47, %v10173_v47  ;;  %18065 = vst [vmem:[#allocation131_spill] sm:$0xff] %v10213_v14  ;;  %v10243_v47 = vsub.f32 %v7586_v35, %v8421_v26  ;;  %v7588_v35 = vld [vmem:[%s17393_s0 + $0xf8] sm:$0xff] }
 0x1f3   :  { %6808 = vst.msk [vmem:[%s17394_s4 + $0x588] sm:$0xff] %vm6630_vm1, %v10181_v31  ;;  %6807 = vst.msk [vmem:[%s17394_s4 + $0x580] sm:$0xff] %vm6630_vm1, %v10183_v34  ;;  %1678 = vadd.xlane.f32.xlu1 %v1677_v43  ;;  %1675 = vadd.xlane.f32.xlu0 %v1674_v54  ;;  %v7585_v54 = vld [vmem:[%s17393_s0 + $0xd0] sm:$0xff]  ;;  %v1415_v17 = vmul.f32 %v10243_v47, %v10243_v47 }
 0x1f4   :  { %v785_v3 = vpop.xlane.xlu1 %784  ;;  %v782_v44 = vpop.xlane.xlu0 %781  ;;  %v10219_v43 = vsub.f32 %v7585_v54, %v8401_v13  ;;  %v1686_v54 = vsel %vm245_vm0, %v1410_v7, 0.0  ;;  %18067 = vst [vmem:[#allocation133_spill] sm:$0xff] %v10243_v47  ;;  %v10269_v7 = vsub.f32 %v7588_v35, %v8443_v40 }
 0x1f5   :  { %v10201_v25 = vmul.f32 0.020408163, %v785_v3  ;;  %v10203_v56 = vmul.f32 0.020408163, %v782_v44  ;;  %v1683_v3 = vsel %vm245_vm0, %v1409_v49, 0.0  ;;  %v1680_v44 = vsel %vm245_vm0, %v1408_v2, 0.0 }
 0x1f6   :  { %18066 = vst [vmem:[#allocation132_spill] sm:$0xff] %v10219_v43  ;;  %v1689_v2 = vsel %vm245_vm0, %v1411_v57, 0.0  ;;  %v1412_v57 = vmul.f32 %v10219_v43, %v10219_v43  ;;  %18069 = vst [vmem:[#allocation135_spill] sm:$0xff] %v10269_v7 }
 0x1f7   :  { %6810 = vst.msk [vmem:[%s17394_s4 + $0x598] sm:$0xff] %vm6630_vm1, %v10201_v25  ;;  %6809 = vst.msk [vmem:[%s17394_s4 + $0x590] sm:$0xff] %vm6630_vm1, %v10203_v56  ;;  %1684 = vadd.xlane.f32.xlu1 %v1683_v3  ;;  %1681 = vadd.xlane.f32.xlu0 %v1680_v44  ;;  %v7587_v3 = vld [vmem:[%s17393_s0 + $0xe0] sm:$0xff] }
 0x1f8   :  { %v791_v12 = vpop.xlane.xlu1 %790  ;;  %v788_v13 = vpop.xlane.xlu0 %787  ;;  %v10249_v44 = vsub.f32 %v7587_v3, %v8423_v27 }
 0x1f9   :  { %v10233_v45 = vmul.f32 0.020408163, %v791_v12  ;;  %v10235_v49 = vmul.f32 0.020408163, %v788_v13  ;;  %v1413_v12 = vmul.f32 %v10213_v14, %v10213_v14  ;;  %v7589_v13 = vld [vmem:[%s17393_s0 + $0xf0] sm:$0xff]  ;;  %v1692_v14 = vsel %vm245_vm0, %v1412_v57, 0.0 }
 0x1fa   :  { %18068 = vst [vmem:[#allocation134_spill] sm:$0xff] %v10249_v44  ;;  %v10275_v3 = vsub.f32 %v7589_v13, %v8445_v41  ;;  %v1414_v40 = vmul.f32 %v10249_v44, %v10249_v44  ;;  %v7590_v13 = vld [vmem:[%s17393_s0 + $0x108] sm:$0xff] }
 0x1fb   :  { %6812 = vst.msk [vmem:[%s17394_s4 + $0x5a8] sm:$0xff] %vm6630_vm1, %v10233_v45  ;;  %6811 = vst.msk [vmem:[%s17394_s4 + $0x5a0] sm:$0xff] %vm6630_vm1, %v10235_v49  ;;  %1690 = vadd.xlane.f32.xlu1 %v1689_v2  ;;  %1687 = vadd.xlane.f32.xlu0 %v1686_v54  ;;  %v1695_v54 = vsel %vm245_vm0, %v1413_v12, 0.0  ;;  %v10309_v44 = vsub.f32 %v7590_v13, %v8465_v52 }
 0x1fc   :  { %v797_v26 = vpop.xlane.xlu1 %796  ;;  %v794_v27 = vpop.xlane.xlu0 %793  ;;  %18070 = vst [vmem:[#allocation136_spill] sm:$0xff] %v10275_v3  ;;  %v1416_v35 = vmul.f32 %v10275_v3, %v10275_v3  ;;  %v7592_v3 = vld [vmem:[%s17393_s0 + $0x118] sm:$0xff] }
 0x1fd   :  { %v10277_v43 = vmul.f32 0.020408163, %v797_v26  ;;  %v10279_v2 = vmul.f32 0.020408163, %v794_v27  ;;  %v1417_v27 = vmul.f32 %v10269_v7, %v10269_v7  ;;  %18071 = vst [vmem:[#allocation137_spill] sm:$0xff] %v10309_v44  ;;  %v10339_v7 = vsub.f32 %v7592_v3, %v8487_v4  ;;  %v7594_v3 = vld [vmem:[%s17393_s0 + $0x128] sm:$0xff] }
 0x1ff   :  { %6814 = vst.msk [vmem:[%s17394_s4 + $0x5b8] sm:$0xff] %vm6630_vm1, %v10277_v43  ;;  %6813 = vst.msk [vmem:[%s17394_s4 + $0x5b0] sm:$0xff] %vm6630_vm1, %v10279_v2  ;;  %1696 = vadd.xlane.f32.xlu1 %v1695_v54  ;;  %1693 = vadd.xlane.f32.xlu0 %v1692_v14  ;;  %v7591_v14 = vld [vmem:[%s17393_s0 + $0x100] sm:$0xff]  ;;  %v1421_v47 = vmul.f32 %v10339_v7, %v10339_v7 }
 0x200   :  { %v803_v41 = vpop.xlane.xlu1 %802  ;;  %v800_v12 = vpop.xlane.xlu0 %799  ;;  %v10315_v54 = vsub.f32 %v7591_v14, %v8467_v53  ;;  %v1704_v14 = vsel %vm245_vm0, %v1416_v35, 0.0  ;;  %18073 = vst [vmem:[#allocation139_spill] sm:$0xff] %v10339_v7  ;;  %v10365_v35 = vsub.f32 %v7594_v3, %v8509_v18 }
 0x201   :  { %v10297_v57 = vmul.f32 0.020408163, %v803_v41  ;;  %v10299_v26 = vmul.f32 0.020408163, %v800_v12  ;;  %v1701_v41 = vsel %vm245_vm0, %v1415_v17, 0.0  ;;  %v1698_v12 = vsel %vm245_vm0, %v1414_v40, 0.0 }
 0x202   :  { %18072 = vst [vmem:[#allocation138_spill] sm:$0xff] %v10315_v54  ;;  %v1707_v40 = vsel %vm245_vm0, %v1417_v27, 0.0  ;;  %v1418_v27 = vmul.f32 %v10315_v54, %v10315_v54  ;;  %18075 = vst [vmem:[#allocation141_spill] sm:$0xff] %v10365_v35 }
 0x203   :  { %6816 = vst.msk [vmem:[%s17394_s4 + $0x5c8] sm:$0xff] %vm6630_vm1, %v10297_v57  ;;  %6815 = vst.msk [vmem:[%s17394_s4 + $0x5c0] sm:$0xff] %vm6630_vm1, %v10299_v26  ;;  %1702 = vadd.xlane.f32.xlu1 %v1701_v41  ;;  %1699 = vadd.xlane.f32.xlu0 %v1698_v12  ;;  %v7593_v41 = vld [vmem:[%s17393_s0 + $0x110] sm:$0xff] }
 0x204   :  { %v809_v52 = vpop.xlane.xlu1 %808  ;;  %v806_v53 = vpop.xlane.xlu0 %805  ;;  %v10345_v12 = vsub.f32 %v7593_v41, %v8489_v5 }
 0x205   :  { %v10329_v13 = vmul.f32 0.020408163, %v809_v52  ;;  %v10331_v17 = vmul.f32 0.020408163, %v806_v53  ;;  %v1419_v52 = vmul.f32 %v10309_v44, %v10309_v44  ;;  %v7595_v53 = vld [vmem:[%s17393_s0 + $0x120] sm:$0xff]  ;;  %v1710_v44 = vsel %vm245_vm0, %v1418_v27, 0.0 }
 0x206   :  { %18074 = vst [vmem:[#allocation140_spill] sm:$0xff] %v10345_v12  ;;  %v10371_v41 = vsub.f32 %v7595_v53, %v8511_v19  ;;  %v1420_v18 = vmul.f32 %v10345_v12, %v10345_v12  ;;  %v7596_v53 = vld [vmem:[%s17393_s0 + $0x138] sm:$0xff] }
 0x207   :  { %6818 = vst.msk [vmem:[%s17394_s4 + $0x5d8] sm:$0xff] %vm6630_vm1, %v10329_v13  ;;  %6817 = vst.msk [vmem:[%s17394_s4 + $0x5d0] sm:$0xff] %vm6630_vm1, %v10331_v17  ;;  %1708 = vadd.xlane.f32.xlu1 %v1707_v40  ;;  %1705 = vadd.xlane.f32.xlu0 %v1704_v14  ;;  %v1713_v14 = vsel %vm245_vm0, %v1419_v52, 0.0  ;;  %v10405_v12 = vsub.f32 %v7596_v53, %v8531_v36 }
 0x208   :  { %v815_v4 = vpop.xlane.xlu1 %814  ;;  %v812_v5 = vpop.xlane.xlu0 %811  ;;  %18076 = vst [vmem:[#allocation142_spill] sm:$0xff] %v10371_v41  ;;  %v1422_v3 = vmul.f32 %v10371_v41, %v10371_v41  ;;  %v7598_v41 = vld [vmem:[%s17393_s0 + $0x148] sm:$0xff] }
 0x209   :  { %v10373_v54 = vmul.f32 0.020408163, %v815_v4  ;;  %v10375_v40 = vmul.f32 0.020408163, %v812_v5  ;;  %v1423_v5 = vmul.f32 %v10365_v35, %v10365_v35  ;;  %18077 = vst [vmem:[#allocation143_spill] sm:$0xff] %v10405_v12  ;;  %v10435_v35 = vsub.f32 %v7598_v41, %v8553_v58  ;;  %v7600_v41 = vld [vmem:[%s17393_s0 + $0x158] sm:$0xff] }
 0x20b   :  { %6820 = vst.msk [vmem:[%s17394_s4 + $0x5e8] sm:$0xff] %vm6630_vm1, %v10373_v54  ;;  %6819 = vst.msk [vmem:[%s17394_s4 + $0x5e0] sm:$0xff] %vm6630_vm1, %v10375_v40  ;;  %1714 = vadd.xlane.f32.xlu1 %v1713_v14  ;;  %1711 = vadd.xlane.f32.xlu0 %v1710_v44  ;;  %v7597_v44 = vld [vmem:[%s17393_s0 + $0x130] sm:$0xff]  ;;  %v1427_v7 = vmul.f32 %v10435_v35, %v10435_v35 }
 0x20c   :  { %v821_v19 = vpop.xlane.xlu1 %820  ;;  %v818_v52 = vpop.xlane.xlu0 %817  ;;  %v10411_v14 = vsub.f32 %v7597_v44, %v8533_v37  ;;  %v1722_v44 = vsel %vm245_vm0, %v1422_v3, 0.0  ;;  %18079 = vst [vmem:[#allocation145_spill] sm:$0xff] %v10435_v35  ;;  %v10461_v3 = vsub.f32 %v7600_v41, %v8575_v10 }
 0x20d   :  { %v10393_v27 = vmul.f32 0.020408163, %v821_v19  ;;  %v10395_v4 = vmul.f32 0.020408163, %v818_v52  ;;  %v1719_v19 = vsel %vm245_vm0, %v1421_v47, 0.0  ;;  %v1716_v52 = vsel %vm245_vm0, %v1420_v18, 0.0 }
 0x20e   :  { %18078 = vst [vmem:[#allocation144_spill] sm:$0xff] %v10411_v14  ;;  %v1725_v18 = vsel %vm245_vm0, %v1423_v5, 0.0  ;;  %v1424_v5 = vmul.f32 %v10411_v14, %v10411_v14  ;;  %18081 = vst [vmem:[#allocation147_spill] sm:$0xff] %v10461_v3 }
 0x20f   :  { %6822 = vst.msk [vmem:[%s17394_s4 + $0x5f8] sm:$0xff] %vm6630_vm1, %v10393_v27  ;;  %6821 = vst.msk [vmem:[%s17394_s4 + $0x5f0] sm:$0xff] %vm6630_vm1, %v10395_v4  ;;  %1720 = vadd.xlane.f32.xlu1 %v1719_v19  ;;  %1717 = vadd.xlane.f32.xlu0 %v1716_v52  ;;  %v7599_v19 = vld [vmem:[%s17393_s0 + $0x140] sm:$0xff] }
 0x210   :  { %v827_v36 = vpop.xlane.xlu1 %826  ;;  %v824_v37 = vpop.xlane.xlu0 %823  ;;  %v10441_v52 = vsub.f32 %v7599_v19, %v8555_v59 }
 0x211   :  { %v10425_v53 = vmul.f32 0.020408163, %v827_v36  ;;  %v10427_v47 = vmul.f32 0.020408163, %v824_v37  ;;  %v1425_v36 = vmul.f32 %v10405_v12, %v10405_v12  ;;  %v7601_v37 = vld [vmem:[%s17393_s0 + $0x150] sm:$0xff]  ;;  %v1728_v12 = vsel %vm245_vm0, %v1424_v5, 0.0 }
 0x212   :  { %18080 = vst [vmem:[#allocation146_spill] sm:$0xff] %v10441_v52  ;;  %v10467_v19 = vsub.f32 %v7601_v37, %v8577_v11  ;;  %v1426_v10 = vmul.f32 %v10441_v52, %v10441_v52  ;;  %v7602_v37 = vld [vmem:[%s17393_s0 + $0x168] sm:$0xff] }
 0x213   :  { %6824 = vst.msk [vmem:[%s17394_s4 + $0x608] sm:$0xff] %vm6630_vm1, %v10425_v53  ;;  %6823 = vst.msk [vmem:[%s17394_s4 + $0x600] sm:$0xff] %vm6630_vm1, %v10427_v47  ;;  %1726 = vadd.xlane.f32.xlu1 %v1725_v18  ;;  %1723 = vadd.xlane.f32.xlu0 %v1722_v44  ;;  %v1731_v44 = vsel %vm245_vm0, %v1425_v36, 0.0  ;;  %v10501_v52 = vsub.f32 %v7602_v37, %v8597_v32 }
 0x214   :  { %v833_v58 = vpop.xlane.xlu1 %832  ;;  %v830_v59 = vpop.xlane.xlu0 %829  ;;  %18082 = vst [vmem:[#allocation148_spill] sm:$0xff] %v10467_v19  ;;  %v1428_v41 = vmul.f32 %v10467_v19, %v10467_v19  ;;  %v7604_v19 = vld [vmem:[%s17393_s0 + $0x178] sm:$0xff] }
 0x215   :  { %v10469_v14 = vmul.f32 0.020408163, %v833_v58  ;;  %v10471_v18 = vmul.f32 0.020408163, %v830_v59  ;;  %v1429_v59 = vmul.f32 %v10461_v3, %v10461_v3  ;;  %18083 = vst [vmem:[#allocation149_spill] sm:$0xff] %v10501_v52  ;;  %v10531_v3 = vsub.f32 %v7604_v19, %v8619_v60  ;;  %v7606_v19 = vld [vmem:[%s17393_s0 + $0x188] sm:$0xff] }
 0x217   :  { %6826 = vst.msk [vmem:[%s17394_s4 + $0x618] sm:$0xff] %vm6630_vm1, %v10469_v14  ;;  %6825 = vst.msk [vmem:[%s17394_s4 + $0x610] sm:$0xff] %vm6630_vm1, %v10471_v18  ;;  %1732 = vadd.xlane.f32.xlu1 %v1731_v44  ;;  %1729 = vadd.xlane.f32.xlu0 %v1728_v12  ;;  %v7603_v12 = vld [vmem:[%s17393_s0 + $0x160] sm:$0xff]  ;;  %v1433_v35 = vmul.f32 %v10531_v3, %v10531_v3 }
 0x218   :  { %v839_v11 = vpop.xlane.xlu1 %838  ;;  %v836_v36 = vpop.xlane.xlu0 %835  ;;  %v10507_v44 = vsub.f32 %v7603_v12, %v8599_v33  ;;  %v1740_v12 = vsel %vm245_vm0, %v1428_v41, 0.0  ;;  %18085 = vst [vmem:[#allocation151_spill] sm:$0xff] %v10531_v3  ;;  %v10557_v41 = vsub.f32 %v7606_v19, %v8641_v20  ;;  %v18097_v3 = vld [vmem:[#allocation3_spill] sm:$0xff] }
 0x219   :  { %v10489_v5 = vmul.f32 0.020408163, %v839_v11  ;;  %v10491_v58 = vmul.f32 0.020408163, %v836_v36  ;;  %v1737_v11 = vsel %vm245_vm0, %v1427_v7, 0.0  ;;  %v1734_v36 = vsel %vm245_vm0, %v1426_v10, 0.0 }
 0x21a   :  { %18084 = vst [vmem:[#allocation150_spill] sm:$0xff] %v10507_v44  ;;  %v1743_v10 = vsel %vm245_vm0, %v1429_v59, 0.0  ;;  %v1430_v59 = vmul.f32 %v10507_v44, %v10507_v44  ;;  %18087 = vst [vmem:[#allocation153_spill] sm:$0xff] %v10557_v41 }
 0x21b   :  { %6828 = vst.msk [vmem:[%s17394_s4 + $0x628] sm:$0xff] %vm6630_vm1, %v10489_v5  ;;  %6827 = vst.msk [vmem:[%s17394_s4 + $0x620] sm:$0xff] %vm6630_vm1, %v10491_v58  ;;  %1738 = vadd.xlane.f32.xlu1 %v1737_v11  ;;  %1735 = vadd.xlane.f32.xlu0 %v1734_v36  ;;  %v7605_v11 = vld [vmem:[%s17393_s0 + $0x170] sm:$0xff] }
 0x21c   :  { %v845_v32 = vpop.xlane.xlu1 %844  ;;  %v842_v33 = vpop.xlane.xlu0 %841  ;;  %v10537_v36 = vsub.f32 %v7605_v11, %v8621_v61 }
 0x21d   :  { %v10521_v37 = vmul.f32 0.020408163, %v845_v32  ;;  %v10523_v7 = vmul.f32 0.020408163, %v842_v33  ;;  %v1431_v32 = vmul.f32 %v10501_v52, %v10501_v52  ;;  %v7607_v33 = vld [vmem:[%s17393_s0 + $0x180] sm:$0xff]  ;;  %v1746_v52 = vsel %vm245_vm0, %v1430_v59, 0.0 }
 0x21e   :  { %18086 = vst [vmem:[#allocation152_spill] sm:$0xff] %v10537_v36  ;;  %v10563_v11 = vsub.f32 %v7607_v33, %v8643_v21  ;;  %v1432_v20 = vmul.f32 %v10537_v36, %v10537_v36  ;;  %v7608_v33 = vld [vmem:[%s17393_s0 + $0x198] sm:$0xff] }
 0x21f   :  { %6830 = vst.msk [vmem:[%s17394_s4 + $0x638] sm:$0xff] %vm6630_vm1, %v10521_v37  ;;  %6829 = vst.msk [vmem:[%s17394_s4 + $0x630] sm:$0xff] %vm6630_vm1, %v10523_v7  ;;  %1744 = vadd.xlane.f32.xlu1 %v1743_v10  ;;  %1741 = vadd.xlane.f32.xlu0 %v1740_v12  ;;  %v1749_v12 = vsel %vm245_vm0, %v1431_v32, 0.0  ;;  %v10597_v36 = vsub.f32 %v7608_v33, %v8663_v50 }
 0x220   :  { %v851_v60 = vpop.xlane.xlu1 %850  ;;  %v848_v61 = vpop.xlane.xlu0 %847  ;;  %18088 = vst [vmem:[#allocation154_spill] sm:$0xff] %v10563_v11  ;;  %v1434_v19 = vmul.f32 %v10563_v11, %v10563_v11  ;;  %v7610_v11 = vld [vmem:[%s17393_s0 + $0x1a8] sm:$0xff] }
 0x221   :  { %v10565_v44 = vmul.f32 0.020408163, %v851_v60  ;;  %v10567_v10 = vmul.f32 0.020408163, %v848_v61  ;;  %v1435_v61 = vmul.f32 %v10557_v41, %v10557_v41  ;;  %18092 = vst [vmem:[#allocation158_spill] sm:$0xff] %v10597_v36  ;;  %v1752_v41 = vsel %vm245_vm0, %v1432_v20, 0.0 }
 0x223   :  { %18089 = vst [vmem:[#allocation155_spill] sm:$0xff] %v10567_v10  ;;  %6832 = vst.msk [vmem:[%s17394_s4 + $0x648] sm:$0xff] %vm6630_vm1, %v10565_v44  ;;  %1750 = vadd.xlane.f32.xlu1 %v1749_v12  ;;  %1747 = vadd.xlane.f32.xlu0 %v1746_v52  ;;  %v7609_v52 = vld [vmem:[%s17393_s0 + $0x190] sm:$0xff]  ;;  %v18093_v12 = vld [vmem:[#allocation2_spill] sm:$0xff]  ;;  %v1761_v20 = vsel %vm245_vm0, %v1435_v61, 0.0 }
 0x224   :  { %6831 = vst.msk [vmem:[%s17394_s4 + $0x640] sm:$0xff] %vm6630_vm1, %v10567_v10  ;;  %v857_v21 = vpop.xlane.xlu1 %856  ;;  %v854_v32 = vpop.xlane.xlu0 %853 }
 0x225   :  { %v10585_v59 = vmul.f32 0.020408163, %v857_v21  ;;  %v10587_v60 = vmul.f32 0.020408163, %v854_v32  ;;  %v10603_v21 = vsub.f32 %v7609_v52, %v18093_v12  ;;  %v1755_v32 = vsel %vm245_vm0, %v1433_v35, 0.0 }
 0x226   :  { %v1758_v12 = vsel %vm245_vm0, %v1434_v19, 0.0  ;;  %v7612_v19 = vld [vmem:[%s17393_s0 + $0x1b8] sm:$0xff] }
 0x227   :  { %18090 = vst [vmem:[#allocation156_spill] sm:$0xff] %v10585_v59  ;;  %18091 = vst [vmem:[#allocation157_spill] sm:$0xff] %v10587_v60  ;;  %1756 = vadd.xlane.f32.xlu1 %v1755_v32  ;;  %1753 = vadd.xlane.f32.xlu0 %v1752_v41  ;;  %v7611_v41 = vld [vmem:[%s17393_s0 + $0x1a0] sm:$0xff]  ;;  %v18099_v32 = vld [vmem:[#allocation4_spill] sm:$0xff]  ;;  %v1436_v61 = vmul.f32 %v10603_v21, %v10603_v21 }
 0x228   :  { %18094 = vst [vmem:[#allocation2_spill] sm:$0xff] %v10603_v21  ;;  %6834 = vst.msk [vmem:[%s17394_s4 + $0x658] sm:$0xff] %vm6630_vm1, %v10585_v59  ;;  %v863_v50 = vpop.xlane.xlu1 %862  ;;  %v860_v33 = vpop.xlane.xlu0 %859  ;;  %v10627_v59 = vsub.f32 %v7610_v11, %v18097_v3  ;;  %v7613_v21 = vld [vmem:[%s17393_s0 + $0x1b0] sm:$0xff] }
 0x229   :  { %6833 = vst.msk [vmem:[%s17394_s4 + $0x650] sm:$0xff] %vm6630_vm1, %v10587_v60  ;;  %v10617_v52 = vmul.f32 0.020408163, %v863_v50  ;;  %v10619_v35 = vmul.f32 0.020408163, %v860_v33  ;;  %v10633_v50 = vsub.f32 %v7611_v41, %v18099_v32  ;;  %v1437_v33 = vmul.f32 %v10597_v36, %v10597_v36  ;;  %v18101_v41 = vld [vmem:[#allocation5_spill] sm:$0xff] }
 0x22a   :  { %18098 = vst [vmem:[#allocation3_spill] sm:$0xff] %v10627_v59  ;;  %v10653_v32 = vsub.f32 %v7612_v19, %v18101_v41  ;;  %v18103_v36 = vld [vmem:[#allocation6_spill] sm:$0xff]  ;;  %v1439_v10 = vmul.f32 %v10627_v59, %v10627_v59  ;;  %v7614_v41 = vld [vmem:[%s17393_s0 + $0x1c8] sm:$0xff] }
 0x22b   :  { %18095 = vst [vmem:[#allocation159_spill] sm:$0xff] %v10617_v52  ;;  %18096 = vst [vmem:[#allocation160_spill] sm:$0xff] %v10619_v35  ;;  %1762 = vadd.xlane.f32.xlu1 %v1761_v20  ;;  %1759 = vadd.xlane.f32.xlu0 %v1758_v12  ;;  %v1767_v12 = vsel %vm245_vm0, %v1437_v33, 0.0  ;;  %v1438_v19 = vmul.f32 %v10633_v50, %v10633_v50 }
 0x22c   :  { %18100 = vst [vmem:[#allocation4_spill] sm:$0xff] %v10633_v50  ;;  %6836 = vst.msk [vmem:[%s17394_s4 + $0x668] sm:$0xff] %vm6630_vm1, %v10617_v52  ;;  %v869_v3 = vpop.xlane.xlu1 %868  ;;  %v866_v11 = vpop.xlane.xlu0 %865  ;;  %v10659_v52 = vsub.f32 %v7613_v21, %v18103_v36  ;;  %v18109_v50 = vld [vmem:[#allocation7_spill] sm:$0xff] }
 0x22d   :  { %6835 = vst.msk [vmem:[%s17394_s4 + $0x660] sm:$0xff] %vm6630_vm1, %v10619_v35  ;;  %18102 = vst [vmem:[#allocation5_spill] sm:$0xff] %v10653_v32  ;;  %v10661_v60 = vmul.f32 0.020408163, %v869_v3  ;;  %v10663_v20 = vmul.f32 0.020408163, %v866_v11  ;;  %v1441_v3 = vmul.f32 %v10653_v32, %v10653_v32  ;;  %v10693_v59 = vsub.f32 %v7614_v41, %v18109_v50 }
 0x22e   :  { %18104 = vst [vmem:[#allocation6_spill] sm:$0xff] %v10659_v52  ;;  %v1764_v35 = vsel %vm245_vm0, %v1436_v61, 0.0  ;;  %v1440_v11 = vmul.f32 %v10659_v52, %v10659_v52  ;;  %v1770_v32 = vsel %vm245_vm0, %v1438_v19, 0.0  ;;  %v7616_v52 = vld [vmem:[%s17393_s0 + $0x1d8] sm:$0xff] }
 0x22f   :  { %18105 = vst [vmem:[#allocation161_spill] sm:$0xff] %v10661_v60  ;;  %18106 = vst [vmem:[#allocation162_spill] sm:$0xff] %v10663_v20  ;;  %1768 = vadd.xlane.f32.xlu1 %v1767_v12  ;;  %1765 = vadd.xlane.f32.xlu0 %v1764_v35  ;;  %v7615_v35 = vld [vmem:[%s17393_s0 + $0x1c0] sm:$0xff]  ;;  %v18111_v12 = vld [vmem:[#allocation8_spill] sm:$0xff]  ;;  %v1779_v19 = vsel %vm245_vm0, %v1441_v3, 0.0 }
 0x230   :  { %6838 = vst.msk [vmem:[%s17394_s4 + $0x678] sm:$0xff] %vm6630_vm1, %v10661_v60  ;;  %6837 = vst.msk [vmem:[%s17394_s4 + $0x670] sm:$0xff] %vm6630_vm1, %v10663_v20  ;;  %v875_v36 = vpop.xlane.xlu1 %874  ;;  %v872_v21 = vpop.xlane.xlu0 %871 }
 0x231   :  { %v10681_v33 = vmul.f32 0.020408163, %v875_v36  ;;  %v10683_v61 = vmul.f32 0.020408163, %v872_v21  ;;  %18110 = vst [vmem:[#allocation7_spill] sm:$0xff] %v10693_v59  ;;  %v10699_v36 = vsub.f32 %v7615_v35, %v18111_v12  ;;  %v1773_v21 = vsel %vm245_vm0, %v1439_v10, 0.0 }
 0x232   :  { %v1776_v12 = vsel %vm245_vm0, %v1440_v11, 0.0  ;;  %v7618_v11 = vld [vmem:[%s17393_s0 + $0x1e8] sm:$0xff] }
 0x233   :  { %18107 = vst [vmem:[#allocation163_spill] sm:$0xff] %v10681_v33  ;;  %18108 = vst [vmem:[#allocation164_spill] sm:$0xff] %v10683_v61  ;;  %1774 = vadd.xlane.f32.xlu1 %v1773_v21  ;;  %1771 = vadd.xlane.f32.xlu0 %v1770_v32  ;;  %v7617_v32 = vld [vmem:[%s17393_s0 + $0x1d0] sm:$0xff]  ;;  %v18117_v21 = vld [vmem:[#allocation10_spill] sm:$0xff]  ;;  %v1442_v3 = vmul.f32 %v10699_v36, %v10699_v36 }
 0x234   :  { %18112 = vst [vmem:[#allocation8_spill] sm:$0xff] %v10699_v36  ;;  %6840 = vst.msk [vmem:[%s17394_s4 + $0x688] sm:$0xff] %vm6630_vm1, %v10681_v33  ;;  %v881_v50 = vpop.xlane.xlu1 %880  ;;  %v878_v41 = vpop.xlane.xlu0 %877  ;;  %v18115_v33 = vld [vmem:[#allocation9_spill] sm:$0xff]  ;;  %v7619_v36 = vld [vmem:[%s17393_s0 + $0x1e0] sm:$0xff] }
 0x235   :  { %6839 = vst.msk [vmem:[%s17394_s4 + $0x680] sm:$0xff] %vm6630_vm1, %v10683_v61  ;;  %v10713_v35 = vmul.f32 0.020408163, %v881_v50  ;;  %v10715_v10 = vmul.f32 0.020408163, %v878_v41  ;;  %v10723_v20 = vsub.f32 %v7616_v52, %v18115_v33  ;;  %v10729_v50 = vsub.f32 %v7617_v32, %v18117_v21  ;;  %v18119_v32 = vld [vmem:[#allocation11_spill] sm:$0xff] }
 0x236   :  { %v1443_v41 = vmul.f32 %v10693_v59, %v10693_v59  ;;  %v10749_v21 = vsub.f32 %v7618_v11, %v18119_v32  ;;  %v18121_v59 = vld [vmem:[#allocation12_spill] sm:$0xff]  ;;  %v7620_v32 = vld [vmem:[%s17393_s0 + $0x1f8] sm:$0xff] }
 0x237   :  { %18113 = vst [vmem:[#allocation165_spill] sm:$0xff] %v10713_v35  ;;  %18114 = vst [vmem:[#allocation166_spill] sm:$0xff] %v10715_v10  ;;  %1780 = vadd.xlane.f32.xlu1 %v1779_v19  ;;  %1777 = vadd.xlane.f32.xlu0 %v1776_v12  ;;  %v1445_v60 = vmul.f32 %v10723_v20, %v10723_v20  ;;  %v1444_v11 = vmul.f32 %v10729_v50, %v10729_v50 }
 0x238   :  { %18116 = vst [vmem:[#allocation9_spill] sm:$0xff] %v10723_v20  ;;  %18118 = vst [vmem:[#allocation10_spill] sm:$0xff] %v10729_v50  ;;  %v887_v52 = vpop.xlane.xlu1 %886  ;;  %v884_v33 = vpop.xlane.xlu0 %883  ;;  %v1785_v12 = vsel %vm245_vm0, %v1443_v41, 0.0  ;;  %v18127_v50 = vld [vmem:[#allocation13_spill] sm:$0xff] }
 0x239   :  { %6842 = vst.msk [vmem:[%s17394_s4 + $0x698] sm:$0xff] %vm6630_vm1, %v10713_v35  ;;  %6841 = vst.msk [vmem:[%s17394_s4 + $0x690] sm:$0xff] %vm6630_vm1, %v10715_v10  ;;  %v10755_v35 = vsub.f32 %v7619_v36, %v18121_v59  ;;  %v10757_v61 = vmul.f32 0.020408163, %v887_v52  ;;  %v10759_v19 = vmul.f32 0.020408163, %v884_v33  ;;  %v1447_v52 = vmul.f32 %v10749_v21, %v10749_v21 }
 0x23a   :  { %18120 = vst [vmem:[#allocation11_spill] sm:$0xff] %v10749_v21  ;;  %v1782_v10 = vsel %vm245_vm0, %v1442_v3, 0.0  ;;  %v10789_v20 = vsub.f32 %v7620_v32, %v18127_v50  ;;  %v1788_v21 = vsel %vm245_vm0, %v1444_v11, 0.0 }
 0x23b   :  { %18122 = vst [vmem:[#allocation12_spill] sm:$0xff] %v10755_v35  ;;  %18123 = vst [vmem:[#allocation167_spill] sm:$0xff] %v10757_v61  ;;  %1786 = vadd.xlane.f32.xlu1 %v1785_v12  ;;  %1783 = vadd.xlane.f32.xlu0 %v1782_v10  ;;  %v1446_v33 = vmul.f32 %v10755_v35, %v10755_v35  ;;  %v7621_v10 = vld [vmem:[%s17393_s0 + $0x1f0] sm:$0xff]  ;;  %v18129_v12 = vld [vmem:[#allocation14_spill] sm:$0xff]  ;;  %v1797_v11 = vsel %vm245_vm0, %v1447_v52, 0.0 }
 0x23c   :  { %18124 = vst [vmem:[#allocation168_spill] sm:$0xff] %v10759_v19  ;;  %6844 = vst.msk [vmem:[%s17394_s4 + $0x6a8] sm:$0xff] %vm6630_vm1, %v10757_v61  ;;  %v893_v59 = vpop.xlane.xlu1 %892  ;;  %v890_v36 = vpop.xlane.xlu0 %889  ;;  %v7622_v35 = vld [vmem:[%s17393_s0 + $0x208] sm:$0xff] }
 0x23d   :  { %6843 = vst.msk [vmem:[%s17394_s4 + $0x6a0] sm:$0xff] %vm6630_vm1, %v10759_v19  ;;  %v10777_v41 = vmul.f32 0.020408163, %v893_v59  ;;  %v10779_v3 = vmul.f32 0.020408163, %v890_v36  ;;  %18128 = vst [vmem:[#allocation13_spill] sm:$0xff] %v10789_v20  ;;  %v10795_v59 = vsub.f32 %v7621_v10, %v18129_v12 }
 0x23e   :  { %v1791_v36 = vsel %vm245_vm0, %v1445_v60, 0.0  ;;  %v1794_v12 = vsel %vm245_vm0, %v1446_v33, 0.0  ;;  %v7624_v33 = vld [vmem:[%s17393_s0 + $0x218] sm:$0xff] }
 0x23f   :  { %18125 = vst [vmem:[#allocation169_spill] sm:$0xff] %v10777_v41  ;;  %18126 = vst [vmem:[#allocation170_spill] sm:$0xff] %v10779_v3  ;;  %1792 = vadd.xlane.f32.xlu1 %v1791_v36  ;;  %1789 = vadd.xlane.f32.xlu0 %v1788_v21  ;;  %v7623_v21 = vld [vmem:[%s17393_s0 + $0x200] sm:$0xff]  ;;  %v18135_v36 = vld [vmem:[#allocation16_spill] sm:$0xff]  ;;  %v1448_v52 = vmul.f32 %v10795_v59, %v10795_v59 }
 0x240   :  { %18130 = vst [vmem:[#allocation14_spill] sm:$0xff] %v10795_v59  ;;  %6846 = vst.msk [vmem:[%s17394_s4 + $0x6b8] sm:$0xff] %vm6630_vm1, %v10777_v41  ;;  %v899_v50 = vpop.xlane.xlu1 %898  ;;  %v896_v32 = vpop.xlane.xlu0 %895  ;;  %v18133_v41 = vld [vmem:[#allocation15_spill] sm:$0xff]  ;;  %v7625_v59 = vld [vmem:[%s17393_s0 + $0x210] sm:$0xff] }
 0x241   :  { %6845 = vst.msk [vmem:[%s17394_s4 + $0x6b0] sm:$0xff] %vm6630_vm1, %v10779_v3  ;;  %v10809_v10 = vmul.f32 0.020408163, %v899_v50  ;;  %v10811_v60 = vmul.f32 0.020408163, %v896_v32  ;;  %v10819_v19 = vsub.f32 %v7622_v35, %v18133_v41  ;;  %v10825_v50 = vsub.f32 %v7623_v21, %v18135_v36  ;;  %v18137_v21 = vld [vmem:[#allocation17_spill] sm:$0xff] }
 0x242   :  { %v1449_v32 = vmul.f32 %v10789_v20, %v10789_v20  ;;  %v10845_v36 = vsub.f32 %v7624_v33, %v18137_v21  ;;  %v18139_v20 = vld [vmem:[#allocation18_spill] sm:$0xff]  ;;  %v7626_v21 = vld [vmem:[%s17393_s0 + $0x228] sm:$0xff] }
 0x243   :  { %18131 = vst [vmem:[#allocation171_spill] sm:$0xff] %v10809_v10  ;;  %18132 = vst [vmem:[#allocation172_spill] sm:$0xff] %v10811_v60  ;;  %1798 = vadd.xlane.f32.xlu1 %v1797_v11  ;;  %1795 = vadd.xlane.f32.xlu0 %v1794_v12  ;;  %v1451_v61 = vmul.f32 %v10819_v19, %v10819_v19  ;;  %v1450_v33 = vmul.f32 %v10825_v50, %v10825_v50 }
 0x244   :  { %18134 = vst [vmem:[#allocation15_spill] sm:$0xff] %v10819_v19  ;;  %18136 = vst [vmem:[#allocation16_spill] sm:$0xff] %v10825_v50  ;;  %v905_v35 = vpop.xlane.xlu1 %904  ;;  %v902_v41 = vpop.xlane.xlu0 %901  ;;  %v1803_v12 = vsel %vm245_vm0, %v1449_v32, 0.0  ;;  %v18145_v50 = vld [vmem:[#allocation19_spill] sm:$0xff] }
 0x245   :  { %6848 = vst.msk [vmem:[%s17394_s4 + $0x6c8] sm:$0xff] %vm6630_vm1, %v10809_v10  ;;  %6847 = vst.msk [vmem:[%s17394_s4 + $0x6c0] sm:$0xff] %vm6630_vm1, %v10811_v60  ;;  %v10851_v10 = vsub.f32 %v7625_v59, %v18139_v20  ;;  %v10853_v3 = vmul.f32 0.020408163, %v905_v35  ;;  %v10855_v11 = vmul.f32 0.020408163, %v902_v41  ;;  %v1453_v35 = vmul.f32 %v10845_v36, %v10845_v36 }
 0x246   :  { %18138 = vst [vmem:[#allocation17_spill] sm:$0xff] %v10845_v36  ;;  %v1800_v60 = vsel %vm245_vm0, %v1448_v52, 0.0  ;;  %v10885_v19 = vsub.f32 %v7626_v21, %v18145_v50  ;;  %v1806_v36 = vsel %vm245_vm0, %v1450_v33, 0.0 }
 0x247   :  { %18140 = vst [vmem:[#allocation18_spill] sm:$0xff] %v10851_v10  ;;  %18141 = vst [vmem:[#allocation173_spill] sm:$0xff] %v10853_v3  ;;  %1804 = vadd.xlane.f32.xlu1 %v1803_v12  ;;  %1801 = vadd.xlane.f32.xlu0 %v1800_v60  ;;  %v1452_v41 = vmul.f32 %v10851_v10, %v10851_v10  ;;  %v7627_v60 = vld [vmem:[%s17393_s0 + $0x220] sm:$0xff]  ;;  %v18147_v12 = vld [vmem:[#allocation20_spill] sm:$0xff]  ;;  %v1815_v33 = vsel %vm245_vm0, %v1453_v35, 0.0 }
 0x248   :  { %18142 = vst [vmem:[#allocation174_spill] sm:$0xff] %v10855_v11  ;;  %6850 = vst.msk [vmem:[%s17394_s4 + $0x6d8] sm:$0xff] %vm6630_vm1, %v10853_v3  ;;  %v911_v20 = vpop.xlane.xlu1 %910  ;;  %v908_v59 = vpop.xlane.xlu0 %907  ;;  %v7628_v10 = vld [vmem:[%s17393_s0 + $0x238] sm:$0xff] }
 0x249   :  { %6849 = vst.msk [vmem:[%s17394_s4 + $0x6d0] sm:$0xff] %vm6630_vm1, %v10855_v11  ;;  %v10873_v32 = vmul.f32 0.020408163, %v911_v20  ;;  %v10875_v52 = vmul.f32 0.020408163, %v908_v59  ;;  %18146 = vst [vmem:[#allocation19_spill] sm:$0xff] %v10885_v19  ;;  %v10891_v20 = vsub.f32 %v7627_v60, %v18147_v12 }
 0x24a   :  { %v1809_v59 = vsel %vm245_vm0, %v1451_v61, 0.0  ;;  %v1812_v12 = vsel %vm245_vm0, %v1452_v41, 0.0  ;;  %v7630_v41 = vld [vmem:[%s17393_s0 + $0x248] sm:$0xff] }
 0x24b   :  { %18143 = vst [vmem:[#allocation175_spill] sm:$0xff] %v10873_v32  ;;  %18144 = vst [vmem:[#allocation176_spill] sm:$0xff] %v10875_v52  ;;  %1810 = vadd.xlane.f32.xlu1 %v1809_v59  ;;  %1807 = vadd.xlane.f32.xlu0 %v1806_v36  ;;  %v7629_v36 = vld [vmem:[%s17393_s0 + $0x230] sm:$0xff]  ;;  %v18153_v59 = vld [vmem:[#allocation22_spill] sm:$0xff]  ;;  %v1454_v35 = vmul.f32 %v10891_v20, %v10891_v20 }
 0x24c   :  { %18148 = vst [vmem:[#allocation20_spill] sm:$0xff] %v10891_v20  ;;  %6852 = vst.msk [vmem:[%s17394_s4 + $0x6e8] sm:$0xff] %vm6630_vm1, %v10873_v32  ;;  %v917_v50 = vpop.xlane.xlu1 %916  ;;  %v914_v21 = vpop.xlane.xlu0 %913  ;;  %v18151_v32 = vld [vmem:[#allocation21_spill] sm:$0xff]  ;;  %v7631_v20 = vld [vmem:[%s17393_s0 + $0x240] sm:$0xff] }
 0x24d   :  { %6851 = vst.msk [vmem:[%s17394_s4 + $0x6e0] sm:$0xff] %vm6630_vm1, %v10875_v52  ;;  %v10905_v60 = vmul.f32 0.020408163, %v917_v50  ;;  %v10907_v61 = vmul.f32 0.020408163, %v914_v21  ;;  %v10915_v11 = vsub.f32 %v7628_v10, %v18151_v32  ;;  %v10921_v50 = vsub.f32 %v7629_v36, %v18153_v59  ;;  %v18155_v36 = vld [vmem:[#allocation23_spill] sm:$0xff] }
 0x24e   :  { %v1455_v21 = vmul.f32 %v10885_v19, %v10885_v19  ;;  %v10941_v59 = vsub.f32 %v7630_v41, %v18155_v36  ;;  %v18157_v19 = vld [vmem:[#allocation24_spill] sm:$0xff]  ;;  %v7632_v36 = vld [vmem:[%s17393_s0 + $0x258] sm:$0xff] }
 0x24f   :  { %18149 = vst [vmem:[#allocation177_spill] sm:$0xff] %v10905_v60  ;;  %18150 = vst [vmem:[#allocation178_spill] sm:$0xff] %v10907_v61  ;;  %1816 = vadd.xlane.f32.xlu1 %v1815_v33  ;;  %1813 = vadd.xlane.f32.xlu0 %v1812_v12  ;;  %v1457_v3 = vmul.f32 %v10915_v11, %v10915_v11  ;;  %v1456_v41 = vmul.f32 %v10921_v50, %v10921_v50 }
 0x250   :  { %18152 = vst [vmem:[#allocation21_spill] sm:$0xff] %v10915_v11  ;;  %18154 = vst [vmem:[#allocation22_spill] sm:$0xff] %v10921_v50  ;;  %v923_v10 = vpop.xlane.xlu1 %922  ;;  %v920_v32 = vpop.xlane.xlu0 %919  ;;  %v1821_v12 = vsel %vm245_vm0, %v1455_v21, 0.0  ;;  %v18163_v50 = vld [vmem:[#allocation25_spill] sm:$0xff] }
 0x251   :  { %6854 = vst.msk [vmem:[%s17394_s4 + $0x6f8] sm:$0xff] %vm6630_vm1, %v10905_v60  ;;  %6853 = vst.msk [vmem:[%s17394_s4 + $0x6f0] sm:$0xff] %vm6630_vm1, %v10907_v61  ;;  %v10947_v60 = vsub.f32 %v7631_v20, %v18157_v19  ;;  %v10949_v52 = vmul.f32 0.020408163, %v923_v10  ;;  %v10951_v33 = vmul.f32 0.020408163, %v920_v32  ;;  %v1459_v10 = vmul.f32 %v10941_v59, %v10941_v59 }
 0x252   :  { %18156 = vst [vmem:[#allocation23_spill] sm:$0xff] %v10941_v59  ;;  %v1818_v61 = vsel %vm245_vm0, %v1454_v35, 0.0  ;;  %v10981_v11 = vsub.f32 %v7632_v36, %v18163_v50  ;;  %v1824_v59 = vsel %vm245_vm0, %v1456_v41, 0.0 }
 0x253   :  { %18158 = vst [vmem:[#allocation24_spill] sm:$0xff] %v10947_v60  ;;  %18159 = vst [vmem:[#allocation179_spill] sm:$0xff] %v10949_v52  ;;  %1822 = vadd.xlane.f32.xlu1 %v1821_v12  ;;  %1819 = vadd.xlane.f32.xlu0 %v1818_v61  ;;  %v1458_v32 = vmul.f32 %v10947_v60, %v10947_v60  ;;  %v7633_v61 = vld [vmem:[%s17393_s0 + $0x250] sm:$0xff]  ;;  %v18165_v12 = vld [vmem:[#allocation26_spill] sm:$0xff]  ;;  %v1833_v41 = vsel %vm245_vm0, %v1459_v10, 0.0 }
 0x254   :  { %18160 = vst [vmem:[#allocation180_spill] sm:$0xff] %v10951_v33  ;;  %6856 = vst.msk [vmem:[%s17394_s4 + $0x708] sm:$0xff] %vm6630_vm1, %v10949_v52  ;;  %v929_v19 = vpop.xlane.xlu1 %928  ;;  %v926_v20 = vpop.xlane.xlu0 %925  ;;  %v7634_v60 = vld [vmem:[%s17393_s0 + $0x268] sm:$0xff] }
 0x255   :  { %6855 = vst.msk [vmem:[%s17394_s4 + $0x700] sm:$0xff] %vm6630_vm1, %v10951_v33  ;;  %v10969_v21 = vmul.f32 0.020408163, %v929_v19  ;;  %v10971_v35 = vmul.f32 0.020408163, %v926_v20  ;;  %18164 = vst [vmem:[#allocation25_spill] sm:$0xff] %v10981_v11  ;;  %v10987_v19 = vsub.f32 %v7633_v61, %v18165_v12 }
 0x256   :  { %v1827_v20 = vsel %vm245_vm0, %v1457_v3, 0.0  ;;  %v1830_v12 = vsel %vm245_vm0, %v1458_v32, 0.0  ;;  %v7636_v32 = vld [vmem:[%s17393_s0 + $0x278] sm:$0xff] }
 0x257   :  { %18161 = vst [vmem:[#allocation181_spill] sm:$0xff] %v10969_v21  ;;  %18162 = vst [vmem:[#allocation182_spill] sm:$0xff] %v10971_v35  ;;  %1828 = vadd.xlane.f32.xlu1 %v1827_v20  ;;  %1825 = vadd.xlane.f32.xlu0 %v1824_v59  ;;  %v7635_v59 = vld [vmem:[%s17393_s0 + $0x260] sm:$0xff]  ;;  %v18171_v20 = vld [vmem:[#allocation28_spill] sm:$0xff]  ;;  %v1460_v10 = vmul.f32 %v10987_v19, %v10987_v19 }
 0x258   :  { %18166 = vst [vmem:[#allocation26_spill] sm:$0xff] %v10987_v19  ;;  %6858 = vst.msk [vmem:[%s17394_s4 + $0x718] sm:$0xff] %vm6630_vm1, %v10969_v21  ;;  %v1619_v50 = vpop.xlane.xlu1 %1618  ;;  %v1616_v36 = vpop.xlane.xlu0 %1615  ;;  %v18169_v21 = vld [vmem:[#allocation27_spill] sm:$0xff]  ;;  %v7637_v19 = vld [vmem:[%s17393_s0 + $0x270] sm:$0xff] }
 0x259   :  { %6857 = vst.msk [vmem:[%s17394_s4 + $0x710] sm:$0xff] %vm6630_vm1, %v10971_v35  ;;  %v11001_v61 = vmul.f32 0.020408163, %v1619_v50  ;;  %v11003_v3 = vmul.f32 0.020408163, %v1616_v36  ;;  %v11011_v33 = vsub.f32 %v7634_v60, %v18169_v21  ;;  %v11017_v50 = vsub.f32 %v7635_v59, %v18171_v20  ;;  %v18173_v59 = vld [vmem:[#allocation29_spill] sm:$0xff] }
 0x25a   :  { %v1461_v36 = vmul.f32 %v10981_v11, %v10981_v11  ;;  %v11037_v20 = vsub.f32 %v7636_v32, %v18173_v59  ;;  %v18175_v11 = vld [vmem:[#allocation30_spill] sm:$0xff]  ;;  %v7638_v59 = vld [vmem:[%s17393_s0 + $0x288] sm:$0xff] }
 0x25b   :  { %18167 = vst [vmem:[#allocation183_spill] sm:$0xff] %v11001_v61  ;;  %18168 = vst [vmem:[#allocation184_spill] sm:$0xff] %v11003_v3  ;;  %1834 = vadd.xlane.f32.xlu1 %v1833_v41  ;;  %1831 = vadd.xlane.f32.xlu0 %v1830_v12  ;;  %v1463_v52 = vmul.f32 %v11011_v33, %v11011_v33  ;;  %v1462_v32 = vmul.f32 %v11017_v50, %v11017_v50 }
 0x25c   :  { %18170 = vst [vmem:[#allocation27_spill] sm:$0xff] %v11011_v33  ;;  %18172 = vst [vmem:[#allocation28_spill] sm:$0xff] %v11017_v50  ;;  %v1625_v60 = vpop.xlane.xlu1 %1624  ;;  %v1622_v21 = vpop.xlane.xlu0 %1621  ;;  %v1839_v12 = vsel %vm245_vm0, %v1461_v36, 0.0  ;;  %v18181_v50 = vld [vmem:[#allocation31_spill] sm:$0xff] }
 0x25d   :  { %6860 = vst.msk [vmem:[%s17395_s5 + $0x8] sm:$0xff] %vm6630_vm1, %v11001_v61  ;;  %6859 = vst.msk [vmem:[%s17395_s5] sm:$0xff] %vm6630_vm1, %v11003_v3  ;;  %v11043_v61 = vsub.f32 %v7637_v19, %v18175_v11  ;;  %v11045_v35 = vmul.f32 0.020408163, %v1625_v60  ;;  %v11047_v41 = vmul.f32 0.020408163, %v1622_v21  ;;  %v1465_v60 = vmul.f32 %v11037_v20, %v11037_v20 }
 0x25e   :  { %18174 = vst [vmem:[#allocation29_spill] sm:$0xff] %v11037_v20  ;;  %v1836_v3 = vsel %vm245_vm0, %v1460_v10, 0.0  ;;  %v11077_v33 = vsub.f32 %v7638_v59, %v18181_v50  ;;  %v1842_v20 = vsel %vm245_vm0, %v1462_v32, 0.0 }
 0x25f   :  { %18176 = vst [vmem:[#allocation30_spill] sm:$0xff] %v11043_v61  ;;  %18177 = vst [vmem:[#allocation185_spill] sm:$0xff] %v11045_v35  ;;  %1840 = vadd.xlane.f32.xlu1 %v1839_v12  ;;  %1837 = vadd.xlane.f32.xlu0 %v1836_v3  ;;  %v1464_v21 = vmul.f32 %v11043_v61, %v11043_v61  ;;  %v7639_v3 = vld [vmem:[%s17393_s0 + $0x280] sm:$0xff]  ;;  %v18183_v12 = vld [vmem:[#allocation32_spill] sm:$0xff]  ;;  %v1851_v32 = vsel %vm245_vm0, %v1465_v60, 0.0 }
 0x260   :  { %18178 = vst [vmem:[#allocation186_spill] sm:$0xff] %v11047_v41  ;;  %6862 = vst.msk [vmem:[%s17395_s5 + $0x18] sm:$0xff] %vm6630_vm1, %v11045_v35  ;;  %v1631_v11 = vpop.xlane.xlu1 %1630  ;;  %v1628_v19 = vpop.xlane.xlu0 %1627  ;;  %v7640_v61 = vld [vmem:[%s17393_s0 + $0x298] sm:$0xff] }
 0x261   :  { %6861 = vst.msk [vmem:[%s17395_s5 + $0x10] sm:$0xff] %vm6630_vm1, %v11047_v41  ;;  %v11065_v36 = vmul.f32 0.020408163, %v1631_v11  ;;  %v11067_v10 = vmul.f32 0.020408163, %v1628_v19  ;;  %18182 = vst [vmem:[#allocation31_spill] sm:$0xff] %v11077_v33  ;;  %v11083_v11 = vsub.f32 %v7639_v3, %v18183_v12 }
 0x262   :  { %v1845_v19 = vsel %vm245_vm0, %v1463_v52, 0.0  ;;  %v1848_v12 = vsel %vm245_vm0, %v1464_v21, 0.0  ;;  %v7642_v21 = vld [vmem:[%s17393_s0 + $0x2a8] sm:$0xff] }
 0x263   :  { %18179 = vst [vmem:[#allocation187_spill] sm:$0xff] %v11065_v36  ;;  %18180 = vst [vmem:[#allocation188_spill] sm:$0xff] %v11067_v10  ;;  %1846 = vadd.xlane.f32.xlu1 %v1845_v19  ;;  %1843 = vadd.xlane.f32.xlu0 %v1842_v20  ;;  %v7641_v20 = vld [vmem:[%s17393_s0 + $0x290] sm:$0xff]  ;;  %v18189_v19 = vld [vmem:[#allocation34_spill] sm:$0xff]  ;;  %v1466_v60 = vmul.f32 %v11083_v11, %v11083_v11 }
 0x264   :  { %18184 = vst [vmem:[#allocation32_spill] sm:$0xff] %v11083_v11  ;;  %6864 = vst.msk [vmem:[%s17395_s5 + $0x28] sm:$0xff] %vm6630_vm1, %v11065_v36  ;;  %v1637_v50 = vpop.xlane.xlu1 %1636  ;;  %v1634_v59 = vpop.xlane.xlu0 %1633  ;;  %v18187_v36 = vld [vmem:[#allocation33_spill] sm:$0xff]  ;;  %v7643_v11 = vld [vmem:[%s17393_s0 + $0x2a0] sm:$0xff] }
 0x265   :  { %6863 = vst.msk [vmem:[%s17395_s5 + $0x20] sm:$0xff] %vm6630_vm1, %v11067_v10  ;;  %v11097_v3 = vmul.f32 0.020408163, %v1637_v50  ;;  %v11099_v52 = vmul.f32 0.020408163, %v1634_v59  ;;  %v11107_v35 = vsub.f32 %v7640_v61, %v18187_v36  ;;  %v11113_v50 = vsub.f32 %v7641_v20, %v18189_v19  ;;  %v18191_v20 = vld [vmem:[#allocation35_spill] sm:$0xff] }
 0x266   :  { %v1467_v59 = vmul.f32 %v11077_v33, %v11077_v33  ;;  %v11133_v19 = vsub.f32 %v7642_v21, %v18191_v20  ;;  %v18193_v33 = vld [vmem:[#allocation36_spill] sm:$0xff]  ;;  %v7644_v20 = vld [vmem:[%s17393_s0 + $0x2b8] sm:$0xff] }
 0x267   :  { %18185 = vst [vmem:[#allocation189_spill] sm:$0xff] %v11097_v3  ;;  %18186 = vst [vmem:[#allocation190_spill] sm:$0xff] %v11099_v52  ;;  %1852 = vadd.xlane.f32.xlu1 %v1851_v32  ;;  %1849 = vadd.xlane.f32.xlu0 %v1848_v12  ;;  %v1469_v41 = vmul.f32 %v11107_v35, %v11107_v35  ;;  %v1468_v21 = vmul.f32 %v11113_v50, %v11113_v50 }
 0x268   :  { %18188 = vst [vmem:[#allocation33_spill] sm:$0xff] %v11107_v35  ;;  %18190 = vst [vmem:[#allocation34_spill] sm:$0xff] %v11113_v50  ;;  %v1643_v61 = vpop.xlane.xlu1 %1642  ;;  %v1640_v36 = vpop.xlane.xlu0 %1639  ;;  %v1857_v12 = vsel %vm245_vm0, %v1467_v59, 0.0  ;;  %v18199_v50 = vld [vmem:[#allocation37_spill] sm:$0xff] }
 0x269   :  { %6866 = vst.msk [vmem:[%s17395_s5 + $0x38] sm:$0xff] %vm6630_vm1, %v11097_v3  ;;  %6865 = vst.msk [vmem:[%s17395_s5 + $0x30] sm:$0xff] %vm6630_vm1, %v11099_v52  ;;  %v11139_v3 = vsub.f32 %v7643_v11, %v18193_v33  ;;  %v11141_v10 = vmul.f32 0.020408163, %v1643_v61  ;;  %v11143_v32 = vmul.f32 0.020408163, %v1640_v36  ;;  %v1471_v61 = vmul.f32 %v11133_v19, %v11133_v19 }
 0x26a   :  { %18192 = vst [vmem:[#allocation35_spill] sm:$0xff] %v11133_v19  ;;  %v1854_v52 = vsel %vm245_vm0, %v1466_v60, 0.0  ;;  %v11173_v35 = vsub.f32 %v7644_v20, %v18199_v50  ;;  %v1860_v19 = vsel %vm245_vm0, %v1468_v21, 0.0 }
 0x26b   :  { %18194 = vst [vmem:[#allocation36_spill] sm:$0xff] %v11139_v3  ;;  %18195 = vst [vmem:[#allocation191_spill] sm:$0xff] %v11141_v10  ;;  %1858 = vadd.xlane.f32.xlu1 %v1857_v12  ;;  %1855 = vadd.xlane.f32.xlu0 %v1854_v52  ;;  %v1470_v36 = vmul.f32 %v11139_v3, %v11139_v3  ;;  %v7645_v52 = vld [vmem:[%s17393_s0 + $0x2b0] sm:$0xff]  ;;  %v18201_v12 = vld [vmem:[#allocation38_spill] sm:$0xff]  ;;  %v1869_v21 = vsel %vm245_vm0, %v1471_v61, 0.0 }
 0x26c   :  { %18196 = vst [vmem:[#allocation192_spill] sm:$0xff] %v11143_v32  ;;  %6868 = vst.msk [vmem:[%s17395_s5 + $0x48] sm:$0xff] %vm6630_vm1, %v11141_v10  ;;  %v1649_v33 = vpop.xlane.xlu1 %1648  ;;  %v1646_v11 = vpop.xlane.xlu0 %1645  ;;  %v7646_v3 = vld [vmem:[%s17393_s0 + $0x2c8] sm:$0xff] }
 0x26d   :  { %6867 = vst.msk [vmem:[%s17395_s5 + $0x40] sm:$0xff] %vm6630_vm1, %v11143_v32  ;;  %v11161_v59 = vmul.f32 0.020408163, %v1649_v33  ;;  %v11163_v60 = vmul.f32 0.020408163, %v1646_v11  ;;  %18200 = vst [vmem:[#allocation37_spill] sm:$0xff] %v11173_v35  ;;  %v11179_v33 = vsub.f32 %v7645_v52, %v18201_v12 }
 0x26e   :  { %v1863_v11 = vsel %vm245_vm0, %v1469_v41, 0.0  ;;  %v1866_v12 = vsel %vm245_vm0, %v1470_v36, 0.0  ;;  %v18205_v32 = vld [vmem:[#allocation39_spill] sm:$0xff]  ;;  %v7648_v36 = vld [vmem:[%s17393_s0 + $0x2d8] sm:$0xff] }
 0x26f   :  { %18197 = vst [vmem:[#allocation193_spill] sm:$0xff] %v11161_v59  ;;  %18198 = vst [vmem:[#allocation194_spill] sm:$0xff] %v11163_v60  ;;  %1864 = vadd.xlane.f32.xlu1 %v1863_v11  ;;  %1861 = vadd.xlane.f32.xlu0 %v1860_v19  ;;  %v7647_v19 = vld [vmem:[%s17393_s0 + $0x2c0] sm:$0xff]  ;;  %v18207_v11 = vld [vmem:[#allocation40_spill] sm:$0xff]  ;;  %v1472_v61 = vmul.f32 %v11179_v33, %v11179_v33 }
 0x270   :  { %18202 = vst [vmem:[#allocation38_spill] sm:$0xff] %v11179_v33  ;;  %6870 = vst.msk [vmem:[%s17395_s5 + $0x58] sm:$0xff] %vm6630_vm1, %v11161_v59  ;;  %v1655_v50 = vpop.xlane.xlu1 %1654  ;;  %v1652_v20 = vpop.xlane.xlu0 %1651  ;;  %v11203_v59 = vsub.f32 %v7646_v3, %v18205_v32  ;;  %v7649_v33 = vld [vmem:[%s17393_s0 + $0x2d0] sm:$0xff] }
 0x271   :  { %6869 = vst.msk [vmem:[%s17395_s5 + $0x50] sm:$0xff] %vm6630_vm1, %v11163_v60  ;;  %v11193_v52 = vmul.f32 0.020408163, %v1655_v50  ;;  %v11195_v41 = vmul.f32 0.020408163, %v1652_v20  ;;  %v11209_v50 = vsub.f32 %v7647_v19, %v18207_v11  ;;  %v1473_v20 = vmul.f32 %v11173_v35, %v11173_v35  ;;  %v18209_v19 = vld [vmem:[#allocation41_spill] sm:$0xff] }
 0x272   :  { %18206 = vst [vmem:[#allocation39_spill] sm:$0xff] %v11203_v59  ;;  %v11229_v11 = vsub.f32 %v7648_v36, %v18209_v19  ;;  %v18211_v35 = vld [vmem:[#allocation42_spill] sm:$0xff]  ;;  %v1475_v10 = vmul.f32 %v11203_v59, %v11203_v59  ;;  %v7650_v19 = vld [vmem:[%s17393_s0 + $0x2e8] sm:$0xff] }
 0x273   :  { %18203 = vst [vmem:[#allocation195_spill] sm:$0xff] %v11193_v52  ;;  %18204 = vst [vmem:[#allocation196_spill] sm:$0xff] %v11195_v41  ;;  %1870 = vadd.xlane.f32.xlu1 %v1869_v21  ;;  %1867 = vadd.xlane.f32.xlu0 %v1866_v12  ;;  %v11235_v60 = vsub.f32 %v7649_v33, %v18211_v35  ;;  %v1875_v12 = vsel %vm245_vm0, %v1473_v20, 0.0  ;;  %v1474_v36 = vmul.f32 %v11209_v50, %v11209_v50 }
 0x274   :  { %18208 = vst [vmem:[#allocation40_spill] sm:$0xff] %v11209_v50  ;;  %6872 = vst.msk [vmem:[%s17395_s5 + $0x68] sm:$0xff] %vm6630_vm1, %v11193_v52  ;;  %v1661_v3 = vpop.xlane.xlu1 %1660  ;;  %v1658_v32 = vpop.xlane.xlu0 %1657  ;;  %v18217_v50 = vld [vmem:[#allocation43_spill] sm:$0xff] }
 0x275   :  { %6871 = vst.msk [vmem:[%s17395_s5 + $0x60] sm:$0xff] %vm6630_vm1, %v11195_v41  ;;  %18210 = vst [vmem:[#allocation41_spill] sm:$0xff] %v11229_v11  ;;  %v11237_v52 = vmul.f32 0.020408163, %v1661_v3  ;;  %v11239_v21 = vmul.f32 0.020408163, %v1658_v32  ;;  %v1477_v3 = vmul.f32 %v11229_v11, %v11229_v11  ;;  %v1476_v32 = vmul.f32 %v11235_v60, %v11235_v60 }
 0x276   :  { %18212 = vst [vmem:[#allocation42_spill] sm:$0xff] %v11235_v60  ;;  %v1872_v41 = vsel %vm245_vm0, %v1472_v61, 0.0  ;;  %v11269_v59 = vsub.f32 %v7650_v19, %v18217_v50  ;;  %v1878_v11 = vsel %vm245_vm0, %v1474_v36, 0.0  ;;  %v7652_v60 = vld [vmem:[%s17393_s0 + $0x2f8] sm:$0xff] }
 0x277   :  { %18213 = vst [vmem:[#allocation197_spill] sm:$0xff] %v11237_v52  ;;  %18214 = vst [vmem:[#allocation198_spill] sm:$0xff] %v11239_v21  ;;  %1876 = vadd.xlane.f32.xlu1 %v1875_v12  ;;  %1873 = vadd.xlane.f32.xlu0 %v1872_v41  ;;  %v7651_v41 = vld [vmem:[%s17393_s0 + $0x2e0] sm:$0xff]  ;;  %v18219_v12 = vld [vmem:[#allocation44_spill] sm:$0xff]  ;;  %v1887_v36 = vsel %vm245_vm0, %v1477_v3, 0.0 }
 0x278   :  { %6874 = vst.msk [vmem:[%s17395_s5 + $0x78] sm:$0xff] %vm6630_vm1, %v11237_v52  ;;  %6873 = vst.msk [vmem:[%s17395_s5 + $0x70] sm:$0xff] %vm6630_vm1, %v11239_v21  ;;  %v1667_v35 = vpop.xlane.xlu1 %1666  ;;  %v1664_v33 = vpop.xlane.xlu0 %1663  ;;  %v18223_v21 = vld [vmem:[#allocation45_spill] sm:$0xff] }
 0x279   :  { %v11257_v20 = vmul.f32 0.020408163, %v1667_v35  ;;  %v11259_v61 = vmul.f32 0.020408163, %v1664_v33  ;;  %18218 = vst [vmem:[#allocation43_spill] sm:$0xff] %v11269_v59  ;;  %v11275_v35 = vsub.f32 %v7651_v41, %v18219_v12  ;;  %v1881_v33 = vsel %vm245_vm0, %v1475_v10, 0.0 }
 0x27a   :  { %v1884_v12 = vsel %vm245_vm0, %v1476_v32, 0.0  ;;  %v7654_v32 = vld [vmem:[%s17393_s0 + $0x308] sm:$0xff] }
 0x27b   :  { %18215 = vst [vmem:[#allocation199_spill] sm:$0xff] %v11257_v20  ;;  %18216 = vst [vmem:[#allocation200_spill] sm:$0xff] %v11259_v61  ;;  %1882 = vadd.xlane.f32.xlu1 %v1881_v33  ;;  %1879 = vadd.xlane.f32.xlu0 %v1878_v11  ;;  %v7653_v11 = vld [vmem:[%s17393_s0 + $0x2f0] sm:$0xff]  ;;  %v18225_v33 = vld [vmem:[#allocation46_spill] sm:$0xff]  ;;  %v1478_v3 = vmul.f32 %v11275_v35, %v11275_v35 }
 0x27c   :  { %18220 = vst [vmem:[#allocation44_spill] sm:$0xff] %v11275_v35  ;;  %6876 = vst.msk [vmem:[%s17395_s5 + $0x88] sm:$0xff] %vm6630_vm1, %v11257_v20  ;;  %v1673_v50 = vpop.xlane.xlu1 %1672  ;;  %v1670_v19 = vpop.xlane.xlu0 %1669  ;;  %v11299_v20 = vsub.f32 %v7652_v60, %v18223_v21  ;;  %v7655_v35 = vld [vmem:[%s17393_s0 + $0x300] sm:$0xff] }
 0x27d   :  { %6875 = vst.msk [vmem:[%s17395_s5 + $0x80] sm:$0xff] %vm6630_vm1, %v11259_v61  ;;  %v11289_v41 = vmul.f32 0.020408163, %v1673_v50  ;;  %v11291_v10 = vmul.f32 0.020408163, %v1670_v19  ;;  %v11305_v50 = vsub.f32 %v7653_v11, %v18225_v33  ;;  %v1479_v19 = vmul.f32 %v11269_v59, %v11269_v59  ;;  %v18227_v11 = vld [vmem:[#allocation47_spill] sm:$0xff] }
 0x27e   :  { %18224 = vst [vmem:[#allocation45_spill] sm:$0xff] %v11299_v20  ;;  %v11325_v33 = vsub.f32 %v7654_v32, %v18227_v11  ;;  %v18229_v59 = vld [vmem:[#allocation48_spill] sm:$0xff]  ;;  %v1481_v52 = vmul.f32 %v11299_v20, %v11299_v20  ;;  %v7656_v11 = vld [vmem:[%s17393_s0 + $0x318] sm:$0xff] }
 0x27f   :  { %18221 = vst [vmem:[#allocation201_spill] sm:$0xff] %v11289_v41  ;;  %18222 = vst [vmem:[#allocation202_spill] sm:$0xff] %v11291_v10  ;;  %1888 = vadd.xlane.f32.xlu1 %v1887_v36  ;;  %1885 = vadd.xlane.f32.xlu0 %v1884_v12  ;;  %v11331_v61 = vsub.f32 %v7655_v35, %v18229_v59  ;;  %v1893_v12 = vsel %vm245_vm0, %v1479_v19, 0.0  ;;  %v1480_v32 = vmul.f32 %v11305_v50, %v11305_v50 }
 0x280   :  { %18226 = vst [vmem:[#allocation46_spill] sm:$0xff] %v11305_v50  ;;  %6878 = vst.msk [vmem:[%s17395_s5 + $0x98] sm:$0xff] %vm6630_vm1, %v11289_v41  ;;  %v1679_v60 = vpop.xlane.xlu1 %1678  ;;  %v1676_v21 = vpop.xlane.xlu0 %1675  ;;  %v18235_v50 = vld [vmem:[#allocation49_spill] sm:$0xff] }
 0x281   :  { %6877 = vst.msk [vmem:[%s17395_s5 + $0x90] sm:$0xff] %vm6630_vm1, %v11291_v10  ;;  %18228 = vst [vmem:[#allocation47_spill] sm:$0xff] %v11325_v33  ;;  %v11333_v41 = vmul.f32 0.020408163, %v1679_v60  ;;  %v11335_v36 = vmul.f32 0.020408163, %v1676_v21  ;;  %v1483_v60 = vmul.f32 %v11325_v33, %v11325_v33  ;;  %v1482_v21 = vmul.f32 %v11331_v61, %v11331_v61 }
 0x282   :  { %18230 = vst [vmem:[#allocation48_spill] sm:$0xff] %v11331_v61  ;;  %v1890_v10 = vsel %vm245_vm0, %v1478_v3, 0.0  ;;  %v11365_v20 = vsub.f32 %v7656_v11, %v18235_v50  ;;  %v1896_v33 = vsel %vm245_vm0, %v1480_v32, 0.0  ;;  %v7658_v61 = vld [vmem:[%s17393_s0 + $0x328] sm:$0xff] }
 0x283   :  { %18231 = vst [vmem:[#allocation203_spill] sm:$0xff] %v11333_v41  ;;  %18232 = vst [vmem:[#allocation204_spill] sm:$0xff] %v11335_v36  ;;  %1894 = vadd.xlane.f32.xlu1 %v1893_v12  ;;  %1891 = vadd.xlane.f32.xlu0 %v1890_v10  ;;  %v7657_v10 = vld [vmem:[%s17393_s0 + $0x310] sm:$0xff]  ;;  %v18237_v12 = vld [vmem:[#allocation50_spill] sm:$0xff]  ;;  %v1905_v32 = vsel %vm245_vm0, %v1483_v60, 0.0 }
 0x284   :  { %6880 = vst.msk [vmem:[%s17395_s5 + $0xa8] sm:$0xff] %vm6630_vm1, %v11333_v41  ;;  %6879 = vst.msk [vmem:[%s17395_s5 + $0xa0] sm:$0xff] %vm6630_vm1, %v11335_v36  ;;  %v1685_v59 = vpop.xlane.xlu1 %1684  ;;  %v1682_v35 = vpop.xlane.xlu0 %1681  ;;  %v18241_v36 = vld [vmem:[#allocation51_spill] sm:$0xff] }
 0x285   :  { %v11353_v19 = vmul.f32 0.020408163, %v1685_v59  ;;  %v11355_v3 = vmul.f32 0.020408163, %v1682_v35  ;;  %18236 = vst [vmem:[#allocation49_spill] sm:$0xff] %v11365_v20  ;;  %v11371_v59 = vsub.f32 %v7657_v10, %v18237_v12  ;;  %v1899_v35 = vsel %vm245_vm0, %v1481_v52, 0.0 }
 0x286   :  { %v1902_v12 = vsel %vm245_vm0, %v1482_v21, 0.0  ;;  %v7660_v21 = vld [vmem:[%s17393_s0 + $0x338] sm:$0xff] }
 0x287   :  { %18233 = vst [vmem:[#allocation205_spill] sm:$0xff] %v11353_v19  ;;  %18234 = vst [vmem:[#allocation206_spill] sm:$0xff] %v11355_v3  ;;  %1900 = vadd.xlane.f32.xlu1 %v1899_v35  ;;  %1897 = vadd.xlane.f32.xlu0 %v1896_v33  ;;  %v7659_v33 = vld [vmem:[%s17393_s0 + $0x320] sm:$0xff]  ;;  %v18243_v35 = vld [vmem:[#allocation52_spill] sm:$0xff]  ;;  %v1484_v60 = vmul.f32 %v11371_v59, %v11371_v59 }
 0x288   :  { %18238 = vst [vmem:[#allocation50_spill] sm:$0xff] %v11371_v59  ;;  %6882 = vst.msk [vmem:[%s17395_s5 + $0xb8] sm:$0xff] %vm6630_vm1, %v11353_v19  ;;  %v1691_v50 = vpop.xlane.xlu1 %1690  ;;  %v1688_v11 = vpop.xlane.xlu0 %1687  ;;  %v11395_v19 = vsub.f32 %v7658_v61, %v18241_v36  ;;  %v7661_v59 = vld [vmem:[%s17393_s0 + $0x330] sm:$0xff] }
 0x289   :  { %6881 = vst.msk [vmem:[%s17395_s5 + $0xb0] sm:$0xff] %vm6630_vm1, %v11355_v3  ;;  %v11385_v10 = vmul.f32 0.020408163, %v1691_v50  ;;  %v11387_v52 = vmul.f32 0.020408163, %v1688_v11  ;;  %v11401_v50 = vsub.f32 %v7659_v33, %v18243_v35  ;;  %v1485_v11 = vmul.f32 %v11365_v20, %v11365_v20  ;;  %v18245_v33 = vld [vmem:[#allocation53_spill] sm:$0xff] }
 0x28a   :  { %18242 = vst [vmem:[#allocation51_spill] sm:$0xff] %v11395_v19  ;;  %v11421_v35 = vsub.f32 %v7660_v21, %v18245_v33  ;;  %v18247_v20 = vld [vmem:[#allocation54_spill] sm:$0xff]  ;;  %v1487_v41 = vmul.f32 %v11395_v19, %v11395_v19  ;;  %v7662_v33 = vld [vmem:[%s17393_s0 + $0x348] sm:$0xff] }
 0x28b   :  { %18239 = vst [vmem:[#allocation207_spill] sm:$0xff] %v11385_v10  ;;  %18240 = vst [vmem:[#allocation208_spill] sm:$0xff] %v11387_v52  ;;  %1906 = vadd.xlane.f32.xlu1 %v1905_v32  ;;  %1903 = vadd.xlane.f32.xlu0 %v1902_v12  ;;  %v11427_v3 = vsub.f32 %v7661_v59, %v18247_v20  ;;  %v1911_v12 = vsel %vm245_vm0, %v1485_v11, 0.0  ;;  %v1486_v21 = vmul.f32 %v11401_v50, %v11401_v50 }
 0x28c   :  { %18244 = vst [vmem:[#allocation52_spill] sm:$0xff] %v11401_v50  ;;  %6884 = vst.msk [vmem:[%s17395_s5 + $0xc8] sm:$0xff] %vm6630_vm1, %v11385_v10  ;;  %v1697_v61 = vpop.xlane.xlu1 %1696  ;;  %v1694_v36 = vpop.xlane.xlu0 %1693  ;;  %v18253_v50 = vld [vmem:[#allocation55_spill] sm:$0xff] }
 0x28d   :  { %6883 = vst.msk [vmem:[%s17395_s5 + $0xc0] sm:$0xff] %vm6630_vm1, %v11387_v52  ;;  %18246 = vst [vmem:[#allocation53_spill] sm:$0xff] %v11421_v35  ;;  %v11429_v10 = vmul.f32 0.020408163, %v1697_v61  ;;  %v11431_v32 = vmul.f32 0.020408163, %v1694_v36  ;;  %v1489_v61 = vmul.f32 %v11421_v35, %v11421_v35  ;;  %v1488_v36 = vmul.f32 %v11427_v3, %v11427_v3 }
 0x28e   :  { %18248 = vst [vmem:[#allocation54_spill] sm:$0xff] %v11427_v3  ;;  %v1908_v52 = vsel %vm245_vm0, %v1484_v60, 0.0  ;;  %v11461_v19 = vsub.f32 %v7662_v33, %v18253_v50  ;;  %v1914_v35 = vsel %vm245_vm0, %v1486_v21, 0.0  ;;  %v7664_v3 = vld [vmem:[%s17393_s0 + $0x358] sm:$0xff] }
 0x28f   :  { %18249 = vst [vmem:[#allocation209_spill] sm:$0xff] %v11429_v10  ;;  %18250 = vst [vmem:[#allocation210_spill] sm:$0xff] %v11431_v32  ;;  %1912 = vadd.xlane.f32.xlu1 %v1911_v12  ;;  %1909 = vadd.xlane.f32.xlu0 %v1908_v52  ;;  %v7663_v52 = vld [vmem:[%s17393_s0 + $0x340] sm:$0xff]  ;;  %v18255_v12 = vld [vmem:[#allocation56_spill] sm:$0xff]  ;;  %v1923_v21 = vsel %vm245_vm0, %v1489_v61, 0.0 }
 0x290   :  { %6886 = vst.msk [vmem:[%s17395_s5 + $0xd8] sm:$0xff] %vm6630_vm1, %v11429_v10  ;;  %6885 = vst.msk [vmem:[%s17395_s5 + $0xd0] sm:$0xff] %vm6630_vm1, %v11431_v32  ;;  %v1703_v20 = vpop.xlane.xlu1 %1702  ;;  %v1700_v59 = vpop.xlane.xlu0 %1699  ;;  %v18259_v32 = vld [vmem:[#allocation57_spill] sm:$0xff] }
 0x291   :  { %v11449_v11 = vmul.f32 0.020408163, %v1703_v20  ;;  %v11451_v60 = vmul.f32 0.020408163, %v1700_v59  ;;  %18254 = vst [vmem:[#allocation55_spill] sm:$0xff] %v11461_v19  ;;  %v11467_v20 = vsub.f32 %v7663_v52, %v18255_v12  ;;  %v1917_v59 = vsel %vm245_vm0, %v1487_v41, 0.0 }
 0x292   :  { %v1920_v12 = vsel %vm245_vm0, %v1488_v36, 0.0  ;;  %v7666_v36 = vld [vmem:[%s17393_s0 + $0x368] sm:$0xff] }
 0x293   :  { %18251 = vst [vmem:[#allocation211_spill] sm:$0xff] %v11449_v11  ;;  %18252 = vst [vmem:[#allocation212_spill] sm:$0xff] %v11451_v60  ;;  %1918 = vadd.xlane.f32.xlu1 %v1917_v59  ;;  %1915 = vadd.xlane.f32.xlu0 %v1914_v35  ;;  %v7665_v35 = vld [vmem:[%s17393_s0 + $0x350] sm:$0xff]  ;;  %v18261_v59 = vld [vmem:[#allocation58_spill] sm:$0xff]  ;;  %v1490_v61 = vmul.f32 %v11467_v20, %v11467_v20 }
 0x294   :  { %18256 = vst [vmem:[#allocation56_spill] sm:$0xff] %v11467_v20  ;;  %6888 = vst.msk [vmem:[%s17395_s5 + $0xe8] sm:$0xff] %vm6630_vm1, %v11449_v11  ;;  %v1709_v50 = vpop.xlane.xlu1 %1708  ;;  %v1706_v33 = vpop.xlane.xlu0 %1705  ;;  %v11491_v11 = vsub.f32 %v7664_v3, %v18259_v32  ;;  %v7667_v20 = vld [vmem:[%s17393_s0 + $0x360] sm:$0xff] }
 0x295   :  { %6887 = vst.msk [vmem:[%s17395_s5 + $0xe0] sm:$0xff] %vm6630_vm1, %v11451_v60  ;;  %v11481_v52 = vmul.f32 0.020408163, %v1709_v50  ;;  %v11483_v41 = vmul.f32 0.020408163, %v1706_v33  ;;  %v11497_v50 = vsub.f32 %v7665_v35, %v18261_v59  ;;  %v1491_v33 = vmul.f32 %v11461_v19, %v11461_v19  ;;  %v18263_v35 = vld [vmem:[#allocation59_spill] sm:$0xff] }
 0x296   :  { %18260 = vst [vmem:[#allocation57_spill] sm:$0xff] %v11491_v11  ;;  %v11517_v59 = vsub.f32 %v7666_v36, %v18263_v35  ;;  %v18265_v19 = vld [vmem:[#allocation60_spill] sm:$0xff]  ;;  %v1493_v10 = vmul.f32 %v11491_v11, %v11491_v11  ;;  %v7668_v35 = vld [vmem:[%s17393_s0 + $0x378] sm:$0xff] }
 0x297   :  { %18257 = vst [vmem:[#allocation213_spill] sm:$0xff] %v11481_v52  ;;  %18258 = vst [vmem:[#allocation214_spill] sm:$0xff] %v11483_v41  ;;  %1924 = vadd.xlane.f32.xlu1 %v1923_v21  ;;  %1921 = vadd.xlane.f32.xlu0 %v1920_v12  ;;  %v11523_v60 = vsub.f32 %v7667_v20, %v18265_v19  ;;  %v1929_v12 = vsel %vm245_vm0, %v1491_v33, 0.0  ;;  %v1492_v36 = vmul.f32 %v11497_v50, %v11497_v50 }
 0x298   :  { %18262 = vst [vmem:[#allocation58_spill] sm:$0xff] %v11497_v50  ;;  %6890 = vst.msk [vmem:[%s17395_s5 + $0xf8] sm:$0xff] %vm6630_vm1, %v11481_v52  ;;  %v1715_v3 = vpop.xlane.xlu1 %1714  ;;  %v1712_v32 = vpop.xlane.xlu0 %1711  ;;  %v18271_v50 = vld [vmem:[#allocation61_spill] sm:$0xff] }
 0x299   :  { %6889 = vst.msk [vmem:[%s17395_s5 + $0xf0] sm:$0xff] %vm6630_vm1, %v11483_v41  ;;  %18264 = vst [vmem:[#allocation59_spill] sm:$0xff] %v11517_v59  ;;  %v11525_v52 = vmul.f32 0.020408163, %v1715_v3  ;;  %v11527_v21 = vmul.f32 0.020408163, %v1712_v32  ;;  %v1495_v3 = vmul.f32 %v11517_v59, %v11517_v59  ;;  %v1494_v32 = vmul.f32 %v11523_v60, %v11523_v60 }
 0x29a   :  { %18266 = vst [vmem:[#allocation60_spill] sm:$0xff] %v11523_v60  ;;  %v1926_v41 = vsel %vm245_vm0, %v1490_v61, 0.0  ;;  %v11557_v11 = vsub.f32 %v7668_v35, %v18271_v50  ;;  %v1932_v59 = vsel %vm245_vm0, %v1492_v36, 0.0  ;;  %v7670_v60 = vld [vmem:[%s17393_s0 + $0x388] sm:$0xff] }
 0x29b   :  { %18267 = vst [vmem:[#allocation215_spill] sm:$0xff] %v11525_v52  ;;  %18268 = vst [vmem:[#allocation216_spill] sm:$0xff] %v11527_v21  ;;  %1930 = vadd.xlane.f32.xlu1 %v1929_v12  ;;  %1927 = vadd.xlane.f32.xlu0 %v1926_v41  ;;  %v7669_v41 = vld [vmem:[%s17393_s0 + $0x370] sm:$0xff]  ;;  %v18273_v12 = vld [vmem:[#allocation62_spill] sm:$0xff]  ;;  %v1941_v36 = vsel %vm245_vm0, %v1495_v3, 0.0 }
 0x29c   :  { %6892 = vst.msk [vmem:[%s17395_s5 + $0x108] sm:$0xff] %vm6630_vm1, %v11525_v52  ;;  %6891 = vst.msk [vmem:[%s17395_s5 + $0x100] sm:$0xff] %vm6630_vm1, %v11527_v21  ;;  %v1721_v19 = vpop.xlane.xlu1 %1720  ;;  %v1718_v20 = vpop.xlane.xlu0 %1717  ;;  %v18277_v21 = vld [vmem:[#allocation63_spill] sm:$0xff] }
 0x29d   :  { %v11545_v33 = vmul.f32 0.020408163, %v1721_v19  ;;  %v11547_v61 = vmul.f32 0.020408163, %v1718_v20  ;;  %18272 = vst [vmem:[#allocation61_spill] sm:$0xff] %v11557_v11  ;;  %v11563_v19 = vsub.f32 %v7669_v41, %v18273_v12  ;;  %v1935_v20 = vsel %vm245_vm0, %v1493_v10, 0.0 }
 0x29e   :  { %v1938_v12 = vsel %vm245_vm0, %v1494_v32, 0.0  ;;  %v7672_v32 = vld [vmem:[%s17393_s0 + $0x398] sm:$0xff] }
 0x29f   :  { %18269 = vst [vmem:[#allocation217_spill] sm:$0xff] %v11545_v33  ;;  %18270 = vst [vmem:[#allocation218_spill] sm:$0xff] %v11547_v61  ;;  %1936 = vadd.xlane.f32.xlu1 %v1935_v20  ;;  %1933 = vadd.xlane.f32.xlu0 %v1932_v59  ;;  %v7671_v59 = vld [vmem:[%s17393_s0 + $0x380] sm:$0xff]  ;;  %v18279_v20 = vld [vmem:[#allocation64_spill] sm:$0xff]  ;;  %v1496_v3 = vmul.f32 %v11563_v19, %v11563_v19 }
 0x2a0   :  { %18274 = vst [vmem:[#allocation62_spill] sm:$0xff] %v11563_v19  ;;  %6894 = vst.msk [vmem:[%s17395_s5 + $0x118] sm:$0xff] %vm6630_vm1, %v11545_v33  ;;  %v1727_v50 = vpop.xlane.xlu1 %1726  ;;  %v1724_v35 = vpop.xlane.xlu0 %1723  ;;  %v11587_v33 = vsub.f32 %v7670_v60, %v18277_v21  ;;  %v7673_v19 = vld [vmem:[%s17393_s0 + $0x390] sm:$0xff] }
 0x2a1   :  { %6893 = vst.msk [vmem:[%s17395_s5 + $0x110] sm:$0xff] %vm6630_vm1, %v11547_v61  ;;  %v11577_v41 = vmul.f32 0.020408163, %v1727_v50  ;;  %v11579_v10 = vmul.f32 0.020408163, %v1724_v35  ;;  %v11593_v50 = vsub.f32 %v7671_v59, %v18279_v20  ;;  %v1497_v35 = vmul.f32 %v11557_v11, %v11557_v11  ;;  %v18281_v59 = vld [vmem:[#allocation65_spill] sm:$0xff] }
 0x2a2   :  { %18278 = vst [vmem:[#allocation63_spill] sm:$0xff] %v11587_v33  ;;  %v11613_v20 = vsub.f32 %v7672_v32, %v18281_v59  ;;  %v18283_v11 = vld [vmem:[#allocation66_spill] sm:$0xff]  ;;  %v1499_v52 = vmul.f32 %v11587_v33, %v11587_v33  ;;  %v7674_v59 = vld [vmem:[%s17393_s0 + $0x3a8] sm:$0xff] }
 0x2a3   :  { %18275 = vst [vmem:[#allocation219_spill] sm:$0xff] %v11577_v41  ;;  %18276 = vst [vmem:[#allocation220_spill] sm:$0xff] %v11579_v10  ;;  %1942 = vadd.xlane.f32.xlu1 %v1941_v36  ;;  %1939 = vadd.xlane.f32.xlu0 %v1938_v12  ;;  %v11619_v61 = vsub.f32 %v7673_v19, %v18283_v11  ;;  %v1947_v12 = vsel %vm245_vm0, %v1497_v35, 0.0  ;;  %v1498_v32 = vmul.f32 %v11593_v50, %v11593_v50 }
 0x2a4   :  { %18280 = vst [vmem:[#allocation64_spill] sm:$0xff] %v11593_v50  ;;  %6896 = vst.msk [vmem:[%s17395_s5 + $0x128] sm:$0xff] %vm6630_vm1, %v11577_v41  ;;  %v1733_v60 = vpop.xlane.xlu1 %1732  ;;  %v1730_v21 = vpop.xlane.xlu0 %1729  ;;  %v18289_v50 = vld [vmem:[#allocation67_spill] sm:$0xff] }
 0x2a5   :  { %6895 = vst.msk [vmem:[%s17395_s5 + $0x120] sm:$0xff] %vm6630_vm1, %v11579_v10  ;;  %18282 = vst [vmem:[#allocation65_spill] sm:$0xff] %v11613_v20  ;;  %v11621_v41 = vmul.f32 0.020408163, %v1733_v60  ;;  %v11623_v36 = vmul.f32 0.020408163, %v1730_v21  ;;  %v1501_v60 = vmul.f32 %v11613_v20, %v11613_v20  ;;  %v1500_v21 = vmul.f32 %v11619_v61, %v11619_v61 }
 0x2a6   :  { %18284 = vst [vmem:[#allocation66_spill] sm:$0xff] %v11619_v61  ;;  %v1944_v10 = vsel %vm245_vm0, %v1496_v3, 0.0  ;;  %v11653_v33 = vsub.f32 %v7674_v59, %v18289_v50  ;;  %v1950_v20 = vsel %vm245_vm0, %v1498_v32, 0.0  ;;  %v7676_v61 = vld [vmem:[%s17393_s0 + $0x3b8] sm:$0xff] }
 0x2a7   :  { %18285 = vst [vmem:[#allocation221_spill] sm:$0xff] %v11621_v41  ;;  %18286 = vst [vmem:[#allocation222_spill] sm:$0xff] %v11623_v36  ;;  %1948 = vadd.xlane.f32.xlu1 %v1947_v12  ;;  %1945 = vadd.xlane.f32.xlu0 %v1944_v10  ;;  %v7675_v10 = vld [vmem:[%s17393_s0 + $0x3a0] sm:$0xff]  ;;  %v18291_v12 = vld [vmem:[#allocation68_spill] sm:$0xff]  ;;  %v1959_v32 = vsel %vm245_vm0, %v1501_v60, 0.0 }
 0x2a8   :  { %6898 = vst.msk [vmem:[%s17395_s5 + $0x138] sm:$0xff] %vm6630_vm1, %v11621_v41  ;;  %6897 = vst.msk [vmem:[%s17395_s5 + $0x130] sm:$0xff] %vm6630_vm1, %v11623_v36  ;;  %v1739_v11 = vpop.xlane.xlu1 %1738  ;;  %v1736_v19 = vpop.xlane.xlu0 %1735  ;;  %v18295_v36 = vld [vmem:[#allocation69_spill] sm:$0xff] }
 0x2a9   :  { %v11641_v35 = vmul.f32 0.020408163, %v1739_v11  ;;  %v11643_v3 = vmul.f32 0.020408163, %v1736_v19  ;;  %18290 = vst [vmem:[#allocation67_spill] sm:$0xff] %v11653_v33  ;;  %v11659_v11 = vsub.f32 %v7675_v10, %v18291_v12  ;;  %v1953_v19 = vsel %vm245_vm0, %v1499_v52, 0.0 }
 0x2aa   :  { %v1956_v12 = vsel %vm245_vm0, %v1500_v21, 0.0  ;;  %v7678_v21 = vld [vmem:[%s17393_s0 + $0x3c8] sm:$0xff] }
 0x2ab   :  { %18287 = vst [vmem:[#allocation223_spill] sm:$0xff] %v11641_v35  ;;  %18288 = vst [vmem:[#allocation224_spill] sm:$0xff] %v11643_v3  ;;  %1954 = vadd.xlane.f32.xlu1 %v1953_v19  ;;  %1951 = vadd.xlane.f32.xlu0 %v1950_v20  ;;  %v7677_v20 = vld [vmem:[%s17393_s0 + $0x3b0] sm:$0xff]  ;;  %v18297_v19 = vld [vmem:[#allocation70_spill] sm:$0xff]  ;;  %v1502_v60 = vmul.f32 %v11659_v11, %v11659_v11 }
 0x2ac   :  { %18292 = vst [vmem:[#allocation68_spill] sm:$0xff] %v11659_v11  ;;  %6900 = vst.msk [vmem:[%s17395_s5 + $0x148] sm:$0xff] %vm6630_vm1, %v11641_v35  ;;  %v1745_v50 = vpop.xlane.xlu1 %1744  ;;  %v1742_v59 = vpop.xlane.xlu0 %1741  ;;  %v11683_v35 = vsub.f32 %v7676_v61, %v18295_v36  ;;  %v7679_v11 = vld [vmem:[%s17393_s0 + $0x3c0] sm:$0xff] }
 0x2ad   :  { %6899 = vst.msk [vmem:[%s17395_s5 + $0x140] sm:$0xff] %vm6630_vm1, %v11643_v3  ;;  %v11673_v10 = vmul.f32 0.020408163, %v1745_v50  ;;  %v11675_v52 = vmul.f32 0.020408163, %v1742_v59  ;;  %v11689_v50 = vsub.f32 %v7677_v20, %v18297_v19  ;;  %v1503_v59 = vmul.f32 %v11653_v33, %v11653_v33  ;;  %v18299_v20 = vld [vmem:[#allocation71_spill] sm:$0xff] }
 0x2ae   :  { %18296 = vst [vmem:[#allocation69_spill] sm:$0xff] %v11683_v35  ;;  %v11709_v19 = vsub.f32 %v7678_v21, %v18299_v20  ;;  %v18301_v33 = vld [vmem:[#allocation72_spill] sm:$0xff]  ;;  %v1505_v41 = vmul.f32 %v11683_v35, %v11683_v35  ;;  %v7680_v20 = vld [vmem:[%s17393_s0 + $0x3d8] sm:$0xff] }
 0x2af   :  { %18293 = vst [vmem:[#allocation225_spill] sm:$0xff] %v11673_v10  ;;  %18294 = vst [vmem:[#allocation226_spill] sm:$0xff] %v11675_v52  ;;  %1960 = vadd.xlane.f32.xlu1 %v1959_v32  ;;  %1957 = vadd.xlane.f32.xlu0 %v1956_v12  ;;  %v11715_v3 = vsub.f32 %v7679_v11, %v18301_v33  ;;  %v1965_v12 = vsel %vm245_vm0, %v1503_v59, 0.0  ;;  %v1504_v21 = vmul.f32 %v11689_v50, %v11689_v50 }
 0x2b0   :  { %18298 = vst [vmem:[#allocation70_spill] sm:$0xff] %v11689_v50  ;;  %6902 = vst.msk [vmem:[%s17395_s5 + $0x158] sm:$0xff] %vm6630_vm1, %v11673_v10  ;;  %v1751_v61 = vpop.xlane.xlu1 %1750  ;;  %v1748_v36 = vpop.xlane.xlu0 %1747  ;;  %v18307_v50 = vld [vmem:[#allocation73_spill] sm:$0xff] }
 0x2b1   :  { %6901 = vst.msk [vmem:[%s17395_s5 + $0x150] sm:$0xff] %vm6630_vm1, %v11675_v52  ;;  %18300 = vst [vmem:[#allocation71_spill] sm:$0xff] %v11709_v19  ;;  %v11717_v10 = vmul.f32 0.020408163, %v1751_v61  ;;  %v11719_v32 = vmul.f32 0.020408163, %v1748_v36  ;;  %v1507_v61 = vmul.f32 %v11709_v19, %v11709_v19  ;;  %v1506_v36 = vmul.f32 %v11715_v3, %v11715_v3 }
 0x2b2   :  { %18302 = vst [vmem:[#allocation72_spill] sm:$0xff] %v11715_v3  ;;  %v1962_v52 = vsel %vm245_vm0, %v1502_v60, 0.0  ;;  %v11749_v35 = vsub.f32 %v7680_v20, %v18307_v50  ;;  %v1968_v19 = vsel %vm245_vm0, %v1504_v21, 0.0  ;;  %v7682_v3 = vld [vmem:[%s17393_s0 + $0x3e8] sm:$0xff] }
 0x2b3   :  { %18303 = vst [vmem:[#allocation227_spill] sm:$0xff] %v11717_v10  ;;  %18304 = vst [vmem:[#allocation228_spill] sm:$0xff] %v11719_v32  ;;  %1966 = vadd.xlane.f32.xlu1 %v1965_v12  ;;  %1963 = vadd.xlane.f32.xlu0 %v1962_v52  ;;  %v7681_v52 = vld [vmem:[%s17393_s0 + $0x3d0] sm:$0xff]  ;;  %v18309_v12 = vld [vmem:[#allocation74_spill] sm:$0xff]  ;;  %v1977_v21 = vsel %vm245_vm0, %v1507_v61, 0.0 }
 0x2b4   :  { %6904 = vst.msk [vmem:[%s17395_s5 + $0x168] sm:$0xff] %vm6630_vm1, %v11717_v10  ;;  %6903 = vst.msk [vmem:[%s17395_s5 + $0x160] sm:$0xff] %vm6630_vm1, %v11719_v32  ;;  %v1757_v33 = vpop.xlane.xlu1 %1756  ;;  %v1754_v11 = vpop.xlane.xlu0 %1753  ;;  %v18313_v32 = vld [vmem:[#allocation75_spill] sm:$0xff] }
 0x2b5   :  { %v11737_v59 = vmul.f32 0.020408163, %v1757_v33  ;;  %v11739_v60 = vmul.f32 0.020408163, %v1754_v11  ;;  %18308 = vst [vmem:[#allocation73_spill] sm:$0xff] %v11749_v35  ;;  %v11755_v33 = vsub.f32 %v7681_v52, %v18309_v12  ;;  %v1971_v11 = vsel %vm245_vm0, %v1505_v41, 0.0 }
 0x2b6   :  { %v1974_v12 = vsel %vm245_vm0, %v1506_v36, 0.0  ;;  %v7684_v36 = vld [vmem:[%s17393_s0 + $0x3f8] sm:$0xff] }
 0x2b7   :  { %18305 = vst [vmem:[#allocation229_spill] sm:$0xff] %v11737_v59  ;;  %18306 = vst [vmem:[#allocation230_spill] sm:$0xff] %v11739_v60  ;;  %1972 = vadd.xlane.f32.xlu1 %v1971_v11  ;;  %1969 = vadd.xlane.f32.xlu0 %v1968_v19  ;;  %v7683_v19 = vld [vmem:[%s17393_s0 + $0x3e0] sm:$0xff]  ;;  %v18315_v11 = vld [vmem:[#allocation76_spill] sm:$0xff]  ;;  %v1508_v61 = vmul.f32 %v11755_v33, %v11755_v33 }
 0x2b8   :  { %18310 = vst [vmem:[#allocation74_spill] sm:$0xff] %v11755_v33  ;;  %6906 = vst.msk [vmem:[%s17395_s5 + $0x178] sm:$0xff] %vm6630_vm1, %v11737_v59  ;;  %v1763_v50 = vpop.xlane.xlu1 %1762  ;;  %v1760_v20 = vpop.xlane.xlu0 %1759  ;;  %v11779_v59 = vsub.f32 %v7682_v3, %v18313_v32  ;;  %v7685_v33 = vld [vmem:[%s17393_s0 + $0x3f0] sm:$0xff] }
 0x2b9   :  { %6905 = vst.msk [vmem:[%s17395_s5 + $0x170] sm:$0xff] %vm6630_vm1, %v11739_v60  ;;  %v11769_v52 = vmul.f32 0.020408163, %v1763_v50  ;;  %v11771_v41 = vmul.f32 0.020408163, %v1760_v20  ;;  %v11785_v50 = vsub.f32 %v7683_v19, %v18315_v11  ;;  %v1509_v20 = vmul.f32 %v11749_v35, %v11749_v35  ;;  %v18317_v19 = vld [vmem:[#allocation77_spill] sm:$0xff] }
 0x2ba   :  { %18314 = vst [vmem:[#allocation75_spill] sm:$0xff] %v11779_v59  ;;  %v11805_v11 = vsub.f32 %v7684_v36, %v18317_v19  ;;  %v18319_v35 = vld [vmem:[#allocation78_spill] sm:$0xff]  ;;  %v1511_v10 = vmul.f32 %v11779_v59, %v11779_v59  ;;  %v7686_v19 = vld [vmem:[%s17393_s0 + $0x408] sm:$0xff] }
 0x2bb   :  { %18311 = vst [vmem:[#allocation231_spill] sm:$0xff] %v11769_v52  ;;  %18312 = vst [vmem:[#allocation232_spill] sm:$0xff] %v11771_v41  ;;  %1978 = vadd.xlane.f32.xlu1 %v1977_v21  ;;  %1975 = vadd.xlane.f32.xlu0 %v1974_v12  ;;  %v11811_v60 = vsub.f32 %v7685_v33, %v18319_v35  ;;  %v1983_v12 = vsel %vm245_vm0, %v1509_v20, 0.0  ;;  %v1510_v36 = vmul.f32 %v11785_v50, %v11785_v50 }
 0x2bc   :  { %18316 = vst [vmem:[#allocation76_spill] sm:$0xff] %v11785_v50  ;;  %6908 = vst.msk [vmem:[%s17395_s5 + $0x188] sm:$0xff] %vm6630_vm1, %v11769_v52  ;;  %v1769_v3 = vpop.xlane.xlu1 %1768  ;;  %v1766_v32 = vpop.xlane.xlu0 %1765  ;;  %v18325_v50 = vld [vmem:[#allocation79_spill] sm:$0xff] }
 0x2bd   :  { %6907 = vst.msk [vmem:[%s17395_s5 + $0x180] sm:$0xff] %vm6630_vm1, %v11771_v41  ;;  %18318 = vst [vmem:[#allocation77_spill] sm:$0xff] %v11805_v11  ;;  %v11813_v52 = vmul.f32 0.020408163, %v1769_v3  ;;  %v11815_v21 = vmul.f32 0.020408163, %v1766_v32  ;;  %v1513_v3 = vmul.f32 %v11805_v11, %v11805_v11  ;;  %v1512_v32 = vmul.f32 %v11811_v60, %v11811_v60 }
 0x2be   :  { %18320 = vst [vmem:[#allocation78_spill] sm:$0xff] %v11811_v60  ;;  %v1980_v41 = vsel %vm245_vm0, %v1508_v61, 0.0  ;;  %v11845_v59 = vsub.f32 %v7686_v19, %v18325_v50  ;;  %v1986_v11 = vsel %vm245_vm0, %v1510_v36, 0.0  ;;  %v7688_v60 = vld [vmem:[%s17393_s0 + $0x418] sm:$0xff] }
 0x2bf   :  { %18321 = vst [vmem:[#allocation233_spill] sm:$0xff] %v11813_v52  ;;  %18322 = vst [vmem:[#allocation234_spill] sm:$0xff] %v11815_v21  ;;  %1984 = vadd.xlane.f32.xlu1 %v1983_v12  ;;  %1981 = vadd.xlane.f32.xlu0 %v1980_v41  ;;  %v7687_v41 = vld [vmem:[%s17393_s0 + $0x400] sm:$0xff]  ;;  %v18327_v12 = vld [vmem:[#allocation80_spill] sm:$0xff]  ;;  %v1995_v36 = vsel %vm245_vm0, %v1513_v3, 0.0 }
 0x2c0   :  { %6910 = vst.msk [vmem:[%s17395_s5 + $0x198] sm:$0xff] %vm6630_vm1, %v11813_v52  ;;  %6909 = vst.msk [vmem:[%s17395_s5 + $0x190] sm:$0xff] %vm6630_vm1, %v11815_v21  ;;  %v1775_v35 = vpop.xlane.xlu1 %1774  ;;  %v1772_v33 = vpop.xlane.xlu0 %1771  ;;  %v18331_v21 = vld [vmem:[#allocation81_spill] sm:$0xff] }
 0x2c1   :  { %v11833_v20 = vmul.f32 0.020408163, %v1775_v35  ;;  %v11835_v61 = vmul.f32 0.020408163, %v1772_v33  ;;  %18326 = vst [vmem:[#allocation79_spill] sm:$0xff] %v11845_v59  ;;  %v11851_v35 = vsub.f32 %v7687_v41, %v18327_v12  ;;  %v1989_v33 = vsel %vm245_vm0, %v1511_v10, 0.0 }
 0x2c2   :  { %v1992_v12 = vsel %vm245_vm0, %v1512_v32, 0.0  ;;  %v7690_v32 = vld [vmem:[%s17393_s0 + $0x428] sm:$0xff] }
 0x2c3   :  { %18323 = vst [vmem:[#allocation235_spill] sm:$0xff] %v11833_v20  ;;  %18324 = vst [vmem:[#allocation236_spill] sm:$0xff] %v11835_v61  ;;  %1990 = vadd.xlane.f32.xlu1 %v1989_v33  ;;  %1987 = vadd.xlane.f32.xlu0 %v1986_v11  ;;  %v7689_v11 = vld [vmem:[%s17393_s0 + $0x410] sm:$0xff]  ;;  %v18333_v33 = vld [vmem:[#allocation82_spill] sm:$0xff]  ;;  %v1514_v3 = vmul.f32 %v11851_v35, %v11851_v35 }
 0x2c4   :  { %18328 = vst [vmem:[#allocation80_spill] sm:$0xff] %v11851_v35  ;;  %6912 = vst.msk [vmem:[%s17395_s5 + $0x1a8] sm:$0xff] %vm6630_vm1, %v11833_v20  ;;  %v1781_v50 = vpop.xlane.xlu1 %1780  ;;  %v1778_v19 = vpop.xlane.xlu0 %1777  ;;  %v11875_v20 = vsub.f32 %v7688_v60, %v18331_v21  ;;  %v7691_v35 = vld [vmem:[%s17393_s0 + $0x420] sm:$0xff] }
 0x2c5   :  { %6911 = vst.msk [vmem:[%s17395_s5 + $0x1a0] sm:$0xff] %vm6630_vm1, %v11835_v61  ;;  %v11865_v41 = vmul.f32 0.020408163, %v1781_v50  ;;  %v11867_v10 = vmul.f32 0.020408163, %v1778_v19  ;;  %v11881_v50 = vsub.f32 %v7689_v11, %v18333_v33  ;;  %v1515_v19 = vmul.f32 %v11845_v59, %v11845_v59  ;;  %v18335_v11 = vld [vmem:[#allocation83_spill] sm:$0xff] }
 0x2c6   :  { %18332 = vst [vmem:[#allocation81_spill] sm:$0xff] %v11875_v20  ;;  %v11901_v33 = vsub.f32 %v7690_v32, %v18335_v11  ;;  %v18337_v59 = vld [vmem:[#allocation84_spill] sm:$0xff]  ;;  %v1517_v52 = vmul.f32 %v11875_v20, %v11875_v20  ;;  %v7692_v11 = vld [vmem:[%s17393_s0 + $0x438] sm:$0xff] }
 0x2c7   :  { %18329 = vst [vmem:[#allocation237_spill] sm:$0xff] %v11865_v41  ;;  %18330 = vst [vmem:[#allocation238_spill] sm:$0xff] %v11867_v10  ;;  %1996 = vadd.xlane.f32.xlu1 %v1995_v36  ;;  %1993 = vadd.xlane.f32.xlu0 %v1992_v12  ;;  %v11907_v61 = vsub.f32 %v7691_v35, %v18337_v59  ;;  %v2001_v12 = vsel %vm245_vm0, %v1515_v19, 0.0  ;;  %v1516_v32 = vmul.f32 %v11881_v50, %v11881_v50 }
 0x2c8   :  { %18334 = vst [vmem:[#allocation82_spill] sm:$0xff] %v11881_v50  ;;  %6914 = vst.msk [vmem:[%s17395_s5 + $0x1b8] sm:$0xff] %vm6630_vm1, %v11865_v41  ;;  %v1787_v60 = vpop.xlane.xlu1 %1786  ;;  %v1784_v21 = vpop.xlane.xlu0 %1783  ;;  %v18343_v50 = vld [vmem:[#allocation85_spill] sm:$0xff] }
 0x2c9   :  { %6913 = vst.msk [vmem:[%s17395_s5 + $0x1b0] sm:$0xff] %vm6630_vm1, %v11867_v10  ;;  %18336 = vst [vmem:[#allocation83_spill] sm:$0xff] %v11901_v33  ;;  %v11909_v41 = vmul.f32 0.020408163, %v1787_v60  ;;  %v11911_v36 = vmul.f32 0.020408163, %v1784_v21  ;;  %v1519_v60 = vmul.f32 %v11901_v33, %v11901_v33  ;;  %v1518_v21 = vmul.f32 %v11907_v61, %v11907_v61 }
 0x2ca   :  { %18338 = vst [vmem:[#allocation84_spill] sm:$0xff] %v11907_v61  ;;  %v1998_v10 = vsel %vm245_vm0, %v1514_v3, 0.0  ;;  %v11941_v20 = vsub.f32 %v7692_v11, %v18343_v50  ;;  %v2004_v33 = vsel %vm245_vm0, %v1516_v32, 0.0  ;;  %v7694_v61 = vld [vmem:[%s17393_s0 + $0x448] sm:$0xff] }
 0x2cb   :  { %18339 = vst [vmem:[#allocation239_spill] sm:$0xff] %v11909_v41  ;;  %18340 = vst [vmem:[#allocation240_spill] sm:$0xff] %v11911_v36  ;;  %2002 = vadd.xlane.f32.xlu1 %v2001_v12  ;;  %1999 = vadd.xlane.f32.xlu0 %v1998_v10  ;;  %v7693_v10 = vld [vmem:[%s17393_s0 + $0x430] sm:$0xff]  ;;  %v18345_v12 = vld [vmem:[#allocation86_spill] sm:$0xff]  ;;  %v2013_v32 = vsel %vm245_vm0, %v1519_v60, 0.0 }
 0x2cc   :  { %6916 = vst.msk [vmem:[%s17395_s5 + $0x1c8] sm:$0xff] %vm6630_vm1, %v11909_v41  ;;  %6915 = vst.msk [vmem:[%s17395_s5 + $0x1c0] sm:$0xff] %vm6630_vm1, %v11911_v36  ;;  %v1793_v59 = vpop.xlane.xlu1 %1792  ;;  %v1790_v35 = vpop.xlane.xlu0 %1789  ;;  %v18349_v36 = vld [vmem:[#allocation87_spill] sm:$0xff] }
 0x2cd   :  { %v11929_v19 = vmul.f32 0.020408163, %v1793_v59  ;;  %v11931_v3 = vmul.f32 0.020408163, %v1790_v35  ;;  %18344 = vst [vmem:[#allocation85_spill] sm:$0xff] %v11941_v20  ;;  %v11947_v59 = vsub.f32 %v7693_v10, %v18345_v12  ;;  %v2007_v35 = vsel %vm245_vm0, %v1517_v52, 0.0 }
 0x2ce   :  { %v2010_v12 = vsel %vm245_vm0, %v1518_v21, 0.0  ;;  %v7696_v21 = vld [vmem:[%s17393_s0 + $0x458] sm:$0xff] }
 0x2cf   :  { %18341 = vst [vmem:[#allocation241_spill] sm:$0xff] %v11929_v19  ;;  %18342 = vst [vmem:[#allocation242_spill] sm:$0xff] %v11931_v3  ;;  %2008 = vadd.xlane.f32.xlu1 %v2007_v35  ;;  %2005 = vadd.xlane.f32.xlu0 %v2004_v33  ;;  %v7695_v33 = vld [vmem:[%s17393_s0 + $0x440] sm:$0xff]  ;;  %v18351_v35 = vld [vmem:[#allocation88_spill] sm:$0xff]  ;;  %v1520_v60 = vmul.f32 %v11947_v59, %v11947_v59 }
 0x2d0   :  { %18346 = vst [vmem:[#allocation86_spill] sm:$0xff] %v11947_v59  ;;  %6918 = vst.msk [vmem:[%s17395_s5 + $0x1d8] sm:$0xff] %vm6630_vm1, %v11929_v19  ;;  %v1799_v50 = vpop.xlane.xlu1 %1798  ;;  %v1796_v11 = vpop.xlane.xlu0 %1795  ;;  %v11971_v19 = vsub.f32 %v7694_v61, %v18349_v36  ;;  %v7697_v59 = vld [vmem:[%s17393_s0 + $0x450] sm:$0xff] }
 0x2d1   :  { %6917 = vst.msk [vmem:[%s17395_s5 + $0x1d0] sm:$0xff] %vm6630_vm1, %v11931_v3  ;;  %v11961_v10 = vmul.f32 0.020408163, %v1799_v50  ;;  %v11963_v52 = vmul.f32 0.020408163, %v1796_v11  ;;  %v11977_v50 = vsub.f32 %v7695_v33, %v18351_v35  ;;  %v1521_v11 = vmul.f32 %v11941_v20, %v11941_v20  ;;  %v18353_v33 = vld [vmem:[#allocation89_spill] sm:$0xff] }
 0x2d2   :  { %18350 = vst [vmem:[#allocation87_spill] sm:$0xff] %v11971_v19  ;;  %v11997_v35 = vsub.f32 %v7696_v21, %v18353_v33  ;;  %v18355_v20 = vld [vmem:[#allocation90_spill] sm:$0xff]  ;;  %v1523_v41 = vmul.f32 %v11971_v19, %v11971_v19  ;;  %v7698_v33 = vld [vmem:[%s17393_s0 + $0x468] sm:$0xff] }
 0x2d3   :  { %18347 = vst [vmem:[#allocation243_spill] sm:$0xff] %v11961_v10  ;;  %18348 = vst [vmem:[#allocation244_spill] sm:$0xff] %v11963_v52  ;;  %2014 = vadd.xlane.f32.xlu1 %v2013_v32  ;;  %2011 = vadd.xlane.f32.xlu0 %v2010_v12  ;;  %v12003_v3 = vsub.f32 %v7697_v59, %v18355_v20  ;;  %v2019_v12 = vsel %vm245_vm0, %v1521_v11, 0.0  ;;  %v1522_v21 = vmul.f32 %v11977_v50, %v11977_v50 }
 0x2d4   :  { %18352 = vst [vmem:[#allocation88_spill] sm:$0xff] %v11977_v50  ;;  %6920 = vst.msk [vmem:[%s17395_s5 + $0x1e8] sm:$0xff] %vm6630_vm1, %v11961_v10  ;;  %v1805_v61 = vpop.xlane.xlu1 %1804  ;;  %v1802_v36 = vpop.xlane.xlu0 %1801  ;;  %v18361_v50 = vld [vmem:[#allocation91_spill] sm:$0xff] }
 0x2d5   :  { %6919 = vst.msk [vmem:[%s17395_s5 + $0x1e0] sm:$0xff] %vm6630_vm1, %v11963_v52  ;;  %18354 = vst [vmem:[#allocation89_spill] sm:$0xff] %v11997_v35  ;;  %v12005_v10 = vmul.f32 0.020408163, %v1805_v61  ;;  %v12007_v32 = vmul.f32 0.020408163, %v1802_v36  ;;  %v1525_v61 = vmul.f32 %v11997_v35, %v11997_v35  ;;  %v1524_v36 = vmul.f32 %v12003_v3, %v12003_v3 }
 0x2d6   :  { %18356 = vst [vmem:[#allocation90_spill] sm:$0xff] %v12003_v3  ;;  %v2016_v52 = vsel %vm245_vm0, %v1520_v60, 0.0  ;;  %v12037_v19 = vsub.f32 %v7698_v33, %v18361_v50  ;;  %v2022_v35 = vsel %vm245_vm0, %v1522_v21, 0.0  ;;  %v7700_v3 = vld [vmem:[%s17393_s0 + $0x478] sm:$0xff] }
 0x2d7   :  { %18357 = vst [vmem:[#allocation245_spill] sm:$0xff] %v12005_v10  ;;  %18358 = vst [vmem:[#allocation246_spill] sm:$0xff] %v12007_v32  ;;  %2020 = vadd.xlane.f32.xlu1 %v2019_v12  ;;  %2017 = vadd.xlane.f32.xlu0 %v2016_v52  ;;  %v7699_v52 = vld [vmem:[%s17393_s0 + $0x460] sm:$0xff]  ;;  %v18363_v12 = vld [vmem:[#allocation92_spill] sm:$0xff]  ;;  %v2031_v21 = vsel %vm245_vm0, %v1525_v61, 0.0 }
 0x2d8   :  { %6922 = vst.msk [vmem:[%s17395_s5 + $0x1f8] sm:$0xff] %vm6630_vm1, %v12005_v10  ;;  %6921 = vst.msk [vmem:[%s17395_s5 + $0x1f0] sm:$0xff] %vm6630_vm1, %v12007_v32  ;;  %v1811_v20 = vpop.xlane.xlu1 %1810  ;;  %v1808_v59 = vpop.xlane.xlu0 %1807  ;;  %v18367_v32 = vld [vmem:[#allocation93_spill] sm:$0xff] }
 0x2d9   :  { %v12025_v11 = vmul.f32 0.020408163, %v1811_v20  ;;  %v12027_v60 = vmul.f32 0.020408163, %v1808_v59  ;;  %18362 = vst [vmem:[#allocation91_spill] sm:$0xff] %v12037_v19  ;;  %v12043_v20 = vsub.f32 %v7699_v52, %v18363_v12  ;;  %v2025_v59 = vsel %vm245_vm0, %v1523_v41, 0.0 }
 0x2da   :  { %v2028_v12 = vsel %vm245_vm0, %v1524_v36, 0.0  ;;  %v7702_v36 = vld [vmem:[%s17393_s0 + $0x488] sm:$0xff] }
 0x2db   :  { %18359 = vst [vmem:[#allocation247_spill] sm:$0xff] %v12025_v11  ;;  %18360 = vst [vmem:[#allocation248_spill] sm:$0xff] %v12027_v60  ;;  %2026 = vadd.xlane.f32.xlu1 %v2025_v59  ;;  %2023 = vadd.xlane.f32.xlu0 %v2022_v35  ;;  %v7701_v35 = vld [vmem:[%s17393_s0 + $0x470] sm:$0xff]  ;;  %v18369_v59 = vld [vmem:[#allocation94_spill] sm:$0xff]  ;;  %v1526_v61 = vmul.f32 %v12043_v20, %v12043_v20 }
 0x2dc   :  { %18364 = vst [vmem:[#allocation92_spill] sm:$0xff] %v12043_v20  ;;  %6924 = vst.msk [vmem:[%s17395_s5 + $0x208] sm:$0xff] %vm6630_vm1, %v12025_v11  ;;  %v1817_v50 = vpop.xlane.xlu1 %1816  ;;  %v1814_v33 = vpop.xlane.xlu0 %1813  ;;  %v12067_v11 = vsub.f32 %v7700_v3, %v18367_v32  ;;  %v7703_v20 = vld [vmem:[%s17393_s0 + $0x480] sm:$0xff] }
 0x2dd   :  { %6923 = vst.msk [vmem:[%s17395_s5 + $0x200] sm:$0xff] %vm6630_vm1, %v12027_v60  ;;  %v12057_v52 = vmul.f32 0.020408163, %v1817_v50  ;;  %v12059_v41 = vmul.f32 0.020408163, %v1814_v33  ;;  %v12073_v50 = vsub.f32 %v7701_v35, %v18369_v59  ;;  %v1527_v33 = vmul.f32 %v12037_v19, %v12037_v19  ;;  %v18371_v35 = vld [vmem:[#allocation95_spill] sm:$0xff] }
 0x2de   :  { %18368 = vst [vmem:[#allocation93_spill] sm:$0xff] %v12067_v11  ;;  %v12093_v59 = vsub.f32 %v7702_v36, %v18371_v35  ;;  %v18373_v19 = vld [vmem:[#allocation96_spill] sm:$0xff]  ;;  %v1529_v10 = vmul.f32 %v12067_v11, %v12067_v11  ;;  %v7704_v35 = vld [vmem:[%s17393_s0 + $0x498] sm:$0xff] }
 0x2df   :  { %18365 = vst [vmem:[#allocation249_spill] sm:$0xff] %v12057_v52  ;;  %18366 = vst [vmem:[#allocation250_spill] sm:$0xff] %v12059_v41  ;;  %2032 = vadd.xlane.f32.xlu1 %v2031_v21  ;;  %2029 = vadd.xlane.f32.xlu0 %v2028_v12  ;;  %v12099_v60 = vsub.f32 %v7703_v20, %v18373_v19  ;;  %v2037_v12 = vsel %vm245_vm0, %v1527_v33, 0.0  ;;  %v1528_v36 = vmul.f32 %v12073_v50, %v12073_v50 }
 0x2e0   :  { %18370 = vst [vmem:[#allocation94_spill] sm:$0xff] %v12073_v50  ;;  %6926 = vst.msk [vmem:[%s17395_s5 + $0x218] sm:$0xff] %vm6630_vm1, %v12057_v52  ;;  %v1823_v3 = vpop.xlane.xlu1 %1822  ;;  %v1820_v32 = vpop.xlane.xlu0 %1819  ;;  %v18379_v50 = vld [vmem:[#allocation97_spill] sm:$0xff] }
 0x2e1   :  { %6925 = vst.msk [vmem:[%s17395_s5 + $0x210] sm:$0xff] %vm6630_vm1, %v12059_v41  ;;  %18372 = vst [vmem:[#allocation95_spill] sm:$0xff] %v12093_v59  ;;  %v12101_v52 = vmul.f32 0.020408163, %v1823_v3  ;;  %v12103_v21 = vmul.f32 0.020408163, %v1820_v32  ;;  %v1531_v3 = vmul.f32 %v12093_v59, %v12093_v59  ;;  %v1530_v32 = vmul.f32 %v12099_v60, %v12099_v60 }
 0x2e2   :  { %18374 = vst [vmem:[#allocation96_spill] sm:$0xff] %v12099_v60  ;;  %v2034_v41 = vsel %vm245_vm0, %v1526_v61, 0.0  ;;  %v12133_v11 = vsub.f32 %v7704_v35, %v18379_v50  ;;  %v2040_v59 = vsel %vm245_vm0, %v1528_v36, 0.0  ;;  %v7706_v60 = vld [vmem:[%s17393_s0 + $0x4a8] sm:$0xff] }
 0x2e3   :  { %18375 = vst [vmem:[#allocation251_spill] sm:$0xff] %v12101_v52  ;;  %18376 = vst [vmem:[#allocation252_spill] sm:$0xff] %v12103_v21  ;;  %2038 = vadd.xlane.f32.xlu1 %v2037_v12  ;;  %2035 = vadd.xlane.f32.xlu0 %v2034_v41  ;;  %v7705_v41 = vld [vmem:[%s17393_s0 + $0x490] sm:$0xff]  ;;  %v18381_v12 = vld [vmem:[#allocation98_spill] sm:$0xff]  ;;  %v2049_v36 = vsel %vm245_vm0, %v1531_v3, 0.0 }
 0x2e4   :  { %6928 = vst.msk [vmem:[%s17395_s5 + $0x228] sm:$0xff] %vm6630_vm1, %v12101_v52  ;;  %6927 = vst.msk [vmem:[%s17395_s5 + $0x220] sm:$0xff] %vm6630_vm1, %v12103_v21  ;;  %v1829_v19 = vpop.xlane.xlu1 %1828  ;;  %v1826_v20 = vpop.xlane.xlu0 %1825  ;;  %v18385_v21 = vld [vmem:[#allocation99_spill] sm:$0xff] }
 0x2e5   :  { %v12121_v33 = vmul.f32 0.020408163, %v1829_v19  ;;  %v12123_v61 = vmul.f32 0.020408163, %v1826_v20  ;;  %18380 = vst [vmem:[#allocation97_spill] sm:$0xff] %v12133_v11  ;;  %v12139_v19 = vsub.f32 %v7705_v41, %v18381_v12  ;;  %v2043_v20 = vsel %vm245_vm0, %v1529_v10, 0.0 }
 0x2e6   :  { %v2046_v12 = vsel %vm245_vm0, %v1530_v32, 0.0  ;;  %v7708_v32 = vld [vmem:[%s17393_s0 + $0x4b8] sm:$0xff] }
 0x2e7   :  { %18377 = vst [vmem:[#allocation253_spill] sm:$0xff] %v12121_v33  ;;  %18378 = vst [vmem:[#allocation254_spill] sm:$0xff] %v12123_v61  ;;  %2044 = vadd.xlane.f32.xlu1 %v2043_v20  ;;  %2041 = vadd.xlane.f32.xlu0 %v2040_v59  ;;  %v7707_v59 = vld [vmem:[%s17393_s0 + $0x4a0] sm:$0xff]  ;;  %v18387_v20 = vld [vmem:[#allocation100_spill] sm:$0xff]  ;;  %v1532_v3 = vmul.f32 %v12139_v19, %v12139_v19 }
 0x2e8   :  { %18382 = vst [vmem:[#allocation98_spill] sm:$0xff] %v12139_v19  ;;  %6930 = vst.msk [vmem:[%s17395_s5 + $0x238] sm:$0xff] %vm6630_vm1, %v12121_v33  ;;  %v1835_v50 = vpop.xlane.xlu1 %1834  ;;  %v1832_v35 = vpop.xlane.xlu0 %1831  ;;  %v12163_v33 = vsub.f32 %v7706_v60, %v18385_v21  ;;  %v7709_v19 = vld [vmem:[%s17393_s0 + $0x4b0] sm:$0xff] }
 0x2e9   :  { %6929 = vst.msk [vmem:[%s17395_s5 + $0x230] sm:$0xff] %vm6630_vm1, %v12123_v61  ;;  %v12153_v41 = vmul.f32 0.020408163, %v1835_v50  ;;  %v12155_v10 = vmul.f32 0.020408163, %v1832_v35  ;;  %v12169_v50 = vsub.f32 %v7707_v59, %v18387_v20  ;;  %v1533_v35 = vmul.f32 %v12133_v11, %v12133_v11  ;;  %v18389_v59 = vld [vmem:[#allocation101_spill] sm:$0xff] }
 0x2ea   :  { %18386 = vst [vmem:[#allocation99_spill] sm:$0xff] %v12163_v33  ;;  %v12189_v20 = vsub.f32 %v7708_v32, %v18389_v59  ;;  %v18391_v11 = vld [vmem:[#allocation102_spill] sm:$0xff]  ;;  %v1535_v52 = vmul.f32 %v12163_v33, %v12163_v33  ;;  %v7710_v59 = vld [vmem:[%s17393_s0 + $0x4c8] sm:$0xff] }
 0x2eb   :  { %18383 = vst [vmem:[#allocation255_spill] sm:$0xff] %v12153_v41  ;;  %18384 = vst [vmem:[#allocation256_spill] sm:$0xff] %v12155_v10  ;;  %2050 = vadd.xlane.f32.xlu1 %v2049_v36  ;;  %2047 = vadd.xlane.f32.xlu0 %v2046_v12  ;;  %v12195_v61 = vsub.f32 %v7709_v19, %v18391_v11  ;;  %v2055_v12 = vsel %vm245_vm0, %v1533_v35, 0.0  ;;  %v1534_v32 = vmul.f32 %v12169_v50, %v12169_v50 }
 0x2ec   :  { %18388 = vst [vmem:[#allocation100_spill] sm:$0xff] %v12169_v50  ;;  %6932 = vst.msk [vmem:[%s17395_s5 + $0x248] sm:$0xff] %vm6630_vm1, %v12153_v41  ;;  %v1841_v60 = vpop.xlane.xlu1 %1840  ;;  %v1838_v21 = vpop.xlane.xlu0 %1837  ;;  %v18394_v50 = vld [vmem:[#allocation104_spill] sm:$0xff] }
 0x2ed   :  { %6931 = vst.msk [vmem:[%s17395_s5 + $0x240] sm:$0xff] %vm6630_vm1, %v12155_v10  ;;  %18390 = vst [vmem:[#allocation101_spill] sm:$0xff] %v12189_v20  ;;  %v12197_v41 = vmul.f32 0.020408163, %v1841_v60  ;;  %v12199_v36 = vmul.f32 0.020408163, %v1838_v21  ;;  %v1537_v60 = vmul.f32 %v12189_v20, %v12189_v20  ;;  %v1536_v21 = vmul.f32 %v12195_v61, %v12195_v61 }
 0x2ee   :  { %18392 = vst [vmem:[#allocation102_spill] sm:$0xff] %v12195_v61  ;;  %v2052_v10 = vsel %vm245_vm0, %v1532_v3, 0.0  ;;  %v12229_v33 = vsub.f32 %v7710_v59, %v18394_v50  ;;  %v7712_v61 = vld [vmem:[%s17393_s0 + $0x4d8] sm:$0xff] }
 0x2ef   :  { %6934 = vst.msk [vmem:[%s17395_s5 + $0x258] sm:$0xff] %vm6630_vm1, %v12197_v41  ;;  %6933 = vst.msk [vmem:[%s17395_s5 + $0x250] sm:$0xff] %vm6630_vm1, %v12199_v36  ;;  %2056 = vadd.xlane.f32.xlu1 %v2055_v12  ;;  %2053 = vadd.xlane.f32.xlu0 %v2052_v10  ;;  %v7711_v10 = vld [vmem:[%s17393_s0 + $0x4c0] sm:$0xff]  ;;  %v12259_v20 = vsub.f32 %v7712_v61, %v9825_v8  ;;  %v7714_v61 = vld [vmem:[%s17393_s0 + $0x4e8] sm:$0xff] }
 0x2f0   :  { %v1847_v11 = vpop.xlane.xlu1 %1846  ;;  %v1844_v19 = vpop.xlane.xlu0 %1843  ;;  %18395 = vst [vmem:[#allocation104_spill] sm:$0xff] %v12229_v33  ;;  %v12235_v12 = vsub.f32 %v7711_v10, %v9793_v51  ;;  %v2064_v10 = vsel %vm245_vm0, %v1536_v21, 0.0  ;;  %v12285_v21 = vsub.f32 %v7714_v61, %v9849_v23 }
 0x2f1   :  { %v12217_v35 = vmul.f32 0.020408163, %v1847_v11  ;;  %v12219_v3 = vmul.f32 0.020408163, %v1844_v19  ;;  %v2061_v11 = vsel %vm245_vm0, %v1535_v52, 0.0  ;;  %v2058_v19 = vsel %vm245_vm0, %v1534_v32, 0.0 }
 0x2f2   :  { %18396 = vst [vmem:[#allocation258_spill] sm:$0xff] %v12235_v12  ;;  %v2067_v32 = vsel %vm245_vm0, %v1537_v60, 0.0  ;;  %18398 = vst [vmem:[#allocation260_spill] sm:$0xff] %v12259_v20  ;;  %v1538_v60 = vmul.f32 %v12235_v12, %v12235_v12  ;;  %v1543_v61 = vmul.f32 %v12285_v21, %v12285_v21 }
 0x2f3   :  { %18393 = vst [vmem:[#allocation257_spill] sm:$0xff] %v12219_v3  ;;  %6936 = vst.msk [vmem:[%s17395_s5 + $0x268] sm:$0xff] %vm6630_vm1, %v12217_v35  ;;  %2062 = vadd.xlane.f32.xlu1 %v2061_v11  ;;  %2059 = vadd.xlane.f32.xlu0 %v2058_v19  ;;  %v7713_v11 = vld [vmem:[%s17393_s0 + $0x4d0] sm:$0xff] }
 0x2f4   :  { %6935 = vst.msk [vmem:[%s17395_s5 + $0x260] sm:$0xff] %vm6630_vm1, %v12219_v3  ;;  %v1853_v51 = vpop.xlane.xlu1 %1852  ;;  %v1850_v50 = vpop.xlane.xlu0 %1849  ;;  %v12265_v19 = vsub.f32 %v7713_v11, %v9827_v9  ;;  %18400 = vst [vmem:[#allocation262_spill] sm:$0xff] %v12285_v21  ;;  %v18401_v11 = vld [vmem:[#allocation108_spill] sm:$0xff]  ;;  %v1541_v3 = vmul.f32 %v12259_v20, %v12259_v20 }
 0x2f5   :  { %v12249_v59 = vmul.f32 0.020408163, %v1853_v51  ;;  %v12251_v52 = vmul.f32 0.020408163, %v1850_v50  ;;  %v1539_v51 = vmul.f32 %v12229_v33, %v12229_v33  ;;  %v7715_v50 = vld [vmem:[%s17393_s0 + $0x4e0] sm:$0xff] }
 0x2f6   :  { %18399 = vst [vmem:[#allocation261_spill] sm:$0xff] %v12265_v19  ;;  %v12291_v12 = vsub.f32 %v7715_v50, %v18401_v11  ;;  %v1540_v23 = vmul.f32 %v12265_v19, %v12265_v19  ;;  %v7716_v11 = vld [vmem:[%s17393_s0 + $0x4f8] sm:$0xff] }
 0x2f7   :  { %18397 = vst [vmem:[#allocation259_spill] sm:$0xff] %v12251_v52  ;;  %6938 = vst.msk [vmem:[%s17395_s5 + $0x278] sm:$0xff] %vm6630_vm1, %v12249_v59  ;;  %2068 = vadd.xlane.f32.xlu1 %v2067_v32  ;;  %2065 = vadd.xlane.f32.xlu0 %v2064_v10  ;;  %v2073_v10 = vsel %vm245_vm0, %v1539_v51, 0.0  ;;  %v12325_v19 = vsub.f32 %v7716_v11, %v9893_v29 }
 0x2f8   :  { %6937 = vst.msk [vmem:[%s17395_s5 + $0x270] sm:$0xff] %vm6630_vm1, %v12251_v52  ;;  %v1859_v8 = vpop.xlane.xlu1 %1858  ;;  %v1856_v9 = vpop.xlane.xlu0 %1855  ;;  %18402 = vst [vmem:[#allocation108_spill] sm:$0xff] %v12291_v12  ;;  %v2070_v52 = vsel %vm245_vm0, %v1538_v60, 0.0  ;;  %v1542_v50 = vmul.f32 %v12291_v12, %v12291_v12  ;;  %v7718_v12 = vld [vmem:[%s17393_s0 + $0x508] sm:$0xff] }
 0x2f9   :  { %v12293_v33 = vmul.f32 0.020408163, %v1859_v8  ;;  %v12295_v32 = vmul.f32 0.020408163, %v1856_v9  ;;  %18403 = vst [vmem:[#allocation263_spill] sm:$0xff] %v12325_v19  ;;  %v12355_v21 = vsub.f32 %v7718_v12, %v9913_v42  ;;  %v7720_v12 = vld [vmem:[%s17393_s0 + $0x518] sm:$0xff] }
 0x2fb   :  { %6940 = vst.msk [vmem:[%s17395_s5 + $0x288] sm:$0xff] %vm6630_vm1, %v12293_v33  ;;  %6939 = vst.msk [vmem:[%s17395_s5 + $0x280] sm:$0xff] %vm6630_vm1, %v12295_v32  ;;  %2074 = vadd.xlane.f32.xlu1 %v2073_v10  ;;  %2071 = vadd.xlane.f32.xlu0 %v2070_v52  ;;  %v7717_v52 = vld [vmem:[%s17393_s0 + $0x4f0] sm:$0xff]  ;;  %v1547_v20 = vmul.f32 %v12355_v21, %v12355_v21 }
 0x2fc   :  { %v1865_v51 = vpop.xlane.xlu1 %1864  ;;  %v1862_v60 = vpop.xlane.xlu0 %1861  ;;  %v12331_v10 = vsub.f32 %v7717_v52, %v9895_v22  ;;  %v2082_v52 = vsel %vm245_vm0, %v1542_v50, 0.0  ;;  %18405 = vst [vmem:[#allocation265_spill] sm:$0xff] %v12355_v21  ;;  %v12381_v50 = vsub.f32 %v7720_v12, %v9945_v30 }
 0x2fd   :  { %v12313_v8 = vmul.f32 0.020408163, %v1865_v51  ;;  %v12315_v9 = vmul.f32 0.020408163, %v1862_v60  ;;  %v2079_v51 = vsel %vm245_vm0, %v1541_v3, 0.0  ;;  %v2076_v60 = vsel %vm245_vm0, %v1540_v23, 0.0 }
 0x2fe   :  { %18404 = vst [vmem:[#allocation264_spill] sm:$0xff] %v12331_v10  ;;  %v2085_v23 = vsel %vm245_vm0, %v1543_v61, 0.0  ;;  %v1544_v61 = vmul.f32 %v12331_v10, %v12331_v10  ;;  %18407 = vst [vmem:[#allocation267_spill] sm:$0xff] %v12381_v50 }
 0x2ff   :  { %6942 = vst.msk [vmem:[%s17395_s5 + $0x298] sm:$0xff] %vm6630_vm1, %v12313_v8  ;;  %6941 = vst.msk [vmem:[%s17395_s5 + $0x290] sm:$0xff] %vm6630_vm1, %v12315_v9  ;;  %2080 = vadd.xlane.f32.xlu1 %v2079_v51  ;;  %2077 = vadd.xlane.f32.xlu0 %v2076_v60  ;;  %v7719_v51 = vld [vmem:[%s17393_s0 + $0x500] sm:$0xff] }
 0x300   :  { %v1871_v29 = vpop.xlane.xlu1 %1870  ;;  %v1868_v22 = vpop.xlane.xlu0 %1867  ;;  %v12361_v60 = vsub.f32 %v7719_v51, %v9915_v38 }
 0x301   :  { %v12345_v11 = vmul.f32 0.020408163, %v1871_v29  ;;  %v12347_v3 = vmul.f32 0.020408163, %v1868_v22  ;;  %v1545_v29 = vmul.f32 %v12325_v19, %v12325_v19  ;;  %v7721_v22 = vld [vmem:[%s17393_s0 + $0x510] sm:$0xff]  ;;  %v2088_v19 = vsel %vm245_vm0, %v1544_v61, 0.0 }
 0x302   :  { %18406 = vst [vmem:[#allocation266_spill] sm:$0xff] %v12361_v60  ;;  %v12387_v51 = vsub.f32 %v7721_v22, %v9947_v16  ;;  %v1546_v30 = vmul.f32 %v12361_v60, %v12361_v60  ;;  %v7722_v22 = vld [vmem:[%s17393_s0 + $0x528] sm:$0xff] }
 0x303   :  { %6944 = vst.msk [vmem:[%s17395_s5 + $0x2a8] sm:$0xff] %vm6630_vm1, %v12345_v11  ;;  %6943 = vst.msk [vmem:[%s17395_s5 + $0x2a0] sm:$0xff] %vm6630_vm1, %v12347_v3  ;;  %2086 = vadd.xlane.f32.xlu1 %v2085_v23  ;;  %2083 = vadd.xlane.f32.xlu0 %v2082_v52  ;;  %v2091_v52 = vsel %vm245_vm0, %v1545_v29, 0.0  ;;  %v12421_v60 = vsub.f32 %v7722_v22, %v9989_v48 }
 0x304   :  { %v1877_v42 = vpop.xlane.xlu1 %1876  ;;  %v1874_v38 = vpop.xlane.xlu0 %1873  ;;  %18408 = vst [vmem:[#allocation268_spill] sm:$0xff] %v12387_v51  ;;  %v1548_v12 = vmul.f32 %v12387_v51, %v12387_v51  ;;  %v7724_v51 = vld [vmem:[%s17393_s0 + $0x538] sm:$0xff] }
 0x305   :  { %v12389_v10 = vmul.f32 0.020408163, %v1877_v42  ;;  %v12391_v23 = vmul.f32 0.020408163, %v1874_v38  ;;  %v1549_v38 = vmul.f32 %v12381_v50, %v12381_v50  ;;  %18409 = vst [vmem:[#allocation269_spill] sm:$0xff] %v12421_v60  ;;  %v12451_v50 = vsub.f32 %v7724_v51, %v10009_v39  ;;  %v7726_v51 = vld [vmem:[%s17393_s0 + $0x548] sm:$0xff] }
 0x307   :  { %6946 = vst.msk [vmem:[%s17395_s5 + $0x2b8] sm:$0xff] %vm6630_vm1, %v12389_v10  ;;  %6945 = vst.msk [vmem:[%s17395_s5 + $0x2b0] sm:$0xff] %vm6630_vm1, %v12391_v23  ;;  %2092 = vadd.xlane.f32.xlu1 %v2091_v52  ;;  %2089 = vadd.xlane.f32.xlu0 %v2088_v19  ;;  %v7723_v19 = vld [vmem:[%s17393_s0 + $0x520] sm:$0xff]  ;;  %v1553_v21 = vmul.f32 %v12451_v50, %v12451_v50 }
 0x308   :  { %v1883_v16 = vpop.xlane.xlu1 %1882  ;;  %v1880_v29 = vpop.xlane.xlu0 %1879  ;;  %v12427_v52 = vsub.f32 %v7723_v19, %v9991_v46  ;;  %v2100_v19 = vsel %vm245_vm0, %v1548_v12, 0.0  ;;  %18411 = vst [vmem:[#allocation271_spill] sm:$0xff] %v12451_v50  ;;  %v12477_v12 = vsub.f32 %v7726_v51, %v10041_v55 }
 0x309   :  { %v12409_v61 = vmul.f32 0.020408163, %v1883_v16  ;;  %v12411_v42 = vmul.f32 0.020408163, %v1880_v29  ;;  %v2097_v16 = vsel %vm245_vm0, %v1547_v20, 0.0  ;;  %v2094_v29 = vsel %vm245_vm0, %v1546_v30, 0.0 }
 0x30a   :  { %18410 = vst [vmem:[#allocation270_spill] sm:$0xff] %v12427_v52  ;;  %v2103_v30 = vsel %vm245_vm0, %v1549_v38, 0.0  ;;  %v1550_v38 = vmul.f32 %v12427_v52, %v12427_v52  ;;  %18413 = vst [vmem:[#allocation273_spill] sm:$0xff] %v12477_v12 }
 0x30b   :  { %6948 = vst.msk [vmem:[%s17395_s5 + $0x2c8] sm:$0xff] %vm6630_vm1, %v12409_v61  ;;  %6947 = vst.msk [vmem:[%s17395_s5 + $0x2c0] sm:$0xff] %vm6630_vm1, %v12411_v42  ;;  %2098 = vadd.xlane.f32.xlu1 %v2097_v16  ;;  %2095 = vadd.xlane.f32.xlu0 %v2094_v29  ;;  %v7725_v16 = vld [vmem:[%s17393_s0 + $0x530] sm:$0xff] }
 0x30c   :  { %v1889_v48 = vpop.xlane.xlu1 %1888  ;;  %v1886_v46 = vpop.xlane.xlu0 %1885  ;;  %v12457_v29 = vsub.f32 %v7725_v16, %v10011_v62 }
 0x30d   :  { %v12441_v22 = vmul.f32 0.020408163, %v1889_v48  ;;  %v12443_v20 = vmul.f32 0.020408163, %v1886_v46  ;;  %v1551_v48 = vmul.f32 %v12421_v60, %v12421_v60  ;;  %v7727_v46 = vld [vmem:[%s17393_s0 + $0x540] sm:$0xff]  ;;  %v2106_v60 = vsel %vm245_vm0, %v1550_v38, 0.0 }
 0x30e   :  { %18412 = vst [vmem:[#allocation272_spill] sm:$0xff] %v12457_v29  ;;  %v12483_v16 = vsub.f32 %v7727_v46, %v10043_v1  ;;  %v1552_v55 = vmul.f32 %v12457_v29, %v12457_v29  ;;  %v7728_v46 = vld [vmem:[%s17393_s0 + $0x558] sm:$0xff] }
 0x30f   :  { %6950 = vst.msk [vmem:[%s17395_s5 + $0x2d8] sm:$0xff] %vm6630_vm1, %v12441_v22  ;;  %6949 = vst.msk [vmem:[%s17395_s5 + $0x2d0] sm:$0xff] %vm6630_vm1, %v12443_v20  ;;  %2104 = vadd.xlane.f32.xlu1 %v2103_v30  ;;  %2101 = vadd.xlane.f32.xlu0 %v2100_v19  ;;  %v2109_v19 = vsel %vm245_vm0, %v1551_v48, 0.0  ;;  %v12517_v29 = vsub.f32 %v7728_v46, %v10085_v0 }
 0x310   :  { %v1895_v39 = vpop.xlane.xlu1 %1894  ;;  %v1892_v62 = vpop.xlane.xlu0 %1891  ;;  %18414 = vst [vmem:[#allocation274_spill] sm:$0xff] %v12483_v16  ;;  %v1554_v51 = vmul.f32 %v12483_v16, %v12483_v16  ;;  %v7730_v16 = vld [vmem:[%s17393_s0 + $0x568] sm:$0xff] }
 0x311   :  { %v12485_v52 = vmul.f32 0.020408163, %v1895_v39  ;;  %v12487_v30 = vmul.f32 0.020408163, %v1892_v62  ;;  %v1555_v62 = vmul.f32 %v12477_v12, %v12477_v12  ;;  %18415 = vst [vmem:[#allocation275_spill] sm:$0xff] %v12517_v29  ;;  %v12547_v12 = vsub.f32 %v7730_v16, %v10105_v63  ;;  %v7732_v16 = vld [vmem:[%s17393_s0 + $0x578] sm:$0xff] }
 0x313   :  { %6952 = vst.msk [vmem:[%s17395_s5 + $0x2e8] sm:$0xff] %vm6630_vm1, %v12485_v52  ;;  %6951 = vst.msk [vmem:[%s17395_s5 + $0x2e0] sm:$0xff] %vm6630_vm1, %v12487_v30  ;;  %2110 = vadd.xlane.f32.xlu1 %v2109_v19  ;;  %2107 = vadd.xlane.f32.xlu0 %v2106_v60  ;;  %v7729_v60 = vld [vmem:[%s17393_s0 + $0x550] sm:$0xff]  ;;  %v1559_v50 = vmul.f32 %v12547_v12, %v12547_v12 }
 0x314   :  { %v1901_v1 = vpop.xlane.xlu1 %1900  ;;  %v1898_v48 = vpop.xlane.xlu0 %1897  ;;  %v12523_v19 = vsub.f32 %v7729_v60, %v10087_v6  ;;  %v2118_v60 = vsel %vm245_vm0, %v1554_v51, 0.0  ;;  %18417 = vst [vmem:[#allocation277_spill] sm:$0xff] %v12547_v12  ;;  %v12573_v51 = vsub.f32 %v7732_v16, %v10137_v15 }
 0x315   :  { %v12505_v38 = vmul.f32 0.020408163, %v1901_v1  ;;  %v12507_v39 = vmul.f32 0.020408163, %v1898_v48  ;;  %v2115_v1 = vsel %vm245_vm0, %v1553_v21, 0.0  ;;  %v2112_v48 = vsel %vm245_vm0, %v1552_v55, 0.0 }
 0x316   :  { %18416 = vst [vmem:[#allocation276_spill] sm:$0xff] %v12523_v19  ;;  %v2121_v55 = vsel %vm245_vm0, %v1555_v62, 0.0  ;;  %v1556_v62 = vmul.f32 %v12523_v19, %v12523_v19  ;;  %18419 = vst [vmem:[#allocation279_spill] sm:$0xff] %v12573_v51  ;;  %v1561_v16 = vmul.f32 %v12573_v51, %v12573_v51 }
 0x317   :  { %6954 = vst.msk [vmem:[%s17395_s5 + $0x2f8] sm:$0xff] %vm6630_vm1, %v12505_v38  ;;  %6953 = vst.msk [vmem:[%s17395_s5 + $0x2f0] sm:$0xff] %vm6630_vm1, %v12507_v39  ;;  %2116 = vadd.xlane.f32.xlu1 %v2115_v1  ;;  %2113 = vadd.xlane.f32.xlu0 %v2112_v48  ;;  %v7731_v1 = vld [vmem:[%s17393_s0 + $0x560] sm:$0xff] }
 0x318   :  { %v1907_v0 = vpop.xlane.xlu1 %1906  ;;  %v1904_v6 = vpop.xlane.xlu0 %1903  ;;  %v12553_v48 = vsub.f32 %v7731_v1, %v10107_v24 }
 0x319   :  { %v12537_v46 = vmul.f32 0.020408163, %v1907_v0  ;;  %v12539_v21 = vmul.f32 0.020408163, %v1904_v6  ;;  %v1557_v0 = vmul.f32 %v12517_v29, %v12517_v29  ;;  %v7733_v6 = vld [vmem:[%s17393_s0 + $0x570] sm:$0xff]  ;;  %v2124_v29 = vsel %vm245_vm0, %v1556_v62, 0.0 }
 0x31a   :  { %18418 = vst [vmem:[#allocation278_spill] sm:$0xff] %v12553_v48  ;;  %v12579_v1 = vsub.f32 %v7733_v6, %v10139_v28  ;;  %v1558_v15 = vmul.f32 %v12553_v48, %v12553_v48  ;;  %v7786_v62 = vmov 0  }
 0x31b   :  { %6956 = vst.msk [vmem:[%s17395_s5 + $0x308] sm:$0xff] %vm6630_vm1, %v12537_v46  ;;  %6955 = vst.msk [vmem:[%s17395_s5 + $0x300] sm:$0xff] %vm6630_vm1, %v12539_v21  ;;  %2122 = vadd.xlane.f32.xlu1 %v2121_v55  ;;  %2119 = vadd.xlane.f32.xlu0 %v2118_v60  ;;  %v2127_v60 = vsel %vm245_vm0, %v1557_v0, 0.0 }
 0x31c   :  { %v1913_v63 = vpop.xlane.xlu1 %1912  ;;  %v1910_v24 = vpop.xlane.xlu0 %1909  ;;  %18420 = vst [vmem:[#allocation280_spill] sm:$0xff] %v12579_v1  ;;  %7101 = vset.pattern.permute.xlu1 %v7786_v62  ;;  %7100 = vset.pattern.permute.xlu0 %v7786_v62  ;;  %v1560_v6 = vmul.f32 %v12579_v1, %v12579_v1  ;;  %v2133_v62 = vsel %vm245_vm0, %v1559_v50, 0.0  ;;  %v2130_v48 = vsel %vm245_vm0, %v1558_v15, 0.0  ;;  %v2139_v15 = vsel %vm245_vm0, %v1561_v16, 0.0  ;;  %v7736_v1 = vld [vmem:[%s17393_s0 + $0x598] sm:$0xff] }
 0x31d   :  { %v12581_v19 = vmul.f32 0.020408163, %v1913_v63  ;;  %v12583_v55 = vmul.f32 0.020408163, %v1910_v24  ;;  %v12643_v51 = vsub.f32 %v7736_v1, %v10201_v25  ;;  %v7738_v1 = vld [vmem:[%s17393_s0 + $0x5a8] sm:$0xff] }
 0x31f   :  { %6958 = vst.msk [vmem:[%s17395_s5 + $0x318] sm:$0xff] %vm6630_vm1, %v12581_v19  ;;  %6957 = vst.msk [vmem:[%s17395_s5 + $0x310] sm:$0xff] %vm6630_vm1, %v12583_v55  ;;  %2128 = vadd.xlane.f32.xlu1 %v2127_v60  ;;  %2125 = vadd.xlane.f32.xlu0 %v2124_v29  ;;  %v7734_v60 = vld [vmem:[%s17393_s0 + $0x588] sm:$0xff]  ;;  %v1565_v12 = vmul.f32 %v12643_v51, %v12643_v51 }
 0x320   :  { %v1919_v28 = vpop.xlane.xlu1 %1918  ;;  %v1916_v0 = vpop.xlane.xlu0 %1915  ;;  %v12613_v29 = vsub.f32 %v7734_v60, %v10181_v31  ;;  %18423 = vst [vmem:[#allocation283_spill] sm:$0xff] %v12643_v51 }
 0x321   :  { %v12601_v63 = vmul.f32 0.020408163, %v1919_v28  ;;  %v12603_v24 = vmul.f32 0.020408163, %v1916_v0  ;;  %v7735_v28 = vld [vmem:[%s17393_s0 + $0x580] sm:$0xff] }
 0x322   :  { %18421 = vst [vmem:[#allocation281_spill] sm:$0xff] %v12613_v29  ;;  %v12619_v0 = vsub.f32 %v7735_v28, %v10183_v34  ;;  %v2136_v28 = vsel %vm245_vm0, %v1560_v6, 0.0  ;;  %v12669_v6 = vsub.f32 %v7738_v1, %v10233_v45 }
 0x323   :  { %6960 = vst.msk [vmem:[%s17395_s5 + $0x328] sm:$0xff] %vm6630_vm1, %v12601_v63  ;;  %6959 = vst.msk [vmem:[%s17395_s5 + $0x320] sm:$0xff] %vm6630_vm1, %v12603_v24  ;;  %2134 = vadd.xlane.f32.xlu1 %v2133_v62  ;;  %2131 = vadd.xlane.f32.xlu0 %v2130_v48  ;;  %v7737_v48 = vld [vmem:[%s17393_s0 + $0x590] sm:$0xff] }
 0x324   :  { %18422 = vst [vmem:[#allocation282_spill] sm:$0xff] %v12619_v0  ;;  %v1925_v31 = vpop.xlane.xlu1 %1924  ;;  %v1922_v34 = vpop.xlane.xlu0 %1921  ;;  %v12649_v62 = vsub.f32 %v7737_v48, %v10203_v56  ;;  %v1562_v16 = vmul.f32 %v12619_v0, %v12619_v0  ;;  %18425 = vst [vmem:[#allocation285_spill] sm:$0xff] %v12669_v6 }
 0x325   :  { %v12633_v60 = vmul.f32 0.020408163, %v1925_v31  ;;  %v12635_v50 = vmul.f32 0.020408163, %v1922_v34  ;;  %v1563_v31 = vmul.f32 %v12613_v29, %v12613_v29  ;;  %v7739_v34 = vld [vmem:[%s17393_s0 + $0x5a0] sm:$0xff] }
 0x326   :  { %18424 = vst [vmem:[#allocation284_spill] sm:$0xff] %v12649_v62  ;;  %v12675_v48 = vsub.f32 %v7739_v34, %v10235_v49  ;;  %v2142_v29 = vsel %vm245_vm0, %v1562_v16, 0.0  ;;  %v1564_v45 = vmul.f32 %v12649_v62, %v12649_v62  ;;  %v7740_v34 = vld [vmem:[%s17393_s0 + $0x5b8] sm:$0xff] }
 0x327   :  { %6962 = vst.msk [vmem:[%s17395_s5 + $0x338] sm:$0xff] %vm6630_vm1, %v12633_v60  ;;  %6961 = vst.msk [vmem:[%s17395_s5 + $0x330] sm:$0xff] %vm6630_vm1, %v12635_v50  ;;  %2140 = vadd.xlane.f32.xlu1 %v2139_v15  ;;  %2137 = vadd.xlane.f32.xlu0 %v2136_v28  ;;  %v2145_v28 = vsel %vm245_vm0, %v1563_v31, 0.0  ;;  %v12709_v62 = vsub.f32 %v7740_v34, %v10277_v43 }
 0x328   :  { %v1931_v25 = vpop.xlane.xlu1 %1930  ;;  %v1928_v56 = vpop.xlane.xlu0 %1927  ;;  %18426 = vst [vmem:[#allocation286_spill] sm:$0xff] %v12675_v48  ;;  %v1566_v1 = vmul.f32 %v12675_v48, %v12675_v48  ;;  %v7742_v48 = vld [vmem:[%s17393_s0 + $0x5c8] sm:$0xff] }
 0x329   :  { %v12677_v0 = vmul.f32 0.020408163, %v1931_v25  ;;  %v12679_v15 = vmul.f32 0.020408163, %v1928_v56  ;;  %v1567_v56 = vmul.f32 %v12669_v6, %v12669_v6  ;;  %18427 = vst [vmem:[#allocation287_spill] sm:$0xff] %v12709_v62  ;;  %v12739_v6 = vsub.f32 %v7742_v48, %v10297_v57  ;;  %v7744_v48 = vld [vmem:[%s17393_s0 + $0x5d8] sm:$0xff] }
 0x32b   :  { %6964 = vst.msk [vmem:[%s17395_s5 + $0x348] sm:$0xff] %vm6630_vm1, %v12677_v0  ;;  %6963 = vst.msk [vmem:[%s17395_s5 + $0x340] sm:$0xff] %vm6630_vm1, %v12679_v15  ;;  %2146 = vadd.xlane.f32.xlu1 %v2145_v28  ;;  %2143 = vadd.xlane.f32.xlu0 %v2142_v29  ;;  %v7741_v29 = vld [vmem:[%s17393_s0 + $0x5b0] sm:$0xff]  ;;  %v1571_v51 = vmul.f32 %v12739_v6, %v12739_v6 }
 0x32c   :  { %v1937_v49 = vpop.xlane.xlu1 %1936  ;;  %v1934_v31 = vpop.xlane.xlu0 %1933  ;;  %v12715_v28 = vsub.f32 %v7741_v29, %v10279_v2  ;;  %v2154_v29 = vsel %vm245_vm0, %v1566_v1, 0.0  ;;  %18429 = vst [vmem:[#allocation289_spill] sm:$0xff] %v12739_v6  ;;  %v12765_v1 = vsub.f32 %v7744_v48, %v10329_v13 }
 0x32d   :  { %v12697_v16 = vmul.f32 0.020408163, %v1937_v49  ;;  %v12699_v25 = vmul.f32 0.020408163, %v1934_v31  ;;  %v2151_v49 = vsel %vm245_vm0, %v1565_v12, 0.0  ;;  %v2148_v31 = vsel %vm245_vm0, %v1564_v45, 0.0 }
 0x32e   :  { %18428 = vst [vmem:[#allocation288_spill] sm:$0xff] %v12715_v28  ;;  %v2157_v45 = vsel %vm245_vm0, %v1567_v56, 0.0  ;;  %v1568_v56 = vmul.f32 %v12715_v28, %v12715_v28  ;;  %18431 = vst [vmem:[#allocation291_spill] sm:$0xff] %v12765_v1 }
 0x32f   :  { %6966 = vst.msk [vmem:[%s17395_s5 + $0x358] sm:$0xff] %vm6630_vm1, %v12697_v16  ;;  %6965 = vst.msk [vmem:[%s17395_s5 + $0x350] sm:$0xff] %vm6630_vm1, %v12699_v25  ;;  %2152 = vadd.xlane.f32.xlu1 %v2151_v49  ;;  %2149 = vadd.xlane.f32.xlu0 %v2148_v31  ;;  %v7743_v49 = vld [vmem:[%s17393_s0 + $0x5c0] sm:$0xff] }
 0x330   :  { %v1943_v43 = vpop.xlane.xlu1 %1942  ;;  %v1940_v2 = vpop.xlane.xlu0 %1939  ;;  %v12745_v31 = vsub.f32 %v7743_v49, %v10299_v26 }
 0x331   :  { %v12729_v34 = vmul.f32 0.020408163, %v1943_v43  ;;  %v12731_v12 = vmul.f32 0.020408163, %v1940_v2  ;;  %v1569_v43 = vmul.f32 %v12709_v62, %v12709_v62  ;;  %v7745_v2 = vld [vmem:[%s17393_s0 + $0x5d0] sm:$0xff]  ;;  %v2160_v62 = vsel %vm245_vm0, %v1568_v56, 0.0 }
 0x332   :  { %18430 = vst [vmem:[#allocation290_spill] sm:$0xff] %v12745_v31  ;;  %v12771_v49 = vsub.f32 %v7745_v2, %v10331_v17  ;;  %v1570_v13 = vmul.f32 %v12745_v31, %v12745_v31  ;;  %v7746_v2 = vld [vmem:[%s17393_s0 + $0x5e8] sm:$0xff] }
 0x333   :  { %6968 = vst.msk [vmem:[%s17395_s5 + $0x368] sm:$0xff] %vm6630_vm1, %v12729_v34  ;;  %6967 = vst.msk [vmem:[%s17395_s5 + $0x360] sm:$0xff] %vm6630_vm1, %v12731_v12  ;;  %2158 = vadd.xlane.f32.xlu1 %v2157_v45  ;;  %2155 = vadd.xlane.f32.xlu0 %v2154_v29  ;;  %v2163_v29 = vsel %vm245_vm0, %v1569_v43, 0.0  ;;  %v12805_v31 = vsub.f32 %v7746_v2, %v10373_v54 }
 0x334   :  { %v1949_v57 = vpop.xlane.xlu1 %1948  ;;  %v1946_v26 = vpop.xlane.xlu0 %1945  ;;  %18432 = vst [vmem:[#allocation292_spill] sm:$0xff] %v12771_v49  ;;  %v1572_v48 = vmul.f32 %v12771_v49, %v12771_v49  ;;  %v7748_v49 = vld [vmem:[%s17393_s0 + $0x5f8] sm:$0xff] }
 0x335   :  { %v12773_v28 = vmul.f32 0.020408163, %v1949_v57  ;;  %v12775_v45 = vmul.f32 0.020408163, %v1946_v26  ;;  %v1573_v26 = vmul.f32 %v12765_v1, %v12765_v1  ;;  %18433 = vst [vmem:[#allocation293_spill] sm:$0xff] %v12805_v31  ;;  %v12835_v1 = vsub.f32 %v7748_v49, %v10393_v27  ;;  %v7750_v49 = vld [vmem:[%s17393_s0 + $0x608] sm:$0xff] }
 0x337   :  { %6970 = vst.msk [vmem:[%s17395_s5 + $0x378] sm:$0xff] %vm6630_vm1, %v12773_v28  ;;  %6969 = vst.msk [vmem:[%s17395_s5 + $0x370] sm:$0xff] %vm6630_vm1, %v12775_v45  ;;  %2164 = vadd.xlane.f32.xlu1 %v2163_v29  ;;  %2161 = vadd.xlane.f32.xlu0 %v2160_v62  ;;  %v7747_v62 = vld [vmem:[%s17393_s0 + $0x5e0] sm:$0xff]  ;;  %v1577_v6 = vmul.f32 %v12835_v1, %v12835_v1 }
 0x338   :  { %v1955_v17 = vpop.xlane.xlu1 %1954  ;;  %v1952_v43 = vpop.xlane.xlu0 %1951  ;;  %v12811_v29 = vsub.f32 %v7747_v62, %v10375_v40  ;;  %v2172_v62 = vsel %vm245_vm0, %v1572_v48, 0.0  ;;  %18435 = vst [vmem:[#allocation295_spill] sm:$0xff] %v12835_v1  ;;  %v12861_v48 = vsub.f32 %v7750_v49, %v10425_v53 }
 0x339   :  { %v12793_v56 = vmul.f32 0.020408163, %v1955_v17  ;;  %v12795_v57 = vmul.f32 0.020408163, %v1952_v43  ;;  %v2169_v17 = vsel %vm245_vm0, %v1571_v51, 0.0  ;;  %v2166_v43 = vsel %vm245_vm0, %v1570_v13, 0.0 }
 0x33a   :  { %18434 = vst [vmem:[#allocation294_spill] sm:$0xff] %v12811_v29  ;;  %v2175_v13 = vsel %vm245_vm0, %v1573_v26, 0.0  ;;  %v1574_v26 = vmul.f32 %v12811_v29, %v12811_v29  ;;  %18437 = vst [vmem:[#allocation297_spill] sm:$0xff] %v12861_v48 }
 0x33b   :  { %6972 = vst.msk [vmem:[%s17395_s5 + $0x388] sm:$0xff] %vm6630_vm1, %v12793_v56  ;;  %6971 = vst.msk [vmem:[%s17395_s5 + $0x380] sm:$0xff] %vm6630_vm1, %v12795_v57  ;;  %2170 = vadd.xlane.f32.xlu1 %v2169_v17  ;;  %2167 = vadd.xlane.f32.xlu0 %v2166_v43  ;;  %v7749_v17 = vld [vmem:[%s17393_s0 + $0x5f0] sm:$0xff] }
 0x33c   :  { %v1961_v54 = vpop.xlane.xlu1 %1960  ;;  %v1958_v40 = vpop.xlane.xlu0 %1957  ;;  %v12841_v43 = vsub.f32 %v7749_v17, %v10395_v4 }
 0x33d   :  { %v12825_v2 = vmul.f32 0.020408163, %v1961_v54  ;;  %v12827_v51 = vmul.f32 0.020408163, %v1958_v40  ;;  %v1575_v54 = vmul.f32 %v12805_v31, %v12805_v31  ;;  %v7751_v40 = vld [vmem:[%s17393_s0 + $0x600] sm:$0xff]  ;;  %v2178_v31 = vsel %vm245_vm0, %v1574_v26, 0.0 }
 0x33e   :  { %18436 = vst [vmem:[#allocation296_spill] sm:$0xff] %v12841_v43  ;;  %v12867_v17 = vsub.f32 %v7751_v40, %v10427_v47  ;;  %v1576_v53 = vmul.f32 %v12841_v43, %v12841_v43  ;;  %v7752_v40 = vld [vmem:[%s17393_s0 + $0x618] sm:$0xff] }
 0x33f   :  { %6974 = vst.msk [vmem:[%s17395_s5 + $0x398] sm:$0xff] %vm6630_vm1, %v12825_v2  ;;  %6973 = vst.msk [vmem:[%s17395_s5 + $0x390] sm:$0xff] %vm6630_vm1, %v12827_v51  ;;  %2176 = vadd.xlane.f32.xlu1 %v2175_v13  ;;  %2173 = vadd.xlane.f32.xlu0 %v2172_v62  ;;  %v2181_v62 = vsel %vm245_vm0, %v1575_v54, 0.0  ;;  %v12901_v43 = vsub.f32 %v7752_v40, %v10469_v14 }
 0x340   :  { %v1967_v27 = vpop.xlane.xlu1 %1966  ;;  %v1964_v4 = vpop.xlane.xlu0 %1963  ;;  %18438 = vst [vmem:[#allocation298_spill] sm:$0xff] %v12867_v17  ;;  %v1578_v49 = vmul.f32 %v12867_v17, %v12867_v17  ;;  %v7754_v17 = vld [vmem:[%s17393_s0 + $0x628] sm:$0xff] }
 0x341   :  { %v12869_v29 = vmul.f32 0.020408163, %v1967_v27  ;;  %v12871_v13 = vmul.f32 0.020408163, %v1964_v4  ;;  %v1579_v4 = vmul.f32 %v12861_v48, %v12861_v48  ;;  %18440 = vst [vmem:[#allocation300_spill] sm:$0xff] %v12901_v43  ;;  %v12931_v48 = vsub.f32 %v7754_v17, %v10489_v5  ;;  %v7756_v17 = vld [vmem:[%s17393_s0 + $0x638] sm:$0xff] }
 0x343   :  { %6976 = vst.msk [vmem:[%s17395_s5 + $0x3a8] sm:$0xff] %vm6630_vm1, %v12869_v29  ;;  %6975 = vst.msk [vmem:[%s17395_s5 + $0x3a0] sm:$0xff] %vm6630_vm1, %v12871_v13  ;;  %2182 = vadd.xlane.f32.xlu1 %v2181_v62  ;;  %2179 = vadd.xlane.f32.xlu0 %v2178_v31  ;;  %v7753_v31 = vld [vmem:[%s17393_s0 + $0x610] sm:$0xff]  ;;  %v1583_v1 = vmul.f32 %v12931_v48, %v12931_v48 }
 0x344   :  { %v1973_v47 = vpop.xlane.xlu1 %1972  ;;  %v1970_v54 = vpop.xlane.xlu0 %1969  ;;  %v12907_v62 = vsub.f32 %v7753_v31, %v10471_v18  ;;  %v2190_v31 = vsel %vm245_vm0, %v1578_v49, 0.0  ;;  %18443 = vst [vmem:[#allocation303_spill] sm:$0xff] %v12931_v48  ;;  %v12957_v49 = vsub.f32 %v7756_v17, %v10521_v37  ;;  %v18454_v48 = vld [vmem:[#allocation156_spill] sm:$0xff] }
 0x345   :  { %v12889_v26 = vmul.f32 0.020408163, %v1973_v47  ;;  %v12891_v27 = vmul.f32 0.020408163, %v1970_v54  ;;  %v2187_v47 = vsel %vm245_vm0, %v1577_v6, 0.0  ;;  %v2184_v54 = vsel %vm245_vm0, %v1576_v53, 0.0 }
 0x346   :  { %18441 = vst [vmem:[#allocation301_spill] sm:$0xff] %v12907_v62  ;;  %v2193_v53 = vsel %vm245_vm0, %v1579_v4, 0.0  ;;  %v1580_v4 = vmul.f32 %v12907_v62, %v12907_v62  ;;  %18445 = vst [vmem:[#allocation305_spill] sm:$0xff] %v12957_v49 }
 0x347   :  { %18439 = vst [vmem:[#allocation299_spill] sm:$0xff] %v12891_v27  ;;  %6978 = vst.msk [vmem:[%s17395_s5 + $0x3b8] sm:$0xff] %vm6630_vm1, %v12889_v26  ;;  %2188 = vadd.xlane.f32.xlu1 %v2187_v47  ;;  %2185 = vadd.xlane.f32.xlu0 %v2184_v54  ;;  %v7755_v47 = vld [vmem:[%s17393_s0 + $0x620] sm:$0xff] }
 0x348   :  { %6977 = vst.msk [vmem:[%s17395_s5 + $0x3b0] sm:$0xff] %vm6630_vm1, %v12891_v27  ;;  %v1979_v14 = vpop.xlane.xlu1 %1978  ;;  %v1976_v18 = vpop.xlane.xlu0 %1975  ;;  %v12937_v54 = vsub.f32 %v7755_v47, %v10491_v58 }
 0x349   :  { %v12921_v40 = vmul.f32 0.020408163, %v1979_v14  ;;  %v12923_v6 = vmul.f32 0.020408163, %v1976_v18  ;;  %v1581_v14 = vmul.f32 %v12901_v43, %v12901_v43  ;;  %v7757_v18 = vld [vmem:[%s17393_s0 + $0x630] sm:$0xff]  ;;  %v2196_v43 = vsel %vm245_vm0, %v1580_v4, 0.0 }
 0x34a   :  { %18444 = vst [vmem:[#allocation304_spill] sm:$0xff] %v12937_v54  ;;  %v12963_v47 = vsub.f32 %v7757_v18, %v10523_v7  ;;  %v1582_v37 = vmul.f32 %v12937_v54, %v12937_v54  ;;  %v7758_v18 = vld [vmem:[%s17393_s0 + $0x648] sm:$0xff] }
 0x34b   :  { %18442 = vst [vmem:[#allocation302_spill] sm:$0xff] %v12923_v6  ;;  %6980 = vst.msk [vmem:[%s17395_s5 + $0x3c8] sm:$0xff] %vm6630_vm1, %v12921_v40  ;;  %2194 = vadd.xlane.f32.xlu1 %v2193_v53  ;;  %2191 = vadd.xlane.f32.xlu0 %v2190_v31  ;;  %v2199_v31 = vsel %vm245_vm0, %v1581_v14, 0.0  ;;  %v12997_v54 = vsub.f32 %v7758_v18, %v10565_v44 }
 0x34c   :  { %6979 = vst.msk [vmem:[%s17395_s5 + $0x3c0] sm:$0xff] %vm6630_vm1, %v12923_v6  ;;  %v1985_v5 = vpop.xlane.xlu1 %1984  ;;  %v1982_v58 = vpop.xlane.xlu0 %1981  ;;  %18446 = vst [vmem:[#allocation306_spill] sm:$0xff] %v12963_v47  ;;  %v1584_v17 = vmul.f32 %v12963_v47, %v12963_v47  ;;  %v7760_v47 = vld [vmem:[%s17393_s0 + $0x658] sm:$0xff] }
 0x34d   :  { %v12965_v62 = vmul.f32 0.020408163, %v1985_v5  ;;  %v12967_v53 = vmul.f32 0.020408163, %v1982_v58  ;;  %v1585_v58 = vmul.f32 %v12957_v49, %v12957_v49  ;;  %18449 = vst [vmem:[#allocation309_spill] sm:$0xff] %v12997_v54  ;;  %v2202_v49 = vsel %vm245_vm0, %v1582_v37, 0.0 }
 0x34f   :  { %18447 = vst [vmem:[#allocation307_spill] sm:$0xff] %v12967_v53  ;;  %6982 = vst.msk [vmem:[%s17395_s5 + $0x3d8] sm:$0xff] %vm6630_vm1, %v12965_v62  ;;  %2200 = vadd.xlane.f32.xlu1 %v2199_v31  ;;  %2197 = vadd.xlane.f32.xlu0 %v2196_v43  ;;  %v7759_v43 = vld [vmem:[%s17393_s0 + $0x640] sm:$0xff]  ;;  %v18450_v31 = vld [vmem:[#allocation155_spill] sm:$0xff]  ;;  %v2211_v37 = vsel %vm245_vm0, %v1585_v58, 0.0 }
 0x350   :  { %6981 = vst.msk [vmem:[%s17395_s5 + $0x3d0] sm:$0xff] %vm6630_vm1, %v12967_v53  ;;  %v1991_v7 = vpop.xlane.xlu1 %1990  ;;  %v1988_v14 = vpop.xlane.xlu0 %1987  ;;  %v13027_v53 = vsub.f32 %v7760_v47, %v18454_v48 }
 0x351   :  { %v12985_v4 = vmul.f32 0.020408163, %v1991_v7  ;;  %v12987_v5 = vmul.f32 0.020408163, %v1988_v14  ;;  %v13003_v7 = vsub.f32 %v7759_v43, %v18450_v31  ;;  %v2205_v14 = vsel %vm245_vm0, %v1583_v1, 0.0 }
 0x352   :  { %v2208_v31 = vsel %vm245_vm0, %v1584_v17, 0.0  ;;  %18455 = vst [vmem:[#allocation156_spill] sm:$0xff] %v13027_v53  ;;  %v7762_v17 = vld [vmem:[%s17393_s0 + $0x668] sm:$0xff]  ;;  %v1589_v27 = vmul.f32 %v13027_v53, %v13027_v53 }
 0x353   :  { %18448 = vst [vmem:[#allocation308_spill] sm:$0xff] %v12987_v5  ;;  %18451 = vst [vmem:[#allocation155_spill] sm:$0xff] %v13003_v7  ;;  %2206 = vadd.xlane.f32.xlu1 %v2205_v14  ;;  %2203 = vadd.xlane.f32.xlu0 %v2202_v49  ;;  %v7761_v49 = vld [vmem:[%s17393_s0 + $0x650] sm:$0xff]  ;;  %v18456_v14 = vld [vmem:[#allocation157_spill] sm:$0xff]  ;;  %v1586_v58 = vmul.f32 %v13003_v7, %v13003_v7 }
 0x354   :  { %6984 = vst.msk [vmem:[%s17395_s5 + $0x3e8] sm:$0xff] %vm6630_vm1, %v12985_v4  ;;  %6983 = vst.msk [vmem:[%s17395_s5 + $0x3e0] sm:$0xff] %vm6630_vm1, %v12987_v5  ;;  %v1997_v44 = vpop.xlane.xlu1 %1996  ;;  %v1994_v18 = vpop.xlane.xlu0 %1993  ;;  %v7763_v7 = vld [vmem:[%s17393_s0 + $0x660] sm:$0xff] }
 0x355   :  { %v13017_v43 = vmul.f32 0.020408163, %v1997_v44  ;;  %v13019_v1 = vmul.f32 0.020408163, %v1994_v18  ;;  %v13033_v44 = vsub.f32 %v7761_v49, %v18456_v14  ;;  %v1587_v18 = vmul.f32 %v12997_v54, %v12997_v54  ;;  %v18458_v49 = vld [vmem:[#allocation159_spill] sm:$0xff]  ;;  %v18460_v54 = vld [vmem:[#allocation160_spill] sm:$0xff] }
 0x356   :  { %v13053_v14 = vsub.f32 %v7762_v17, %v18458_v49  ;;  %v13059_v5 = vsub.f32 %v7763_v7, %v18460_v54  ;;  %v7764_v49 = vld [vmem:[%s17393_s0 + $0x678] sm:$0xff] }
 0x357   :  { %18452 = vst [vmem:[#allocation310_spill] sm:$0xff] %v13017_v43  ;;  %18453 = vst [vmem:[#allocation311_spill] sm:$0xff] %v13019_v1  ;;  %2212 = vadd.xlane.f32.xlu1 %v2211_v37  ;;  %2209 = vadd.xlane.f32.xlu0 %v2208_v31  ;;  %v2217_v31 = vsel %vm245_vm0, %v1587_v18, 0.0  ;;  %v1588_v17 = vmul.f32 %v13033_v44, %v13033_v44 }
 0x358   :  { %18457 = vst [vmem:[#allocation157_spill] sm:$0xff] %v13033_v44  ;;  %6986 = vst.msk [vmem:[%s17395_s5 + $0x3f8] sm:$0xff] %vm6630_vm1, %v13017_v43  ;;  %v2003_v48 = vpop.xlane.xlu1 %2002  ;;  %v2000_v47 = vpop.xlane.xlu0 %1999  ;;  %v18466_v44 = vld [vmem:[#allocation161_spill] sm:$0xff] }
 0x359   :  { %6985 = vst.msk [vmem:[%s17395_s5 + $0x3f0] sm:$0xff] %vm6630_vm1, %v13019_v1  ;;  %18459 = vst [vmem:[#allocation159_spill] sm:$0xff] %v13053_v14  ;;  %v13061_v6 = vmul.f32 0.020408163, %v2003_v48  ;;  %v13063_v37 = vmul.f32 0.020408163, %v2000_v47  ;;  %v1591_v48 = vmul.f32 %v13053_v14, %v13053_v14  ;;  %v1590_v47 = vmul.f32 %v13059_v5, %v13059_v5 }
 0x35a   :  { %18461 = vst [vmem:[#allocation160_spill] sm:$0xff] %v13059_v5  ;;  %v2214_v1 = vsel %vm245_vm0, %v1586_v58, 0.0  ;;  %v13093_v53 = vsub.f32 %v7764_v49, %v18466_v44  ;;  %v2220_v14 = vsel %vm245_vm0, %v1588_v17, 0.0  ;;  %v7766_v5 = vld [vmem:[%s17393_s0 + $0x688] sm:$0xff] }
 0x35b   :  { %18462 = vst [vmem:[#allocation312_spill] sm:$0xff] %v13061_v6  ;;  %18463 = vst [vmem:[#allocation313_spill] sm:$0xff] %v13063_v37  ;;  %2218 = vadd.xlane.f32.xlu1 %v2217_v31  ;;  %2215 = vadd.xlane.f32.xlu0 %v2214_v1  ;;  %v7765_v1 = vld [vmem:[%s17393_s0 + $0x670] sm:$0xff]  ;;  %v18468_v31 = vld [vmem:[#allocation162_spill] sm:$0xff]  ;;  %v2229_v17 = vsel %vm245_vm0, %v1591_v48, 0.0 }
 0x35c   :  { %6988 = vst.msk [vmem:[%s17395_s5 + $0x408] sm:$0xff] %vm6630_vm1, %v13061_v6  ;;  %6987 = vst.msk [vmem:[%s17395_s5 + $0x400] sm:$0xff] %vm6630_vm1, %v13063_v37  ;;  %v2009_v54 = vpop.xlane.xlu1 %2008  ;;  %v2006_v7 = vpop.xlane.xlu0 %2005  ;;  %v18472_v37 = vld [vmem:[#allocation163_spill] sm:$0xff] }
 0x35d   :  { %v13081_v18 = vmul.f32 0.020408163, %v2009_v54  ;;  %v13083_v58 = vmul.f32 0.020408163, %v2006_v7  ;;  %18467 = vst [vmem:[#allocation161_spill] sm:$0xff] %v13093_v53  ;;  %v13099_v54 = vsub.f32 %v7765_v1, %v18468_v31  ;;  %v2223_v7 = vsel %vm245_vm0, %v1589_v27, 0.0 }
 0x35e   :  { %v2226_v31 = vsel %vm245_vm0, %v1590_v47, 0.0  ;;  %v7768_v47 = vld [vmem:[%s17393_s0 + $0x698] sm:$0xff] }
 0x35f   :  { %18464 = vst [vmem:[#allocation314_spill] sm:$0xff] %v13081_v18  ;;  %18465 = vst [vmem:[#allocation315_spill] sm:$0xff] %v13083_v58  ;;  %2224 = vadd.xlane.f32.xlu1 %v2223_v7  ;;  %2221 = vadd.xlane.f32.xlu0 %v2220_v14  ;;  %v7767_v14 = vld [vmem:[%s17393_s0 + $0x680] sm:$0xff]  ;;  %v18474_v7 = vld [vmem:[#allocation164_spill] sm:$0xff]  ;;  %v1592_v48 = vmul.f32 %v13099_v54, %v13099_v54 }
 0x360   :  { %18469 = vst [vmem:[#allocation162_spill] sm:$0xff] %v13099_v54  ;;  %6990 = vst.msk [vmem:[%s17395_s5 + $0x418] sm:$0xff] %vm6630_vm1, %v13081_v18  ;;  %v2015_v44 = vpop.xlane.xlu1 %2014  ;;  %v2012_v49 = vpop.xlane.xlu0 %2011  ;;  %v13123_v18 = vsub.f32 %v7766_v5, %v18472_v37  ;;  %v7769_v54 = vld [vmem:[%s17393_s0 + $0x690] sm:$0xff] }
 0x361   :  { %6989 = vst.msk [vmem:[%s17395_s5 + $0x410] sm:$0xff] %vm6630_vm1, %v13083_v58  ;;  %v13113_v1 = vmul.f32 0.020408163, %v2015_v44  ;;  %v13115_v27 = vmul.f32 0.020408163, %v2012_v49  ;;  %v13129_v44 = vsub.f32 %v7767_v14, %v18474_v7  ;;  %v1593_v49 = vmul.f32 %v13093_v53, %v13093_v53  ;;  %v18476_v14 = vld [vmem:[#allocation165_spill] sm:$0xff] }
 0x362   :  { %18473 = vst [vmem:[#allocation163_spill] sm:$0xff] %v13123_v18  ;;  %v13149_v7 = vsub.f32 %v7768_v47, %v18476_v14  ;;  %v18478_v53 = vld [vmem:[#allocation166_spill] sm:$0xff]  ;;  %v1595_v6 = vmul.f32 %v13123_v18, %v13123_v18  ;;  %v7770_v14 = vld [vmem:[%s17393_s0 + $0x6a8] sm:$0xff] }
 0x363   :  { %18470 = vst [vmem:[#allocation316_spill] sm:$0xff] %v13113_v1  ;;  %18471 = vst [vmem:[#allocation317_spill] sm:$0xff] %v13115_v27  ;;  %2230 = vadd.xlane.f32.xlu1 %v2229_v17  ;;  %2227 = vadd.xlane.f32.xlu0 %v2226_v31  ;;  %v13155_v58 = vsub.f32 %v7769_v54, %v18478_v53  ;;  %v2235_v31 = vsel %vm245_vm0, %v1593_v49, 0.0  ;;  %v1594_v47 = vmul.f32 %v13129_v44, %v13129_v44 }
 0x364   :  { %18475 = vst [vmem:[#allocation164_spill] sm:$0xff] %v13129_v44  ;;  %6992 = vst.msk [vmem:[%s17395_s5 + $0x428] sm:$0xff] %vm6630_vm1, %v13113_v1  ;;  %v2021_v5 = vpop.xlane.xlu1 %2020  ;;  %v2018_v37 = vpop.xlane.xlu0 %2017  ;;  %v18484_v44 = vld [vmem:[#allocation167_spill] sm:$0xff] }
 0x365   :  { %6991 = vst.msk [vmem:[%s17395_s5 + $0x420] sm:$0xff] %vm6630_vm1, %v13115_v27  ;;  %18477 = vst [vmem:[#allocation165_spill] sm:$0xff] %v13149_v7  ;;  %v13157_v1 = vmul.f32 0.020408163, %v2021_v5  ;;  %v13159_v17 = vmul.f32 0.020408163, %v2018_v37  ;;  %v1597_v5 = vmul.f32 %v13149_v7, %v13149_v7  ;;  %v1596_v37 = vmul.f32 %v13155_v58, %v13155_v58 }
 0x366   :  { %18479 = vst [vmem:[#allocation166_spill] sm:$0xff] %v13155_v58  ;;  %v2232_v27 = vsel %vm245_vm0, %v1592_v48, 0.0  ;;  %v13189_v18 = vsub.f32 %v7770_v14, %v18484_v44  ;;  %v2238_v7 = vsel %vm245_vm0, %v1594_v47, 0.0  ;;  %v7772_v58 = vld [vmem:[%s17393_s0 + $0x6b8] sm:$0xff] }
 0x367   :  { %18480 = vst [vmem:[#allocation318_spill] sm:$0xff] %v13157_v1  ;;  %18481 = vst [vmem:[#allocation319_spill] sm:$0xff] %v13159_v17  ;;  %2236 = vadd.xlane.f32.xlu1 %v2235_v31  ;;  %2233 = vadd.xlane.f32.xlu0 %v2232_v27  ;;  %v7771_v27 = vld [vmem:[%s17393_s0 + $0x6a0] sm:$0xff]  ;;  %v18486_v31 = vld [vmem:[#allocation168_spill] sm:$0xff]  ;;  %v2247_v47 = vsel %vm245_vm0, %v1597_v5, 0.0 }
 0x368   :  { %6994 = vst.msk [vmem:[%s17395_s5 + $0x438] sm:$0xff] %vm6630_vm1, %v13157_v1  ;;  %6993 = vst.msk [vmem:[%s17395_s5 + $0x430] sm:$0xff] %vm6630_vm1, %v13159_v17  ;;  %v2027_v53 = vpop.xlane.xlu1 %2026  ;;  %v2024_v54 = vpop.xlane.xlu0 %2023  ;;  %v18490_v17 = vld [vmem:[#allocation169_spill] sm:$0xff] }
 0x369   :  { %v13177_v49 = vmul.f32 0.020408163, %v2027_v53  ;;  %v13179_v48 = vmul.f32 0.020408163, %v2024_v54  ;;  %18485 = vst [vmem:[#allocation167_spill] sm:$0xff] %v13189_v18  ;;  %v13195_v53 = vsub.f32 %v7771_v27, %v18486_v31  ;;  %v2241_v54 = vsel %vm245_vm0, %v1595_v6, 0.0 }
 0x36a   :  { %v2244_v31 = vsel %vm245_vm0, %v1596_v37, 0.0  ;;  %v7774_v37 = vld [vmem:[%s17393_s0 + $0x6c8] sm:$0xff] }
 0x36b   :  { %18482 = vst [vmem:[#allocation320_spill] sm:$0xff] %v13177_v49  ;;  %18483 = vst [vmem:[#allocation321_spill] sm:$0xff] %v13179_v48  ;;  %2242 = vadd.xlane.f32.xlu1 %v2241_v54  ;;  %2239 = vadd.xlane.f32.xlu0 %v2238_v7  ;;  %v7773_v7 = vld [vmem:[%s17393_s0 + $0x6b0] sm:$0xff]  ;;  %v18492_v54 = vld [vmem:[#allocation170_spill] sm:$0xff]  ;;  %v1598_v5 = vmul.f32 %v13195_v53, %v13195_v53 }
 0x36c   :  { %18487 = vst [vmem:[#allocation168_spill] sm:$0xff] %v13195_v53  ;;  %6996 = vst.msk [vmem:[%s17395_s5 + $0x448] sm:$0xff] %vm6630_vm1, %v13177_v49  ;;  %v2033_v44 = vpop.xlane.xlu1 %2032  ;;  %v2030_v14 = vpop.xlane.xlu0 %2029  ;;  %v13219_v49 = vsub.f32 %v7772_v58, %v18490_v17  ;;  %v7775_v53 = vld [vmem:[%s17393_s0 + $0x6c0] sm:$0xff] }
 0x36d   :  { %6995 = vst.msk [vmem:[%s17395_s5 + $0x440] sm:$0xff] %vm6630_vm1, %v13179_v48  ;;  %v13209_v27 = vmul.f32 0.020408163, %v2033_v44  ;;  %v13211_v6 = vmul.f32 0.020408163, %v2030_v14  ;;  %v13225_v44 = vsub.f32 %v7773_v7, %v18492_v54  ;;  %v1599_v14 = vmul.f32 %v13189_v18, %v13189_v18  ;;  %v18494_v7 = vld [vmem:[#allocation171_spill] sm:$0xff] }
 0x36e   :  { %18491 = vst [vmem:[#allocation169_spill] sm:$0xff] %v13219_v49  ;;  %v13245_v54 = vsub.f32 %v7774_v37, %v18494_v7  ;;  %v18496_v18 = vld [vmem:[#allocation172_spill] sm:$0xff]  ;;  %v1601_v1 = vmul.f32 %v13219_v49, %v13219_v49  ;;  %v7776_v7 = vld [vmem:[%s17393_s0 + $0x6d8] sm:$0xff] }
 0x36f   :  { %18488 = vst [vmem:[#allocation322_spill] sm:$0xff] %v13209_v27  ;;  %18489 = vst [vmem:[#allocation323_spill] sm:$0xff] %v13211_v6  ;;  %2248 = vadd.xlane.f32.xlu1 %v2247_v47  ;;  %2245 = vadd.xlane.f32.xlu0 %v2244_v31  ;;  %v13251_v48 = vsub.f32 %v7775_v53, %v18496_v18  ;;  %v2253_v31 = vsel %vm245_vm0, %v1599_v14, 0.0  ;;  %v1600_v37 = vmul.f32 %v13225_v44, %v13225_v44 }
 0x370   :  { %18493 = vst [vmem:[#allocation170_spill] sm:$0xff] %v13225_v44  ;;  %6998 = vst.msk [vmem:[%s17395_s5 + $0x458] sm:$0xff] %vm6630_vm1, %v13209_v27  ;;  %v2039_v58 = vpop.xlane.xlu1 %2038  ;;  %v2036_v17 = vpop.xlane.xlu0 %2035  ;;  %v18502_v44 = vld [vmem:[#allocation173_spill] sm:$0xff] }
 0x371   :  { %6997 = vst.msk [vmem:[%s17395_s5 + $0x450] sm:$0xff] %vm6630_vm1, %v13211_v6  ;;  %18495 = vst [vmem:[#allocation171_spill] sm:$0xff] %v13245_v54  ;;  %v13253_v27 = vmul.f32 0.020408163, %v2039_v58  ;;  %v13255_v47 = vmul.f32 0.020408163, %v2036_v17  ;;  %v1603_v58 = vmul.f32 %v13245_v54, %v13245_v54  ;;  %v1602_v17 = vmul.f32 %v13251_v48, %v13251_v48 }
 0x372   :  { %18497 = vst [vmem:[#allocation172_spill] sm:$0xff] %v13251_v48  ;;  %v2250_v6 = vsel %vm245_vm0, %v1598_v5, 0.0  ;;  %v13285_v49 = vsub.f32 %v7776_v7, %v18502_v44  ;;  %v2256_v54 = vsel %vm245_vm0, %v1600_v37, 0.0  ;;  %v7778_v48 = vld [vmem:[%s17393_s0 + $0x6e8] sm:$0xff] }
 0x373   :  { %18498 = vst [vmem:[#allocation324_spill] sm:$0xff] %v13253_v27  ;;  %18499 = vst [vmem:[#allocation325_spill] sm:$0xff] %v13255_v47  ;;  %2254 = vadd.xlane.f32.xlu1 %v2253_v31  ;;  %2251 = vadd.xlane.f32.xlu0 %v2250_v6  ;;  %v7777_v6 = vld [vmem:[%s17393_s0 + $0x6d0] sm:$0xff]  ;;  %v18504_v31 = vld [vmem:[#allocation174_spill] sm:$0xff]  ;;  %v2265_v37 = vsel %vm245_vm0, %v1603_v58, 0.0 }
 0x374   :  { %7000 = vst.msk [vmem:[%s17395_s5 + $0x468] sm:$0xff] %vm6630_vm1, %v13253_v27  ;;  %6999 = vst.msk [vmem:[%s17395_s5 + $0x460] sm:$0xff] %vm6630_vm1, %v13255_v47  ;;  %v2045_v18 = vpop.xlane.xlu1 %2044  ;;  %v2042_v53 = vpop.xlane.xlu0 %2041  ;;  %v18508_v47 = vld [vmem:[#allocation175_spill] sm:$0xff] }
 0x375   :  { %v13273_v14 = vmul.f32 0.020408163, %v2045_v18  ;;  %v13275_v5 = vmul.f32 0.020408163, %v2042_v53  ;;  %18503 = vst [vmem:[#allocation173_spill] sm:$0xff] %v13285_v49  ;;  %v13291_v18 = vsub.f32 %v7777_v6, %v18504_v31  ;;  %v2259_v53 = vsel %vm245_vm0, %v1601_v1, 0.0 }
 0x376   :  { %v2262_v31 = vsel %vm245_vm0, %v1602_v17, 0.0  ;;  %v7780_v17 = vld [vmem:[%s17393_s0 + $0x6f8] sm:$0xff] }
 0x377   :  { %18500 = vst [vmem:[#allocation326_spill] sm:$0xff] %v13273_v14  ;;  %18501 = vst [vmem:[#allocation327_spill] sm:$0xff] %v13275_v5  ;;  %2260 = vadd.xlane.f32.xlu1 %v2259_v53  ;;  %2257 = vadd.xlane.f32.xlu0 %v2256_v54  ;;  %v7779_v54 = vld [vmem:[%s17393_s0 + $0x6e0] sm:$0xff]  ;;  %v18510_v53 = vld [vmem:[#allocation176_spill] sm:$0xff]  ;;  %v1604_v58 = vmul.f32 %v13291_v18, %v13291_v18 }
 0x378   :  { %18505 = vst [vmem:[#allocation174_spill] sm:$0xff] %v13291_v18  ;;  %7002 = vst.msk [vmem:[%s17395_s5 + $0x478] sm:$0xff] %vm6630_vm1, %v13273_v14  ;;  %v2051_v44 = vpop.xlane.xlu1 %2050  ;;  %v2048_v7 = vpop.xlane.xlu0 %2047  ;;  %v13315_v14 = vsub.f32 %v7778_v48, %v18508_v47  ;;  %v7781_v18 = vld [vmem:[%s17393_s0 + $0x6f0] sm:$0xff] }
 0x379   :  { %7001 = vst.msk [vmem:[%s17395_s5 + $0x470] sm:$0xff] %vm6630_vm1, %v13275_v5  ;;  %v13305_v6 = vmul.f32 0.020408163, %v2051_v44  ;;  %v13307_v1 = vmul.f32 0.020408163, %v2048_v7  ;;  %v13321_v44 = vsub.f32 %v7779_v54, %v18510_v53  ;;  %v1605_v7 = vmul.f32 %v13285_v49, %v13285_v49  ;;  %v18512_v54 = vld [vmem:[#allocation177_spill] sm:$0xff] }
 0x37a   :  { %18509 = vst [vmem:[#allocation175_spill] sm:$0xff] %v13315_v14  ;;  %v13341_v53 = vsub.f32 %v7780_v17, %v18512_v54  ;;  %v18514_v49 = vld [vmem:[#allocation178_spill] sm:$0xff]  ;;  %v1607_v27 = vmul.f32 %v13315_v14, %v13315_v14  ;;  %v7782_v54 = vld [vmem:[%s17393_s0 + $0x708] sm:$0xff] }
 0x37b   :  { %18506 = vst [vmem:[#allocation328_spill] sm:$0xff] %v13305_v6  ;;  %18507 = vst [vmem:[#allocation329_spill] sm:$0xff] %v13307_v1  ;;  %2266 = vadd.xlane.f32.xlu1 %v2265_v37  ;;  %2263 = vadd.xlane.f32.xlu0 %v2262_v31  ;;  %v13347_v5 = vsub.f32 %v7781_v18, %v18514_v49  ;;  %v2271_v31 = vsel %vm245_vm0, %v1605_v7, 0.0  ;;  %v1606_v17 = vmul.f32 %v13321_v44, %v13321_v44 }
 0x37c   :  { %18511 = vst [vmem:[#allocation176_spill] sm:$0xff] %v13321_v44  ;;  %7004 = vst.msk [vmem:[%s17395_s5 + $0x488] sm:$0xff] %vm6630_vm1, %v13305_v6  ;;  %v2057_v48 = vpop.xlane.xlu1 %2056  ;;  %v2054_v47 = vpop.xlane.xlu0 %2053  ;;  %v18520_v44 = vld [vmem:[#allocation179_spill] sm:$0xff] }
 0x37d   :  { %7003 = vst.msk [vmem:[%s17395_s5 + $0x480] sm:$0xff] %vm6630_vm1, %v13307_v1  ;;  %18513 = vst [vmem:[#allocation177_spill] sm:$0xff] %v13341_v53  ;;  %v13349_v6 = vmul.f32 0.020408163, %v2057_v48  ;;  %v13351_v37 = vmul.f32 0.020408163, %v2054_v47  ;;  %v1609_v48 = vmul.f32 %v13341_v53, %v13341_v53  ;;  %v1608_v47 = vmul.f32 %v13347_v5, %v13347_v5 }
 0x37e   :  { %18515 = vst [vmem:[#allocation178_spill] sm:$0xff] %v13347_v5  ;;  %v2268_v1 = vsel %vm245_vm0, %v1604_v58, 0.0  ;;  %v13381_v14 = vsub.f32 %v7782_v54, %v18520_v44  ;;  %v2274_v53 = vsel %vm245_vm0, %v1606_v17, 0.0  ;;  %v7784_v5 = vld [vmem:[%s17393_s0 + $0x718] sm:$0xff] }
 0x37f   :  { %18516 = vst [vmem:[#allocation330_spill] sm:$0xff] %v13349_v6  ;;  %18517 = vst [vmem:[#allocation331_spill] sm:$0xff] %v13351_v37  ;;  %2272 = vadd.xlane.f32.xlu1 %v2271_v31  ;;  %2269 = vadd.xlane.f32.xlu0 %v2268_v1  ;;  %v7783_v1 = vld [vmem:[%s17393_s0 + $0x700] sm:$0xff]  ;;  %v18522_v31 = vld [vmem:[#allocation180_spill] sm:$0xff]  ;;  %v2283_v17 = vsel %vm245_vm0, %v1609_v48, 0.0 }
 0x380   :  { %7006 = vst.msk [vmem:[%s17395_s5 + $0x498] sm:$0xff] %vm6630_vm1, %v13349_v6  ;;  %7005 = vst.msk [vmem:[%s17395_s5 + $0x490] sm:$0xff] %vm6630_vm1, %v13351_v37  ;;  %v2063_v49 = vpop.xlane.xlu1 %2062  ;;  %v2060_v18 = vpop.xlane.xlu0 %2059  ;;  %v18526_v37 = vld [vmem:[#allocation181_spill] sm:$0xff] }
 0x381   :  { %v13369_v7 = vmul.f32 0.020408163, %v2063_v49  ;;  %v13371_v58 = vmul.f32 0.020408163, %v2060_v18  ;;  %18521 = vst [vmem:[#allocation179_spill] sm:$0xff] %v13381_v14  ;;  %v13387_v49 = vsub.f32 %v7783_v1, %v18522_v31  ;;  %v2277_v18 = vsel %vm245_vm0, %v1607_v27, 0.0 }
 0x382   :  { %v2280_v31 = vsel %vm245_vm0, %v1608_v47, 0.0 }
 0x383   :  { %18518 = vst [vmem:[#allocation332_spill] sm:$0xff] %v13369_v7  ;;  %18519 = vst [vmem:[#allocation333_spill] sm:$0xff] %v13371_v58  ;;  %2278 = vadd.xlane.f32.xlu1 %v2277_v18  ;;  %2275 = vadd.xlane.f32.xlu0 %v2274_v53  ;;  %v7785_v53 = vld [vmem:[%s17393_s0 + $0x710] sm:$0xff]  ;;  %v18528_v18 = vld [vmem:[#allocation182_spill] sm:$0xff]  ;;  %v1610_v48 = vmul.f32 %v13387_v49, %v13387_v49 }
 0x384   :  { %18523 = vst [vmem:[#allocation180_spill] sm:$0xff] %v13387_v49  ;;  %7008 = vst.msk [vmem:[%s17395_s5 + $0x4a8] sm:$0xff] %vm6630_vm1, %v13369_v7  ;;  %v2069_v44 = vpop.xlane.xlu1 %2068  ;;  %v2066_v54 = vpop.xlane.xlu0 %2065  ;;  %v13411_v7 = vsub.f32 %v7784_v5, %v18526_v37 }
 0x385   :  { %7007 = vst.msk [vmem:[%s17395_s5 + $0x4a0] sm:$0xff] %vm6630_vm1, %v13371_v58  ;;  %v13401_v1 = vmul.f32 0.020408163, %v2069_v44  ;;  %v13403_v27 = vmul.f32 0.020408163, %v2066_v54  ;;  %v13417_v44 = vsub.f32 %v7785_v53, %v18528_v18  ;;  %v1611_v54 = vmul.f32 %v13381_v14, %v13381_v14 }
 0x386   :  { %18527 = vst [vmem:[#allocation181_spill] sm:$0xff] %v13411_v7  ;;  %v2286_v49 = vsel %vm245_vm0, %v1610_v48, 0.0  ;;  %v1613_v14 = vmul.f32 %v13411_v7, %v13411_v7 }
 0x387   :  { %18524 = vst [vmem:[#allocation334_spill] sm:$0xff] %v13401_v1  ;;  %18525 = vst [vmem:[#allocation335_spill] sm:$0xff] %v13403_v27  ;;  %2284 = vadd.xlane.f32.xlu1 %v2283_v17  ;;  %2281 = vadd.xlane.f32.xlu0 %v2280_v31  ;;  %v2289_v18 = vsel %vm245_vm0, %v1611_v54, 0.0  ;;  %v1612_v58 = vmul.f32 %v13417_v44, %v13417_v44  ;;  %v18532_v54 = vld [vmem:[#allocation183_spill] sm:$0xff] }
 0x388   :  { %18529 = vst [vmem:[#allocation182_spill] sm:$0xff] %v13417_v44  ;;  %7010 = vst.msk [vmem:[%s17395_s5 + $0x4b8] sm:$0xff] %vm6630_vm1, %v13401_v1  ;;  %v2075_v5 = vpop.xlane.xlu1 %2074  ;;  %v2072_v37 = vpop.xlane.xlu0 %2071  ;;  %v2983_v48 = vadd.f32 0.001, %v18532_v54  ;;  %v2295_v44 = vsel %vm245_vm0, %v1613_v14, 0.0  ;;  %v18535_v14 = vld [vmem:[#allocation186_spill] sm:$0xff] }
 0x389   :  { %7009 = vst.msk [vmem:[%s17395_s5 + $0x4b0] sm:$0xff] %vm6630_vm1, %v13403_v27  ;;  %v13433_v47 = vmul.f32 0.020408163, %v2075_v5  ;;  %v13435_v53 = vmul.f32 0.020408163, %v2072_v37  ;;  %v2292_v7 = vsel %vm245_vm0, %v1612_v58, 0.0 }
 0x38a   :  { %7102 = vrsqrt.f32 %v2983_v48  ;;  %v18538_v54 = vld [vmem:[#allocation184_spill] sm:$0xff]  ;;  %v18539_v48 = vld [vmem:[#allocation185_spill] sm:$0xff] }
 0x38b   :  { %18530 = vst [vmem:[#allocation336_spill] sm:$0xff] %v13433_v47  ;;  %18531 = vst [vmem:[#allocation337_spill] sm:$0xff] %v13435_v53  ;;  %2290 = vadd.xlane.f32.xlu1 %v2289_v18  ;;  %2287 = vadd.xlane.f32.xlu0 %v2286_v49 }
 0x38c   :  { %7012 = vst.msk [vmem:[%s17395_s5 + $0x4c8] sm:$0xff] %vm6630_vm1, %v13433_v47  ;;  %7011 = vst.msk [vmem:[%s17395_s5 + $0x4c0] sm:$0xff] %vm6630_vm1, %v13435_v53  ;;  %v2081_v17 = vpop.xlane.xlu1 %2080  ;;  %v2078_v31 = vpop.xlane.xlu0 %2077  ;;  %v2982_v53 = vadd.f32 0.001, %v18538_v54  ;;  %v18542_v54 = vld [vmem:[#allocation191_spill] sm:$0xff] }
 0x38d   :  { %v13454_v5 = vmul.f32 0.020408163, %v2081_v17  ;;  %v13456_v37 = vmul.f32 0.020408163, %v2078_v31  ;;  %v2984_v17 = vadd.f32 0.001, %v18535_v14 }
 0x38f   :  { %18533 = vst [vmem:[#allocation183_spill] sm:$0xff] %v13454_v5  ;;  %18534 = vst [vmem:[#allocation338_spill] sm:$0xff] %v13456_v37  ;;  %2296 = vadd.xlane.f32.xlu1 %v2295_v44  ;;  %2293 = vadd.xlane.f32.xlu0 %v2292_v7  ;;  %7104 = vrsqrt.f32 %v2984_v17 }
 0x390   :  { %7014 = vst.msk [vmem:[%s17395_s5 + $0x4d8] sm:$0xff] %vm6630_vm1, %v13454_v5  ;;  %7013 = vst.msk [vmem:[%s17395_s5 + $0x4d0] sm:$0xff] %vm6630_vm1, %v13456_v37  ;;  %v2087_v49 = vpop.xlane.xlu1 %2086  ;;  %v2084_v18 = vpop.xlane.xlu0 %2083  ;;  %7106 = vrsqrt.f32 %v2982_v53  ;;  %v2991_v37 = vadd.f32 0.001, %v18542_v54 }
 0x391   :  { %v13471_v58 = vmul.f32 0.020408163, %v2087_v49  ;;  %v13473_v31 = vmul.f32 0.020408163, %v2084_v18  ;;  %v2985_v49 = vadd.f32 0.001, %v18539_v48 }
 0x393   :  { %18536 = vst [vmem:[#allocation186_spill] sm:$0xff] %v13471_v58  ;;  %18537 = vst [vmem:[#allocation339_spill] sm:$0xff] %v13473_v31  ;;  %7108 = vrsqrt.f32 %v2985_v49  ;;  %v2527_v49 = vld [vmem:[%s17396_s1 + $0x8] sm:$0xff] }
 0x394   :  { %7016 = vst.msk [vmem:[%s17395_s5 + $0x4e8] sm:$0xff] %vm6630_vm1, %v13471_v58  ;;  %7015 = vst.msk [vmem:[%s17395_s5 + $0x4e0] sm:$0xff] %vm6630_vm1, %v13473_v31  ;;  %v2093_v7 = vpop.xlane.xlu1 %2092  ;;  %v2090_v44 = vpop.xlane.xlu0 %2089  ;;  %7110 = vrsqrt.f32 %v2991_v37  ;;  %v18546_v31 = vld [vmem:[#allocation193_spill] sm:$0xff] }
 0x395   :  { %v13487_v18 = vmul.f32 0.020408163, %v2093_v7  ;;  %v13489_v14 = vmul.f32 0.020408163, %v2090_v44  ;;  %v18543_v44 = vld [vmem:[#allocation188_spill] sm:$0xff]  ;;  %v7103_v58 = vpop.eup %7102 }
 0x396   :  { %v2986_v48 = vadd.f32 0.001, %v18543_v44  ;;  %v2993_v27 = vadd.f32 0.001, %v18546_v31  ;;  %v18547_v31 = vld [vmem:[#allocation187_spill] sm:$0xff]  ;;  %v3439_v5 = vmul.f32 %v7103_v58, %v2527_v49  ;;  %v2526_v49 = vld [vmem:[%s17396_s1] sm:$0xff] }
 0x397   :  { %18540 = vst [vmem:[#allocation184_spill] sm:$0xff] %v13487_v18  ;;  %18541 = vst [vmem:[#allocation185_spill] sm:$0xff] %v13489_v14 }
 0x398   :  { %7018 = vst.msk [vmem:[%s17395_s5 + $0x4f8] sm:$0xff] %vm6630_vm1, %v13487_v18  ;;  %7017 = vst.msk [vmem:[%s17395_s5 + $0x4f0] sm:$0xff] %vm6630_vm1, %v13489_v14  ;;  %v2099_v17 = vpop.xlane.xlu1 %2098  ;;  %v2096_v7 = vpop.xlane.xlu0 %2095  ;;  %7112 = vrsqrt.f32 %v2986_v48 }
 0x399   :  { %v13503_v53 = vmul.f32 0.020408163, %v2099_v17  ;;  %v13505_v54 = vmul.f32 0.020408163, %v2096_v7  ;;  %v2987_v7 = vadd.f32 0.001, %v18547_v31  ;;  %7114 = vrsqrt.f32 %v2993_v27  ;;  %v7105_v47 = vpop.eup %7104 }
 0x39a   :  { %v2528_v27 = vld [vmem:[%s17396_s1 + $0x10] sm:$0xff]  ;;  %v7107_v48 = vpop.eup %7106 }
 0x39b   :  { %18544 = vst [vmem:[#allocation191_spill] sm:$0xff] %v13503_v53  ;;  %18545 = vst [vmem:[#allocation188_spill] sm:$0xff] %v13505_v54  ;;  %7116 = vrsqrt.f32 %v2987_v7  ;;  %v3440_v1 = vmul.f32 %v7105_v47, %v2528_v27  ;;  %v2535_v27 = vld [vmem:[%s17396_s1 + $0x48] sm:$0xff] }
 0x39c   :  { %7020 = vst.msk [vmem:[%s17395_s5 + $0x508] sm:$0xff] %vm6630_vm1, %v13503_v53  ;;  %7019 = vst.msk [vmem:[%s17395_s5 + $0x500] sm:$0xff] %vm6630_vm1, %v13505_v54  ;;  %v2105_v37 = vpop.xlane.xlu1 %2104  ;;  %v2102_v17 = vpop.xlane.xlu0 %2101  ;;  %v18550_v53 = vld [vmem:[#allocation195_spill] sm:$0xff] }
 0x39d   :  { %v13522_v44 = vmul.f32 0.020408163, %v2105_v37  ;;  %v13524_v14 = vmul.f32 0.020408163, %v2102_v17  ;;  %v2995_v18 = vadd.f32 0.001, %v18550_v53  ;;  %v7109_v6 = vpop.eup %7108 }
 0x39e   :  { %v18551_v37 = vld [vmem:[#allocation190_spill] sm:$0xff] }
 0x39f   :  { %18548 = vst [vmem:[#allocation193_spill] sm:$0xff] %v13522_v44  ;;  %18549 = vst [vmem:[#allocation187_spill] sm:$0xff] %v13524_v14  ;;  %v2988_v17 = vadd.f32 0.001, %v18551_v37  ;;  %7118 = vrsqrt.f32 %v2995_v18  ;;  %v2529_v18 = vld [vmem:[%s17396_s1 + $0x18] sm:$0xff] }
 0x3a0   :  { %7022 = vst.msk [vmem:[%s17395_s5 + $0x518] sm:$0xff] %vm6630_vm1, %v13522_v44  ;;  %7021 = vst.msk [vmem:[%s17395_s5 + $0x510] sm:$0xff] %vm6630_vm1, %v13524_v14  ;;  %3673 = vperm.xlu1 %7101, %v3439_v5   ;;  %v2111_v58 = vpop.xlane.xlu1 %2110  ;;  %v2108_v53 = vpop.xlane.xlu0 %2107  ;;  %v18554_v14 = vld [vmem:[#allocation197_spill] sm:$0xff]  ;;  %v3438_v5 = vmul.f32 %v7107_v48, %v2526_v49  ;;  %v18558_v48 = vld [vmem:[#allocation199_spill] sm:$0xff] }
 0x3a1   :  { %v13544_v31 = vmul.f32 0.020408163, %v2111_v58  ;;  %v13546_v54 = vmul.f32 0.020408163, %v2108_v53  ;;  %v2997_v44 = vadd.f32 0.001, %v18554_v14  ;;  %v7111_v14 = vpop.eup %7110  ;;  %7120 = vrsqrt.f32 %v2988_v17 }
 0x3a2   :  { %v18555_v58 = vld [vmem:[#allocation189_spill] sm:$0xff]  ;;  %v2999_v49 = vadd.f32 0.001, %v18558_v48  ;;  %v7113_v43 = vpop.eup %7112 }
 0x3a3   :  { %18552 = vst [vmem:[#allocation195_spill] sm:$0xff] %v13544_v31  ;;  %18553 = vst [vmem:[#allocation190_spill] sm:$0xff] %v13546_v54  ;;  %v2989_v53 = vadd.f32 0.001, %v18555_v58  ;;  %7122 = vrsqrt.f32 %v2997_v44  ;;  %v2530_v44 = vld [vmem:[%s17396_s1 + $0x20] sm:$0xff]  ;;  %v7115_v17 = vpop.eup %7114 }
 0x3a4   :  { %7024 = vst.msk [vmem:[%s17395_s5 + $0x528] sm:$0xff] %vm6630_vm1, %v13544_v31  ;;  %7023 = vst.msk [vmem:[%s17395_s5 + $0x520] sm:$0xff] %vm6630_vm1, %v13546_v54  ;;  %v2117_v47 = vpop.xlane.xlu1 %2116  ;;  %3678 = vperm.xlu1 %7101, %v3440_v1   ;;  %v2114_v7 = vpop.xlane.xlu0 %2113  ;;  %v3441_v54 = vmul.f32 %v7109_v6, %v2529_v18  ;;  %v3447_v1 = vmul.f32 %v7111_v14, %v2535_v27  ;;  %v2537_v18 = vld [vmem:[%s17396_s1 + $0x58] sm:$0xff] }
 0x3a5   :  { %v13566_v37 = vmul.f32 0.020408163, %v2117_v47  ;;  %v13568_v31 = vmul.f32 0.020408163, %v2114_v7  ;;  %3668 = vperm.xlu0 %7100, %v3438_v5   ;;  %7124 = vrsqrt.f32 %v2989_v53  ;;  %v18559_v47 = vld [vmem:[#allocation192_spill] sm:$0xff]  ;;  %v18562_v14 = vld [vmem:[#allocation201_spill] sm:$0xff] }
 0x3a6   :  { %v2990_v7 = vadd.f32 0.001, %v18559_v47  ;;  %7126 = vrsqrt.f32 %v2999_v49  ;;  %v3001_v27 = vadd.f32 0.001, %v18562_v14  ;;  %v2531_v53 = vld [vmem:[%s17396_s1 + $0x28] sm:$0xff] }
 0x3a7   :  { %18556 = vst [vmem:[#allocation197_spill] sm:$0xff] %v13566_v37  ;;  %18557 = vst [vmem:[#allocation189_spill] sm:$0xff] %v13568_v31 }
 0x3a8   :  { %7026 = vst.msk [vmem:[%s17395_s5 + $0x538] sm:$0xff] %vm6630_vm1, %v13566_v37  ;;  %7025 = vst.msk [vmem:[%s17395_s5 + $0x530] sm:$0xff] %vm6630_vm1, %v13568_v31  ;;  %v2123_v6 = vpop.xlane.xlu1 %2122  ;;  %3683 = vperm.xlu1 %7101, %v3441_v54   ;;  %v2120_v5 = vpop.xlane.xlu0 %2119  ;;  %v3442_v31 = vmul.f32 %v7113_v43, %v2530_v44  ;;  %v3449_v54 = vmul.f32 %v7115_v17, %v2537_v18  ;;  %v2539_v44 = vld [vmem:[%s17396_s1 + $0x68] sm:$0xff]  ;;  %7128 = vrsqrt.f32 %v2990_v7  ;;  %v2532_v7 = vld [vmem:[%s17396_s1 + $0x30] sm:$0xff] }
 0x3a9   :  { %v13588_v58 = vmul.f32 0.020408163, %v2123_v6  ;;  %v13590_v48 = vmul.f32 0.020408163, %v2120_v5  ;;  %3713 = vperm.xlu0 %7100, %v3447_v1   ;;  %v7117_v37 = vpop.eup %7116  ;;  %v18563_v6 = vld [vmem:[#allocation194_spill] sm:$0xff]  ;;  %7130 = vrsqrt.f32 %v3001_v27  ;;  %v18566_v17 = vld [vmem:[#allocation203_spill] sm:$0xff] }
 0x3aa   :  { %v7119_v49 = vpop.eup %7118  ;;  %v2992_v5 = vadd.f32 0.001, %v18563_v6  ;;  %v3003_v18 = vadd.f32 0.001, %v18566_v17 }
 0x3ab   :  { %18560 = vst [vmem:[#allocation199_spill] sm:$0xff] %v13588_v58  ;;  %18561 = vst [vmem:[#allocation192_spill] sm:$0xff] %v13590_v48 }
 0x3ac   :  { %7028 = vst.msk [vmem:[%s17395_s5 + $0x548] sm:$0xff] %vm6630_vm1, %v13588_v58  ;;  %7027 = vst.msk [vmem:[%s17395_s5 + $0x540] sm:$0xff] %vm6630_vm1, %v13590_v48  ;;  %v2129_v43 = vpop.xlane.xlu1 %2128  ;;  %3688 = vperm.xlu1 %7101, %v3442_v31   ;;  %v2126_v1 = vpop.xlane.xlu0 %2125  ;;  %v3443_v48 = vmul.f32 %v7117_v37, %v2531_v53  ;;  %v3451_v31 = vmul.f32 %v7119_v49, %v2539_v44  ;;  %v2541_v53 = vld [vmem:[%s17396_s1 + $0x78] sm:$0xff]  ;;  %7132 = vrsqrt.f32 %v2992_v5 }
 0x3ad   :  { %v13610_v47 = vmul.f32 0.020408163, %v2129_v43  ;;  %v13612_v14 = vmul.f32 0.020408163, %v2126_v1  ;;  %3723 = vperm.xlu0 %7100, %v3449_v54   ;;  %v7121_v58 = vpop.eup %7120  ;;  %v18567_v43 = vld [vmem:[#allocation196_spill] sm:$0xff]  ;;  %7134 = vrsqrt.f32 %v3003_v18  ;;  %v18570_v49 = vld [vmem:[#allocation205_spill] sm:$0xff] }
 0x3ae   :  { %v7123_v27 = vpop.eup %7122  ;;  %v2994_v1 = vadd.f32 0.001, %v18567_v43  ;;  %v3005_v44 = vadd.f32 0.001, %v18570_v49  ;;  %v2533_v5 = vld [vmem:[%s17396_s1 + $0x38] sm:$0xff] }
 0x3af   :  { %18564 = vst [vmem:[#allocation201_spill] sm:$0xff] %v13610_v47  ;;  %18565 = vst [vmem:[#allocation194_spill] sm:$0xff] %v13612_v14 }
 0x3b0   :  { %7030 = vst.msk [vmem:[%s17395_s5 + $0x558] sm:$0xff] %vm6630_vm1, %v13610_v47  ;;  %7029 = vst.msk [vmem:[%s17395_s5 + $0x550] sm:$0xff] %vm6630_vm1, %v13612_v14  ;;  %v2135_v37 = vpop.xlane.xlu1 %2134  ;;  %3693 = vperm.xlu1 %7101, %v3443_v48   ;;  %v2132_v54 = vpop.xlane.xlu0 %2131  ;;  %v3444_v14 = vmul.f32 %v7121_v58, %v2532_v7  ;;  %v3453_v48 = vmul.f32 %v7123_v27, %v2541_v53  ;;  %v2543_v7 = vld [vmem:[%s17396_s1 + $0x88] sm:$0xff]  ;;  %7136 = vrsqrt.f32 %v2994_v1  ;;  %v2534_v1 = vld [vmem:[%s17396_s1 + $0x40] sm:$0xff] }
 0x3b1   :  { %v13632_v6 = vmul.f32 0.020408163, %v2135_v37  ;;  %v13634_v17 = vmul.f32 0.020408163, %v2132_v54  ;;  %3733 = vperm.xlu0 %7100, %v3451_v31   ;;  %v7125_v47 = vpop.eup %7124  ;;  %v18571_v37 = vld [vmem:[#allocation198_spill] sm:$0xff]  ;;  %7138 = vrsqrt.f32 %v3005_v44  ;;  %v18574_v27 = vld [vmem:[#allocation207_spill] sm:$0xff] }
 0x3b2   :  { %v7127_v18 = vpop.eup %7126  ;;  %v2996_v54 = vadd.f32 0.001, %v18571_v37  ;;  %v3007_v53 = vadd.f32 0.001, %v18574_v27 }
 0x3b3   :  { %18568 = vst [vmem:[#allocation203_spill] sm:$0xff] %v13632_v6  ;;  %18569 = vst [vmem:[#allocation196_spill] sm:$0xff] %v13634_v17 }
 0x3b4   :  { %7032 = vst.msk [vmem:[%s17395_s5 + $0x568] sm:$0xff] %vm6630_vm1, %v13632_v6  ;;  %7031 = vst.msk [vmem:[%s17395_s5 + $0x560] sm:$0xff] %vm6630_vm1, %v13634_v17  ;;  %v2141_v58 = vpop.xlane.xlu1 %2140  ;;  %3698 = vperm.xlu1 %7101, %v3444_v14   ;;  %v2138_v31 = vpop.xlane.xlu0 %2137  ;;  %v3445_v17 = vmul.f32 %v7125_v47, %v2533_v5  ;;  %v3455_v14 = vmul.f32 %v7127_v18, %v2543_v7  ;;  %v2545_v5 = vld [vmem:[%s17396_s1 + $0x98] sm:$0xff]  ;;  %7140 = vrsqrt.f32 %v2996_v54  ;;  %v2536_v54 = vld [vmem:[%s17396_s1 + $0x50] sm:$0xff] }
 0x3b5   :  { %v13654_v43 = vmul.f32 0.020408163, %v2141_v58  ;;  %v13656_v49 = vmul.f32 0.020408163, %v2138_v31  ;;  %3743 = vperm.xlu0 %7100, %v3453_v48   ;;  %v7129_v6 = vpop.eup %7128  ;;  %v18575_v58 = vld [vmem:[#allocation200_spill] sm:$0xff]  ;;  %7142 = vrsqrt.f32 %v3007_v53  ;;  %v18578_v18 = vld [vmem:[#allocation209_spill] sm:$0xff] }
 0x3b6   :  { %v7131_v44 = vpop.eup %7130  ;;  %v2998_v31 = vadd.f32 0.001, %v18575_v58  ;;  %v3009_v7 = vadd.f32 0.001, %v18578_v18 }
 0x3b7   :  { %18572 = vst [vmem:[#allocation205_spill] sm:$0xff] %v13654_v43  ;;  %18573 = vst [vmem:[#allocation198_spill] sm:$0xff] %v13656_v49 }
 0x3b8   :  { %7034 = vst.msk [vmem:[%s17395_s5 + $0x578] sm:$0xff] %vm6630_vm1, %v13654_v43  ;;  %7033 = vst.msk [vmem:[%s17395_s5 + $0x570] sm:$0xff] %vm6630_vm1, %v13656_v49  ;;  %v2147_v47 = vpop.xlane.xlu1 %2146  ;;  %3703 = vperm.xlu1 %7101, %v3445_v17   ;;  %v2144_v48 = vpop.xlane.xlu0 %2143  ;;  %v3446_v49 = vmul.f32 %v7129_v6, %v2534_v1  ;;  %v3457_v17 = vmul.f32 %v7131_v44, %v2545_v5  ;;  %v2547_v1 = vld [vmem:[%s17396_s1 + $0xa8] sm:$0xff]  ;;  %7144 = vrsqrt.f32 %v2998_v31  ;;  %v2538_v31 = vld [vmem:[%s17396_s1 + $0x60] sm:$0xff] }
 0x3b9   :  { %v13676_v37 = vmul.f32 0.020408163, %v2147_v47  ;;  %v13678_v27 = vmul.f32 0.020408163, %v2144_v48  ;;  %3753 = vperm.xlu0 %7100, %v3455_v14   ;;  %v7133_v43 = vpop.eup %7132  ;;  %v18579_v47 = vld [vmem:[#allocation202_spill] sm:$0xff]  ;;  %7146 = vrsqrt.f32 %v3009_v7  ;;  %v18582_v44 = vld [vmem:[#allocation211_spill] sm:$0xff] }
 0x3ba   :  { %v7135_v53 = vpop.eup %7134  ;;  %v3000_v48 = vadd.f32 0.001, %v18579_v47  ;;  %v3011_v5 = vadd.f32 0.001, %v18582_v44 }
 0x3bb   :  { %18576 = vst [vmem:[#allocation207_spill] sm:$0xff] %v13676_v37  ;;  %18577 = vst [vmem:[#allocation200_spill] sm:$0xff] %v13678_v27 }
 0x3bc   :  { %7036 = vst.msk [vmem:[%s17395_s5 + $0x588] sm:$0xff] %vm6630_vm1, %v13676_v37  ;;  %7035 = vst.msk [vmem:[%s17395_s5 + $0x580] sm:$0xff] %vm6630_vm1, %v13678_v27  ;;  %v2153_v6 = vpop.xlane.xlu1 %2152  ;;  %3708 = vperm.xlu1 %7101, %v3446_v49   ;;  %v2150_v14 = vpop.xlane.xlu0 %2149  ;;  %v3448_v27 = vmul.f32 %v7133_v43, %v2536_v54  ;;  %v3459_v49 = vmul.f32 %v7135_v53, %v2547_v1  ;;  %v2549_v54 = vld [vmem:[%s17396_s1 + $0xb8] sm:$0xff]  ;;  %7148 = vrsqrt.f32 %v3000_v48  ;;  %v2540_v48 = vld [vmem:[%s17396_s1 + $0x70] sm:$0xff] }
 0x3bd   :  { %v13698_v58 = vmul.f32 0.020408163, %v2153_v6  ;;  %v13700_v18 = vmul.f32 0.020408163, %v2150_v14  ;;  %3763 = vperm.xlu0 %7100, %v3457_v17   ;;  %v7137_v37 = vpop.eup %7136  ;;  %v18583_v6 = vld [vmem:[#allocation204_spill] sm:$0xff]  ;;  %7150 = vrsqrt.f32 %v3011_v5  ;;  %v18586_v53 = vld [vmem:[#allocation213_spill] sm:$0xff] }
 0x3be   :  { %v7139_v7 = vpop.eup %7138  ;;  %v3002_v14 = vadd.f32 0.001, %v18583_v6  ;;  %v3013_v1 = vadd.f32 0.001, %v18586_v53 }
 0x3bf   :  { %18580 = vst [vmem:[#allocation209_spill] sm:$0xff] %v13698_v58  ;;  %18581 = vst [vmem:[#allocation202_spill] sm:$0xff] %v13700_v18 }
 0x3c0   :  { %7038 = vst.msk [vmem:[%s17395_s5 + $0x598] sm:$0xff] %vm6630_vm1, %v13698_v58  ;;  %7037 = vst.msk [vmem:[%s17395_s5 + $0x590] sm:$0xff] %vm6630_vm1, %v13700_v18  ;;  %v2159_v43 = vpop.xlane.xlu1 %2158  ;;  %3718 = vperm.xlu1 %7101, %v3448_v27   ;;  %v2156_v17 = vpop.xlane.xlu0 %2155  ;;  %v3450_v18 = vmul.f32 %v7137_v37, %v2538_v31  ;;  %v3461_v27 = vmul.f32 %v7139_v7, %v2549_v54  ;;  %v2551_v31 = vld [vmem:[%s17396_s1 + $0xc8] sm:$0xff]  ;;  %7152 = vrsqrt.f32 %v3002_v14  ;;  %v2542_v14 = vld [vmem:[%s17396_s1 + $0x80] sm:$0xff] }
 0x3c1   :  { %v13720_v47 = vmul.f32 0.020408163, %v2159_v43  ;;  %v13722_v44 = vmul.f32 0.020408163, %v2156_v17  ;;  %3773 = vperm.xlu0 %7100, %v3459_v49   ;;  %v7141_v58 = vpop.eup %7140  ;;  %v18587_v43 = vld [vmem:[#allocation206_spill] sm:$0xff]  ;;  %7154 = vrsqrt.f32 %v3013_v1  ;;  %v18590_v7 = vld [vmem:[#allocation215_spill] sm:$0xff] }
 0x3c2   :  { %v7143_v5 = vpop.eup %7142  ;;  %v3004_v17 = vadd.f32 0.001, %v18587_v43  ;;  %v3015_v54 = vadd.f32 0.001, %v18590_v7 }
 0x3c3   :  { %18584 = vst [vmem:[#allocation211_spill] sm:$0xff] %v13720_v47  ;;  %18585 = vst [vmem:[#allocation204_spill] sm:$0xff] %v13722_v44 }
 0x3c4   :  { %7040 = vst.msk [vmem:[%s17395_s5 + $0x5a8] sm:$0xff] %vm6630_vm1, %v13720_v47  ;;  %7039 = vst.msk [vmem:[%s17395_s5 + $0x5a0] sm:$0xff] %vm6630_vm1, %v13722_v44  ;;  %v2165_v37 = vpop.xlane.xlu1 %2164  ;;  %3728 = vperm.xlu1 %7101, %v3450_v18   ;;  %v2162_v49 = vpop.xlane.xlu0 %2161  ;;  %v3452_v44 = vmul.f32 %v7141_v58, %v2540_v48  ;;  %v3463_v18 = vmul.f32 %v7143_v5, %v2551_v31  ;;  %v2553_v48 = vld [vmem:[%s17396_s1 + $0xd8] sm:$0xff]  ;;  %7156 = vrsqrt.f32 %v3004_v17  ;;  %v2544_v17 = vld [vmem:[%s17396_s1 + $0x90] sm:$0xff] }
 0x3c5   :  { %v13742_v6 = vmul.f32 0.020408163, %v2165_v37  ;;  %v13744_v53 = vmul.f32 0.020408163, %v2162_v49  ;;  %3783 = vperm.xlu0 %7100, %v3461_v27   ;;  %v7145_v47 = vpop.eup %7144  ;;  %v18591_v37 = vld [vmem:[#allocation208_spill] sm:$0xff]  ;;  %7158 = vrsqrt.f32 %v3015_v54  ;;  %v18594_v5 = vld [vmem:[#allocation217_spill] sm:$0xff] }
 0x3c6   :  { %v7147_v1 = vpop.eup %7146  ;;  %v3006_v49 = vadd.f32 0.001, %v18591_v37  ;;  %v3017_v31 = vadd.f32 0.001, %v18594_v5 }
 0x3c7   :  { %18588 = vst [vmem:[#allocation213_spill] sm:$0xff] %v13742_v6  ;;  %18589 = vst [vmem:[#allocation206_spill] sm:$0xff] %v13744_v53 }
 0x3c8   :  { %7042 = vst.msk [vmem:[%s17395_s5 + $0x5b8] sm:$0xff] %vm6630_vm1, %v13742_v6  ;;  %7041 = vst.msk [vmem:[%s17395_s5 + $0x5b0] sm:$0xff] %vm6630_vm1, %v13744_v53  ;;  %v2171_v58 = vpop.xlane.xlu1 %2170  ;;  %3738 = vperm.xlu1 %7101, %v3452_v44   ;;  %v2168_v27 = vpop.xlane.xlu0 %2167  ;;  %v3454_v53 = vmul.f32 %v7145_v47, %v2542_v14  ;;  %v3465_v44 = vmul.f32 %v7147_v1, %v2553_v48  ;;  %v2555_v14 = vld [vmem:[%s17396_s1 + $0xe8] sm:$0xff]  ;;  %7160 = vrsqrt.f32 %v3006_v49  ;;  %v2546_v49 = vld [vmem:[%s17396_s1 + $0xa0] sm:$0xff] }
 0x3c9   :  { %v13764_v43 = vmul.f32 0.020408163, %v2171_v58  ;;  %v13766_v7 = vmul.f32 0.020408163, %v2168_v27  ;;  %3793 = vperm.xlu0 %7100, %v3463_v18   ;;  %v7149_v6 = vpop.eup %7148  ;;  %v18595_v58 = vld [vmem:[#allocation210_spill] sm:$0xff]  ;;  %7162 = vrsqrt.f32 %v3017_v31  ;;  %v18598_v1 = vld [vmem:[#allocation219_spill] sm:$0xff] }
 0x3ca   :  { %v7151_v54 = vpop.eup %7150  ;;  %v3008_v27 = vadd.f32 0.001, %v18595_v58  ;;  %v3019_v48 = vadd.f32 0.001, %v18598_v1 }
 0x3cb   :  { %18592 = vst [vmem:[#allocation215_spill] sm:$0xff] %v13764_v43  ;;  %18593 = vst [vmem:[#allocation208_spill] sm:$0xff] %v13766_v7 }
 0x3cc   :  { %7044 = vst.msk [vmem:[%s17395_s5 + $0x5c8] sm:$0xff] %vm6630_vm1, %v13764_v43  ;;  %7043 = vst.msk [vmem:[%s17395_s5 + $0x5c0] sm:$0xff] %vm6630_vm1, %v13766_v7  ;;  %v2177_v47 = vpop.xlane.xlu1 %2176  ;;  %3748 = vperm.xlu1 %7101, %v3454_v53   ;;  %v2174_v18 = vpop.xlane.xlu0 %2173  ;;  %v3456_v7 = vmul.f32 %v7149_v6, %v2544_v17  ;;  %v3467_v53 = vmul.f32 %v7151_v54, %v2555_v14  ;;  %v2557_v17 = vld [vmem:[%s17396_s1 + $0xf8] sm:$0xff]  ;;  %7164 = vrsqrt.f32 %v3008_v27  ;;  %v2548_v27 = vld [vmem:[%s17396_s1 + $0xb0] sm:$0xff] }
 0x3cd   :  { %v13786_v37 = vmul.f32 0.020408163, %v2177_v47  ;;  %v13788_v5 = vmul.f32 0.020408163, %v2174_v18  ;;  %3803 = vperm.xlu0 %7100, %v3465_v44   ;;  %v7153_v43 = vpop.eup %7152  ;;  %v18599_v47 = vld [vmem:[#allocation212_spill] sm:$0xff]  ;;  %7166 = vrsqrt.f32 %v3019_v48  ;;  %v18602_v54 = vld [vmem:[#allocation221_spill] sm:$0xff] }
 0x3ce   :  { %v7155_v31 = vpop.eup %7154  ;;  %v3010_v18 = vadd.f32 0.001, %v18599_v47  ;;  %v3021_v14 = vadd.f32 0.001, %v18602_v54 }
 0x3cf   :  { %18596 = vst [vmem:[#allocation217_spill] sm:$0xff] %v13786_v37  ;;  %18597 = vst [vmem:[#allocation210_spill] sm:$0xff] %v13788_v5 }
 0x3d0   :  { %7046 = vst.msk [vmem:[%s17395_s5 + $0x5d8] sm:$0xff] %vm6630_vm1, %v13786_v37  ;;  %7045 = vst.msk [vmem:[%s17395_s5 + $0x5d0] sm:$0xff] %vm6630_vm1, %v13788_v5  ;;  %v2183_v6 = vpop.xlane.xlu1 %2182  ;;  %3758 = vperm.xlu1 %7101, %v3456_v7   ;;  %v2180_v44 = vpop.xlane.xlu0 %2179  ;;  %v3458_v5 = vmul.f32 %v7153_v43, %v2546_v49  ;;  %v3469_v7 = vmul.f32 %v7155_v31, %v2557_v17  ;;  %v2559_v49 = vld [vmem:[%s17396_s1 + $0x108] sm:$0xff]  ;;  %7168 = vrsqrt.f32 %v3010_v18  ;;  %v2550_v18 = vld [vmem:[%s17396_s1 + $0xc0] sm:$0xff] }
 0x3d1   :  { %v13808_v58 = vmul.f32 0.020408163, %v2183_v6  ;;  %v13810_v1 = vmul.f32 0.020408163, %v2180_v44  ;;  %3813 = vperm.xlu0 %7100, %v3467_v53   ;;  %v7157_v37 = vpop.eup %7156  ;;  %v18603_v6 = vld [vmem:[#allocation214_spill] sm:$0xff]  ;;  %7170 = vrsqrt.f32 %v3021_v14  ;;  %v18606_v31 = vld [vmem:[#allocation223_spill] sm:$0xff] }
 0x3d2   :  { %v7159_v48 = vpop.eup %7158  ;;  %v3012_v44 = vadd.f32 0.001, %v18603_v6  ;;  %v3023_v17 = vadd.f32 0.001, %v18606_v31 }
 0x3d3   :  { %18600 = vst [vmem:[#allocation219_spill] sm:$0xff] %v13808_v58  ;;  %18601 = vst [vmem:[#allocation212_spill] sm:$0xff] %v13810_v1 }
 0x3d4   :  { %7048 = vst.msk [vmem:[%s17395_s5 + $0x5e8] sm:$0xff] %vm6630_vm1, %v13808_v58  ;;  %7047 = vst.msk [vmem:[%s17395_s5 + $0x5e0] sm:$0xff] %vm6630_vm1, %v13810_v1  ;;  %v2189_v43 = vpop.xlane.xlu1 %2188  ;;  %3768 = vperm.xlu1 %7101, %v3458_v5   ;;  %v2186_v53 = vpop.xlane.xlu0 %2185  ;;  %v3460_v1 = vmul.f32 %v7157_v37, %v2548_v27  ;;  %v3471_v5 = vmul.f32 %v7159_v48, %v2559_v49  ;;  %v2561_v27 = vld [vmem:[%s17396_s1 + $0x118] sm:$0xff]  ;;  %7172 = vrsqrt.f32 %v3012_v44  ;;  %v2552_v44 = vld [vmem:[%s17396_s1 + $0xd0] sm:$0xff] }
 0x3d5   :  { %v13830_v47 = vmul.f32 0.020408163, %v2189_v43  ;;  %v13832_v54 = vmul.f32 0.020408163, %v2186_v53  ;;  %3823 = vperm.xlu0 %7100, %v3469_v7   ;;  %v7161_v58 = vpop.eup %7160  ;;  %v18607_v43 = vld [vmem:[#allocation216_spill] sm:$0xff]  ;;  %7174 = vrsqrt.f32 %v3023_v17  ;;  %v18610_v48 = vld [vmem:[#allocation225_spill] sm:$0xff] }
 0x3d6   :  { %v7163_v14 = vpop.eup %7162  ;;  %v3014_v53 = vadd.f32 0.001, %v18607_v43  ;;  %v3025_v49 = vadd.f32 0.001, %v18610_v48 }
 0x3d7   :  { %18604 = vst [vmem:[#allocation221_spill] sm:$0xff] %v13830_v47  ;;  %18605 = vst [vmem:[#allocation214_spill] sm:$0xff] %v13832_v54 }
 0x3d8   :  { %7050 = vst.msk [vmem:[%s17395_s5 + $0x5f8] sm:$0xff] %vm6630_vm1, %v13830_v47  ;;  %7049 = vst.msk [vmem:[%s17395_s5 + $0x5f0] sm:$0xff] %vm6630_vm1, %v13832_v54  ;;  %v2195_v37 = vpop.xlane.xlu1 %2194  ;;  %3778 = vperm.xlu1 %7101, %v3460_v1   ;;  %v2192_v7 = vpop.xlane.xlu0 %2191  ;;  %v3462_v54 = vmul.f32 %v7161_v58, %v2550_v18  ;;  %v3473_v1 = vmul.f32 %v7163_v14, %v2561_v27  ;;  %v2563_v18 = vld [vmem:[%s17396_s1 + $0x128] sm:$0xff]  ;;  %7176 = vrsqrt.f32 %v3014_v53  ;;  %v2554_v53 = vld [vmem:[%s17396_s1 + $0xe0] sm:$0xff] }
 0x3d9   :  { %v13852_v6 = vmul.f32 0.020408163, %v2195_v37  ;;  %v13854_v31 = vmul.f32 0.020408163, %v2192_v7  ;;  %3833 = vperm.xlu0 %7100, %v3471_v5   ;;  %v7165_v47 = vpop.eup %7164  ;;  %v18611_v37 = vld [vmem:[#allocation218_spill] sm:$0xff]  ;;  %7178 = vrsqrt.f32 %v3025_v49  ;;  %v18614_v14 = vld [vmem:[#allocation227_spill] sm:$0xff] }
 0x3da   :  { %v7167_v17 = vpop.eup %7166  ;;  %v3016_v7 = vadd.f32 0.001, %v18611_v37  ;;  %v3027_v27 = vadd.f32 0.001, %v18614_v14 }
 0x3db   :  { %18608 = vst [vmem:[#allocation223_spill] sm:$0xff] %v13852_v6  ;;  %18609 = vst [vmem:[#allocation216_spill] sm:$0xff] %v13854_v31 }
 0x3dc   :  { %7052 = vst.msk [vmem:[%s17395_s5 + $0x608] sm:$0xff] %vm6630_vm1, %v13852_v6  ;;  %7051 = vst.msk [vmem:[%s17395_s5 + $0x600] sm:$0xff] %vm6630_vm1, %v13854_v31  ;;  %v2201_v58 = vpop.xlane.xlu1 %2200  ;;  %3788 = vperm.xlu1 %7101, %v3462_v54   ;;  %v2198_v5 = vpop.xlane.xlu0 %2197  ;;  %v3464_v31 = vmul.f32 %v7165_v47, %v2552_v44  ;;  %v3475_v54 = vmul.f32 %v7167_v17, %v2563_v18  ;;  %v2565_v44 = vld [vmem:[%s17396_s1 + $0x138] sm:$0xff]  ;;  %7180 = vrsqrt.f32 %v3016_v7  ;;  %v2556_v7 = vld [vmem:[%s17396_s1 + $0xf0] sm:$0xff] }
 0x3dd   :  { %v13874_v43 = vmul.f32 0.020408163, %v2201_v58  ;;  %v13876_v48 = vmul.f32 0.020408163, %v2198_v5  ;;  %3843 = vperm.xlu0 %7100, %v3473_v1   ;;  %v7169_v6 = vpop.eup %7168  ;;  %v18615_v58 = vld [vmem:[#allocation220_spill] sm:$0xff]  ;;  %7182 = vrsqrt.f32 %v3027_v27  ;;  %v18618_v17 = vld [vmem:[#allocation229_spill] sm:$0xff] }
 0x3de   :  { %v7171_v49 = vpop.eup %7170  ;;  %v3018_v5 = vadd.f32 0.001, %v18615_v58  ;;  %v3029_v18 = vadd.f32 0.001, %v18618_v17 }
 0x3df   :  { %18612 = vst [vmem:[#allocation225_spill] sm:$0xff] %v13874_v43  ;;  %18613 = vst [vmem:[#allocation218_spill] sm:$0xff] %v13876_v48 }
 0x3e0   :  { %7054 = vst.msk [vmem:[%s17395_s5 + $0x618] sm:$0xff] %vm6630_vm1, %v13874_v43  ;;  %7053 = vst.msk [vmem:[%s17395_s5 + $0x610] sm:$0xff] %vm6630_vm1, %v13876_v48  ;;  %v2207_v47 = vpop.xlane.xlu1 %2206  ;;  %3798 = vperm.xlu1 %7101, %v3464_v31   ;;  %v2204_v1 = vpop.xlane.xlu0 %2203  ;;  %v3466_v48 = vmul.f32 %v7169_v6, %v2554_v53  ;;  %v3477_v31 = vmul.f32 %v7171_v49, %v2565_v44  ;;  %v2567_v53 = vld [vmem:[%s17396_s1 + $0x148] sm:$0xff]  ;;  %7184 = vrsqrt.f32 %v3018_v5  ;;  %v2558_v5 = vld [vmem:[%s17396_s1 + $0x100] sm:$0xff] }
 0x3e1   :  { %v13896_v37 = vmul.f32 0.020408163, %v2207_v47  ;;  %v13898_v14 = vmul.f32 0.020408163, %v2204_v1  ;;  %3853 = vperm.xlu0 %7100, %v3475_v54   ;;  %v7173_v43 = vpop.eup %7172  ;;  %v18619_v47 = vld [vmem:[#allocation222_spill] sm:$0xff]  ;;  %7186 = vrsqrt.f32 %v3029_v18  ;;  %v18622_v49 = vld [vmem:[#allocation231_spill] sm:$0xff] }
 0x3e2   :  { %v7175_v27 = vpop.eup %7174  ;;  %v3020_v1 = vadd.f32 0.001, %v18619_v47  ;;  %v3031_v44 = vadd.f32 0.001, %v18622_v49 }
 0x3e3   :  { %18616 = vst [vmem:[#allocation227_spill] sm:$0xff] %v13896_v37  ;;  %18617 = vst [vmem:[#allocation220_spill] sm:$0xff] %v13898_v14 }
 0x3e4   :  { %7056 = vst.msk [vmem:[%s17395_s5 + $0x628] sm:$0xff] %vm6630_vm1, %v13896_v37  ;;  %7055 = vst.msk [vmem:[%s17395_s5 + $0x620] sm:$0xff] %vm6630_vm1, %v13898_v14  ;;  %v2213_v6 = vpop.xlane.xlu1 %2212  ;;  %3808 = vperm.xlu1 %7101, %v3466_v48   ;;  %v2210_v54 = vpop.xlane.xlu0 %2209  ;;  %v3468_v14 = vmul.f32 %v7173_v43, %v2556_v7  ;;  %v3479_v48 = vmul.f32 %v7175_v27, %v2567_v53  ;;  %v2569_v7 = vld [vmem:[%s17396_s1 + $0x158] sm:$0xff]  ;;  %7188 = vrsqrt.f32 %v3020_v1  ;;  %v2560_v1 = vld [vmem:[%s17396_s1 + $0x110] sm:$0xff] }
 0x3e5   :  { %v13918_v58 = vmul.f32 0.020408163, %v2213_v6  ;;  %v13920_v17 = vmul.f32 0.020408163, %v2210_v54  ;;  %3863 = vperm.xlu0 %7100, %v3477_v31   ;;  %v7177_v37 = vpop.eup %7176  ;;  %v18623_v6 = vld [vmem:[#allocation224_spill] sm:$0xff]  ;;  %7190 = vrsqrt.f32 %v3031_v44  ;;  %v18626_v27 = vld [vmem:[#allocation233_spill] sm:$0xff] }
 0x3e6   :  { %v7179_v18 = vpop.eup %7178  ;;  %v3022_v54 = vadd.f32 0.001, %v18623_v6  ;;  %v3033_v53 = vadd.f32 0.001, %v18626_v27 }
 0x3e7   :  { %18620 = vst [vmem:[#allocation229_spill] sm:$0xff] %v13918_v58  ;;  %18621 = vst [vmem:[#allocation222_spill] sm:$0xff] %v13920_v17 }
 0x3e8   :  { %7058 = vst.msk [vmem:[%s17395_s5 + $0x638] sm:$0xff] %vm6630_vm1, %v13918_v58  ;;  %7057 = vst.msk [vmem:[%s17395_s5 + $0x630] sm:$0xff] %vm6630_vm1, %v13920_v17  ;;  %v2219_v43 = vpop.xlane.xlu1 %2218  ;;  %3818 = vperm.xlu1 %7101, %v3468_v14   ;;  %v2216_v31 = vpop.xlane.xlu0 %2215  ;;  %v3470_v17 = vmul.f32 %v7177_v37, %v2558_v5  ;;  %v3481_v14 = vmul.f32 %v7179_v18, %v2569_v7  ;;  %v2571_v5 = vld [vmem:[%s17396_s1 + $0x168] sm:$0xff]  ;;  %7192 = vrsqrt.f32 %v3022_v54  ;;  %v2562_v54 = vld [vmem:[%s17396_s1 + $0x120] sm:$0xff] }
 0x3e9   :  { %v13940_v47 = vmul.f32 0.020408163, %v2219_v43  ;;  %v13942_v49 = vmul.f32 0.020408163, %v2216_v31  ;;  %3873 = vperm.xlu0 %7100, %v3479_v48   ;;  %v7181_v58 = vpop.eup %7180  ;;  %v18627_v43 = vld [vmem:[#allocation226_spill] sm:$0xff]  ;;  %7194 = vrsqrt.f32 %v3033_v53  ;;  %v18630_v18 = vld [vmem:[#allocation235_spill] sm:$0xff] }
 0x3ea   :  { %v7183_v44 = vpop.eup %7182  ;;  %v3024_v31 = vadd.f32 0.001, %v18627_v43  ;;  %v3035_v7 = vadd.f32 0.001, %v18630_v18 }
 0x3eb   :  { %18624 = vst [vmem:[#allocation231_spill] sm:$0xff] %v13940_v47  ;;  %18625 = vst [vmem:[#allocation224_spill] sm:$0xff] %v13942_v49 }
 0x3ec   :  { %7060 = vst.msk [vmem:[%s17395_s5 + $0x648] sm:$0xff] %vm6630_vm1, %v13940_v47  ;;  %7059 = vst.msk [vmem:[%s17395_s5 + $0x640] sm:$0xff] %vm6630_vm1, %v13942_v49  ;;  %v2225_v37 = vpop.xlane.xlu1 %2224  ;;  %3828 = vperm.xlu1 %7101, %v3470_v17   ;;  %v2222_v48 = vpop.xlane.xlu0 %2221  ;;  %v3472_v49 = vmul.f32 %v7181_v58, %v2560_v1  ;;  %v3483_v17 = vmul.f32 %v7183_v44, %v2571_v5  ;;  %v2573_v1 = vld [vmem:[%s17396_s1 + $0x178] sm:$0xff]  ;;  %7196 = vrsqrt.f32 %v3024_v31  ;;  %v2564_v31 = vld [vmem:[%s17396_s1 + $0x130] sm:$0xff] }
 0x3ed   :  { %v13962_v6 = vmul.f32 0.020408163, %v2225_v37  ;;  %v13964_v27 = vmul.f32 0.020408163, %v2222_v48  ;;  %3883 = vperm.xlu0 %7100, %v3481_v14   ;;  %v7185_v47 = vpop.eup %7184  ;;  %v18631_v37 = vld [vmem:[#allocation228_spill] sm:$0xff]  ;;  %7198 = vrsqrt.f32 %v3035_v7  ;;  %v18634_v44 = vld [vmem:[#allocation237_spill] sm:$0xff] }
 0x3ee   :  { %v7187_v53 = vpop.eup %7186  ;;  %v3026_v48 = vadd.f32 0.001, %v18631_v37  ;;  %v3037_v5 = vadd.f32 0.001, %v18634_v44 }
 0x3ef   :  { %18628 = vst [vmem:[#allocation233_spill] sm:$0xff] %v13962_v6  ;;  %18629 = vst [vmem:[#allocation226_spill] sm:$0xff] %v13964_v27 }
 0x3f0   :  { %7062 = vst.msk [vmem:[%s17395_s5 + $0x658] sm:$0xff] %vm6630_vm1, %v13962_v6  ;;  %7061 = vst.msk [vmem:[%s17395_s5 + $0x650] sm:$0xff] %vm6630_vm1, %v13964_v27  ;;  %v2231_v58 = vpop.xlane.xlu1 %2230  ;;  %3838 = vperm.xlu1 %7101, %v3472_v49   ;;  %v2228_v14 = vpop.xlane.xlu0 %2227  ;;  %v3474_v27 = vmul.f32 %v7185_v47, %v2562_v54  ;;  %v3485_v49 = vmul.f32 %v7187_v53, %v2573_v1  ;;  %v2575_v54 = vld [vmem:[%s17396_s1 + $0x188] sm:$0xff]  ;;  %7200 = vrsqrt.f32 %v3026_v48  ;;  %v2566_v48 = vld [vmem:[%s17396_s1 + $0x140] sm:$0xff] }
 0x3f1   :  { %v13984_v43 = vmul.f32 0.020408163, %v2231_v58  ;;  %v13986_v18 = vmul.f32 0.020408163, %v2228_v14  ;;  %3893 = vperm.xlu0 %7100, %v3483_v17   ;;  %v7189_v6 = vpop.eup %7188  ;;  %v18635_v58 = vld [vmem:[#allocation230_spill] sm:$0xff]  ;;  %7202 = vrsqrt.f32 %v3037_v5  ;;  %v18638_v53 = vld [vmem:[#allocation239_spill] sm:$0xff] }
 0x3f2   :  { %v7191_v7 = vpop.eup %7190  ;;  %v3028_v14 = vadd.f32 0.001, %v18635_v58  ;;  %v3039_v1 = vadd.f32 0.001, %v18638_v53 }
 0x3f3   :  { %18632 = vst [vmem:[#allocation235_spill] sm:$0xff] %v13984_v43  ;;  %18633 = vst [vmem:[#allocation228_spill] sm:$0xff] %v13986_v18 }
 0x3f4   :  { %7064 = vst.msk [vmem:[%s17395_s5 + $0x668] sm:$0xff] %vm6630_vm1, %v13984_v43  ;;  %7063 = vst.msk [vmem:[%s17395_s5 + $0x660] sm:$0xff] %vm6630_vm1, %v13986_v18  ;;  %v2237_v47 = vpop.xlane.xlu1 %2236  ;;  %3848 = vperm.xlu1 %7101, %v3474_v27   ;;  %v2234_v17 = vpop.xlane.xlu0 %2233  ;;  %v3476_v18 = vmul.f32 %v7189_v6, %v2564_v31  ;;  %v3487_v27 = vmul.f32 %v7191_v7, %v2575_v54  ;;  %v2577_v31 = vld [vmem:[%s17396_s1 + $0x198] sm:$0xff]  ;;  %7204 = vrsqrt.f32 %v3028_v14  ;;  %v2568_v14 = vld [vmem:[%s17396_s1 + $0x150] sm:$0xff] }
 0x3f5   :  { %v14006_v37 = vmul.f32 0.020408163, %v2237_v47  ;;  %v14008_v44 = vmul.f32 0.020408163, %v2234_v17  ;;  %3903 = vperm.xlu0 %7100, %v3485_v49   ;;  %v7193_v43 = vpop.eup %7192  ;;  %v18639_v47 = vld [vmem:[#allocation232_spill] sm:$0xff]  ;;  %7206 = vrsqrt.f32 %v3039_v1  ;;  %v18642_v7 = vld [vmem:[#allocation241_spill] sm:$0xff] }
 0x3f6   :  { %v7195_v5 = vpop.eup %7194  ;;  %v3030_v17 = vadd.f32 0.001, %v18639_v47  ;;  %v3041_v54 = vadd.f32 0.001, %v18642_v7 }
 0x3f7   :  { %18636 = vst [vmem:[#allocation237_spill] sm:$0xff] %v14006_v37  ;;  %18637 = vst [vmem:[#allocation230_spill] sm:$0xff] %v14008_v44 }
 0x3f8   :  { %7066 = vst.msk [vmem:[%s17395_s5 + $0x678] sm:$0xff] %vm6630_vm1, %v14006_v37  ;;  %7065 = vst.msk [vmem:[%s17395_s5 + $0x670] sm:$0xff] %vm6630_vm1, %v14008_v44  ;;  %v2243_v6 = vpop.xlane.xlu1 %2242  ;;  %3858 = vperm.xlu1 %7101, %v3476_v18   ;;  %v2240_v49 = vpop.xlane.xlu0 %2239  ;;  %v3478_v44 = vmul.f32 %v7193_v43, %v2566_v48  ;;  %v3489_v18 = vmul.f32 %v7195_v5, %v2577_v31  ;;  %v2579_v48 = vld [vmem:[%s17396_s1 + $0x1a8] sm:$0xff]  ;;  %7208 = vrsqrt.f32 %v3030_v17  ;;  %v2570_v17 = vld [vmem:[%s17396_s1 + $0x160] sm:$0xff] }
 0x3f9   :  { %v14028_v58 = vmul.f32 0.020408163, %v2243_v6  ;;  %v14030_v53 = vmul.f32 0.020408163, %v2240_v49  ;;  %3913 = vperm.xlu0 %7100, %v3487_v27   ;;  %v7197_v37 = vpop.eup %7196  ;;  %v18643_v6 = vld [vmem:[#allocation234_spill] sm:$0xff]  ;;  %7210 = vrsqrt.f32 %v3041_v54  ;;  %v18646_v5 = vld [vmem:[#allocation243_spill] sm:$0xff] }
 0x3fa   :  { %v7199_v1 = vpop.eup %7198  ;;  %v3032_v49 = vadd.f32 0.001, %v18643_v6  ;;  %v3043_v31 = vadd.f32 0.001, %v18646_v5 }
 0x3fb   :  { %18640 = vst [vmem:[#allocation239_spill] sm:$0xff] %v14028_v58  ;;  %18641 = vst [vmem:[#allocation232_spill] sm:$0xff] %v14030_v53 }
 0x3fc   :  { %7068 = vst.msk [vmem:[%s17395_s5 + $0x688] sm:$0xff] %vm6630_vm1, %v14028_v58  ;;  %7067 = vst.msk [vmem:[%s17395_s5 + $0x680] sm:$0xff] %vm6630_vm1, %v14030_v53  ;;  %v2249_v43 = vpop.xlane.xlu1 %2248  ;;  %3868 = vperm.xlu1 %7101, %v3478_v44   ;;  %v2246_v27 = vpop.xlane.xlu0 %2245  ;;  %v3480_v53 = vmul.f32 %v7197_v37, %v2568_v14  ;;  %v3491_v44 = vmul.f32 %v7199_v1, %v2579_v48  ;;  %v2581_v14 = vld [vmem:[%s17396_s1 + $0x1b8] sm:$0xff]  ;;  %7212 = vrsqrt.f32 %v3032_v49  ;;  %v2572_v49 = vld [vmem:[%s17396_s1 + $0x170] sm:$0xff] }
 0x3fd   :  { %v14050_v47 = vmul.f32 0.020408163, %v2249_v43  ;;  %v14052_v7 = vmul.f32 0.020408163, %v2246_v27  ;;  %3923 = vperm.xlu0 %7100, %v3489_v18   ;;  %v7201_v58 = vpop.eup %7200  ;;  %v18647_v43 = vld [vmem:[#allocation236_spill] sm:$0xff]  ;;  %7214 = vrsqrt.f32 %v3043_v31  ;;  %v18650_v1 = vld [vmem:[#allocation245_spill] sm:$0xff] }
 0x3fe   :  { %v7203_v54 = vpop.eup %7202  ;;  %v3034_v27 = vadd.f32 0.001, %v18647_v43  ;;  %v3045_v48 = vadd.f32 0.001, %v18650_v1 }
 0x3ff   :  { %18644 = vst [vmem:[#allocation241_spill] sm:$0xff] %v14050_v47  ;;  %18645 = vst [vmem:[#allocation234_spill] sm:$0xff] %v14052_v7 }
 0x400   :  { %7070 = vst.msk [vmem:[%s17395_s5 + $0x698] sm:$0xff] %vm6630_vm1, %v14050_v47  ;;  %7069 = vst.msk [vmem:[%s17395_s5 + $0x690] sm:$0xff] %vm6630_vm1, %v14052_v7  ;;  %v2255_v37 = vpop.xlane.xlu1 %2254  ;;  %3878 = vperm.xlu1 %7101, %v3480_v53   ;;  %v2252_v18 = vpop.xlane.xlu0 %2251  ;;  %v3482_v7 = vmul.f32 %v7201_v58, %v2570_v17  ;;  %v3493_v53 = vmul.f32 %v7203_v54, %v2581_v14  ;;  %v2583_v17 = vld [vmem:[%s17396_s1 + $0x1c8] sm:$0xff]  ;;  %7216 = vrsqrt.f32 %v3034_v27  ;;  %v2574_v27 = vld [vmem:[%s17396_s1 + $0x180] sm:$0xff] }
 0x401   :  { %v14072_v6 = vmul.f32 0.020408163, %v2255_v37  ;;  %v14074_v5 = vmul.f32 0.020408163, %v2252_v18  ;;  %3933 = vperm.xlu0 %7100, %v3491_v44   ;;  %v7205_v47 = vpop.eup %7204  ;;  %v18651_v37 = vld [vmem:[#allocation238_spill] sm:$0xff]  ;;  %7218 = vrsqrt.f32 %v3045_v48  ;;  %v18654_v54 = vld [vmem:[#allocation247_spill] sm:$0xff] }
 0x402   :  { %v7207_v31 = vpop.eup %7206  ;;  %v3036_v18 = vadd.f32 0.001, %v18651_v37  ;;  %v3047_v14 = vadd.f32 0.001, %v18654_v54 }
 0x403   :  { %18648 = vst [vmem:[#allocation243_spill] sm:$0xff] %v14072_v6  ;;  %18649 = vst [vmem:[#allocation236_spill] sm:$0xff] %v14074_v5 }
 0x404   :  { %7072 = vst.msk [vmem:[%s17395_s5 + $0x6a8] sm:$0xff] %vm6630_vm1, %v14072_v6  ;;  %7071 = vst.msk [vmem:[%s17395_s5 + $0x6a0] sm:$0xff] %vm6630_vm1, %v14074_v5  ;;  %v2261_v58 = vpop.xlane.xlu1 %2260  ;;  %3888 = vperm.xlu1 %7101, %v3482_v7   ;;  %v2258_v44 = vpop.xlane.xlu0 %2257  ;;  %v3484_v5 = vmul.f32 %v7205_v47, %v2572_v49  ;;  %v3495_v7 = vmul.f32 %v7207_v31, %v2583_v17  ;;  %v2585_v49 = vld [vmem:[%s17396_s1 + $0x1d8] sm:$0xff]  ;;  %7220 = vrsqrt.f32 %v3036_v18  ;;  %v2576_v18 = vld [vmem:[%s17396_s1 + $0x190] sm:$0xff] }
 0x405   :  { %v14094_v43 = vmul.f32 0.020408163, %v2261_v58  ;;  %v14096_v1 = vmul.f32 0.020408163, %v2258_v44  ;;  %3943 = vperm.xlu0 %7100, %v3493_v53   ;;  %v7209_v6 = vpop.eup %7208  ;;  %v18655_v58 = vld [vmem:[#allocation240_spill] sm:$0xff]  ;;  %7222 = vrsqrt.f32 %v3047_v14  ;;  %v18658_v31 = vld [vmem:[#allocation249_spill] sm:$0xff] }
 0x406   :  { %v7211_v48 = vpop.eup %7210  ;;  %v3038_v44 = vadd.f32 0.001, %v18655_v58  ;;  %v3049_v17 = vadd.f32 0.001, %v18658_v31 }
 0x407   :  { %18652 = vst [vmem:[#allocation245_spill] sm:$0xff] %v14094_v43  ;;  %18653 = vst [vmem:[#allocation238_spill] sm:$0xff] %v14096_v1 }
 0x408   :  { %7074 = vst.msk [vmem:[%s17395_s5 + $0x6b8] sm:$0xff] %vm6630_vm1, %v14094_v43  ;;  %7073 = vst.msk [vmem:[%s17395_s5 + $0x6b0] sm:$0xff] %vm6630_vm1, %v14096_v1  ;;  %v2267_v47 = vpop.xlane.xlu1 %2266  ;;  %3898 = vperm.xlu1 %7101, %v3484_v5   ;;  %v2264_v53 = vpop.xlane.xlu0 %2263  ;;  %v3486_v1 = vmul.f32 %v7209_v6, %v2574_v27  ;;  %v3497_v5 = vmul.f32 %v7211_v48, %v2585_v49  ;;  %v2587_v27 = vld [vmem:[%s17396_s1 + $0x1e8] sm:$0xff]  ;;  %7224 = vrsqrt.f32 %v3038_v44  ;;  %v2578_v44 = vld [vmem:[%s17396_s1 + $0x1a0] sm:$0xff] }
 0x409   :  { %v14116_v37 = vmul.f32 0.020408163, %v2267_v47  ;;  %v14118_v54 = vmul.f32 0.020408163, %v2264_v53  ;;  %3953 = vperm.xlu0 %7100, %v3495_v7   ;;  %v7213_v43 = vpop.eup %7212  ;;  %v18659_v47 = vld [vmem:[#allocation242_spill] sm:$0xff]  ;;  %7226 = vrsqrt.f32 %v3049_v17  ;;  %v18662_v48 = vld [vmem:[#allocation251_spill] sm:$0xff] }
 0x40a   :  { %v7215_v14 = vpop.eup %7214  ;;  %v3040_v53 = vadd.f32 0.001, %v18659_v47  ;;  %v3051_v49 = vadd.f32 0.001, %v18662_v48 }
 0x40b   :  { %18656 = vst [vmem:[#allocation247_spill] sm:$0xff] %v14116_v37  ;;  %18657 = vst [vmem:[#allocation240_spill] sm:$0xff] %v14118_v54 }
 0x40c   :  { %7076 = vst.msk [vmem:[%s17395_s5 + $0x6c8] sm:$0xff] %vm6630_vm1, %v14116_v37  ;;  %7075 = vst.msk [vmem:[%s17395_s5 + $0x6c0] sm:$0xff] %vm6630_vm1, %v14118_v54  ;;  %v2273_v6 = vpop.xlane.xlu1 %2272  ;;  %3908 = vperm.xlu1 %7101, %v3486_v1   ;;  %v2270_v7 = vpop.xlane.xlu0 %2269  ;;  %v3488_v54 = vmul.f32 %v7213_v43, %v2576_v18  ;;  %v3499_v1 = vmul.f32 %v7215_v14, %v2587_v27  ;;  %v2589_v18 = vld [vmem:[%s17396_s1 + $0x1f8] sm:$0xff]  ;;  %7228 = vrsqrt.f32 %v3040_v53  ;;  %v2580_v53 = vld [vmem:[%s17396_s1 + $0x1b0] sm:$0xff] }
 0x40d   :  { %v14138_v58 = vmul.f32 0.020408163, %v2273_v6  ;;  %v14140_v31 = vmul.f32 0.020408163, %v2270_v7  ;;  %3963 = vperm.xlu0 %7100, %v3497_v5   ;;  %v7217_v37 = vpop.eup %7216  ;;  %v18663_v6 = vld [vmem:[#allocation244_spill] sm:$0xff]  ;;  %7230 = vrsqrt.f32 %v3051_v49  ;;  %v18666_v14 = vld [vmem:[#allocation253_spill] sm:$0xff] }
 0x40e   :  { %v7219_v17 = vpop.eup %7218  ;;  %v3042_v7 = vadd.f32 0.001, %v18663_v6  ;;  %v3053_v27 = vadd.f32 0.001, %v18666_v14 }
 0x40f   :  { %18660 = vst [vmem:[#allocation249_spill] sm:$0xff] %v14138_v58  ;;  %18661 = vst [vmem:[#allocation242_spill] sm:$0xff] %v14140_v31 }
 0x410   :  { %7078 = vst.msk [vmem:[%s17395_s5 + $0x6d8] sm:$0xff] %vm6630_vm1, %v14138_v58  ;;  %7077 = vst.msk [vmem:[%s17395_s5 + $0x6d0] sm:$0xff] %vm6630_vm1, %v14140_v31  ;;  %v2279_v43 = vpop.xlane.xlu1 %2278  ;;  %3918 = vperm.xlu1 %7101, %v3488_v54   ;;  %v2276_v5 = vpop.xlane.xlu0 %2275  ;;  %v3490_v31 = vmul.f32 %v7217_v37, %v2578_v44  ;;  %v3501_v54 = vmul.f32 %v7219_v17, %v2589_v18  ;;  %v2591_v44 = vld [vmem:[%s17396_s1 + $0x208] sm:$0xff]  ;;  %7232 = vrsqrt.f32 %v3042_v7  ;;  %v2582_v7 = vld [vmem:[%s17396_s1 + $0x1c0] sm:$0xff] }
 0x411   :  { %v14160_v47 = vmul.f32 0.020408163, %v2279_v43  ;;  %v14162_v48 = vmul.f32 0.020408163, %v2276_v5  ;;  %3973 = vperm.xlu0 %7100, %v3499_v1   ;;  %v7221_v58 = vpop.eup %7220  ;;  %v18667_v43 = vld [vmem:[#allocation246_spill] sm:$0xff]  ;;  %7234 = vrsqrt.f32 %v3053_v27  ;;  %v18669_v17 = vld [vmem:[#allocation255_spill] sm:$0xff] }
 0x412   :  { %v7223_v49 = vpop.eup %7222  ;;  %v3044_v5 = vadd.f32 0.001, %v18667_v43  ;;  %v3055_v18 = vadd.f32 0.001, %v18669_v17 }
 0x413   :  { %18664 = vst [vmem:[#allocation251_spill] sm:$0xff] %v14160_v47  ;;  %18665 = vst [vmem:[#allocation244_spill] sm:$0xff] %v14162_v48 }
 0x414   :  { %7080 = vst.msk [vmem:[%s17395_s5 + $0x6e8] sm:$0xff] %vm6630_vm1, %v14160_v47  ;;  %7079 = vst.msk [vmem:[%s17395_s5 + $0x6e0] sm:$0xff] %vm6630_vm1, %v14162_v48  ;;  %v2285_v37 = vpop.xlane.xlu1 %2284  ;;  %3928 = vperm.xlu1 %7101, %v3490_v31   ;;  %v2282_v1 = vpop.xlane.xlu0 %2281  ;;  %v3492_v48 = vmul.f32 %v7221_v58, %v2580_v53  ;;  %v3503_v31 = vmul.f32 %v7223_v49, %v2591_v44  ;;  %v2593_v53 = vld [vmem:[%s17396_s1 + $0x218] sm:$0xff]  ;;  %7236 = vrsqrt.f32 %v3044_v5  ;;  %v3057_v49 = vadd.f32 0.001, %v12197_v41  ;;  %v2584_v5 = vld [vmem:[%s17396_s1 + $0x1d0] sm:$0xff] }
 0x415   :  { %v14182_v6 = vmul.f32 0.020408163, %v2285_v37  ;;  %v14184_v14 = vmul.f32 0.020408163, %v2282_v1  ;;  %3983 = vperm.xlu0 %7100, %v3501_v54   ;;  %v7225_v47 = vpop.eup %7224  ;;  %v18670_v37 = vld [vmem:[#allocation248_spill] sm:$0xff]  ;;  %7238 = vrsqrt.f32 %v3055_v18 }
 0x416   :  { %v7227_v27 = vpop.eup %7226  ;;  %v3046_v1 = vadd.f32 0.001, %v18670_v37  ;;  %v3494_v44 = vmul.f32 %v7225_v47, %v2582_v7  ;;  %v18672_v7 = vld [vmem:[#allocation250_spill] sm:$0xff] }
 0x417   :  { %18668 = vst [vmem:[#allocation253_spill] sm:$0xff] %v14184_v14  ;;  %7082 = vst.msk [vmem:[%s17395_s5 + $0x6f8] sm:$0xff] %vm6630_vm1, %v14182_v6 }
 0x418   :  { %7081 = vst.msk [vmem:[%s17395_s5 + $0x6f0] sm:$0xff] %vm6630_vm1, %v14184_v14  ;;  %v2291_v58 = vpop.xlane.xlu1 %2290  ;;  %3938 = vperm.xlu1 %7101, %v3492_v48   ;;  %v2288_v54 = vpop.xlane.xlu0 %2287  ;;  %v3505_v48 = vmul.f32 %v7227_v27, %v2593_v53  ;;  %7240 = vrsqrt.f32 %v3046_v1  ;;  %v3059_v27 = vadd.f32 0.001, %v12217_v35 }
 0x419   :  { %v14204_v43 = vmul.f32 0.020408163, %v2291_v58  ;;  %v14206_v17 = vmul.f32 0.020408163, %v2288_v54  ;;  %3993 = vperm.xlu0 %7100, %v3503_v31   ;;  %v7229_v14 = vpop.eup %7228  ;;  %v2595_v31 = vld [vmem:[%s17396_s1 + $0x228] sm:$0xff]  ;;  %7242 = vrsqrt.f32 %v3057_v49  ;;  %v2586_v49 = vld [vmem:[%s17396_s1 + $0x1e0] sm:$0xff] }
 0x41a   :  { %v7231_v41 = vpop.eup %7230  ;;  %v3048_v58 = vadd.f32 0.001, %v18672_v7  ;;  %v3496_v53 = vmul.f32 %v7229_v14, %v2584_v5  ;;  %v2588_v7 = vld [vmem:[%s17396_s1 + $0x1f0] sm:$0xff] }
 0x41b   :  { %18671 = vst [vmem:[#allocation246_spill] sm:$0xff] %v14206_v17  ;;  %7084 = vst.msk [vmem:[%s17395_s5 + $0x708] sm:$0xff] %vm6630_vm1, %v14204_v43  ;;  %v3507_v1 = vmul.f32 %v7231_v41, %v2595_v31 }
 0x41c   :  { %7083 = vst.msk [vmem:[%s17395_s5 + $0x700] sm:$0xff] %vm6630_vm1, %v14206_v17  ;;  %v2297_v47 = vpop.xlane.xlu1 %2296  ;;  %3948 = vperm.xlu1 %7101, %v3494_v44   ;;  %v2294_v18 = vpop.xlane.xlu0 %2293  ;;  %v2597_v44 = vld [vmem:[%s17396_s1 + $0x238] sm:$0xff]  ;;  %7244 = vrsqrt.f32 %v3048_v58  ;;  %v2599_v58 = vld [vmem:[%s17396_s1 + $0x248] sm:$0xff] }
 0x41d   :  { %v14226_v54 = vmul.f32 0.020408163, %v2297_v47  ;;  %v14228_v37 = vmul.f32 0.020408163, %v2294_v18  ;;  %4003 = vperm.xlu0 %7100, %v3505_v48   ;;  %v7233_v17 = vpop.eup %7232  ;;  %v18675_v48 = vld [vmem:[#allocation252_spill] sm:$0xff]  ;;  %7246 = vrsqrt.f32 %v3059_v27  ;;  %v18678_v27 = vld [vmem:[#allocation254_spill] sm:$0xff] }
 0x41e   :  { %v7235_v35 = vpop.eup %7234  ;;  %v3050_v5 = vadd.f32 0.001, %v18675_v48  ;;  %v3061_v47 = vadd.f32 0.001, %v12249_v59  ;;  %v3498_v41 = vmul.f32 %v7233_v17, %v2586_v49  ;;  %v3052_v59 = vadd.f32 0.001, %v18678_v27 }
 0x41f   :  { %18673 = vst [vmem:[#allocation255_spill] sm:$0xff] %v14228_v37  ;;  %7086 = vst.msk [vmem:[%s17395_s5 + $0x718] sm:$0xff] %vm6630_vm1, %v14226_v54  ;;  %v7237_v18 = vpop.eup %7236  ;;  %v3509_v31 = vmul.f32 %v7235_v35, %v2597_v44  ;;  %v3063_v17 = vadd.f32 0.001, %v12293_v33  ;;  %v2590_v44 = vld [vmem:[%s17396_s1 + $0x200] sm:$0xff] }
 0x420   :  { %7085 = vst.msk [vmem:[%s17395_s5 + $0x710] sm:$0xff] %vm6630_vm1, %v14228_v37  ;;  %v14244_v14 = vpop.permute.xlu1 %3673  ;;  %3958 = vperm.xlu1 %7101, %v3496_v53   ;;  %7248 = vrsqrt.f32 %v3050_v5  ;;  %v2601_v5 = vld [vmem:[%s17396_s1 + $0x258] sm:$0xff] }
 0x421   :  { %18674 = vst [vmem:[#allocation248_spill] sm:$0xff] %v14244_v14  ;;  %4013 = vperm.xlu0 %7100, %v3507_v1   ;;  %v7239_v14 = vpop.eup %7238  ;;  %7250 = vrsqrt.f32 %v3061_v47  ;;  %v3500_v1 = vmul.f32 %v7237_v18, %v2588_v7  ;;  %v18679_v47 = vld [vmem:[#allocation256_spill] sm:$0xff] }
 0x422   :  { %v7241_v49 = vpop.eup %7240  ;;  %v3511_v35 = vmul.f32 %v7239_v14, %v2599_v58  ;;  %7252 = vrsqrt.f32 %v3052_v59  ;;  %v3054_v33 = vadd.f32 0.001, %v18679_v47  ;;  %v3065_v14 = vadd.f32 0.001, %v12313_v8  ;;  %v2592_v58 = vld [vmem:[%s17396_s1 + $0x210] sm:$0xff]  ;;  %v2603_v59 = vld [vmem:[%s17396_s1 + $0x268] sm:$0xff] }
 0x423   :  { %v7243_v48 = vpop.eup %7242  ;;  %7254 = vrsqrt.f32 %v3063_v17  ;;  %v3502_v18 = vmul.f32 %v7241_v49, %v2590_v44  ;;  %v3056_v8 = vadd.f32 0.001, %v12199_v36  ;;  %v3067_v17 = vadd.f32 0.001, %v12345_v11  ;;  %v2605_v36 = vld [vmem:[%s17396_s1 + $0x278] sm:$0xff] }
 0x424   :  { %v14254_v53 = vpop.permute.xlu1 %3678  ;;  %3968 = vperm.xlu1 %7101, %v3498_v41   ;;  %v14256_v37 = vpop.permute.xlu0 %3668  ;;  %v3513_v7 = vmul.f32 %v7243_v48, %v2601_v5  ;;  %7256 = vrsqrt.f32 %v3054_v33  ;;  %v2594_v48 = vld [vmem:[%s17396_s1 + $0x220] sm:$0xff]  ;;  %v18681_v33 = vld [vmem:[#allocation257_spill] sm:$0xff] }
 0x425   :  { %18676 = vst [vmem:[#allocation250_spill] sm:$0xff] %v14254_v53  ;;  %18677 = vst [vmem:[#allocation252_spill] sm:$0xff] %v14256_v37  ;;  %4023 = vperm.xlu0 %7100, %v3509_v31   ;;  %7258 = vrsqrt.f32 %v3065_v14  ;;  %v3058_v11 = vadd.f32 0.001, %v18681_v33  ;;  %v3069_v14 = vadd.f32 0.001, %v12389_v10 }
 0x426   :  { %v7245_v31 = vpop.eup %7244  ;;  %7260 = vrsqrt.f32 %v3056_v8  ;;  %v2607_v8 = vld [vmem:[%s17396_s1 + $0x288] sm:$0xff] }
 0x427   :  { %v7247_v27 = vpop.eup %7246  ;;  %v3504_v49 = vmul.f32 %v7245_v31, %v2592_v58  ;;  %7262 = vrsqrt.f32 %v3067_v17  ;;  %v18683_v17 = vld [vmem:[#allocation259_spill] sm:$0xff] }
 0x428   :  { %v14266_v41 = vpop.permute.xlu1 %3683  ;;  %3978 = vperm.xlu1 %7101, %v3500_v1   ;;  %v14268_v53 = vpop.permute.xlu0 %3713  ;;  %v3515_v44 = vmul.f32 %v7247_v27, %v2603_v59  ;;  %v2596_v27 = vld [vmem:[%s17396_s1 + $0x230] sm:$0xff]  ;;  %7264 = vrsqrt.f32 %v3058_v11  ;;  %v3060_v10 = vadd.f32 0.001, %v18683_v17  ;;  %v2609_v11 = vld [vmem:[%s17396_s1 + $0x298] sm:$0xff] }
 0x429   :  { %4033 = vperm.xlu0 %7100, %v3511_v35   ;;  %7266 = vrsqrt.f32 %v3069_v14  ;;  %v3073_v14 = vadd.f32 0.001, %v12441_v22  ;;  %v3064_v22 = vadd.f32 0.001, %v12315_v9  ;;  %v2613_v9 = vld [vmem:[%s17396_s1 + $0x2b8] sm:$0xff] }
 0x42a   :  { %v7249_v35 = vpop.eup %7248  ;;  %7268 = vrsqrt.f32 %v3060_v10  ;;  %v3075_v10 = vadd.f32 0.001, %v12485_v52  ;;  %v3066_v52 = vadd.f32 0.001, %v12347_v3  ;;  %v2615_v3 = vld [vmem:[%s17396_s1 + $0x2c8] sm:$0xff] }
 0x42b   :  { %v7251_v5 = vpop.eup %7250  ;;  %v3506_v31 = vmul.f32 %v7249_v35, %v2594_v48  ;;  %v3071_v35 = vadd.f32 0.001, %v12409_v61  ;;  %v3062_v61 = vadd.f32 0.001, %v12295_v32  ;;  %v2611_v32 = vld [vmem:[%s17396_s1 + $0x2a8] sm:$0xff] }
 0x42c   :  { %v14278_v1 = vpop.permute.xlu1 %3688  ;;  %3988 = vperm.xlu1 %7101, %v3502_v18   ;;  %v14280_v37 = vpop.permute.xlu0 %3723  ;;  %v3517_v58 = vmul.f32 %v7251_v5, %v2605_v36  ;;  %v2598_v36 = vld [vmem:[%s17396_s1 + $0x240] sm:$0xff] }
 0x42d   :  { %18680 = vst [vmem:[#allocation254_spill] sm:$0xff] %v14278_v1  ;;  %4043 = vperm.xlu0 %7100, %v3513_v7   ;;  %v7253_v7 = vpop.eup %7252  ;;  %7270 = vrsqrt.f32 %v3071_v35 }
 0x42e   :  { %v7255_v59 = vpop.eup %7254  ;;  %7272 = vrsqrt.f32 %v3062_v61  ;;  %v3077_v61 = vadd.f32 0.001, %v12505_v38  ;;  %v3068_v38 = vadd.f32 0.001, %v12391_v23  ;;  %v2617_v23 = vld [vmem:[%s17396_s1 + $0x2d8] sm:$0xff] }
 0x42f   :  { %v7257_v48 = vpop.eup %7256  ;;  %v3519_v5 = vmul.f32 %v7255_v59, %v2607_v8  ;;  %v2600_v59 = vld [vmem:[%s17396_s1 + $0x250] sm:$0xff]  ;;  %7274 = vrsqrt.f32 %v3073_v14 }
 0x430   :  { %v14290_v47 = vpop.permute.xlu1 %3693  ;;  %3998 = vperm.xlu1 %7101, %v3504_v49   ;;  %v14292_v18 = vpop.permute.xlu0 %3733  ;;  %7276 = vrsqrt.f32 %v3064_v22  ;;  %v3079_v22 = vadd.f32 0.001, %v12537_v46  ;;  %v3070_v46 = vadd.f32 0.001, %v12411_v42  ;;  %v2619_v42 = vld [vmem:[%s17396_s1 + $0x2e8] sm:$0xff] }
 0x431   :  { %4053 = vperm.xlu0 %7100, %v3515_v44   ;;  %v3508_v44 = vmul.f32 %v7253_v7, %v2596_v27  ;;  %v7259_v33 = vpop.eup %7258  ;;  %v3510_v7 = vmul.f32 %v7257_v48, %v2598_v36  ;;  %v2602_v36 = vld [vmem:[%s17396_s1 + $0x260] sm:$0xff]  ;;  %7278 = vrsqrt.f32 %v3075_v10 }
 0x432   :  { %v3521_v27 = vmul.f32 %v7259_v33, %v2609_v11  ;;  %7280 = vrsqrt.f32 %v3066_v52  ;;  %v3081_v52 = vadd.f32 0.001, %v12581_v19  ;;  %v3072_v19 = vadd.f32 0.001, %v12443_v20  ;;  %v2621_v20 = vld [vmem:[%s17396_s1 + $0x2f8] sm:$0xff] }
 0x433   :  { %7282 = vrsqrt.f32 %v3077_v61 }
 0x434   :  { %v14302_v49 = vpop.permute.xlu1 %3698  ;;  %4008 = vperm.xlu1 %7101, %v3506_v31   ;;  %v14304_v1 = vpop.permute.xlu0 %3743  ;;  %7284 = vrsqrt.f32 %v3068_v38  ;;  %v3083_v38 = vadd.f32 0.001, %v12601_v63  ;;  %v3074_v63 = vadd.f32 0.001, %v12487_v30  ;;  %v2623_v30 = vld [vmem:[%s17396_s1 + $0x308] sm:$0xff] }
 0x435   :  { %18682 = vst [vmem:[#allocation256_spill] sm:$0xff] %v14302_v49  ;;  %4063 = vperm.xlu0 %7100, %v3517_v58   ;;  %v7261_v58 = vpop.eup %7260  ;;  %7286 = vrsqrt.f32 %v3079_v22 }
 0x436   :  { %v7263_v8 = vpop.eup %7262  ;;  %v3512_v35 = vmul.f32 %v7261_v58, %v2600_v59  ;;  %v2604_v59 = vld [vmem:[%s17396_s1 + $0x270] sm:$0xff]  ;;  %7288 = vrsqrt.f32 %v3070_v46  ;;  %v3085_v46 = vadd.f32 0.001, %v12633_v60  ;;  %v3076_v60 = vadd.f32 0.001, %v12507_v39  ;;  %v2625_v39 = vld [vmem:[%s17396_s1 + $0x318] sm:$0xff] }
 0x437   :  { %v7265_v48 = vpop.eup %7264  ;;  %7290 = vrsqrt.f32 %v3081_v52 }
 0x438   :  { %v14314_v31 = vpop.permute.xlu1 %3703  ;;  %4018 = vperm.xlu1 %7101, %v3508_v44   ;;  %v14316_v49 = vpop.permute.xlu0 %3753  ;;  %v3514_v14 = vmul.f32 %v7265_v48, %v2602_v36  ;;  %v2606_v36 = vld [vmem:[%s17396_s1 + $0x280] sm:$0xff]  ;;  %7292 = vrsqrt.f32 %v3072_v19  ;;  %v3087_v19 = vadd.f32 0.001, %v12677_v0  ;;  %v3078_v0 = vadd.f32 0.001, %v12539_v21  ;;  %v2627_v21 = vld [vmem:[%s17396_s1 + $0x328] sm:$0xff] }
 0x439   :  { %4073 = vperm.xlu0 %7100, %v3519_v5   ;;  %v3523_v5 = vmul.f32 %v7263_v8, %v2611_v32  ;;  %v7267_v33 = vpop.eup %7266  ;;  %7294 = vrsqrt.f32 %v3083_v38 }
 0x43a   :  { %v7269_v58 = vpop.eup %7268  ;;  %7296 = vrsqrt.f32 %v3074_v63  ;;  %v3089_v63 = vadd.f32 0.001, %v12697_v16  ;;  %v3080_v16 = vadd.f32 0.001, %v12583_v55  ;;  %v2629_v55 = vld [vmem:[%s17396_s1 + $0x338] sm:$0xff] }
 0x43b   :  { %v7271_v8 = vpop.eup %7270  ;;  %v3516_v10 = vmul.f32 %v7269_v58, %v2604_v59  ;;  %v2608_v59 = vld [vmem:[%s17396_s1 + $0x290] sm:$0xff]  ;;  %7298 = vrsqrt.f32 %v3085_v46 }
 0x43c   :  { %v14326_v17 = vpop.permute.xlu1 %3708  ;;  %4028 = vperm.xlu1 %7101, %v3510_v7   ;;  %v14328_v44 = vpop.permute.xlu0 %3763  ;;  %7300 = vrsqrt.f32 %v3076_v60  ;;  %v3091_v60 = vadd.f32 0.001, %v12729_v34  ;;  %v3082_v34 = vadd.f32 0.001, %v12603_v24  ;;  %v2631_v24 = vld [vmem:[%s17396_s1 + $0x348] sm:$0xff] }
 0x43d   :  { %4083 = vperm.xlu0 %7100, %v3521_v27   ;;  %v3525_v27 = vmul.f32 %v7267_v33, %v2613_v9  ;;  %v7273_v48 = vpop.eup %7272  ;;  %7302 = vrsqrt.f32 %v3087_v19 }
 0x43e   :  { %v7275_v33 = vpop.eup %7274  ;;  %v3518_v61 = vmul.f32 %v7273_v48, %v2606_v36  ;;  %v2610_v36 = vld [vmem:[%s17396_s1 + $0x2a0] sm:$0xff]  ;;  %7304 = vrsqrt.f32 %v3078_v0  ;;  %v3093_v0 = vadd.f32 0.001, %v12773_v28  ;;  %v3084_v28 = vadd.f32 0.001, %v12635_v50  ;;  %v2633_v50 = vld [vmem:[%s17396_s1 + $0x358] sm:$0xff] }
 0x43f   :  { %v7277_v58 = vpop.eup %7276  ;;  %7306 = vrsqrt.f32 %v3089_v63 }
 0x440   :  { %v14338_v11 = vpop.permute.xlu1 %3718  ;;  %4038 = vperm.xlu1 %7101, %v3512_v35   ;;  %v14340_v7 = vpop.permute.xlu0 %3773  ;;  %v3520_v22 = vmul.f32 %v7277_v58, %v2608_v59  ;;  %v2612_v59 = vld [vmem:[%s17396_s1 + $0x2b0] sm:$0xff]  ;;  %7308 = vrsqrt.f32 %v3080_v16  ;;  %v3095_v16 = vadd.f32 0.001, %v12793_v56  ;;  %v3086_v56 = vadd.f32 0.001, %v12679_v15  ;;  %v2635_v15 = vld [vmem:[%s17396_s1 + $0x368] sm:$0xff] }
 0x441   :  { %4093 = vperm.xlu0 %7100, %v3523_v5   ;;  %v3527_v5 = vmul.f32 %v7271_v8, %v2615_v3  ;;  %v7279_v8 = vpop.eup %7278  ;;  %7310 = vrsqrt.f32 %v3091_v60 }
 0x442   :  { %v7281_v48 = vpop.eup %7280  ;;  %7312 = vrsqrt.f32 %v3082_v34  ;;  %v3097_v34 = vadd.f32 0.001, %v12825_v2  ;;  %v3088_v2 = vadd.f32 0.001, %v12699_v25  ;;  %v2637_v25 = vld [vmem:[%s17396_s1 + $0x378] sm:$0xff] }
 0x443   :  { %v3522_v52 = vmul.f32 %v7281_v48, %v2610_v36  ;;  %v2614_v36 = vld [vmem:[%s17396_s1 + $0x2c0] sm:$0xff] }
 0x444   :  { %v14350_v32 = vpop.permute.xlu1 %3728  ;;  %4048 = vperm.xlu1 %7101, %v3514_v14   ;;  %v14352_v35 = vpop.permute.xlu0 %3783 }
 0x445   :  { %4103 = vperm.xlu0 %7100, %v3525_v27   ;;  %v3529_v27 = vmul.f32 %v7275_v33, %v2617_v23  ;;  %v7283_v33 = vpop.eup %7282  ;;  %7314 = vrsqrt.f32 %v3093_v0 }
 0x446   :  { %v7285_v58 = vpop.eup %7284  ;;  %7316 = vrsqrt.f32 %v3084_v28  ;;  %v3099_v28 = vadd.f32 0.001, %v12869_v29  ;;  %v3090_v29 = vadd.f32 0.001, %v12731_v12  ;;  %v2639_v12 = vld [vmem:[%s17396_s1 + $0x388] sm:$0xff] }
 0x447   :  { %v3524_v38 = vmul.f32 %v7285_v58, %v2612_v59  ;;  %v2616_v59 = vld [vmem:[%s17396_s1 + $0x2d0] sm:$0xff] }
 0x448   :  { %v14362_v9 = vpop.permute.xlu1 %3738  ;;  %4058 = vperm.xlu1 %7101, %v3516_v10   ;;  %v14364_v14 = vpop.permute.xlu0 %3793 }
 0x449   :  { %4113 = vperm.xlu0 %7100, %v3527_v5   ;;  %v3531_v5 = vmul.f32 %v7279_v8, %v2619_v42  ;;  %v7287_v8 = vpop.eup %7286  ;;  %7318 = vrsqrt.f32 %v3095_v16 }
 0x44a   :  { %v7289_v48 = vpop.eup %7288  ;;  %7320 = vrsqrt.f32 %v3086_v56  ;;  %v3101_v56 = vadd.f32 0.001, %v12889_v26  ;;  %v3092_v26 = vadd.f32 0.001, %v12775_v45  ;;  %v2641_v45 = vld [vmem:[%s17396_s1 + $0x398] sm:$0xff] }
 0x44b   :  { %v3526_v46 = vmul.f32 %v7289_v48, %v2614_v36  ;;  %v2618_v36 = vld [vmem:[%s17396_s1 + $0x2e0] sm:$0xff] }
 0x44c   :  { %v14374_v3 = vpop.permute.xlu1 %3748  ;;  %4068 = vperm.xlu1 %7101, %v3518_v61   ;;  %v14376_v10 = vpop.permute.xlu0 %3803 }
 0x44d   :  { %4123 = vperm.xlu0 %7100, %v3529_v27   ;;  %v3533_v27 = vmul.f32 %v7283_v33, %v2621_v20  ;;  %v7291_v33 = vpop.eup %7290  ;;  %7322 = vrsqrt.f32 %v3097_v34 }
 0x44e   :  { %v7293_v58 = vpop.eup %7292  ;;  %7324 = vrsqrt.f32 %v3088_v2  ;;  %v3103_v2 = vadd.f32 0.001, %v12921_v40  ;;  %v3094_v40 = vadd.f32 0.001, %v12795_v57  ;;  %v2643_v57 = vld [vmem:[%s17396_s1 + $0x3a8] sm:$0xff] }
 0x44f   :  { %v3528_v19 = vmul.f32 %v7293_v58, %v2616_v59  ;;  %v2620_v59 = vld [vmem:[%s17396_s1 + $0x2f0] sm:$0xff] }
 0x450   :  { %v14386_v23 = vpop.permute.xlu1 %3758  ;;  %4078 = vperm.xlu1 %7101, %v3520_v22   ;;  %v14388_v61 = vpop.permute.xlu0 %3813 }
 0x451   :  { %4133 = vperm.xlu0 %7100, %v3531_v5   ;;  %v3535_v5 = vmul.f32 %v7287_v8, %v2623_v30  ;;  %v7295_v8 = vpop.eup %7294  ;;  %7326 = vrsqrt.f32 %v3099_v28 }
 0x452   :  { %v7297_v48 = vpop.eup %7296  ;;  %7328 = vrsqrt.f32 %v3090_v29  ;;  %v3105_v29 = vadd.f32 0.001, %v12965_v62  ;;  %v3096_v62 = vadd.f32 0.001, %v12827_v51  ;;  %v2645_v51 = vld [vmem:[%s17396_s1 + $0x3b8] sm:$0xff] }
 0x453   :  { %v3530_v63 = vmul.f32 %v7297_v48, %v2618_v36  ;;  %v2622_v36 = vld [vmem:[%s17396_s1 + $0x300] sm:$0xff] }
 0x454   :  { %v14398_v42 = vpop.permute.xlu1 %3768  ;;  %4088 = vperm.xlu1 %7101, %v3522_v52   ;;  %v14400_v22 = vpop.permute.xlu0 %3823 }
 0x455   :  { %4143 = vperm.xlu0 %7100, %v3533_v27   ;;  %v3537_v27 = vmul.f32 %v7291_v33, %v2625_v39  ;;  %v7299_v33 = vpop.eup %7298  ;;  %7330 = vrsqrt.f32 %v3101_v56 }
 0x456   :  { %v7301_v58 = vpop.eup %7300  ;;  %7332 = vrsqrt.f32 %v3092_v26  ;;  %v3107_v26 = vadd.f32 0.001, %v12985_v4  ;;  %v3098_v4 = vadd.f32 0.001, %v12871_v13  ;;  %v2647_v13 = vld [vmem:[%s17396_s1 + $0x3c8] sm:$0xff] }
 0x457   :  { %v3532_v60 = vmul.f32 %v7301_v58, %v2620_v59  ;;  %v2624_v59 = vld [vmem:[%s17396_s1 + $0x310] sm:$0xff] }
 0x458   :  { %v14410_v20 = vpop.permute.xlu1 %3778  ;;  %4098 = vperm.xlu1 %7101, %v3524_v38   ;;  %v14412_v52 = vpop.permute.xlu0 %3833 }
 0x459   :  { %4153 = vperm.xlu0 %7100, %v3535_v5   ;;  %v3539_v5 = vmul.f32 %v7295_v8, %v2627_v21  ;;  %v7303_v8 = vpop.eup %7302  ;;  %7334 = vrsqrt.f32 %v3103_v2 }
 0x45a   :  { %v7305_v48 = vpop.eup %7304  ;;  %7336 = vrsqrt.f32 %v3094_v40  ;;  %v18685_v40 = vld [vmem:[#allocation310_spill] sm:$0xff] }
 0x45b   :  { %v3534_v0 = vmul.f32 %v7305_v48, %v2622_v36  ;;  %v2626_v36 = vld [vmem:[%s17396_s1 + $0x320] sm:$0xff] }
 0x45c   :  { %v14422_v30 = vpop.permute.xlu1 %3788  ;;  %4108 = vperm.xlu1 %7101, %v3526_v46   ;;  %v14424_v38 = vpop.permute.xlu0 %3843 }
 0x45d   :  { %4163 = vperm.xlu0 %7100, %v3537_v27   ;;  %v3541_v27 = vmul.f32 %v7299_v33, %v2629_v55  ;;  %v7307_v33 = vpop.eup %7306  ;;  %7338 = vrsqrt.f32 %v3105_v29  ;;  %v3109_v29 = vadd.f32 0.001, %v18685_v40  ;;  %v2638_v40 = vld [vmem:[%s17396_s1 + $0x380] sm:$0xff] }
 0x45e   :  { %v7309_v58 = vpop.eup %7308  ;;  %7340 = vrsqrt.f32 %v3096_v62  ;;  %v18688_v62 = vld [vmem:[#allocation299_spill] sm:$0xff] }
 0x45f   :  { %v3536_v16 = vmul.f32 %v7309_v58, %v2624_v59  ;;  %v2628_v59 = vld [vmem:[%s17396_s1 + $0x330] sm:$0xff] }
 0x460   :  { %v14434_v39 = vpop.permute.xlu1 %3798  ;;  %4118 = vperm.xlu1 %7101, %v3528_v19   ;;  %v14436_v46 = vpop.permute.xlu0 %3853 }
 0x461   :  { %4173 = vperm.xlu0 %7100, %v3539_v5   ;;  %v3543_v5 = vmul.f32 %v7303_v8, %v2631_v24  ;;  %v7311_v8 = vpop.eup %7310  ;;  %7342 = vrsqrt.f32 %v3107_v26  ;;  %v3100_v26 = vadd.f32 0.001, %v18688_v62 }
 0x462   :  { %v7313_v48 = vpop.eup %7312  ;;  %7344 = vrsqrt.f32 %v3098_v4  ;;  %v2649_v4 = vld [vmem:[%s17396_s1 + $0x3d8] sm:$0xff] }
 0x463   :  { %v3538_v34 = vmul.f32 %v7313_v48, %v2626_v36  ;;  %v2630_v36 = vld [vmem:[%s17396_s1 + $0x340] sm:$0xff] }
 0x464   :  { %v14446_v21 = vpop.permute.xlu1 %3808  ;;  %4128 = vperm.xlu1 %7101, %v3530_v63   ;;  %v14448_v19 = vpop.permute.xlu0 %3863 }
 0x465   :  { %4183 = vperm.xlu0 %7100, %v3541_v27   ;;  %v3545_v27 = vmul.f32 %v7307_v33, %v2633_v50  ;;  %v7315_v33 = vpop.eup %7314  ;;  %7346 = vrsqrt.f32 %v3109_v29  ;;  %v18692_v29 = vld [vmem:[#allocation302_spill] sm:$0xff] }
 0x466   :  { %v7317_v58 = vpop.eup %7316  ;;  %7348 = vrsqrt.f32 %v3100_v26  ;;  %v2651_v26 = vld [vmem:[%s17396_s1 + $0x3e8] sm:$0xff] }
 0x467   :  { %v3540_v28 = vmul.f32 %v7317_v58, %v2628_v59  ;;  %v2632_v59 = vld [vmem:[%s17396_s1 + $0x350] sm:$0xff] }
 0x468   :  { %v14458_v55 = vpop.permute.xlu1 %3818  ;;  %4138 = vperm.xlu1 %7101, %v3532_v60   ;;  %v14460_v63 = vpop.permute.xlu0 %3873 }
 0x469   :  { %4193 = vperm.xlu0 %7100, %v3543_v5   ;;  %v3547_v5 = vmul.f32 %v7311_v8, %v2635_v15  ;;  %v7319_v8 = vpop.eup %7318 }
 0x46a   :  { %v7321_v48 = vpop.eup %7320 }
 0x46b   :  { %v3542_v56 = vmul.f32 %v7321_v48, %v2630_v36  ;;  %v2634_v36 = vld [vmem:[%s17396_s1 + $0x360] sm:$0xff] }
 0x46c   :  { %v14470_v24 = vpop.permute.xlu1 %3828  ;;  %4148 = vperm.xlu1 %7101, %v3534_v0   ;;  %v14472_v60 = vpop.permute.xlu0 %3883 }
 0x46d   :  { %4203 = vperm.xlu0 %7100, %v3545_v27   ;;  %v3549_v27 = vmul.f32 %v7315_v33, %v2637_v25  ;;  %v7323_v33 = vpop.eup %7322 }
 0x46e   :  { %v7325_v58 = vpop.eup %7324 }
 0x46f   :  { %v3544_v2 = vmul.f32 %v7325_v58, %v2632_v59 }
 0x470   :  { %v14482_v50 = vpop.permute.xlu1 %3838  ;;  %4158 = vperm.xlu1 %7101, %v3536_v16   ;;  %v14484_v0 = vpop.permute.xlu0 %3893 }
 0x471   :  { %4213 = vperm.xlu0 %7100, %v3547_v5   ;;  %v3551_v5 = vmul.f32 %v7319_v8, %v2639_v12  ;;  %v7327_v8 = vpop.eup %7326 }
 0x472   :  { %v7329_v48 = vpop.eup %7328 }
 0x473   :  { %v3546_v58 = vmul.f32 %v7329_v48, %v2634_v36  ;;  %v18689_v48 = vld [vmem:[#allocation312_spill] sm:$0xff] }
 0x474   :  { %v14494_v15 = vpop.permute.xlu1 %3848  ;;  %4168 = vperm.xlu1 %7101, %v3538_v34   ;;  %v14496_v16 = vpop.permute.xlu0 %3903 }
 0x475   :  { %4223 = vperm.xlu0 %7100, %v3549_v27   ;;  %v3553_v27 = vmul.f32 %v7323_v33, %v2641_v45  ;;  %v7331_v33 = vpop.eup %7330 }
 0x476   :  { %v3557_v59 = vmul.f32 %v7331_v33, %v2645_v51 }
 0x478   :  { %v14506_v25 = vpop.permute.xlu1 %3858  ;;  %4178 = vperm.xlu1 %7101, %v3540_v28   ;;  %v14508_v34 = vpop.permute.xlu0 %3913 }
 0x479   :  { %4233 = vperm.xlu0 %7100, %v3551_v5   ;;  %v3555_v5 = vmul.f32 %v7327_v8, %v2643_v57  ;;  %v2636_v8 = vld [vmem:[%s17396_s1 + $0x370] sm:$0xff] }
 0x47c   :  { %v14518_v12 = vpop.permute.xlu1 %3868  ;;  %4188 = vperm.xlu1 %7101, %v3542_v56   ;;  %v14520_v28 = vpop.permute.xlu0 %3923 }
 0x47d   :  { %4243 = vperm.xlu0 %7100, %v3553_v27   ;;  %v7333_v27 = vpop.eup %7332 }
 0x47e   :  { %v7335_v57 = vpop.eup %7334  ;;  %v3548_v36 = vmul.f32 %v7333_v27, %v2636_v8  ;;  %v18693_v27 = vld [vmem:[#allocation314_spill] sm:$0xff] }
 0x47f   :  { %v7337_v33 = vpop.eup %7336  ;;  %v3559_v51 = vmul.f32 %v7335_v57, %v2647_v13  ;;  %v3113_v8 = vadd.f32 0.001, %v18693_v27  ;;  %v2642_v27 = vld [vmem:[%s17396_s1 + $0x3a0] sm:$0xff] }
 0x480   :  { %v14530_v45 = vpop.permute.xlu1 %3878  ;;  %4198 = vperm.xlu1 %7101, %v3544_v2   ;;  %v14532_v56 = vpop.permute.xlu0 %3933  ;;  %v3550_v57 = vmul.f32 %v7337_v33, %v2638_v40  ;;  %v18697_v33 = vld [vmem:[#allocation316_spill] sm:$0xff] }
 0x481   :  { %18684 = vst [vmem:[#allocation257_spill] sm:$0xff] %v14532_v56  ;;  %4253 = vperm.xlu0 %7100, %v3555_v5   ;;  %v3111_v5 = vadd.f32 0.001, %v18689_v48  ;;  %v2640_v48 = vld [vmem:[%s17396_s1 + $0x390] sm:$0xff]  ;;  %v3115_v40 = vadd.f32 0.001, %v18697_v33 }
 0x482   :  { %v2644_v33 = vld [vmem:[%s17396_s1 + $0x3b0] sm:$0xff] }
 0x483   :  { %7350 = vrsqrt.f32 %v3111_v5  ;;  %v18696_v5 = vld [vmem:[#allocation307_spill] sm:$0xff] }
 0x484   :  { %v14542_v2 = vpop.permute.xlu1 %3888  ;;  %4208 = vperm.xlu1 %7101, %v3546_v58   ;;  %v14544_v56 = vpop.permute.xlu0 %3943 }
 0x485   :  { %18686 = vst [vmem:[#allocation259_spill] sm:$0xff] %v14542_v2  ;;  %18687 = vst [vmem:[#allocation310_spill] sm:$0xff] %v14544_v56  ;;  %4263 = vperm.xlu0 %7100, %v3557_v59   ;;  %v7339_v58 = vpop.eup %7338  ;;  %v3102_v59 = vadd.f32 0.001, %v18692_v29 }
 0x486   :  { %v7341_v13 = vpop.eup %7340  ;;  %v3561_v62 = vmul.f32 %v7339_v58, %v2649_v4 }
 0x487   :  { %7352 = vrsqrt.f32 %v3102_v59  ;;  %v3552_v58 = vmul.f32 %v7341_v13, %v2640_v48  ;;  %v2653_v59 = vld [vmem:[%s17396_s1 + $0x3f8] sm:$0xff]  ;;  %v18701_v13 = vld [vmem:[#allocation318_spill] sm:$0xff] }
 0x488   :  { %v14554_v56 = vpop.permute.xlu1 %3898  ;;  %4218 = vperm.xlu1 %7101, %v3548_v36   ;;  %v14556_v2 = vpop.permute.xlu0 %3953  ;;  %7354 = vrsqrt.f32 %v3113_v8  ;;  %v18700_v8 = vld [vmem:[#allocation308_spill] sm:$0xff]  ;;  %v3117_v48 = vadd.f32 0.001, %v18701_v13  ;;  %v2646_v13 = vld [vmem:[%s17396_s1 + $0x3c0] sm:$0xff] }
 0x489   :  { %18690 = vst [vmem:[#allocation299_spill] sm:$0xff] %v14554_v56  ;;  %18691 = vst [vmem:[#allocation312_spill] sm:$0xff] %v14556_v2  ;;  %4273 = vperm.xlu0 %7100, %v3559_v51   ;;  %v7343_v36 = vpop.eup %7342  ;;  %v3104_v51 = vadd.f32 0.001, %v18696_v5 }
 0x48a   :  { %v7345_v4 = vpop.eup %7344  ;;  %v3563_v29 = vmul.f32 %v7343_v36, %v2651_v26 }
 0x48b   :  { %7356 = vrsqrt.f32 %v3104_v51  ;;  %v3554_v36 = vmul.f32 %v7345_v4, %v2642_v27  ;;  %v2655_v51 = vld [vmem:[%s17396_s1 + $0x408] sm:$0xff]  ;;  %v18705_v4 = vld [vmem:[#allocation320_spill] sm:$0xff] }
 0x48c   :  { %v14566_v2 = vpop.permute.xlu1 %3908  ;;  %4228 = vperm.xlu1 %7101, %v3550_v57   ;;  %v14568_v56 = vpop.permute.xlu0 %3963  ;;  %7358 = vrsqrt.f32 %v3115_v40  ;;  %v18704_v40 = vld [vmem:[#allocation311_spill] sm:$0xff]  ;;  %v3119_v27 = vadd.f32 0.001, %v18705_v4  ;;  %v2648_v4 = vld [vmem:[%s17396_s1 + $0x3d0] sm:$0xff] }
 0x48d   :  { %18694 = vst [vmem:[#allocation302_spill] sm:$0xff] %v14566_v2  ;;  %18695 = vst [vmem:[#allocation314_spill] sm:$0xff] %v14568_v56  ;;  %4283 = vperm.xlu0 %7100, %v3561_v62   ;;  %v7347_v57 = vpop.eup %7346  ;;  %v3106_v62 = vadd.f32 0.001, %v18700_v8 }
 0x48e   :  { %v7349_v26 = vpop.eup %7348  ;;  %v3565_v5 = vmul.f32 %v7347_v57, %v2653_v59 }
 0x48f   :  { %7360 = vrsqrt.f32 %v3106_v62  ;;  %v3556_v57 = vmul.f32 %v7349_v26, %v2644_v33  ;;  %v2657_v62 = vld [vmem:[%s17396_s1 + $0x418] sm:$0xff]  ;;  %v18709_v26 = vld [vmem:[#allocation322_spill] sm:$0xff] }
 0x490   :  { %v14578_v56 = vpop.permute.xlu1 %3918  ;;  %4238 = vperm.xlu1 %7101, %v3552_v58   ;;  %v14580_v2 = vpop.permute.xlu0 %3973  ;;  %7362 = vrsqrt.f32 %v3117_v48  ;;  %v18708_v48 = vld [vmem:[#allocation313_spill] sm:$0xff]  ;;  %v3121_v33 = vadd.f32 0.001, %v18709_v26  ;;  %v2650_v26 = vld [vmem:[%s17396_s1 + $0x3e0] sm:$0xff] }
 0x491   :  { %18698 = vst [vmem:[#allocation307_spill] sm:$0xff] %v14578_v56  ;;  %18699 = vst [vmem:[#allocation316_spill] sm:$0xff] %v14580_v2  ;;  %4293 = vperm.xlu0 %7100, %v3563_v29   ;;  %v7351_v58 = vpop.eup %7350  ;;  %v3108_v29 = vadd.f32 0.001, %v18704_v40 }
 0x492   :  { %v7353_v59 = vpop.eup %7352  ;;  %v3567_v8 = vmul.f32 %v7351_v58, %v2655_v51 }
 0x493   :  { %7364 = vrsqrt.f32 %v3108_v29  ;;  %v3558_v58 = vmul.f32 %v7353_v59, %v2646_v13  ;;  %v2659_v29 = vld [vmem:[%s17396_s1 + $0x428] sm:$0xff]  ;;  %v18713_v59 = vld [vmem:[#allocation324_spill] sm:$0xff] }
 0x494   :  { %v14590_v2 = vpop.permute.xlu1 %3928  ;;  %4248 = vperm.xlu1 %7101, %v3554_v36   ;;  %v14592_v56 = vpop.permute.xlu0 %3983  ;;  %7366 = vrsqrt.f32 %v3119_v27  ;;  %v18712_v27 = vld [vmem:[#allocation315_spill] sm:$0xff]  ;;  %v3123_v13 = vadd.f32 0.001, %v18713_v59  ;;  %v2652_v59 = vld [vmem:[%s17396_s1 + $0x3f0] sm:$0xff] }
 0x495   :  { %18702 = vst [vmem:[#allocation308_spill] sm:$0xff] %v14590_v2  ;;  %18703 = vst [vmem:[#allocation318_spill] sm:$0xff] %v14592_v56  ;;  %4303 = vperm.xlu0 %7100, %v3565_v5   ;;  %v7355_v36 = vpop.eup %7354  ;;  %v3110_v5 = vadd.f32 0.001, %v18708_v48 }
 0x496   :  { %v7357_v51 = vpop.eup %7356  ;;  %v3569_v40 = vmul.f32 %v7355_v36, %v2657_v62 }
 0x497   :  { %7368 = vrsqrt.f32 %v3110_v5  ;;  %v3560_v36 = vmul.f32 %v7357_v51, %v2648_v4  ;;  %v2661_v5 = vld [vmem:[%s17396_s1 + $0x438] sm:$0xff]  ;;  %v18717_v51 = vld [vmem:[#allocation326_spill] sm:$0xff] }
 0x498   :  { %v14602_v56 = vpop.permute.xlu1 %3938  ;;  %4258 = vperm.xlu1 %7101, %v3556_v57   ;;  %v14604_v2 = vpop.permute.xlu0 %3993  ;;  %7370 = vrsqrt.f32 %v3121_v33  ;;  %v18716_v33 = vld [vmem:[#allocation317_spill] sm:$0xff]  ;;  %v3125_v4 = vadd.f32 0.001, %v18717_v51  ;;  %v2654_v51 = vld [vmem:[%s17396_s1 + $0x400] sm:$0xff] }
 0x499   :  { %18706 = vst [vmem:[#allocation311_spill] sm:$0xff] %v14602_v56  ;;  %18707 = vst [vmem:[#allocation320_spill] sm:$0xff] %v14604_v2  ;;  %4313 = vperm.xlu0 %7100, %v3567_v8   ;;  %v7359_v57 = vpop.eup %7358  ;;  %v3112_v8 = vadd.f32 0.001, %v18712_v27 }
 0x49a   :  { %v7361_v62 = vpop.eup %7360  ;;  %v3571_v48 = vmul.f32 %v7359_v57, %v2659_v29 }
 0x49b   :  { %7372 = vrsqrt.f32 %v3112_v8  ;;  %v3562_v57 = vmul.f32 %v7361_v62, %v2650_v26  ;;  %v2663_v8 = vld [vmem:[%s17396_s1 + $0x448] sm:$0xff]  ;;  %v18721_v62 = vld [vmem:[#allocation328_spill] sm:$0xff] }
 0x49c   :  { %v14614_v2 = vpop.permute.xlu1 %3948  ;;  %4268 = vperm.xlu1 %7101, %v3558_v58   ;;  %v14616_v56 = vpop.permute.xlu0 %4003  ;;  %7374 = vrsqrt.f32 %v3123_v13  ;;  %v18720_v13 = vld [vmem:[#allocation319_spill] sm:$0xff]  ;;  %v3127_v26 = vadd.f32 0.001, %v18721_v62  ;;  %v2656_v62 = vld [vmem:[%s17396_s1 + $0x410] sm:$0xff] }
 0x49d   :  { %18710 = vst [vmem:[#allocation313_spill] sm:$0xff] %v14614_v2  ;;  %18711 = vst [vmem:[#allocation322_spill] sm:$0xff] %v14616_v56  ;;  %4323 = vperm.xlu0 %7100, %v3569_v40   ;;  %v7363_v58 = vpop.eup %7362  ;;  %v3114_v40 = vadd.f32 0.001, %v18716_v33 }
 0x49e   :  { %v7365_v29 = vpop.eup %7364  ;;  %v3573_v27 = vmul.f32 %v7363_v58, %v2661_v5 }
 0x49f   :  { %7376 = vrsqrt.f32 %v3114_v40  ;;  %v3564_v58 = vmul.f32 %v7365_v29, %v2652_v59  ;;  %v2665_v40 = vld [vmem:[%s17396_s1 + $0x458] sm:$0xff]  ;;  %v18725_v29 = vld [vmem:[#allocation330_spill] sm:$0xff] }
 0x4a0   :  { %v14626_v56 = vpop.permute.xlu1 %3958  ;;  %4278 = vperm.xlu1 %7101, %v3560_v36   ;;  %v14628_v2 = vpop.permute.xlu0 %4013  ;;  %7378 = vrsqrt.f32 %v3125_v4  ;;  %v18724_v4 = vld [vmem:[#allocation321_spill] sm:$0xff]  ;;  %v3129_v59 = vadd.f32 0.001, %v18725_v29  ;;  %v2658_v29 = vld [vmem:[%s17396_s1 + $0x420] sm:$0xff] }
 0x4a1   :  { %18714 = vst [vmem:[#allocation315_spill] sm:$0xff] %v14626_v56  ;;  %18715 = vst [vmem:[#allocation324_spill] sm:$0xff] %v14628_v2  ;;  %4333 = vperm.xlu0 %7100, %v3571_v48   ;;  %v7367_v36 = vpop.eup %7366  ;;  %v3116_v48 = vadd.f32 0.001, %v18720_v13 }
 0x4a2   :  { %v7369_v5 = vpop.eup %7368  ;;  %v3575_v33 = vmul.f32 %v7367_v36, %v2663_v8 }
 0x4a3   :  { %7380 = vrsqrt.f32 %v3116_v48  ;;  %v3566_v36 = vmul.f32 %v7369_v5, %v2654_v51  ;;  %v2667_v48 = vld [vmem:[%s17396_s1 + $0x468] sm:$0xff]  ;;  %v18729_v5 = vld [vmem:[#allocation332_spill] sm:$0xff] }
 0x4a4   :  { %v14638_v2 = vpop.permute.xlu1 %3968  ;;  %4288 = vperm.xlu1 %7101, %v3562_v57   ;;  %v14640_v56 = vpop.permute.xlu0 %4023  ;;  %7382 = vrsqrt.f32 %v3127_v26  ;;  %v18728_v26 = vld [vmem:[#allocation323_spill] sm:$0xff]  ;;  %v3131_v51 = vadd.f32 0.001, %v18729_v5  ;;  %v2660_v5 = vld [vmem:[%s17396_s1 + $0x430] sm:$0xff] }
 0x4a5   :  { %18718 = vst [vmem:[#allocation317_spill] sm:$0xff] %v14638_v2  ;;  %18719 = vst [vmem:[#allocation326_spill] sm:$0xff] %v14640_v56  ;;  %4343 = vperm.xlu0 %7100, %v3573_v27   ;;  %v7371_v57 = vpop.eup %7370  ;;  %v3118_v27 = vadd.f32 0.001, %v18724_v4 }
 0x4a6   :  { %v7373_v8 = vpop.eup %7372  ;;  %v3577_v13 = vmul.f32 %v7371_v57, %v2665_v40 }
 0x4a7   :  { %7384 = vrsqrt.f32 %v3118_v27  ;;  %v3568_v57 = vmul.f32 %v7373_v8, %v2656_v62  ;;  %v2669_v27 = vld [vmem:[%s17396_s1 + $0x478] sm:$0xff]  ;;  %v18733_v8 = vld [vmem:[#allocation334_spill] sm:$0xff] }
 0x4a8   :  { %v14650_v56 = vpop.permute.xlu1 %3978  ;;  %4298 = vperm.xlu1 %7101, %v3564_v58   ;;  %v14652_v2 = vpop.permute.xlu0 %4033  ;;  %7386 = vrsqrt.f32 %v3129_v59  ;;  %v18732_v59 = vld [vmem:[#allocation325_spill] sm:$0xff]  ;;  %v3133_v62 = vadd.f32 0.001, %v18733_v8  ;;  %v2662_v8 = vld [vmem:[%s17396_s1 + $0x440] sm:$0xff] }
 0x4a9   :  { %18722 = vst [vmem:[#allocation319_spill] sm:$0xff] %v14650_v56  ;;  %18723 = vst [vmem:[#allocation328_spill] sm:$0xff] %v14652_v2  ;;  %4353 = vperm.xlu0 %7100, %v3575_v33   ;;  %v7375_v58 = vpop.eup %7374  ;;  %v3120_v33 = vadd.f32 0.001, %v18728_v26 }
 0x4aa   :  { %v7377_v40 = vpop.eup %7376  ;;  %v3579_v4 = vmul.f32 %v7375_v58, %v2667_v48 }
 0x4ab   :  { %7388 = vrsqrt.f32 %v3120_v33  ;;  %v3570_v58 = vmul.f32 %v7377_v40, %v2658_v29  ;;  %v2671_v33 = vld [vmem:[%s17396_s1 + $0x488] sm:$0xff]  ;;  %v18737_v40 = vld [vmem:[#allocation336_spill] sm:$0xff] }
 0x4ac   :  { %v14662_v2 = vpop.permute.xlu1 %3988  ;;  %4308 = vperm.xlu1 %7101, %v3566_v36   ;;  %v14664_v56 = vpop.permute.xlu0 %4043  ;;  %7390 = vrsqrt.f32 %v3131_v51  ;;  %v18736_v51 = vld [vmem:[#allocation327_spill] sm:$0xff]  ;;  %v3135_v29 = vadd.f32 0.001, %v18737_v40  ;;  %v2664_v40 = vld [vmem:[%s17396_s1 + $0x450] sm:$0xff] }
 0x4ad   :  { %18726 = vst [vmem:[#allocation321_spill] sm:$0xff] %v14662_v2  ;;  %18727 = vst [vmem:[#allocation330_spill] sm:$0xff] %v14664_v56  ;;  %4363 = vperm.xlu0 %7100, %v3577_v13   ;;  %v7379_v36 = vpop.eup %7378  ;;  %v3122_v13 = vadd.f32 0.001, %v18732_v59 }
 0x4ae   :  { %v7381_v48 = vpop.eup %7380  ;;  %v3581_v26 = vmul.f32 %v7379_v36, %v2669_v27 }
 0x4af   :  { %7392 = vrsqrt.f32 %v3122_v13  ;;  %v3572_v36 = vmul.f32 %v7381_v48, %v2660_v5  ;;  %v2673_v13 = vld [vmem:[%s17396_s1 + $0x498] sm:$0xff]  ;;  %v18741_v48 = vld [vmem:[#allocation183_spill] sm:$0xff] }
 0x4b0   :  { %v14674_v56 = vpop.permute.xlu1 %3998  ;;  %4318 = vperm.xlu1 %7101, %v3568_v57   ;;  %v14676_v2 = vpop.permute.xlu0 %4053  ;;  %7394 = vrsqrt.f32 %v3133_v62  ;;  %v18740_v62 = vld [vmem:[#allocation329_spill] sm:$0xff]  ;;  %v3137_v5 = vadd.f32 0.001, %v18741_v48  ;;  %v2666_v48 = vld [vmem:[%s17396_s1 + $0x460] sm:$0xff] }
 0x4b1   :  { %18730 = vst [vmem:[#allocation323_spill] sm:$0xff] %v14674_v56  ;;  %18731 = vst [vmem:[#allocation332_spill] sm:$0xff] %v14676_v2  ;;  %4373 = vperm.xlu0 %7100, %v3579_v4   ;;  %v7383_v57 = vpop.eup %7382  ;;  %v3124_v4 = vadd.f32 0.001, %v18736_v51 }
 0x4b2   :  { %v7385_v27 = vpop.eup %7384  ;;  %v3583_v59 = vmul.f32 %v7383_v57, %v2671_v33 }
 0x4b3   :  { %7396 = vrsqrt.f32 %v3124_v4  ;;  %v3574_v57 = vmul.f32 %v7385_v27, %v2662_v8  ;;  %v2675_v4 = vld [vmem:[%s17396_s1 + $0x4a8] sm:$0xff]  ;;  %v18745_v27 = vld [vmem:[#allocation186_spill] sm:$0xff] }
 0x4b4   :  { %v14686_v2 = vpop.permute.xlu1 %4008  ;;  %4328 = vperm.xlu1 %7101, %v3570_v58   ;;  %v14688_v56 = vpop.permute.xlu0 %4063  ;;  %7398 = vrsqrt.f32 %v3135_v29  ;;  %v18744_v29 = vld [vmem:[#allocation331_spill] sm:$0xff]  ;;  %v3139_v8 = vadd.f32 0.001, %v18745_v27  ;;  %v2668_v27 = vld [vmem:[%s17396_s1 + $0x470] sm:$0xff] }
 0x4b5   :  { %18734 = vst [vmem:[#allocation325_spill] sm:$0xff] %v14686_v2  ;;  %18735 = vst [vmem:[#allocation334_spill] sm:$0xff] %v14688_v56  ;;  %4383 = vperm.xlu0 %7100, %v3581_v26   ;;  %v7387_v58 = vpop.eup %7386  ;;  %v3126_v26 = vadd.f32 0.001, %v18740_v62 }
 0x4b6   :  { %v7389_v33 = vpop.eup %7388  ;;  %v3585_v51 = vmul.f32 %v7387_v58, %v2673_v13 }
 0x4b7   :  { %7400 = vrsqrt.f32 %v3126_v26  ;;  %v3576_v58 = vmul.f32 %v7389_v33, %v2664_v40  ;;  %v2677_v26 = vld [vmem:[%s17396_s1 + $0x4b8] sm:$0xff]  ;;  %v18749_v33 = vld [vmem:[#allocation184_spill] sm:$0xff] }
 0x4b8   :  { %v14698_v56 = vpop.permute.xlu1 %4018  ;;  %4338 = vperm.xlu1 %7101, %v3572_v36   ;;  %v14700_v2 = vpop.permute.xlu0 %4073  ;;  %7402 = vrsqrt.f32 %v3137_v5  ;;  %v18748_v5 = vld [vmem:[#allocation333_spill] sm:$0xff]  ;;  %v3141_v40 = vadd.f32 0.001, %v18749_v33  ;;  %v2670_v33 = vld [vmem:[%s17396_s1 + $0x480] sm:$0xff] }
 0x4b9   :  { %18738 = vst [vmem:[#allocation327_spill] sm:$0xff] %v14698_v56  ;;  %18739 = vst [vmem:[#allocation336_spill] sm:$0xff] %v14700_v2  ;;  %4393 = vperm.xlu0 %7100, %v3583_v59   ;;  %v7391_v36 = vpop.eup %7390  ;;  %v3128_v59 = vadd.f32 0.001, %v18744_v29 }
 0x4ba   :  { %v7393_v13 = vpop.eup %7392  ;;  %v3587_v62 = vmul.f32 %v7391_v36, %v2675_v4 }
 0x4bb   :  { %7404 = vrsqrt.f32 %v3128_v59  ;;  %v3578_v36 = vmul.f32 %v7393_v13, %v2666_v48  ;;  %v2679_v59 = vld [vmem:[%s17396_s1 + $0x4c8] sm:$0xff] }
 0x4bc   :  { %v14710_v2 = vpop.permute.xlu1 %4028  ;;  %4348 = vperm.xlu1 %7101, %v3574_v57   ;;  %v14712_v56 = vpop.permute.xlu0 %4083  ;;  %7406 = vrsqrt.f32 %v3139_v8  ;;  %v18752_v8 = vld [vmem:[#allocation335_spill] sm:$0xff] }
 0x4bd   :  { %18742 = vst [vmem:[#allocation329_spill] sm:$0xff] %v14710_v2  ;;  %18743 = vst [vmem:[#allocation183_spill] sm:$0xff] %v14712_v56  ;;  %4403 = vperm.xlu0 %7100, %v3585_v51   ;;  %v7395_v57 = vpop.eup %7394  ;;  %v3130_v51 = vadd.f32 0.001, %v18748_v5  ;;  %v18753_v13 = vld [vmem:[#allocation191_spill] sm:$0xff] }
 0x4be   :  { %v7397_v4 = vpop.eup %7396  ;;  %v3589_v29 = vmul.f32 %v7395_v57, %v2677_v26  ;;  %v3143_v48 = vadd.f32 0.001, %v18753_v13  ;;  %v2672_v13 = vld [vmem:[%s17396_s1 + $0x490] sm:$0xff] }
 0x4bf   :  { %7408 = vrsqrt.f32 %v3130_v51  ;;  %v3580_v57 = vmul.f32 %v7397_v4, %v2668_v27  ;;  %v2681_v51 = vld [vmem:[%s17396_s1 + $0x4d8] sm:$0xff] }
 0x4c0   :  { %v14722_v56 = vpop.permute.xlu1 %4038  ;;  %4358 = vperm.xlu1 %7101, %v3576_v58   ;;  %v14724_v2 = vpop.permute.xlu0 %4093  ;;  %7410 = vrsqrt.f32 %v3141_v40  ;;  %v18756_v40 = vld [vmem:[#allocation337_spill] sm:$0xff] }
 0x4c1   :  { %18746 = vst [vmem:[#allocation331_spill] sm:$0xff] %v14722_v56  ;;  %18747 = vst [vmem:[#allocation186_spill] sm:$0xff] %v14724_v2  ;;  %4413 = vperm.xlu0 %7100, %v3587_v62   ;;  %v7399_v58 = vpop.eup %7398  ;;  %v3132_v62 = vadd.f32 0.001, %v18752_v8  ;;  %v18757_v4 = vld [vmem:[#allocation193_spill] sm:$0xff] }
 0x4c2   :  { %v7401_v26 = vpop.eup %7400  ;;  %v3591_v5 = vmul.f32 %v7399_v58, %v2679_v59  ;;  %v3145_v27 = vadd.f32 0.001, %v18757_v4  ;;  %v2674_v4 = vld [vmem:[%s17396_s1 + $0x4a0] sm:$0xff] }
 0x4c3   :  { %7412 = vrsqrt.f32 %v3132_v62  ;;  %v3582_v58 = vmul.f32 %v7401_v26, %v2670_v33  ;;  %v2683_v62 = vld [vmem:[%s17396_s1 + $0x4e8] sm:$0xff] }
 0x4c4   :  { %v14734_v2 = vpop.permute.xlu1 %4048  ;;  %4368 = vperm.xlu1 %7101, %v3578_v36   ;;  %v14736_v56 = vpop.permute.xlu0 %4103  ;;  %7414 = vrsqrt.f32 %v3143_v48  ;;  %v18760_v48 = vld [vmem:[#allocation338_spill] sm:$0xff]  ;;  %v18761_v26 = vld [vmem:[#allocation195_spill] sm:$0xff] }
 0x4c5   :  { %18750 = vst [vmem:[#allocation333_spill] sm:$0xff] %v14734_v2  ;;  %18751 = vst [vmem:[#allocation184_spill] sm:$0xff] %v14736_v56  ;;  %4423 = vperm.xlu0 %7100, %v3589_v29   ;;  %v7403_v36 = vpop.eup %7402  ;;  %v3134_v29 = vadd.f32 0.001, %v18756_v40  ;;  %v3147_v33 = vadd.f32 0.001, %v18761_v26 }
 0x4c6   :  { %v7405_v59 = vpop.eup %7404  ;;  %v3593_v8 = vmul.f32 %v7403_v36, %v2681_v51  ;;  %v2676_v26 = vld [vmem:[%s17396_s1 + $0x4b0] sm:$0xff] }
 0x4c7   :  { %7416 = vrsqrt.f32 %v3134_v29  ;;  %v3584_v36 = vmul.f32 %v7405_v59, %v2672_v13  ;;  %v2685_v29 = vld [vmem:[%s17396_s1 + $0x4f8] sm:$0xff] }
 0x4c8   :  { %v14746_v56 = vpop.permute.xlu1 %4058  ;;  %4378 = vperm.xlu1 %7101, %v3580_v57   ;;  %v14748_v2 = vpop.permute.xlu0 %4113  ;;  %7418 = vrsqrt.f32 %v3145_v27  ;;  %v18764_v27 = vld [vmem:[#allocation339_spill] sm:$0xff]  ;;  %v18765_v59 = vld [vmem:[#allocation197_spill] sm:$0xff] }
 0x4c9   :  { %18754 = vst [vmem:[#allocation335_spill] sm:$0xff] %v14746_v56  ;;  %18755 = vst [vmem:[#allocation191_spill] sm:$0xff] %v14748_v2  ;;  %4433 = vperm.xlu0 %7100, %v3591_v5   ;;  %v7407_v57 = vpop.eup %7406  ;;  %v3136_v5 = vadd.f32 0.001, %v18760_v48  ;;  %v3149_v13 = vadd.f32 0.001, %v18765_v59 }
 0x4ca   :  { %v7409_v51 = vpop.eup %7408  ;;  %v3595_v40 = vmul.f32 %v7407_v57, %v2683_v62  ;;  %v2678_v59 = vld [vmem:[%s17396_s1 + $0x4c0] sm:$0xff] }
 0x4cb   :  { %7420 = vrsqrt.f32 %v3136_v5  ;;  %v3586_v57 = vmul.f32 %v7409_v51, %v2674_v4  ;;  %v2687_v5 = vld [vmem:[%s17396_s1 + $0x508] sm:$0xff] }
 0x4cc   :  { %v14758_v2 = vpop.permute.xlu1 %4068  ;;  %4388 = vperm.xlu1 %7101, %v3582_v58   ;;  %v14760_v56 = vpop.permute.xlu0 %4123  ;;  %7422 = vrsqrt.f32 %v3147_v33  ;;  %v18768_v33 = vld [vmem:[#allocation185_spill] sm:$0xff]  ;;  %v18769_v51 = vld [vmem:[#allocation199_spill] sm:$0xff] }
 0x4cd   :  { %18758 = vst [vmem:[#allocation337_spill] sm:$0xff] %v14758_v2  ;;  %18759 = vst [vmem:[#allocation193_spill] sm:$0xff] %v14760_v56  ;;  %4443 = vperm.xlu0 %7100, %v3593_v8   ;;  %v7411_v58 = vpop.eup %7410  ;;  %v3138_v8 = vadd.f32 0.001, %v18764_v27  ;;  %v3151_v4 = vadd.f32 0.001, %v18769_v51 }
 0x4ce   :  { %v7413_v62 = vpop.eup %7412  ;;  %v3597_v48 = vmul.f32 %v7411_v58, %v2685_v29  ;;  %v2680_v51 = vld [vmem:[%s17396_s1 + $0x4d0] sm:$0xff] }
 0x4cf   :  { %7424 = vrsqrt.f32 %v3138_v8  ;;  %v3588_v58 = vmul.f32 %v7413_v62, %v2676_v26  ;;  %v2689_v8 = vld [vmem:[%s17396_s1 + $0x518] sm:$0xff] }
 0x4d0   :  { %v14770_v56 = vpop.permute.xlu1 %4078  ;;  %4398 = vperm.xlu1 %7101, %v3584_v36   ;;  %v14772_v2 = vpop.permute.xlu0 %4133  ;;  %7426 = vrsqrt.f32 %v3149_v13  ;;  %v18772_v13 = vld [vmem:[#allocation188_spill] sm:$0xff]  ;;  %v18773_v62 = vld [vmem:[#allocation201_spill] sm:$0xff] }
 0x4d1   :  { %18762 = vst [vmem:[#allocation338_spill] sm:$0xff] %v14770_v56  ;;  %18763 = vst [vmem:[#allocation195_spill] sm:$0xff] %v14772_v2  ;;  %4453 = vperm.xlu0 %7100, %v3595_v40   ;;  %v7415_v36 = vpop.eup %7414  ;;  %v3140_v40 = vadd.f32 0.001, %v18768_v33  ;;  %v3153_v26 = vadd.f32 0.001, %v18773_v62 }
 0x4d2   :  { %v7417_v29 = vpop.eup %7416  ;;  %v3599_v27 = vmul.f32 %v7415_v36, %v2687_v5  ;;  %v2682_v62 = vld [vmem:[%s17396_s1 + $0x4e0] sm:$0xff] }
 0x4d3   :  { %7428 = vrsqrt.f32 %v3140_v40  ;;  %v3590_v36 = vmul.f32 %v7417_v29, %v2678_v59  ;;  %v2691_v40 = vld [vmem:[%s17396_s1 + $0x528] sm:$0xff] }
 0x4d4   :  { %v14782_v2 = vpop.permute.xlu1 %4088  ;;  %4408 = vperm.xlu1 %7101, %v3586_v57   ;;  %v14784_v56 = vpop.permute.xlu0 %4143  ;;  %7430 = vrsqrt.f32 %v3151_v4  ;;  %v18776_v4 = vld [vmem:[#allocation187_spill] sm:$0xff] }
 0x4d5   :  { %18766 = vst [vmem:[#allocation339_spill] sm:$0xff] %v14782_v2  ;;  %18767 = vst [vmem:[#allocation197_spill] sm:$0xff] %v14784_v56  ;;  %4463 = vperm.xlu0 %7100, %v3597_v48   ;;  %v7419_v57 = vpop.eup %7418  ;;  %v3142_v48 = vadd.f32 0.001, %v18772_v13  ;;  %v18777_v29 = vld [vmem:[#allocation203_spill] sm:$0xff] }
 0x4d6   :  { %v7421_v5 = vpop.eup %7420  ;;  %v3601_v33 = vmul.f32 %v7419_v57, %v2689_v8  ;;  %v3155_v59 = vadd.f32 0.001, %v18777_v29  ;;  %v2684_v29 = vld [vmem:[%s17396_s1 + $0x4f0] sm:$0xff] }
 0x4d7   :  { %7432 = vrsqrt.f32 %v3142_v48  ;;  %v3592_v57 = vmul.f32 %v7421_v5, %v2680_v51  ;;  %v2693_v48 = vld [vmem:[%s17396_s1 + $0x538] sm:$0xff] }
 0x4d8   :  { %v14794_v56 = vpop.permute.xlu1 %4098  ;;  %4418 = vperm.xlu1 %7101, %v3588_v58   ;;  %v14796_v2 = vpop.permute.xlu0 %4153  ;;  %7434 = vrsqrt.f32 %v3153_v26  ;;  %v18780_v26 = vld [vmem:[#allocation190_spill] sm:$0xff]  ;;  %v18781_v5 = vld [vmem:[#allocation205_spill] sm:$0xff] }
 0x4d9   :  { %18770 = vst [vmem:[#allocation185_spill] sm:$0xff] %v14794_v56  ;;  %18771 = vst [vmem:[#allocation199_spill] sm:$0xff] %v14796_v2  ;;  %4473 = vperm.xlu0 %7100, %v3599_v27   ;;  %v7423_v58 = vpop.eup %7422  ;;  %v3144_v27 = vadd.f32 0.001, %v18776_v4  ;;  %v3157_v51 = vadd.f32 0.001, %v18781_v5 }
 0x4da   :  { %v7425_v8 = vpop.eup %7424  ;;  %v3603_v13 = vmul.f32 %v7423_v58, %v2691_v40  ;;  %v2686_v5 = vld [vmem:[%s17396_s1 + $0x500] sm:$0xff] }
 0x4db   :  { %7436 = vrsqrt.f32 %v3144_v27  ;;  %v3594_v58 = vmul.f32 %v7425_v8, %v2682_v62  ;;  %v2695_v27 = vld [vmem:[%s17396_s1 + $0x548] sm:$0xff] }
 0x4dc   :  { %v14806_v2 = vpop.permute.xlu1 %4108  ;;  %4428 = vperm.xlu1 %7101, %v3590_v36   ;;  %v14808_v56 = vpop.permute.xlu0 %4163  ;;  %7438 = vrsqrt.f32 %v3155_v59  ;;  %v18784_v59 = vld [vmem:[#allocation189_spill] sm:$0xff]  ;;  %v18785_v8 = vld [vmem:[#allocation207_spill] sm:$0xff] }
 0x4dd   :  { %18774 = vst [vmem:[#allocation188_spill] sm:$0xff] %v14806_v2  ;;  %18775 = vst [vmem:[#allocation201_spill] sm:$0xff] %v14808_v56  ;;  %4483 = vperm.xlu0 %7100, %v3601_v33   ;;  %v7427_v36 = vpop.eup %7426  ;;  %v3146_v33 = vadd.f32 0.001, %v18780_v26  ;;  %v3159_v62 = vadd.f32 0.001, %v18785_v8 }
 0x4de   :  { %v7429_v40 = vpop.eup %7428  ;;  %v3605_v4 = vmul.f32 %v7427_v36, %v2693_v48  ;;  %v2688_v8 = vld [vmem:[%s17396_s1 + $0x510] sm:$0xff] }
 0x4df   :  { %7440 = vrsqrt.f32 %v3146_v33  ;;  %v3596_v36 = vmul.f32 %v7429_v40, %v2684_v29  ;;  %v2697_v33 = vld [vmem:[%s17396_s1 + $0x558] sm:$0xff] }
 0x4e0   :  { %v14818_v56 = vpop.permute.xlu1 %4118  ;;  %4438 = vperm.xlu1 %7101, %v3592_v57   ;;  %v14820_v2 = vpop.permute.xlu0 %4173  ;;  %7442 = vrsqrt.f32 %v3157_v51  ;;  %v18788_v51 = vld [vmem:[#allocation192_spill] sm:$0xff]  ;;  %v18789_v40 = vld [vmem:[#allocation209_spill] sm:$0xff] }
 0x4e1   :  { %18778 = vst [vmem:[#allocation187_spill] sm:$0xff] %v14818_v56  ;;  %18779 = vst [vmem:[#allocation203_spill] sm:$0xff] %v14820_v2  ;;  %4493 = vperm.xlu0 %7100, %v3603_v13   ;;  %v7431_v57 = vpop.eup %7430  ;;  %v3148_v13 = vadd.f32 0.001, %v18784_v59  ;;  %v3161_v29 = vadd.f32 0.001, %v18789_v40 }
 0x4e2   :  { %v7433_v48 = vpop.eup %7432  ;;  %v3607_v26 = vmul.f32 %v7431_v57, %v2695_v27  ;;  %v2690_v40 = vld [vmem:[%s17396_s1 + $0x520] sm:$0xff] }
 0x4e3   :  { %7444 = vrsqrt.f32 %v3148_v13  ;;  %v3598_v57 = vmul.f32 %v7433_v48, %v2686_v5  ;;  %v2699_v13 = vld [vmem:[%s17396_s1 + $0x568] sm:$0xff] }
 0x4e4   :  { %v14830_v2 = vpop.permute.xlu1 %4128  ;;  %4448 = vperm.xlu1 %7101, %v3594_v58   ;;  %v14832_v56 = vpop.permute.xlu0 %4183  ;;  %7446 = vrsqrt.f32 %v3159_v62  ;;  %v18792_v62 = vld [vmem:[#allocation194_spill] sm:$0xff]  ;;  %v18793_v48 = vld [vmem:[#allocation211_spill] sm:$0xff] }
 0x4e5   :  { %18782 = vst [vmem:[#allocation190_spill] sm:$0xff] %v14830_v2  ;;  %18783 = vst [vmem:[#allocation205_spill] sm:$0xff] %v14832_v56  ;;  %4503 = vperm.xlu0 %7100, %v3605_v4   ;;  %v7435_v58 = vpop.eup %7434  ;;  %v3150_v4 = vadd.f32 0.001, %v18788_v51  ;;  %v3163_v5 = vadd.f32 0.001, %v18793_v48 }
 0x4e6   :  { %v7437_v27 = vpop.eup %7436  ;;  %v3609_v59 = vmul.f32 %v7435_v58, %v2697_v33  ;;  %v2692_v48 = vld [vmem:[%s17396_s1 + $0x530] sm:$0xff] }
 0x4e7   :  { %7448 = vrsqrt.f32 %v3150_v4  ;;  %v3600_v58 = vmul.f32 %v7437_v27, %v2688_v8  ;;  %v2701_v4 = vld [vmem:[%s17396_s1 + $0x578] sm:$0xff] }
 0x4e8   :  { %v14842_v56 = vpop.permute.xlu1 %4138  ;;  %4458 = vperm.xlu1 %7101, %v3596_v36   ;;  %v14844_v2 = vpop.permute.xlu0 %4193  ;;  %7450 = vrsqrt.f32 %v3161_v29  ;;  %v18796_v29 = vld [vmem:[#allocation196_spill] sm:$0xff]  ;;  %v18797_v27 = vld [vmem:[#allocation213_spill] sm:$0xff] }
 0x4e9   :  { %18786 = vst [vmem:[#allocation189_spill] sm:$0xff] %v14842_v56  ;;  %18787 = vst [vmem:[#allocation207_spill] sm:$0xff] %v14844_v2  ;;  %4513 = vperm.xlu0 %7100, %v3607_v26   ;;  %v7439_v36 = vpop.eup %7438  ;;  %v3152_v26 = vadd.f32 0.001, %v18792_v62  ;;  %v3165_v8 = vadd.f32 0.001, %v18797_v27 }
 0x4ea   :  { %v7441_v33 = vpop.eup %7440  ;;  %v3611_v51 = vmul.f32 %v7439_v36, %v2699_v13  ;;  %v2694_v27 = vld [vmem:[%s17396_s1 + $0x540] sm:$0xff] }
 0x4eb   :  { %7452 = vrsqrt.f32 %v3152_v26  ;;  %v3602_v36 = vmul.f32 %v7441_v33, %v2690_v40  ;;  %v2703_v26 = vld [vmem:[%s17396_s1 + $0x588] sm:$0xff] }
 0x4ec   :  { %v14854_v2 = vpop.permute.xlu1 %4148  ;;  %4468 = vperm.xlu1 %7101, %v3598_v57   ;;  %v14856_v56 = vpop.permute.xlu0 %4203  ;;  %7454 = vrsqrt.f32 %v3163_v5  ;;  %v18800_v5 = vld [vmem:[#allocation198_spill] sm:$0xff]  ;;  %v18801_v33 = vld [vmem:[#allocation215_spill] sm:$0xff] }
 0x4ed   :  { %18790 = vst [vmem:[#allocation192_spill] sm:$0xff] %v14854_v2  ;;  %18791 = vst [vmem:[#allocation209_spill] sm:$0xff] %v14856_v56  ;;  %4523 = vperm.xlu0 %7100, %v3609_v59   ;;  %v7443_v57 = vpop.eup %7442  ;;  %v3154_v59 = vadd.f32 0.001, %v18796_v29  ;;  %v3167_v40 = vadd.f32 0.001, %v18801_v33 }
 0x4ee   :  { %v7445_v13 = vpop.eup %7444  ;;  %v3613_v62 = vmul.f32 %v7443_v57, %v2701_v4  ;;  %v2696_v33 = vld [vmem:[%s17396_s1 + $0x550] sm:$0xff] }
 0x4ef   :  { %7456 = vrsqrt.f32 %v3154_v59  ;;  %v3604_v57 = vmul.f32 %v7445_v13, %v2692_v48  ;;  %v2705_v59 = vld [vmem:[%s17396_s1 + $0x598] sm:$0xff] }
 0x4f0   :  { %v14866_v56 = vpop.permute.xlu1 %4158  ;;  %4478 = vperm.xlu1 %7101, %v3600_v58   ;;  %v14868_v2 = vpop.permute.xlu0 %4213  ;;  %7458 = vrsqrt.f32 %v3165_v8  ;;  %v18804_v8 = vld [vmem:[#allocation200_spill] sm:$0xff]  ;;  %v18805_v13 = vld [vmem:[#allocation217_spill] sm:$0xff] }
 0x4f1   :  { %18794 = vst [vmem:[#allocation194_spill] sm:$0xff] %v14866_v56  ;;  %18795 = vst [vmem:[#allocation211_spill] sm:$0xff] %v14868_v2  ;;  %4533 = vperm.xlu0 %7100, %v3611_v51   ;;  %v7447_v58 = vpop.eup %7446  ;;  %v3156_v51 = vadd.f32 0.001, %v18800_v5  ;;  %v3169_v48 = vadd.f32 0.001, %v18805_v13 }
 0x4f2   :  { %v7449_v4 = vpop.eup %7448  ;;  %v3615_v29 = vmul.f32 %v7447_v58, %v2703_v26  ;;  %v2698_v13 = vld [vmem:[%s17396_s1 + $0x560] sm:$0xff] }
 0x4f3   :  { %7460 = vrsqrt.f32 %v3156_v51  ;;  %v3606_v58 = vmul.f32 %v7449_v4, %v2694_v27  ;;  %v2707_v51 = vld [vmem:[%s17396_s1 + $0x5a8] sm:$0xff] }
 0x4f4   :  { %v14878_v2 = vpop.permute.xlu1 %4168  ;;  %4488 = vperm.xlu1 %7101, %v3602_v36   ;;  %v14880_v56 = vpop.permute.xlu0 %4223  ;;  %7462 = vrsqrt.f32 %v3167_v40  ;;  %v18808_v40 = vld [vmem:[#allocation202_spill] sm:$0xff]  ;;  %v18809_v4 = vld [vmem:[#allocation219_spill] sm:$0xff] }
 0x4f5   :  { %18798 = vst [vmem:[#allocation196_spill] sm:$0xff] %v14878_v2  ;;  %18799 = vst [vmem:[#allocation213_spill] sm:$0xff] %v14880_v56  ;;  %4543 = vperm.xlu0 %7100, %v3613_v62   ;;  %v7451_v36 = vpop.eup %7450  ;;  %v3158_v62 = vadd.f32 0.001, %v18804_v8  ;;  %v3171_v27 = vadd.f32 0.001, %v18809_v4 }
 0x4f6   :  { %v7453_v26 = vpop.eup %7452  ;;  %v3617_v5 = vmul.f32 %v7451_v36, %v2705_v59  ;;  %v2700_v4 = vld [vmem:[%s17396_s1 + $0x570] sm:$0xff] }
 0x4f7   :  { %7464 = vrsqrt.f32 %v3158_v62  ;;  %v3608_v36 = vmul.f32 %v7453_v26, %v2696_v33  ;;  %v2709_v62 = vld [vmem:[%s17396_s1 + $0x5b8] sm:$0xff] }
 0x4f8   :  { %v14890_v56 = vpop.permute.xlu1 %4178  ;;  %4498 = vperm.xlu1 %7101, %v3604_v57   ;;  %v14892_v2 = vpop.permute.xlu0 %4233  ;;  %7466 = vrsqrt.f32 %v3169_v48  ;;  %v18812_v48 = vld [vmem:[#allocation204_spill] sm:$0xff]  ;;  %v18813_v26 = vld [vmem:[#allocation221_spill] sm:$0xff] }
 0x4f9   :  { %18802 = vst [vmem:[#allocation198_spill] sm:$0xff] %v14890_v56  ;;  %18803 = vst [vmem:[#allocation215_spill] sm:$0xff] %v14892_v2  ;;  %4553 = vperm.xlu0 %7100, %v3615_v29   ;;  %v7455_v57 = vpop.eup %7454  ;;  %v3160_v29 = vadd.f32 0.001, %v18808_v40  ;;  %v3173_v33 = vadd.f32 0.001, %v18813_v26 }
 0x4fa   :  { %v7457_v59 = vpop.eup %7456  ;;  %v3619_v8 = vmul.f32 %v7455_v57, %v2707_v51  ;;  %v2702_v26 = vld [vmem:[%s17396_s1 + $0x580] sm:$0xff] }
 0x4fb   :  { %7468 = vrsqrt.f32 %v3160_v29  ;;  %v3610_v57 = vmul.f32 %v7457_v59, %v2698_v13  ;;  %v2711_v29 = vld [vmem:[%s17396_s1 + $0x5c8] sm:$0xff] }
 0x4fc   :  { %v14902_v2 = vpop.permute.xlu1 %4188  ;;  %4508 = vperm.xlu1 %7101, %v3606_v58   ;;  %v14904_v56 = vpop.permute.xlu0 %4243  ;;  %7470 = vrsqrt.f32 %v3171_v27  ;;  %v18816_v27 = vld [vmem:[#allocation206_spill] sm:$0xff]  ;;  %v18817_v59 = vld [vmem:[#allocation223_spill] sm:$0xff] }
 0x4fd   :  { %18806 = vst [vmem:[#allocation200_spill] sm:$0xff] %v14902_v2  ;;  %18807 = vst [vmem:[#allocation217_spill] sm:$0xff] %v14904_v56  ;;  %4563 = vperm.xlu0 %7100, %v3617_v5   ;;  %v7459_v58 = vpop.eup %7458  ;;  %v3162_v5 = vadd.f32 0.001, %v18812_v48  ;;  %v3175_v13 = vadd.f32 0.001, %v18817_v59 }
 0x4fe   :  { %v7461_v51 = vpop.eup %7460  ;;  %v3621_v40 = vmul.f32 %v7459_v58, %v2709_v62  ;;  %v2704_v59 = vld [vmem:[%s17396_s1 + $0x590] sm:$0xff] }
 0x4ff   :  { %7472 = vrsqrt.f32 %v3162_v5  ;;  %v3612_v58 = vmul.f32 %v7461_v51, %v2700_v4  ;;  %v2713_v5 = vld [vmem:[%s17396_s1 + $0x5d8] sm:$0xff] }
 0x500   :  { %v14914_v56 = vpop.permute.xlu1 %4198  ;;  %4518 = vperm.xlu1 %7101, %v3608_v36   ;;  %v14916_v2 = vpop.permute.xlu0 %4253  ;;  %7474 = vrsqrt.f32 %v3173_v33  ;;  %v18820_v33 = vld [vmem:[#allocation208_spill] sm:$0xff]  ;;  %v18821_v51 = vld [vmem:[#allocation225_spill] sm:$0xff] }
 0x501   :  { %18810 = vst [vmem:[#allocation202_spill] sm:$0xff] %v14914_v56  ;;  %18811 = vst [vmem:[#allocation219_spill] sm:$0xff] %v14916_v2  ;;  %4573 = vperm.xlu0 %7100, %v3619_v8   ;;  %v7463_v36 = vpop.eup %7462  ;;  %v3164_v8 = vadd.f32 0.001, %v18816_v27  ;;  %v3177_v4 = vadd.f32 0.001, %v18821_v51 }
 0x502   :  { %v7465_v62 = vpop.eup %7464  ;;  %v3623_v48 = vmul.f32 %v7463_v36, %v2711_v29  ;;  %v2706_v51 = vld [vmem:[%s17396_s1 + $0x5a0] sm:$0xff] }
 0x503   :  { %7476 = vrsqrt.f32 %v3164_v8  ;;  %v3614_v36 = vmul.f32 %v7465_v62, %v2702_v26  ;;  %v2715_v8 = vld [vmem:[%s17396_s1 + $0x5e8] sm:$0xff] }
 0x504   :  { %v14926_v2 = vpop.permute.xlu1 %4208  ;;  %4528 = vperm.xlu1 %7101, %v3610_v57   ;;  %v14928_v56 = vpop.permute.xlu0 %4263  ;;  %7478 = vrsqrt.f32 %v3175_v13  ;;  %v18824_v13 = vld [vmem:[#allocation210_spill] sm:$0xff]  ;;  %v18825_v62 = vld [vmem:[#allocation227_spill] sm:$0xff] }
 0x505   :  { %18814 = vst [vmem:[#allocation204_spill] sm:$0xff] %v14926_v2  ;;  %18815 = vst [vmem:[#allocation221_spill] sm:$0xff] %v14928_v56  ;;  %4583 = vperm.xlu0 %7100, %v3621_v40   ;;  %v7467_v57 = vpop.eup %7466  ;;  %v3166_v40 = vadd.f32 0.001, %v18820_v33  ;;  %v3179_v26 = vadd.f32 0.001, %v18825_v62 }
 0x506   :  { %v7469_v29 = vpop.eup %7468  ;;  %v3625_v27 = vmul.f32 %v7467_v57, %v2713_v5  ;;  %v2708_v62 = vld [vmem:[%s17396_s1 + $0x5b0] sm:$0xff] }
 0x507   :  { %7480 = vrsqrt.f32 %v3166_v40  ;;  %v3616_v57 = vmul.f32 %v7469_v29, %v2704_v59  ;;  %v2717_v40 = vld [vmem:[%s17396_s1 + $0x5f8] sm:$0xff] }
 0x508   :  { %v14938_v56 = vpop.permute.xlu1 %4218  ;;  %4538 = vperm.xlu1 %7101, %v3612_v58   ;;  %v14940_v2 = vpop.permute.xlu0 %4273  ;;  %7482 = vrsqrt.f32 %v3177_v4  ;;  %v18828_v4 = vld [vmem:[#allocation212_spill] sm:$0xff]  ;;  %v18829_v29 = vld [vmem:[#allocation229_spill] sm:$0xff] }
 0x509   :  { %18818 = vst [vmem:[#allocation206_spill] sm:$0xff] %v14938_v56  ;;  %18819 = vst [vmem:[#allocation223_spill] sm:$0xff] %v14940_v2  ;;  %4593 = vperm.xlu0 %7100, %v3623_v48   ;;  %v7471_v58 = vpop.eup %7470  ;;  %v3168_v48 = vadd.f32 0.001, %v18824_v13  ;;  %v3181_v59 = vadd.f32 0.001, %v18829_v29 }
 0x50a   :  { %v7473_v5 = vpop.eup %7472  ;;  %v3627_v33 = vmul.f32 %v7471_v58, %v2715_v8  ;;  %v2710_v29 = vld [vmem:[%s17396_s1 + $0x5c0] sm:$0xff] }
 0x50b   :  { %7484 = vrsqrt.f32 %v3168_v48  ;;  %v3618_v58 = vmul.f32 %v7473_v5, %v2706_v51  ;;  %v2719_v48 = vld [vmem:[%s17396_s1 + $0x608] sm:$0xff] }
 0x50c   :  { %v14950_v2 = vpop.permute.xlu1 %4228  ;;  %4548 = vperm.xlu1 %7101, %v3614_v36   ;;  %v14952_v56 = vpop.permute.xlu0 %4283  ;;  %7486 = vrsqrt.f32 %v3179_v26  ;;  %v18832_v26 = vld [vmem:[#allocation214_spill] sm:$0xff]  ;;  %v18833_v5 = vld [vmem:[#allocation231_spill] sm:$0xff] }
 0x50d   :  { %18822 = vst [vmem:[#allocation208_spill] sm:$0xff] %v14950_v2  ;;  %18823 = vst [vmem:[#allocation225_spill] sm:$0xff] %v14952_v56  ;;  %4603 = vperm.xlu0 %7100, %v3625_v27   ;;  %v7475_v36 = vpop.eup %7474  ;;  %v3170_v27 = vadd.f32 0.001, %v18828_v4  ;;  %v3183_v51 = vadd.f32 0.001, %v18833_v5 }
 0x50e   :  { %v7477_v8 = vpop.eup %7476  ;;  %v3629_v13 = vmul.f32 %v7475_v36, %v2717_v40  ;;  %v2712_v5 = vld [vmem:[%s17396_s1 + $0x5d0] sm:$0xff] }
 0x50f   :  { %7488 = vrsqrt.f32 %v3170_v27  ;;  %v3620_v36 = vmul.f32 %v7477_v8, %v2708_v62  ;;  %v2721_v27 = vld [vmem:[%s17396_s1 + $0x618] sm:$0xff] }
 0x510   :  { %v14962_v56 = vpop.permute.xlu1 %4238  ;;  %4558 = vperm.xlu1 %7101, %v3616_v57   ;;  %v14964_v2 = vpop.permute.xlu0 %4293  ;;  %7490 = vrsqrt.f32 %v3181_v59  ;;  %v18836_v59 = vld [vmem:[#allocation216_spill] sm:$0xff]  ;;  %v18837_v8 = vld [vmem:[#allocation233_spill] sm:$0xff] }
 0x511   :  { %18826 = vst [vmem:[#allocation210_spill] sm:$0xff] %v14962_v56  ;;  %18827 = vst [vmem:[#allocation227_spill] sm:$0xff] %v14964_v2  ;;  %4613 = vperm.xlu0 %7100, %v3627_v33   ;;  %v7479_v57 = vpop.eup %7478  ;;  %v3172_v33 = vadd.f32 0.001, %v18832_v26  ;;  %v3185_v62 = vadd.f32 0.001, %v18837_v8 }
 0x512   :  { %v7481_v40 = vpop.eup %7480  ;;  %v3631_v4 = vmul.f32 %v7479_v57, %v2719_v48  ;;  %v2714_v8 = vld [vmem:[%s17396_s1 + $0x5e0] sm:$0xff] }
 0x513   :  { %7492 = vrsqrt.f32 %v3172_v33  ;;  %v3622_v57 = vmul.f32 %v7481_v40, %v2710_v29  ;;  %v2723_v33 = vld [vmem:[%s17396_s1 + $0x628] sm:$0xff] }
 0x514   :  { %v14974_v2 = vpop.permute.xlu1 %4248  ;;  %4568 = vperm.xlu1 %7101, %v3618_v58   ;;  %v14976_v56 = vpop.permute.xlu0 %4303  ;;  %7494 = vrsqrt.f32 %v3183_v51  ;;  %v18840_v51 = vld [vmem:[#allocation218_spill] sm:$0xff]  ;;  %v18841_v40 = vld [vmem:[#allocation235_spill] sm:$0xff] }
 0x515   :  { %18830 = vst [vmem:[#allocation212_spill] sm:$0xff] %v14974_v2  ;;  %18831 = vst [vmem:[#allocation229_spill] sm:$0xff] %v14976_v56  ;;  %4623 = vperm.xlu0 %7100, %v3629_v13   ;;  %v7483_v58 = vpop.eup %7482  ;;  %v3174_v13 = vadd.f32 0.001, %v18836_v59  ;;  %v3187_v29 = vadd.f32 0.001, %v18841_v40 }
 0x516   :  { %v7485_v48 = vpop.eup %7484  ;;  %v3633_v26 = vmul.f32 %v7483_v58, %v2721_v27  ;;  %v2716_v40 = vld [vmem:[%s17396_s1 + $0x5f0] sm:$0xff] }
 0x517   :  { %7496 = vrsqrt.f32 %v3174_v13  ;;  %v3624_v58 = vmul.f32 %v7485_v48, %v2712_v5  ;;  %v2725_v13 = vld [vmem:[%s17396_s1 + $0x638] sm:$0xff] }
 0x518   :  { %v14986_v56 = vpop.permute.xlu1 %4258  ;;  %4578 = vperm.xlu1 %7101, %v3620_v36   ;;  %v14988_v2 = vpop.permute.xlu0 %4313  ;;  %7498 = vrsqrt.f32 %v3185_v62  ;;  %v18844_v62 = vld [vmem:[#allocation220_spill] sm:$0xff]  ;;  %v18845_v48 = vld [vmem:[#allocation237_spill] sm:$0xff] }
 0x519   :  { %18834 = vst [vmem:[#allocation214_spill] sm:$0xff] %v14986_v56  ;;  %18835 = vst [vmem:[#allocation231_spill] sm:$0xff] %v14988_v2  ;;  %4633 = vperm.xlu0 %7100, %v3631_v4   ;;  %v7487_v36 = vpop.eup %7486  ;;  %v3176_v4 = vadd.f32 0.001, %v18840_v51  ;;  %v3189_v5 = vadd.f32 0.001, %v18845_v48 }
 0x51a   :  { %v7489_v27 = vpop.eup %7488  ;;  %v3635_v59 = vmul.f32 %v7487_v36, %v2723_v33  ;;  %v2718_v48 = vld [vmem:[%s17396_s1 + $0x600] sm:$0xff] }
 0x51b   :  { %7500 = vrsqrt.f32 %v3176_v4  ;;  %v3626_v36 = vmul.f32 %v7489_v27, %v2714_v8  ;;  %v2727_v4 = vld [vmem:[%s17396_s1 + $0x648] sm:$0xff] }
 0x51c   :  { %v14998_v2 = vpop.permute.xlu1 %4268  ;;  %4588 = vperm.xlu1 %7101, %v3622_v57   ;;  %v15000_v56 = vpop.permute.xlu0 %4323  ;;  %7502 = vrsqrt.f32 %v3187_v29  ;;  %v18848_v29 = vld [vmem:[#allocation222_spill] sm:$0xff]  ;;  %v18849_v27 = vld [vmem:[#allocation239_spill] sm:$0xff] }
 0x51d   :  { %18838 = vst [vmem:[#allocation216_spill] sm:$0xff] %v14998_v2  ;;  %18839 = vst [vmem:[#allocation233_spill] sm:$0xff] %v15000_v56  ;;  %4643 = vperm.xlu0 %7100, %v3633_v26   ;;  %v7491_v57 = vpop.eup %7490  ;;  %v3178_v26 = vadd.f32 0.001, %v18844_v62  ;;  %v3191_v8 = vadd.f32 0.001, %v18849_v27 }
 0x51e   :  { %v7493_v33 = vpop.eup %7492  ;;  %v3637_v51 = vmul.f32 %v7491_v57, %v2725_v13  ;;  %v2720_v27 = vld [vmem:[%s17396_s1 + $0x610] sm:$0xff] }
 0x51f   :  { %7504 = vrsqrt.f32 %v3178_v26  ;;  %v3628_v57 = vmul.f32 %v7493_v33, %v2716_v40  ;;  %v2729_v26 = vld [vmem:[%s17396_s1 + $0x658] sm:$0xff] }
 0x520   :  { %v15010_v56 = vpop.permute.xlu1 %4278  ;;  %4598 = vperm.xlu1 %7101, %v3624_v58   ;;  %v15012_v2 = vpop.permute.xlu0 %4333  ;;  %7506 = vrsqrt.f32 %v3189_v5  ;;  %v18852_v5 = vld [vmem:[#allocation224_spill] sm:$0xff]  ;;  %v18853_v33 = vld [vmem:[#allocation241_spill] sm:$0xff] }
 0x521   :  { %18842 = vst [vmem:[#allocation218_spill] sm:$0xff] %v15010_v56  ;;  %18843 = vst [vmem:[#allocation235_spill] sm:$0xff] %v15012_v2  ;;  %4653 = vperm.xlu0 %7100, %v3635_v59   ;;  %v7495_v58 = vpop.eup %7494  ;;  %v3180_v59 = vadd.f32 0.001, %v18848_v29  ;;  %v3193_v40 = vadd.f32 0.001, %v18853_v33 }
 0x522   :  { %v7497_v13 = vpop.eup %7496  ;;  %v3639_v62 = vmul.f32 %v7495_v58, %v2727_v4  ;;  %v2722_v33 = vld [vmem:[%s17396_s1 + $0x620] sm:$0xff] }
 0x523   :  { %7508 = vrsqrt.f32 %v3180_v59  ;;  %v3630_v58 = vmul.f32 %v7497_v13, %v2718_v48  ;;  %v2731_v59 = vld [vmem:[%s17396_s1 + $0x668] sm:$0xff] }
 0x524   :  { %v15022_v2 = vpop.permute.xlu1 %4288  ;;  %4608 = vperm.xlu1 %7101, %v3626_v36   ;;  %v15024_v56 = vpop.permute.xlu0 %4343  ;;  %7510 = vrsqrt.f32 %v3191_v8  ;;  %v18856_v8 = vld [vmem:[#allocation226_spill] sm:$0xff]  ;;  %v18857_v13 = vld [vmem:[#allocation243_spill] sm:$0xff] }
 0x525   :  { %18846 = vst [vmem:[#allocation220_spill] sm:$0xff] %v15022_v2  ;;  %18847 = vst [vmem:[#allocation237_spill] sm:$0xff] %v15024_v56  ;;  %4663 = vperm.xlu0 %7100, %v3637_v51   ;;  %v7499_v36 = vpop.eup %7498  ;;  %v3182_v51 = vadd.f32 0.001, %v18852_v5  ;;  %v3195_v48 = vadd.f32 0.001, %v18857_v13 }
 0x526   :  { %v7501_v4 = vpop.eup %7500  ;;  %v3641_v29 = vmul.f32 %v7499_v36, %v2729_v26  ;;  %v2724_v13 = vld [vmem:[%s17396_s1 + $0x630] sm:$0xff] }
 0x527   :  { %7512 = vrsqrt.f32 %v3182_v51  ;;  %v3632_v36 = vmul.f32 %v7501_v4, %v2720_v27  ;;  %v2733_v51 = vld [vmem:[%s17396_s1 + $0x678] sm:$0xff] }
 0x528   :  { %v15034_v56 = vpop.permute.xlu1 %4298  ;;  %4618 = vperm.xlu1 %7101, %v3628_v57   ;;  %v15036_v2 = vpop.permute.xlu0 %4353  ;;  %7514 = vrsqrt.f32 %v3193_v40  ;;  %v18860_v40 = vld [vmem:[#allocation228_spill] sm:$0xff]  ;;  %v18861_v4 = vld [vmem:[#allocation245_spill] sm:$0xff] }
 0x529   :  { %18850 = vst [vmem:[#allocation222_spill] sm:$0xff] %v15034_v56  ;;  %18851 = vst [vmem:[#allocation239_spill] sm:$0xff] %v15036_v2  ;;  %4673 = vperm.xlu0 %7100, %v3639_v62   ;;  %v7503_v57 = vpop.eup %7502  ;;  %v3184_v62 = vadd.f32 0.001, %v18856_v8  ;;  %v3197_v27 = vadd.f32 0.001, %v18861_v4 }
 0x52a   :  { %v7505_v26 = vpop.eup %7504  ;;  %v3643_v5 = vmul.f32 %v7503_v57, %v2731_v59  ;;  %v2726_v4 = vld [vmem:[%s17396_s1 + $0x640] sm:$0xff] }
 0x52b   :  { %7516 = vrsqrt.f32 %v3184_v62  ;;  %v3634_v57 = vmul.f32 %v7505_v26, %v2722_v33  ;;  %v2735_v62 = vld [vmem:[%s17396_s1 + $0x688] sm:$0xff] }
 0x52c   :  { %v15046_v2 = vpop.permute.xlu1 %4308  ;;  %4628 = vperm.xlu1 %7101, %v3630_v58   ;;  %v15048_v56 = vpop.permute.xlu0 %4363  ;;  %7518 = vrsqrt.f32 %v3195_v48  ;;  %v18864_v48 = vld [vmem:[#allocation230_spill] sm:$0xff]  ;;  %v18865_v26 = vld [vmem:[#allocation247_spill] sm:$0xff] }
 0x52d   :  { %18854 = vst [vmem:[#allocation224_spill] sm:$0xff] %v15046_v2  ;;  %18855 = vst [vmem:[#allocation241_spill] sm:$0xff] %v15048_v56  ;;  %4683 = vperm.xlu0 %7100, %v3641_v29   ;;  %v7507_v58 = vpop.eup %7506  ;;  %v3186_v29 = vadd.f32 0.001, %v18860_v40  ;;  %v3199_v33 = vadd.f32 0.001, %v18865_v26 }
 0x52e   :  { %v7509_v59 = vpop.eup %7508  ;;  %v3645_v8 = vmul.f32 %v7507_v58, %v2733_v51  ;;  %v2728_v26 = vld [vmem:[%s17396_s1 + $0x650] sm:$0xff] }
 0x52f   :  { %7520 = vrsqrt.f32 %v3186_v29  ;;  %v3636_v58 = vmul.f32 %v7509_v59, %v2724_v13  ;;  %v2737_v29 = vld [vmem:[%s17396_s1 + $0x698] sm:$0xff] }
 0x530   :  { %v15058_v56 = vpop.permute.xlu1 %4318  ;;  %4638 = vperm.xlu1 %7101, %v3632_v36   ;;  %v15060_v2 = vpop.permute.xlu0 %4373  ;;  %7522 = vrsqrt.f32 %v3197_v27  ;;  %v18868_v27 = vld [vmem:[#allocation232_spill] sm:$0xff]  ;;  %v18869_v59 = vld [vmem:[#allocation249_spill] sm:$0xff] }
 0x531   :  { %18858 = vst [vmem:[#allocation226_spill] sm:$0xff] %v15058_v56  ;;  %18859 = vst [vmem:[#allocation243_spill] sm:$0xff] %v15060_v2  ;;  %4693 = vperm.xlu0 %7100, %v3643_v5   ;;  %v7511_v36 = vpop.eup %7510  ;;  %v3188_v5 = vadd.f32 0.001, %v18864_v48  ;;  %v3201_v13 = vadd.f32 0.001, %v18869_v59 }
 0x532   :  { %v7513_v51 = vpop.eup %7512  ;;  %v3647_v40 = vmul.f32 %v7511_v36, %v2735_v62  ;;  %v2730_v59 = vld [vmem:[%s17396_s1 + $0x660] sm:$0xff] }
 0x533   :  { %7524 = vrsqrt.f32 %v3188_v5  ;;  %v3638_v36 = vmul.f32 %v7513_v51, %v2726_v4  ;;  %v2739_v5 = vld [vmem:[%s17396_s1 + $0x6a8] sm:$0xff] }
 0x534   :  { %v15070_v2 = vpop.permute.xlu1 %4328  ;;  %4648 = vperm.xlu1 %7101, %v3634_v57   ;;  %v15072_v56 = vpop.permute.xlu0 %4383  ;;  %7526 = vrsqrt.f32 %v3199_v33  ;;  %v18872_v33 = vld [vmem:[#allocation234_spill] sm:$0xff]  ;;  %v18873_v51 = vld [vmem:[#allocation251_spill] sm:$0xff] }
 0x535   :  { %18862 = vst [vmem:[#allocation228_spill] sm:$0xff] %v15070_v2  ;;  %18863 = vst [vmem:[#allocation245_spill] sm:$0xff] %v15072_v56  ;;  %4703 = vperm.xlu0 %7100, %v3645_v8   ;;  %v7515_v57 = vpop.eup %7514  ;;  %v3190_v8 = vadd.f32 0.001, %v18868_v27  ;;  %v3203_v4 = vadd.f32 0.001, %v18873_v51 }
 0x536   :  { %v7517_v62 = vpop.eup %7516  ;;  %v3649_v48 = vmul.f32 %v7515_v57, %v2737_v29 }
 0x537   :  { %7528 = vrsqrt.f32 %v3190_v8  ;;  %v3640_v57 = vmul.f32 %v7517_v62, %v2728_v26  ;;  %v2741_v8 = vld [vmem:[%s17396_s1 + $0x6b8] sm:$0xff]  ;;  %v3205_v62 = vadd.f32 0.001, %v14182_v6 }
 0x538   :  { %v15082_v56 = vpop.permute.xlu1 %4338  ;;  %4658 = vperm.xlu1 %7101, %v3636_v58   ;;  %v15084_v2 = vpop.permute.xlu0 %4393  ;;  %7530 = vrsqrt.f32 %v3201_v13  ;;  %v18875_v13 = vld [vmem:[#allocation236_spill] sm:$0xff] }
 0x539   :  { %18866 = vst [vmem:[#allocation230_spill] sm:$0xff] %v15082_v56  ;;  %18867 = vst [vmem:[#allocation247_spill] sm:$0xff] %v15084_v2  ;;  %4713 = vperm.xlu0 %7100, %v3647_v40   ;;  %v7519_v58 = vpop.eup %7518  ;;  %v3192_v40 = vadd.f32 0.001, %v18872_v33  ;;  %v2732_v33 = vld [vmem:[%s17396_s1 + $0x670] sm:$0xff] }
 0x53a   :  { %v7521_v29 = vpop.eup %7520  ;;  %v3651_v27 = vmul.f32 %v7519_v58, %v2739_v5 }
 0x53b   :  { %7532 = vrsqrt.f32 %v3192_v40  ;;  %v3642_v26 = vmul.f32 %v7521_v29, %v2730_v59  ;;  %v2743_v40 = vld [vmem:[%s17396_s1 + $0x6c8] sm:$0xff]  ;;  %v3207_v29 = vadd.f32 0.001, %v14204_v43 }
 0x53c   :  { %v15094_v2 = vpop.permute.xlu1 %4348  ;;  %4668 = vperm.xlu1 %7101, %v3638_v36   ;;  %v15096_v56 = vpop.permute.xlu0 %4403  ;;  %7534 = vrsqrt.f32 %v3203_v4  ;;  %v18877_v4 = vld [vmem:[#allocation238_spill] sm:$0xff] }
 0x53d   :  { %18870 = vst [vmem:[#allocation232_spill] sm:$0xff] %v15094_v2  ;;  %18871 = vst [vmem:[#allocation249_spill] sm:$0xff] %v15096_v56  ;;  %4723 = vperm.xlu0 %7100, %v3649_v48   ;;  %v7523_v36 = vpop.eup %7522  ;;  %v3194_v48 = vadd.f32 0.001, %v18875_v13  ;;  %v3196_v6 = vadd.f32 0.001, %v18877_v4 }
 0x53e   :  { %v7525_v58 = vpop.eup %7524  ;;  %v3653_v5 = vmul.f32 %v7523_v36, %v2741_v8  ;;  %v2734_v8 = vld [vmem:[%s17396_s1 + $0x680] sm:$0xff] }
 0x53f   :  { %v7527_v51 = vpop.eup %7526  ;;  %7536 = vrsqrt.f32 %v3194_v48  ;;  %v2745_v48 = vld [vmem:[%s17396_s1 + $0x6d8] sm:$0xff] }
 0x540   :  { %v15106_v56 = vpop.permute.xlu1 %4358  ;;  %4678 = vperm.xlu1 %7101, %v3640_v57   ;;  %v15108_v2 = vpop.permute.xlu0 %4413  ;;  %7538 = vrsqrt.f32 %v3205_v62  ;;  %v3655_v36 = vmul.f32 %v7527_v51, %v2743_v40  ;;  %v18879_v62 = vld [vmem:[#allocation240_spill] sm:$0xff] }
 0x541   :  { %18874 = vst [vmem:[#allocation234_spill] sm:$0xff] %v15108_v2  ;;  %4733 = vperm.xlu0 %7100, %v3651_v27   ;;  %v3644_v27 = vmul.f32 %v7525_v58, %v2732_v33  ;;  %v7529_v59 = vpop.eup %7528  ;;  %7540 = vrsqrt.f32 %v3196_v6  ;;  %v3198_v43 = vadd.f32 0.001, %v18879_v62  ;;  %v3209_v58 = vadd.f32 0.001, %v14226_v54  ;;  %v2736_v40 = vld [vmem:[%s17396_s1 + $0x690] sm:$0xff] }
 0x542   :  { %v7531_v13 = vpop.eup %7530  ;;  %7542 = vrsqrt.f32 %v3207_v29  ;;  %v2747_v6 = vld [vmem:[%s17396_s1 + $0x6e8] sm:$0xff]  ;;  %v18880_v29 = vld [vmem:[#allocation242_spill] sm:$0xff] }
 0x543   :  { %v3657_v51 = vmul.f32 %v7531_v13, %v2745_v48  ;;  %7544 = vrsqrt.f32 %v3198_v43  ;;  %v3200_v54 = vadd.f32 0.001, %v18880_v29  ;;  %v2738_v13 = vld [vmem:[%s17396_s1 + $0x6a0] sm:$0xff]  ;;  %v2749_v43 = vld [vmem:[%s17396_s1 + $0x6f8] sm:$0xff] }
 0x544   :  { %v15118_v57 = vpop.permute.xlu1 %4368  ;;  %4688 = vperm.xlu1 %7101, %v3642_v26   ;;  %v15120_v2 = vpop.permute.xlu0 %4423  ;;  %7546 = vrsqrt.f32 %v3209_v58 }
 0x545   :  { %18876 = vst [vmem:[#allocation251_spill] sm:$0xff] %v15120_v2  ;;  %4743 = vperm.xlu0 %7100, %v3653_v5   ;;  %v3646_v5 = vmul.f32 %v7529_v59, %v2734_v8  ;;  %v7533_v33 = vpop.eup %7532  ;;  %7548 = vrsqrt.f32 %v3200_v54  ;;  %v2751_v54 = vld [vmem:[%s17396_s1 + $0x708] sm:$0xff] }
 0x546   :  { %v7535_v4 = vpop.eup %7534  ;;  %v3648_v59 = vmul.f32 %v7533_v33, %v2736_v40 }
 0x547   :  { %v3659_v8 = vmul.f32 %v7535_v4, %v2747_v6  ;;  %v2740_v6 = vld [vmem:[%s17396_s1 + $0x6b0] sm:$0xff] }
 0x548   :  { %v15130_v26 = vpop.permute.xlu1 %4378  ;;  %4698 = vperm.xlu1 %7101, %v3644_v27   ;;  %v15132_v2 = vpop.permute.xlu0 %4433 }
 0x549   :  { %18878 = vst [vmem:[#allocation236_spill] sm:$0xff] %v15132_v2  ;;  %4753 = vperm.xlu0 %7100, %v3655_v36   ;;  %v7537_v36 = vpop.eup %7536 }
 0x54a   :  { %v7539_v48 = vpop.eup %7538  ;;  %v3650_v33 = vmul.f32 %v7537_v36, %v2738_v13 }
 0x54b   :  { %v7541_v40 = vpop.eup %7540  ;;  %v3661_v4 = vmul.f32 %v7539_v48, %v2749_v43  ;;  %v2742_v43 = vld [vmem:[%s17396_s1 + $0x6c0] sm:$0xff] }
 0x54c   :  { %v15142_v27 = vpop.permute.xlu1 %4388  ;;  %4708 = vperm.xlu1 %7101, %v3646_v5   ;;  %v15144_v2 = vpop.permute.xlu0 %4443  ;;  %v3652_v36 = vmul.f32 %v7541_v40, %v2740_v6 }
 0x54d   :  { %4763 = vperm.xlu0 %7100, %v3657_v51   ;;  %v18883_v51 = vld [vmem:[#allocation244_spill] sm:$0xff]  ;;  %v7543_v29 = vpop.eup %7542 }
 0x54e   :  { %v3202_v58 = vadd.f32 0.001, %v18883_v51  ;;  %v18886_v51 = vld [vmem:[#allocation253_spill] sm:$0xff]  ;;  %v7545_v13 = vpop.eup %7544  ;;  %v3663_v48 = vmul.f32 %v7543_v29, %v2751_v54  ;;  %v2744_v54 = vld [vmem:[%s17396_s1 + $0x6d0] sm:$0xff] }
 0x54f   :  { %v3654_v40 = vmul.f32 %v7545_v13, %v2742_v43  ;;  %v2755_v13 = vld [vmem:[%s17397_s2 + $0x8] sm:$0xff] }
 0x550   :  { %v15153_v62 = vpop.permute.xlu1 %4398  ;;  %4718 = vperm.xlu1 %7101, %v3648_v59   ;;  %v15155_v5 = vpop.permute.xlu0 %4453  ;;  %7550 = vrsqrt.f32 %v3202_v58  ;;  %v2753_v58 = vld [vmem:[%s17396_s1 + $0x718] sm:$0xff] }
 0x551   :  { %18881 = vst [vmem:[#allocation238_spill] sm:$0xff] %v15153_v62  ;;  %18882 = vst [vmem:[#allocation240_spill] sm:$0xff] %v15155_v5  ;;  %4773 = vperm.xlu0 %7100, %v3659_v8   ;;  %v3204_v8 = vadd.f32 0.001, %v18886_v51  ;;  %v7547_v5 = vpop.eup %7546  ;;  %v18889_v51 = vld [vmem:[#allocation246_spill] sm:$0xff] }
 0x552   :  { %v7549_v6 = vpop.eup %7548  ;;  %v3665_v29 = vmul.f32 %v7547_v5, %v2753_v58  ;;  %v2746_v5 = vld [vmem:[%s17396_s1 + $0x6e0] sm:$0xff] }
 0x553   :  { %7552 = vrsqrt.f32 %v3204_v8  ;;  %v3656_v8 = vmul.f32 %v7549_v6, %v2744_v54 }
 0x554   :  { %v15164_v62 = vpop.permute.xlu1 %4408  ;;  %4728 = vperm.xlu1 %7101, %v3650_v33   ;;  %v15166_v59 = vpop.permute.xlu0 %4463 }
 0x555   :  { %18884 = vst [vmem:[#allocation242_spill] sm:$0xff] %v15164_v62  ;;  %18885 = vst [vmem:[#allocation244_spill] sm:$0xff] %v15166_v59  ;;  %4783 = vperm.xlu0 %7100, %v3661_v4   ;;  %v3206_v4 = vadd.f32 0.001, %v18889_v51 }
 0x557   :  { %7554 = vrsqrt.f32 %v3206_v4 }
 0x558   :  { %v15175_v62 = vpop.permute.xlu1 %4418  ;;  %4738 = vperm.xlu1 %7101, %v3652_v36   ;;  %v15177_v33 = vpop.permute.xlu0 %4473 }
 0x559   :  { %18887 = vst [vmem:[#allocation253_spill] sm:$0xff] %v15175_v62  ;;  %18888 = vst [vmem:[#allocation340_spill] sm:$0xff] %v15177_v33  ;;  %4793 = vperm.xlu0 %7100, %v3663_v48   ;;  %v18890_v33 = vld [vmem:[#allocation255_spill] sm:$0xff] }
 0x55a   :  { %v3208_v62 = vadd.f32 0.001, %v18890_v33  ;;  %v7551_v48 = vpop.eup %7550  ;;  %v2757_v33 = vld [vmem:[%s17397_s2 + $0x18] sm:$0xff] }
 0x55b   :  { %v3658_v51 = vmul.f32 %v7551_v48, %v2746_v5 }
 0x55c   :  { %v15186_v59 = vpop.permute.xlu1 %4428  ;;  %4748 = vperm.xlu1 %7101, %v3654_v40   ;;  %v15188_v36 = vpop.permute.xlu0 %4483  ;;  %7556 = vrsqrt.f32 %v3208_v62  ;;  %v2748_v40 = vld [vmem:[%s17396_s1 + $0x6f0] sm:$0xff]  ;;  %v2759_v62 = vld [vmem:[%s17397_s2 + $0x28] sm:$0xff] }
 0x55d   :  { %4803 = vperm.xlu0 %7100, %v3665_v29   ;;  %v7553_v4 = vpop.eup %7552 }
 0x55e   :  { %v3660_v54 = vmul.f32 %v7553_v4, %v2748_v40  ;;  %v2752_v40 = vld [vmem:[%s17396_s1 + $0x710] sm:$0xff] }
 0x560   :  { %v15197_v43 = vpop.permute.xlu1 %4438  ;;  %4758 = vperm.xlu1 %7101, %v3656_v8   ;;  %v15199_v58 = vpop.permute.xlu0 %4493 }
 0x561   :  { %5041 = vperm.xlu0 %7100, %v2755_v13   ;;  %v7555_v8 = vpop.eup %7554  ;;  %v2750_v13 = vld [vmem:[%s17396_s1 + $0x700] sm:$0xff] }
 0x564   :  { %v15207_v6 = vpop.permute.xlu1 %4448  ;;  %4768 = vperm.xlu1 %7101, %v3658_v51   ;;  %v15209_v29 = vpop.permute.xlu0 %4503  ;;  %v3662_v51 = vmul.f32 %v7555_v8, %v2750_v13 }
 0x565   :  { %18891 = vst [vmem:[#allocation246_spill] sm:$0xff] %v15207_v6  ;;  %18892 = vst [vmem:[#allocation255_spill] sm:$0xff] %v15209_v29  ;;  %5051 = vperm.xlu0 %7100, %v2757_v33   ;;  %v2761_v33 = vld [vmem:[%s17397_s2 + $0x38] sm:$0xff] }
 0x566   :  { %v7557_v4 = vpop.eup %7556 }
 0x568   :  { %v15217_v48 = vpop.permute.xlu1 %4458  ;;  %4778 = vperm.xlu1 %7101, %v3660_v54   ;;  %v15219_v5 = vpop.permute.xlu0 %4513  ;;  %v3664_v54 = vmul.f32 %v7557_v4, %v2752_v40  ;;  %v2756_v40 = vld [vmem:[%s17397_s2 + $0x10] sm:$0xff] }
 0x569   :  { %18893 = vst [vmem:[#allocation341_spill] sm:$0xff] %v15217_v48  ;;  %18894 = vst [vmem:[#allocation342_spill] sm:$0xff] %v15219_v5  ;;  %5061 = vperm.xlu0 %7100, %v2759_v62   ;;  %v2763_v62 = vld [vmem:[%s17397_s2 + $0x48] sm:$0xff]  ;;  %v2754_v5 = vld [vmem:[%s17397_s2] sm:$0xff] }
 0x56c   :  { %v15227_v29 = vpop.permute.xlu1 %4468  ;;  %4788 = vperm.xlu1 %7101, %v3662_v51   ;;  %v15229_v6 = vpop.permute.xlu0 %4523  ;;  %v2765_v51 = vld [vmem:[%s17397_s2 + $0x58] sm:$0xff] }
 0x56d   :  { %18895 = vst [vmem:[#allocation343_spill] sm:$0xff] %v15227_v29  ;;  %18896 = vst [vmem:[#allocation344_spill] sm:$0xff] %v15229_v6  ;;  %5071 = vperm.xlu0 %7100, %v2761_v33  }
 0x570   :  { %v15234_v8 = vpop.permute.xlu1 %4478  ;;  %4798 = vperm.xlu1 %7101, %v3664_v54   ;;  %v15236_v13 = vpop.permute.xlu0 %4533  ;;  %v2767_v54 = vld [vmem:[%s17397_s2 + $0x68] sm:$0xff] }
 0x571   :  { %18897 = vst [vmem:[#allocation345_spill] sm:$0xff] %v15234_v8  ;;  %18898 = vst [vmem:[#allocation346_spill] sm:$0xff] %v15236_v13  ;;  %5081 = vperm.xlu0 %7100, %v2763_v62  }
 0x574   :  { %v15244_v33 = vpop.permute.xlu1 %4488  ;;  %5036 = vperm.xlu1 %7101, %v2754_v5   ;;  %v15246_v4 = vpop.permute.xlu0 %4543  ;;  %v2758_v5 = vld [vmem:[%s17397_s2 + $0x20] sm:$0xff] }
 0x575   :  { %18899 = vst [vmem:[#allocation347_spill] sm:$0xff] %v15244_v33  ;;  %18900 = vst [vmem:[#allocation348_spill] sm:$0xff] %v15246_v4  ;;  %5091 = vperm.xlu0 %7100, %v2765_v51   ;;  %v2769_v51 = vld [vmem:[%s17397_s2 + $0x78] sm:$0xff] }
 0x578   :  { %v15254_v62 = vpop.permute.xlu1 %4498  ;;  %5046 = vperm.xlu1 %7101, %v2756_v40   ;;  %v15256_v13 = vpop.permute.xlu0 %4553  ;;  %v2760_v40 = vld [vmem:[%s17397_s2 + $0x30] sm:$0xff] }
 0x579   :  { %18901 = vst [vmem:[#allocation349_spill] sm:$0xff] %v15254_v62  ;;  %18902 = vst [vmem:[#allocation350_spill] sm:$0xff] %v15256_v13  ;;  %5101 = vperm.xlu0 %7100, %v2767_v54   ;;  %v2771_v54 = vld [vmem:[%s17397_s2 + $0x88] sm:$0xff] }
 0x57c   :  { %v15264_v4 = vpop.permute.xlu1 %4508  ;;  %5056 = vperm.xlu1 %7101, %v2758_v5   ;;  %v15266_v33 = vpop.permute.xlu0 %4563  ;;  %v2762_v5 = vld [vmem:[%s17397_s2 + $0x40] sm:$0xff] }
 0x57d   :  { %18903 = vst [vmem:[#allocation351_spill] sm:$0xff] %v15264_v4  ;;  %18904 = vst [vmem:[#allocation352_spill] sm:$0xff] %v15266_v33  ;;  %5111 = vperm.xlu0 %7100, %v2769_v51   ;;  %v2773_v51 = vld [vmem:[%s17397_s2 + $0x98] sm:$0xff] }
 0x580   :  { %v15274_v13 = vpop.permute.xlu1 %4518  ;;  %5066 = vperm.xlu1 %7101, %v2760_v40   ;;  %v15276_v62 = vpop.permute.xlu0 %4573  ;;  %v2764_v40 = vld [vmem:[%s17397_s2 + $0x50] sm:$0xff] }
 0x581   :  { %18905 = vst [vmem:[#allocation353_spill] sm:$0xff] %v15274_v13  ;;  %18906 = vst [vmem:[#allocation354_spill] sm:$0xff] %v15276_v62  ;;  %5121 = vperm.xlu0 %7100, %v2771_v54   ;;  %v2775_v54 = vld [vmem:[%s17397_s2 + $0xa8] sm:$0xff] }
 0x584   :  { %v15284_v33 = vpop.permute.xlu1 %4528  ;;  %5076 = vperm.xlu1 %7101, %v2762_v5   ;;  %v15286_v4 = vpop.permute.xlu0 %4583  ;;  %v2766_v5 = vld [vmem:[%s17397_s2 + $0x60] sm:$0xff] }
 0x585   :  { %18907 = vst [vmem:[#allocation355_spill] sm:$0xff] %v15284_v33  ;;  %18908 = vst [vmem:[#allocation356_spill] sm:$0xff] %v15286_v4  ;;  %5131 = vperm.xlu0 %7100, %v2773_v51   ;;  %v2777_v51 = vld [vmem:[%s17397_s2 + $0xb8] sm:$0xff] }
 0x588   :  { %v15294_v62 = vpop.permute.xlu1 %4538  ;;  %5086 = vperm.xlu1 %7101, %v2764_v40   ;;  %v15296_v13 = vpop.permute.xlu0 %4593  ;;  %v2768_v40 = vld [vmem:[%s17397_s2 + $0x70] sm:$0xff] }
 0x589   :  { %18909 = vst [vmem:[#allocation357_spill] sm:$0xff] %v15294_v62  ;;  %18910 = vst [vmem:[#allocation358_spill] sm:$0xff] %v15296_v13  ;;  %5141 = vperm.xlu0 %7100, %v2775_v54   ;;  %v2779_v54 = vld [vmem:[%s17397_s2 + $0xc8] sm:$0xff] }
 0x58c   :  { %v15304_v4 = vpop.permute.xlu1 %4548  ;;  %5096 = vperm.xlu1 %7101, %v2766_v5   ;;  %v15306_v33 = vpop.permute.xlu0 %4603  ;;  %v2770_v5 = vld [vmem:[%s17397_s2 + $0x80] sm:$0xff] }
 0x58d   :  { %18911 = vst [vmem:[#allocation359_spill] sm:$0xff] %v15304_v4  ;;  %18912 = vst [vmem:[#allocation360_spill] sm:$0xff] %v15306_v33  ;;  %5151 = vperm.xlu0 %7100, %v2777_v51   ;;  %v2781_v51 = vld [vmem:[%s17397_s2 + $0xd8] sm:$0xff] }
 0x590   :  { %v15314_v13 = vpop.permute.xlu1 %4558  ;;  %5106 = vperm.xlu1 %7101, %v2768_v40   ;;  %v15316_v62 = vpop.permute.xlu0 %4613  ;;  %v2772_v40 = vld [vmem:[%s17397_s2 + $0x90] sm:$0xff] }
 0x591   :  { %18913 = vst [vmem:[#allocation361_spill] sm:$0xff] %v15314_v13  ;;  %18914 = vst [vmem:[#allocation362_spill] sm:$0xff] %v15316_v62  ;;  %5161 = vperm.xlu0 %7100, %v2779_v54   ;;  %v2783_v54 = vld [vmem:[%s17397_s2 + $0xe8] sm:$0xff] }
 0x594   :  { %v15324_v33 = vpop.permute.xlu1 %4568  ;;  %5116 = vperm.xlu1 %7101, %v2770_v5   ;;  %v15326_v4 = vpop.permute.xlu0 %4623  ;;  %v2774_v5 = vld [vmem:[%s17397_s2 + $0xa0] sm:$0xff] }
 0x595   :  { %18915 = vst [vmem:[#allocation363_spill] sm:$0xff] %v15324_v33  ;;  %18916 = vst [vmem:[#allocation364_spill] sm:$0xff] %v15326_v4  ;;  %5171 = vperm.xlu0 %7100, %v2781_v51   ;;  %v2785_v51 = vld [vmem:[%s17397_s2 + $0xf8] sm:$0xff] }
 0x598   :  { %v15334_v62 = vpop.permute.xlu1 %4578  ;;  %5126 = vperm.xlu1 %7101, %v2772_v40   ;;  %v15336_v13 = vpop.permute.xlu0 %4633  ;;  %v2776_v40 = vld [vmem:[%s17397_s2 + $0xb0] sm:$0xff] }
 0x599   :  { %18917 = vst [vmem:[#allocation365_spill] sm:$0xff] %v15334_v62  ;;  %18918 = vst [vmem:[#allocation366_spill] sm:$0xff] %v15336_v13  ;;  %5181 = vperm.xlu0 %7100, %v2783_v54   ;;  %v2787_v54 = vld [vmem:[%s17397_s2 + $0x108] sm:$0xff] }
 0x59c   :  { %v15344_v4 = vpop.permute.xlu1 %4588  ;;  %5136 = vperm.xlu1 %7101, %v2774_v5   ;;  %v15346_v33 = vpop.permute.xlu0 %4643  ;;  %v2778_v5 = vld [vmem:[%s17397_s2 + $0xc0] sm:$0xff] }
 0x59d   :  { %18919 = vst [vmem:[#allocation367_spill] sm:$0xff] %v15344_v4  ;;  %18920 = vst [vmem:[#allocation368_spill] sm:$0xff] %v15346_v33  ;;  %5191 = vperm.xlu0 %7100, %v2785_v51   ;;  %v2789_v51 = vld [vmem:[%s17397_s2 + $0x118] sm:$0xff] }
 0x5a0   :  { %v15354_v13 = vpop.permute.xlu1 %4598  ;;  %5146 = vperm.xlu1 %7101, %v2776_v40   ;;  %v15356_v62 = vpop.permute.xlu0 %4653  ;;  %v2780_v40 = vld [vmem:[%s17397_s2 + $0xd0] sm:$0xff] }
 0x5a1   :  { %18921 = vst [vmem:[#allocation369_spill] sm:$0xff] %v15354_v13  ;;  %18922 = vst [vmem:[#allocation370_spill] sm:$0xff] %v15356_v62  ;;  %5201 = vperm.xlu0 %7100, %v2787_v54   ;;  %v2791_v54 = vld [vmem:[%s17397_s2 + $0x128] sm:$0xff] }
 0x5a4   :  { %v15364_v33 = vpop.permute.xlu1 %4608  ;;  %5156 = vperm.xlu1 %7101, %v2778_v5   ;;  %v15366_v4 = vpop.permute.xlu0 %4663  ;;  %v2782_v5 = vld [vmem:[%s17397_s2 + $0xe0] sm:$0xff] }
 0x5a5   :  { %18923 = vst [vmem:[#allocation371_spill] sm:$0xff] %v15364_v33  ;;  %18924 = vst [vmem:[#allocation372_spill] sm:$0xff] %v15366_v4  ;;  %5211 = vperm.xlu0 %7100, %v2789_v51   ;;  %v2793_v51 = vld [vmem:[%s17397_s2 + $0x138] sm:$0xff] }
 0x5a8   :  { %v15374_v62 = vpop.permute.xlu1 %4618  ;;  %5166 = vperm.xlu1 %7101, %v2780_v40   ;;  %v15376_v13 = vpop.permute.xlu0 %4673  ;;  %v2784_v40 = vld [vmem:[%s17397_s2 + $0xf0] sm:$0xff] }
 0x5a9   :  { %18925 = vst [vmem:[#allocation373_spill] sm:$0xff] %v15374_v62  ;;  %18926 = vst [vmem:[#allocation374_spill] sm:$0xff] %v15376_v13  ;;  %5221 = vperm.xlu0 %7100, %v2791_v54   ;;  %v2795_v54 = vld [vmem:[%s17397_s2 + $0x148] sm:$0xff] }
 0x5ac   :  { %v15384_v4 = vpop.permute.xlu1 %4628  ;;  %5176 = vperm.xlu1 %7101, %v2782_v5   ;;  %v15386_v33 = vpop.permute.xlu0 %4683  ;;  %v2786_v5 = vld [vmem:[%s17397_s2 + $0x100] sm:$0xff] }
 0x5ad   :  { %18927 = vst [vmem:[#allocation375_spill] sm:$0xff] %v15384_v4  ;;  %18928 = vst [vmem:[#allocation376_spill] sm:$0xff] %v15386_v33  ;;  %5231 = vperm.xlu0 %7100, %v2793_v51   ;;  %v2797_v51 = vld [vmem:[%s17397_s2 + $0x158] sm:$0xff] }
 0x5b0   :  { %v15394_v13 = vpop.permute.xlu1 %4638  ;;  %5186 = vperm.xlu1 %7101, %v2784_v40   ;;  %v15396_v62 = vpop.permute.xlu0 %4693  ;;  %v2788_v40 = vld [vmem:[%s17397_s2 + $0x110] sm:$0xff] }
 0x5b1   :  { %18929 = vst [vmem:[#allocation377_spill] sm:$0xff] %v15394_v13  ;;  %18930 = vst [vmem:[#allocation378_spill] sm:$0xff] %v15396_v62  ;;  %5241 = vperm.xlu0 %7100, %v2795_v54   ;;  %v2799_v54 = vld [vmem:[%s17397_s2 + $0x168] sm:$0xff] }
 0x5b4   :  { %v15404_v33 = vpop.permute.xlu1 %4648  ;;  %5196 = vperm.xlu1 %7101, %v2786_v5   ;;  %v15406_v4 = vpop.permute.xlu0 %4703  ;;  %v2790_v5 = vld [vmem:[%s17397_s2 + $0x120] sm:$0xff] }
 0x5b5   :  { %18931 = vst [vmem:[#allocation379_spill] sm:$0xff] %v15404_v33  ;;  %18932 = vst [vmem:[#allocation380_spill] sm:$0xff] %v15406_v4  ;;  %5251 = vperm.xlu0 %7100, %v2797_v51   ;;  %v2801_v51 = vld [vmem:[%s17397_s2 + $0x178] sm:$0xff] }
 0x5b8   :  { %v15414_v62 = vpop.permute.xlu1 %4658  ;;  %5206 = vperm.xlu1 %7101, %v2788_v40   ;;  %v15416_v13 = vpop.permute.xlu0 %4713  ;;  %v2792_v40 = vld [vmem:[%s17397_s2 + $0x130] sm:$0xff] }
 0x5b9   :  { %18933 = vst [vmem:[#allocation381_spill] sm:$0xff] %v15414_v62  ;;  %18934 = vst [vmem:[#allocation382_spill] sm:$0xff] %v15416_v13  ;;  %5261 = vperm.xlu0 %7100, %v2799_v54   ;;  %v2803_v54 = vld [vmem:[%s17397_s2 + $0x188] sm:$0xff] }
 0x5bc   :  { %v15424_v4 = vpop.permute.xlu1 %4668  ;;  %5216 = vperm.xlu1 %7101, %v2790_v5   ;;  %v15426_v33 = vpop.permute.xlu0 %4723  ;;  %v2794_v5 = vld [vmem:[%s17397_s2 + $0x140] sm:$0xff] }
 0x5bd   :  { %18935 = vst [vmem:[#allocation383_spill] sm:$0xff] %v15424_v4  ;;  %18936 = vst [vmem:[#allocation384_spill] sm:$0xff] %v15426_v33  ;;  %5271 = vperm.xlu0 %7100, %v2801_v51   ;;  %v2805_v51 = vld [vmem:[%s17397_s2 + $0x198] sm:$0xff] }
 0x5c0   :  { %v15434_v13 = vpop.permute.xlu1 %4678  ;;  %5226 = vperm.xlu1 %7101, %v2792_v40   ;;  %v15436_v62 = vpop.permute.xlu0 %4733  ;;  %v2796_v40 = vld [vmem:[%s17397_s2 + $0x150] sm:$0xff] }
 0x5c1   :  { %18937 = vst [vmem:[#allocation385_spill] sm:$0xff] %v15434_v13  ;;  %18938 = vst [vmem:[#allocation386_spill] sm:$0xff] %v15436_v62  ;;  %5281 = vperm.xlu0 %7100, %v2803_v54   ;;  %v2807_v54 = vld [vmem:[%s17397_s2 + $0x1a8] sm:$0xff] }
 0x5c4   :  { %v15444_v33 = vpop.permute.xlu1 %4688  ;;  %5236 = vperm.xlu1 %7101, %v2794_v5   ;;  %v15446_v4 = vpop.permute.xlu0 %4743  ;;  %v2798_v5 = vld [vmem:[%s17397_s2 + $0x160] sm:$0xff] }
 0x5c5   :  { %18939 = vst [vmem:[#allocation387_spill] sm:$0xff] %v15444_v33  ;;  %18940 = vst [vmem:[#allocation388_spill] sm:$0xff] %v15446_v4  ;;  %5291 = vperm.xlu0 %7100, %v2805_v51   ;;  %v2809_v51 = vld [vmem:[%s17397_s2 + $0x1b8] sm:$0xff] }
 0x5c8   :  { %v15454_v62 = vpop.permute.xlu1 %4698  ;;  %5246 = vperm.xlu1 %7101, %v2796_v40   ;;  %v15456_v13 = vpop.permute.xlu0 %4753  ;;  %v2800_v40 = vld [vmem:[%s17397_s2 + $0x170] sm:$0xff] }
 0x5c9   :  { %18941 = vst [vmem:[#allocation389_spill] sm:$0xff] %v15454_v62  ;;  %18942 = vst [vmem:[#allocation390_spill] sm:$0xff] %v15456_v13  ;;  %5301 = vperm.xlu0 %7100, %v2807_v54   ;;  %v2811_v54 = vld [vmem:[%s17397_s2 + $0x1c8] sm:$0xff] }
 0x5cc   :  { %v15464_v4 = vpop.permute.xlu1 %4708  ;;  %5256 = vperm.xlu1 %7101, %v2798_v5   ;;  %v15466_v33 = vpop.permute.xlu0 %4763  ;;  %v2802_v5 = vld [vmem:[%s17397_s2 + $0x180] sm:$0xff] }
 0x5cd   :  { %18943 = vst [vmem:[#allocation391_spill] sm:$0xff] %v15464_v4  ;;  %18944 = vst [vmem:[#allocation392_spill] sm:$0xff] %v15466_v33  ;;  %5311 = vperm.xlu0 %7100, %v2809_v51   ;;  %v2813_v51 = vld [vmem:[%s17397_s2 + $0x1d8] sm:$0xff] }
 0x5d0   :  { %v15474_v13 = vpop.permute.xlu1 %4718  ;;  %5266 = vperm.xlu1 %7101, %v2800_v40   ;;  %v15476_v62 = vpop.permute.xlu0 %4773  ;;  %v2804_v40 = vld [vmem:[%s17397_s2 + $0x190] sm:$0xff] }
 0x5d1   :  { %18945 = vst [vmem:[#allocation393_spill] sm:$0xff] %v15474_v13  ;;  %18946 = vst [vmem:[#allocation394_spill] sm:$0xff] %v15476_v62  ;;  %5321 = vperm.xlu0 %7100, %v2811_v54   ;;  %v2815_v54 = vld [vmem:[%s17397_s2 + $0x1e8] sm:$0xff] }
 0x5d4   :  { %v15484_v33 = vpop.permute.xlu1 %4728  ;;  %5276 = vperm.xlu1 %7101, %v2802_v5   ;;  %v15486_v4 = vpop.permute.xlu0 %4783  ;;  %v2806_v5 = vld [vmem:[%s17397_s2 + $0x1a0] sm:$0xff] }
 0x5d5   :  { %18947 = vst [vmem:[#allocation395_spill] sm:$0xff] %v15484_v33  ;;  %18948 = vst [vmem:[#allocation396_spill] sm:$0xff] %v15486_v4  ;;  %5331 = vperm.xlu0 %7100, %v2813_v51   ;;  %v2817_v51 = vld [vmem:[%s17397_s2 + $0x1f8] sm:$0xff] }
 0x5d8   :  { %v15494_v62 = vpop.permute.xlu1 %4738  ;;  %5286 = vperm.xlu1 %7101, %v2804_v40   ;;  %v15496_v13 = vpop.permute.xlu0 %4793  ;;  %v2808_v40 = vld [vmem:[%s17397_s2 + $0x1b0] sm:$0xff] }
 0x5d9   :  { %18949 = vst [vmem:[#allocation397_spill] sm:$0xff] %v15494_v62  ;;  %18950 = vst [vmem:[#allocation398_spill] sm:$0xff] %v15496_v13  ;;  %5341 = vperm.xlu0 %7100, %v2815_v54   ;;  %v2819_v54 = vld [vmem:[%s17397_s2 + $0x208] sm:$0xff]  ;;  %v18953_v13 = vld [vmem:[#allocation105_spill] sm:$0xff] }
 0x5da   :  { %v18954_v62 = vld [vmem:[#allocation248_spill] sm:$0xff] }
 0x5db   :  { %v4807_v8 = vmul.f32 %v18954_v62, %v18953_v13  ;;  %v2812_v62 = vld [vmem:[%s17397_s2 + $0x1d0] sm:$0xff] }
 0x5dc   :  { %v15504_v4 = vpop.permute.xlu1 %4748  ;;  %5296 = vperm.xlu1 %7101, %v2806_v5   ;;  %v15506_v33 = vpop.permute.xlu0 %4803  ;;  %v2810_v5 = vld [vmem:[%s17397_s2 + $0x1c0] sm:$0xff] }
 0x5dd   :  { %18951 = vst [vmem:[#allocation399_spill] sm:$0xff] %v15504_v4  ;;  %18952 = vst [vmem:[#allocation400_spill] sm:$0xff] %v15506_v33  ;;  %5351 = vperm.xlu0 %7100, %v2817_v51   ;;  %v2821_v51 = vld [vmem:[%s17397_s2 + $0x218] sm:$0xff]  ;;  %v18955_v33 = vld [vmem:[#allocation107_spill] sm:$0xff] }
 0x5de   :  { %v4809_v48 = vmul.f32 %v14266_v41, %v18955_v33  ;;  %v18956_v41 = vld [vmem:[#allocation109_spill] sm:$0xff] }
 0x5df   :  { %v4811_v33 = vmul.f32 %v14290_v47, %v18956_v41  ;;  %v18958_v47 = vld [vmem:[#allocation111_spill] sm:$0xff]  ;;  %v2816_v41 = vld [vmem:[%s17397_s2 + $0x1f0] sm:$0xff] }
 0x5e0   :  { %v15516_v6 = vpop.permute.xlu1 %4758  ;;  %5306 = vperm.xlu1 %7101, %v2808_v40   ;;  %v5042_v29 = vpop.permute.xlu0 %5041  ;;  %v2823_v40 = vld [vmem:[%s17397_s2 + $0x228] sm:$0xff] }
 0x5e1   :  { %v6175_v4 = vadd.f32 %v5042_v29, %v4807_v8  ;;  %5361 = vperm.xlu0 %7100, %v2819_v54  }
 0x5e3   :  { %6403 = vst.msk [vmem:[%s17398_s3 + $0x8] sm:$0xff] %vm245_vm0, %v6175_v4 }
 0x5e4   :  { %v15530_v13 = vpop.permute.xlu1 %4768  ;;  %5316 = vperm.xlu1 %7101, %v2810_v5   ;;  %v5052_v29 = vpop.permute.xlu0 %5051  ;;  %v2814_v5 = vld [vmem:[%s17397_s2 + $0x1e0] sm:$0xff] }
 0x5e5   :  { %v6177_v8 = vadd.f32 %v5052_v29, %v4809_v48  ;;  %5371 = vperm.xlu0 %7100, %v2821_v51   ;;  %v2825_v51 = vld [vmem:[%s17397_s2 + $0x238] sm:$0xff]  ;;  %v4813_v29 = vmul.f32 %v14314_v31, %v18958_v47  ;;  %v2818_v47 = vld [vmem:[%s17397_s2 + $0x200] sm:$0xff] }
 0x5e6   :  { %v18960_v31 = vld [vmem:[#allocation113_spill] sm:$0xff] }
 0x5e7   :  { %6405 = vst.msk [vmem:[%s17398_s3 + $0x18] sm:$0xff] %vm245_vm0, %v6177_v8 }
 0x5e8   :  { %v15544_v4 = vpop.permute.xlu1 %4778  ;;  %5326 = vperm.xlu1 %7101, %v2812_v62   ;;  %v5062_v48 = vpop.permute.xlu0 %5061 }
 0x5e9   :  { %18957 = vst [vmem:[#allocation105_spill] sm:$0xff] %v15544_v4  ;;  %v6179_v54 = vadd.f32 %v5062_v48, %v4811_v33  ;;  %5381 = vperm.xlu0 %7100, %v2823_v40   ;;  %v2827_v33 = vld [vmem:[%s17397_s2 + $0x248] sm:$0xff]  ;;  %v4815_v48 = vmul.f32 %v14268_v53, %v18960_v31  ;;  %v18967_v4 = vld [vmem:[#allocation117_spill] sm:$0xff] }
 0x5ea   :  { %v18962_v53 = vld [vmem:[#allocation103_spill] sm:$0xff] }
 0x5eb   :  { %6407 = vst.msk [vmem:[%s17398_s3 + $0x28] sm:$0xff] %vm245_vm0, %v6179_v54 }
 0x5ec   :  { %v15558_v8 = vpop.permute.xlu1 %4788  ;;  %5336 = vperm.xlu1 %7101, %v2814_v5   ;;  %v5072_v62 = vpop.permute.xlu0 %5071 }
 0x5ed   :  { %18959 = vst [vmem:[#allocation248_spill] sm:$0xff] %v15558_v8  ;;  %v6181_v40 = vadd.f32 %v5072_v62, %v4813_v29  ;;  %5391 = vperm.xlu0 %7100, %v2825_v51   ;;  %v2829_v29 = vld [vmem:[%s17397_s2 + $0x258] sm:$0xff]  ;;  %v18963_v62 = vld [vmem:[#allocation252_spill] sm:$0xff]  ;;  %v18964_v8 = vld [vmem:[#allocation115_spill] sm:$0xff] }
 0x5ee   :  { %v4806_v31 = vmul.f32 %v18963_v62, %v18962_v53  ;;  %v2831_v53 = vld [vmem:[%s17397_s2 + $0x268] sm:$0xff] }
 0x5ef   :  { %6409 = vst.msk [vmem:[%s17398_s3 + $0x38] sm:$0xff] %vm245_vm0, %v6181_v40  ;;  %v4817_v40 = vmul.f32 %v14280_v37, %v18964_v8  ;;  %v18965_v37 = vld [vmem:[#allocation106_spill] sm:$0xff] }
 0x5f0   :  { %5346 = vperm.xlu1 %7101, %v2816_v41   ;;  %v15572_v54 = vpop.permute.xlu1 %4798  ;;  %v5082_v5 = vpop.permute.xlu0 %5081  ;;  %v18966_v8 = vld [vmem:[#allocation250_spill] sm:$0xff] }
 0x5f1   :  { %18961 = vst [vmem:[#allocation107_spill] sm:$0xff] %v15572_v54  ;;  %v6183_v51 = vadd.f32 %v5082_v5, %v4815_v48  ;;  %5401 = vperm.xlu0 %7100, %v2827_v33   ;;  %v2820_v54 = vld [vmem:[%s17397_s2 + $0x210] sm:$0xff]  ;;  %v4808_v62 = vmul.f32 %v18966_v8, %v18965_v37  ;;  %v18970_v37 = vld [vmem:[#allocation119_spill] sm:$0xff] }
 0x5f3   :  { %6411 = vst.msk [vmem:[%s17398_s3 + $0x48] sm:$0xff] %vm245_vm0, %v6183_v51  ;;  %v4819_v51 = vmul.f32 %v14292_v18, %v18967_v4  ;;  %v2822_v18 = vld [vmem:[%s17397_s2 + $0x220] sm:$0xff]  ;;  %v2833_v4 = vld [vmem:[%s17397_s2 + $0x278] sm:$0xff] }
 0x5f4   :  { %5356 = vperm.xlu1 %7101, %v2818_v47   ;;  %v5037_v41 = vpop.permute.xlu1 %5036  ;;  %v5092_v33 = vpop.permute.xlu0 %5091 }
 0x5f5   :  { %v6174_v48 = vadd.f32 %v5037_v41, %v4806_v31  ;;  %v6185_v5 = vadd.f32 %v5092_v33, %v4817_v40  ;;  %5411 = vperm.xlu0 %7100, %v2829_v29   ;;  %v18968_v41 = vld [vmem:[#allocation110_spill] sm:$0xff] }
 0x5f6   :  { %v18969_v33 = vld [vmem:[#allocation254_spill] sm:$0xff] }
 0x5f7   :  { %6402 = vst.msk [vmem:[%s17398_s3] sm:$0xff] %vm245_vm0, %v6174_v48  ;;  %6413 = vst.msk [vmem:[%s17398_s3 + $0x58] sm:$0xff] %vm245_vm0, %v6185_v5  ;;  %v4810_v48 = vmul.f32 %v18969_v33, %v18968_v41  ;;  %v4821_v5 = vmul.f32 %v14304_v1, %v18970_v37  ;;  %v2824_v1 = vld [vmem:[%s17397_s2 + $0x230] sm:$0xff]  ;;  %v18973_v41 = vld [vmem:[#allocation121_spill] sm:$0xff] }
 0x5f8   :  { %5366 = vperm.xlu1 %7101, %v2820_v54   ;;  %v5047_v47 = vpop.permute.xlu1 %5046  ;;  %v5102_v29 = vpop.permute.xlu0 %5101  ;;  %v2837_v37 = vld [vmem:[%s17397_s2 + $0x298] sm:$0xff] }
 0x5f9   :  { %v6176_v31 = vadd.f32 %v5047_v47, %v4808_v62  ;;  %v6187_v40 = vadd.f32 %v5102_v29, %v4819_v51  ;;  %5421 = vperm.xlu0 %7100, %v2831_v53   ;;  %v2835_v51 = vld [vmem:[%s17397_s2 + $0x288] sm:$0xff]  ;;  %v18971_v47 = vld [vmem:[#allocation112_spill] sm:$0xff] }
 0x5fa   :  { %v18972_v29 = vld [vmem:[#allocation256_spill] sm:$0xff] }
 0x5fb   :  { %6404 = vst.msk [vmem:[%s17398_s3 + $0x10] sm:$0xff] %vm245_vm0, %v6176_v31  ;;  %6415 = vst.msk [vmem:[%s17398_s3 + $0x68] sm:$0xff] %vm245_vm0, %v6187_v40  ;;  %v4812_v31 = vmul.f32 %v18972_v29, %v18971_v47  ;;  %v4823_v40 = vmul.f32 %v14316_v49, %v18973_v41  ;;  %v2826_v49 = vld [vmem:[%s17397_s2 + $0x240] sm:$0xff]  ;;  %v18976_v29 = vld [vmem:[#allocation116_spill] sm:$0xff] }
 0x5fc   :  { %5376 = vperm.xlu1 %7101, %v2822_v18   ;;  %v5057_v54 = vpop.permute.xlu1 %5056  ;;  %v5112_v53 = vpop.permute.xlu0 %5111  ;;  %v18977_v41 = vld [vmem:[#allocation125_spill] sm:$0xff] }
 0x5fd   :  { %v6178_v8 = vadd.f32 %v5057_v54, %v4810_v48  ;;  %v6189_v62 = vadd.f32 %v5112_v53, %v4821_v5  ;;  %5431 = vperm.xlu0 %7100, %v2833_v4   ;;  %v18974_v5 = vld [vmem:[#allocation114_spill] sm:$0xff]  ;;  %v18975_v53 = vld [vmem:[#allocation123_spill] sm:$0xff] }
 0x5fe   :  { %v4814_v54 = vmul.f32 %v14326_v17, %v18974_v5  ;;  %v2828_v17 = vld [vmem:[%s17397_s2 + $0x250] sm:$0xff]  ;;  %v18979_v5 = vld [vmem:[#allocation127_spill] sm:$0xff] }
 0x5ff   :  { %6406 = vst.msk [vmem:[%s17398_s3 + $0x20] sm:$0xff] %vm245_vm0, %v6178_v8  ;;  %6417 = vst.msk [vmem:[%s17398_s3 + $0x78] sm:$0xff] %vm245_vm0, %v6189_v62  ;;  %v4825_v8 = vmul.f32 %v14328_v44, %v18975_v53  ;;  %v2839_v44 = vld [vmem:[%s17397_s2 + $0x2a8] sm:$0xff] }
 0x600   :  { %5386 = vperm.xlu1 %7101, %v2824_v1   ;;  %v5067_v18 = vpop.permute.xlu1 %5066  ;;  %v5122_v4 = vpop.permute.xlu0 %5121 }
 0x601   :  { %v6180_v33 = vadd.f32 %v5067_v18, %v4812_v31  ;;  %v6191_v48 = vadd.f32 %v5122_v4, %v4823_v40  ;;  %5441 = vperm.xlu0 %7100, %v2835_v51   ;;  %v4816_v31 = vmul.f32 %v14338_v11, %v18976_v29  ;;  %v4827_v40 = vmul.f32 %v14340_v7, %v18977_v41  ;;  %v2830_v11 = vld [vmem:[%s17397_s2 + $0x260] sm:$0xff]  ;;  %v2841_v7 = vld [vmem:[%s17397_s2 + $0x2b8] sm:$0xff] }
 0x603   :  { %6408 = vst.msk [vmem:[%s17398_s3 + $0x30] sm:$0xff] %vm245_vm0, %v6180_v33  ;;  %6419 = vst.msk [vmem:[%s17398_s3 + $0x88] sm:$0xff] %vm245_vm0, %v6191_v48 }
 0x604   :  { %5396 = vperm.xlu1 %7101, %v2826_v49   ;;  %v5077_v62 = vpop.permute.xlu1 %5076  ;;  %v5132_v1 = vpop.permute.xlu0 %5131  ;;  %v18978_v49 = vld [vmem:[#allocation118_spill] sm:$0xff] }
 0x605   :  { %v6182_v51 = vadd.f32 %v5077_v62, %v4814_v54  ;;  %v6193_v47 = vadd.f32 %v5132_v1, %v4825_v8  ;;  %5451 = vperm.xlu0 %7100, %v2837_v37   ;;  %v4818_v37 = vmul.f32 %v14350_v32, %v18978_v49  ;;  %v4829_v54 = vmul.f32 %v14352_v35, %v18979_v5  ;;  %v2832_v32 = vld [vmem:[%s17397_s2 + $0x270] sm:$0xff]  ;;  %v2843_v35 = vld [vmem:[%s17397_s2 + $0x2c8] sm:$0xff] }
 0x606   :  { %v18984_v5 = vld [vmem:[#allocation124_spill] sm:$0xff] }
 0x607   :  { %6410 = vst.msk [vmem:[%s17398_s3 + $0x40] sm:$0xff] %vm245_vm0, %v6182_v51  ;;  %6421 = vst.msk [vmem:[%s17398_s3 + $0x98] sm:$0xff] %vm245_vm0, %v6193_v47  ;;  %v18980_v51 = vld [vmem:[#allocation120_spill] sm:$0xff] }
 0x608   :  { %5406 = vperm.xlu1 %7101, %v2828_v17   ;;  %v5087_v18 = vpop.permute.xlu1 %5086  ;;  %v5142_v4 = vpop.permute.xlu0 %5141  ;;  %v4820_v47 = vmul.f32 %v14362_v9, %v18980_v51  ;;  %v18981_v17 = vld [vmem:[#allocation129_spill] sm:$0xff]  ;;  %v2834_v9 = vld [vmem:[%s17397_s2 + $0x280] sm:$0xff] }
 0x609   :  { %v6184_v33 = vadd.f32 %v5087_v18, %v4816_v31  ;;  %v6195_v48 = vadd.f32 %v5142_v4, %v4827_v40  ;;  %5461 = vperm.xlu0 %7100, %v2839_v44   ;;  %v4831_v44 = vmul.f32 %v14364_v14, %v18981_v17  ;;  %v2845_v14 = vld [vmem:[%s17397_s2 + $0x2d8] sm:$0xff]  ;;  %v18982_v18 = vld [vmem:[#allocation122_spill] sm:$0xff]  ;;  %v18987_v17 = vld [vmem:[#allocation135_spill] sm:$0xff] }
 0x60a   :  { %v4822_v4 = vmul.f32 %v14374_v3, %v18982_v18  ;;  %v2836_v3 = vld [vmem:[%s17397_s2 + $0x290] sm:$0xff]  ;;  %v18986_v51 = vld [vmem:[#allocation126_spill] sm:$0xff]  ;;  %v18989_v18 = vld [vmem:[#allocation137_spill] sm:$0xff] }
 0x60b   :  { %6412 = vst.msk [vmem:[%s17398_s3 + $0x50] sm:$0xff] %vm245_vm0, %v6184_v33  ;;  %6423 = vst.msk [vmem:[%s17398_s3 + $0xa8] sm:$0xff] %vm245_vm0, %v6195_v48  ;;  %v18983_v33 = vld [vmem:[#allocation131_spill] sm:$0xff] }
 0x60c   :  { %5416 = vperm.xlu1 %7101, %v2830_v11   ;;  %v5097_v53 = vpop.permute.xlu1 %5096  ;;  %v5152_v8 = vpop.permute.xlu0 %5151  ;;  %v4833_v48 = vmul.f32 %v14376_v10, %v18983_v33  ;;  %v2847_v10 = vld [vmem:[%s17397_s2 + $0x2e8] sm:$0xff] }
 0x60d   :  { %v6186_v62 = vadd.f32 %v5097_v53, %v4818_v37  ;;  %v6197_v1 = vadd.f32 %v5152_v8, %v4829_v54  ;;  %5471 = vperm.xlu0 %7100, %v2841_v7   ;;  %v4824_v54 = vmul.f32 %v14386_v23, %v18984_v5  ;;  %v18985_v53 = vld [vmem:[#allocation133_spill] sm:$0xff]  ;;  %v2838_v23 = vld [vmem:[%s17397_s2 + $0x2a0] sm:$0xff] }
 0x60e   :  { %v4835_v8 = vmul.f32 %v14388_v61, %v18985_v53  ;;  %v2849_v61 = vld [vmem:[%s17397_s2 + $0x2f8] sm:$0xff] }
 0x60f   :  { %6414 = vst.msk [vmem:[%s17398_s3 + $0x60] sm:$0xff] %vm245_vm0, %v6186_v62  ;;  %6425 = vst.msk [vmem:[%s17398_s3 + $0xb8] sm:$0xff] %vm245_vm0, %v6197_v1 }
 0x610   :  { %5426 = vperm.xlu1 %7101, %v2832_v32   ;;  %v5107_v29 = vpop.permute.xlu1 %5106  ;;  %v5162_v31 = vpop.permute.xlu0 %5161 }
 0x611   :  { %v6188_v41 = vadd.f32 %v5107_v29, %v4820_v47  ;;  %v6199_v40 = vadd.f32 %v5162_v31, %v4831_v44  ;;  %5481 = vperm.xlu0 %7100, %v2843_v35   ;;  %v4826_v47 = vmul.f32 %v14398_v42, %v18986_v51  ;;  %v4837_v44 = vmul.f32 %v14400_v22, %v18987_v17  ;;  %v2840_v42 = vld [vmem:[%s17397_s2 + $0x2b0] sm:$0xff]  ;;  %v2851_v22 = vld [vmem:[%s17397_s2 + $0x308] sm:$0xff]  ;;  %v18994_v17 = vld [vmem:[#allocation134_spill] sm:$0xff] }
 0x613   :  { %6416 = vst.msk [vmem:[%s17398_s3 + $0x70] sm:$0xff] %vm245_vm0, %v6188_v41  ;;  %6427 = vst.msk [vmem:[%s17398_s3 + $0xc8] sm:$0xff] %vm245_vm0, %v6199_v40 }
 0x614   :  { %5436 = vperm.xlu1 %7101, %v2834_v9   ;;  %v5117_v11 = vpop.permute.xlu1 %5116  ;;  %v5172_v7 = vpop.permute.xlu0 %5171  ;;  %v18988_v9 = vld [vmem:[#allocation128_spill] sm:$0xff] }
 0x615   :  { %v6190_v49 = vadd.f32 %v5117_v11, %v4822_v4  ;;  %v6201_v37 = vadd.f32 %v5172_v7, %v4833_v48  ;;  %5491 = vperm.xlu0 %7100, %v2845_v14   ;;  %v4828_v14 = vmul.f32 %v14410_v20, %v18988_v9  ;;  %v4839_v4 = vmul.f32 %v14412_v52, %v18989_v18  ;;  %v2842_v20 = vld [vmem:[%s17397_s2 + $0x2c0] sm:$0xff]  ;;  %v2853_v52 = vld [vmem:[%s17397_s2 + $0x318] sm:$0xff]  ;;  %v18996_v9 = vld [vmem:[#allocation136_spill] sm:$0xff] }
 0x616   :  { %v18997_v18 = vld [vmem:[#allocation145_spill] sm:$0xff] }
 0x617   :  { %6418 = vst.msk [vmem:[%s17398_s3 + $0x80] sm:$0xff] %vm245_vm0, %v6190_v49  ;;  %6429 = vst.msk [vmem:[%s17398_s3 + $0xd8] sm:$0xff] %vm245_vm0, %v6201_v37  ;;  %v18990_v49 = vld [vmem:[#allocation130_spill] sm:$0xff] }
 0x618   :  { %5446 = vperm.xlu1 %7101, %v2836_v3   ;;  %v5127_v62 = vpop.permute.xlu1 %5126  ;;  %v5182_v1 = vpop.permute.xlu0 %5181  ;;  %v4830_v37 = vmul.f32 %v14422_v30, %v18990_v49  ;;  %v18991_v3 = vld [vmem:[#allocation139_spill] sm:$0xff]  ;;  %v2844_v30 = vld [vmem:[%s17397_s2 + $0x2d0] sm:$0xff] }
 0x619   :  { %v6192_v32 = vadd.f32 %v5127_v62, %v4824_v54  ;;  %v6203_v35 = vadd.f32 %v5182_v1, %v4835_v8  ;;  %5501 = vperm.xlu0 %7100, %v2847_v10   ;;  %v4841_v10 = vmul.f32 %v14424_v38, %v18991_v3  ;;  %v2855_v38 = vld [vmem:[%s17397_s2 + $0x328] sm:$0xff]  ;;  %v18992_v62 = vld [vmem:[#allocation132_spill] sm:$0xff] }
 0x61a   :  { %v4832_v1 = vmul.f32 %v14434_v39, %v18992_v62  ;;  %v2846_v39 = vld [vmem:[%s17397_s2 + $0x2e0] sm:$0xff]  ;;  %v18999_v49 = vld [vmem:[#allocation147_spill] sm:$0xff] }
 0x61b   :  { %6420 = vst.msk [vmem:[%s17398_s3 + $0x90] sm:$0xff] %vm245_vm0, %v6192_v32  ;;  %6431 = vst.msk [vmem:[%s17398_s3 + $0xe8] sm:$0xff] %vm245_vm0, %v6203_v35  ;;  %v18993_v32 = vld [vmem:[#allocation141_spill] sm:$0xff] }
 0x61c   :  { %5456 = vperm.xlu1 %7101, %v2838_v23   ;;  %v5137_v29 = vpop.permute.xlu1 %5136  ;;  %v5192_v31 = vpop.permute.xlu0 %5191  ;;  %v4843_v35 = vmul.f32 %v14436_v46, %v18993_v32  ;;  %v2857_v46 = vld [vmem:[%s17397_s2 + $0x338] sm:$0xff] }
 0x61d   :  { %v6194_v41 = vadd.f32 %v5137_v29, %v4826_v47  ;;  %v6205_v40 = vadd.f32 %v5192_v31, %v4837_v44  ;;  %5511 = vperm.xlu0 %7100, %v2849_v61   ;;  %v4834_v44 = vmul.f32 %v14446_v21, %v18994_v17  ;;  %v18995_v29 = vld [vmem:[#allocation143_spill] sm:$0xff]  ;;  %v2848_v21 = vld [vmem:[%s17397_s2 + $0x2f0] sm:$0xff] }
 0x61e   :  { %v4845_v31 = vmul.f32 %v14448_v19, %v18995_v29  ;;  %v2859_v19 = vld [vmem:[%s17397_s2 + $0x348] sm:$0xff]  ;;  %v19004_v29 = vld [vmem:[#allocation144_spill] sm:$0xff] }
 0x61f   :  { %6422 = vst.msk [vmem:[%s17398_s3 + $0xa0] sm:$0xff] %vm245_vm0, %v6194_v41  ;;  %6433 = vst.msk [vmem:[%s17398_s3 + $0xf8] sm:$0xff] %vm245_vm0, %v6205_v40 }
 0x620   :  { %5466 = vperm.xlu1 %7101, %v2840_v42   ;;  %v5147_v33 = vpop.permute.xlu1 %5146  ;;  %v5202_v48 = vpop.permute.xlu0 %5201 }
 0x621   :  { %v6196_v11 = vadd.f32 %v5147_v33, %v4828_v14  ;;  %v6207_v7 = vadd.f32 %v5202_v48, %v4839_v4  ;;  %5521 = vperm.xlu0 %7100, %v2851_v22   ;;  %v4836_v14 = vmul.f32 %v14458_v55, %v18996_v9  ;;  %v4847_v4 = vmul.f32 %v14460_v63, %v18997_v18  ;;  %v2850_v55 = vld [vmem:[%s17397_s2 + $0x300] sm:$0xff]  ;;  %v2861_v63 = vld [vmem:[%s17397_s2 + $0x358] sm:$0xff] }
 0x622   :  { %v19006_v9 = vld [vmem:[#allocation146_spill] sm:$0xff] }
 0x623   :  { %6424 = vst.msk [vmem:[%s17398_s3 + $0xb0] sm:$0xff] %vm245_vm0, %v6196_v11  ;;  %6435 = vst.msk [vmem:[%s17398_s3 + $0x108] sm:$0xff] %vm245_vm0, %v6207_v7  ;;  %v19007_v18 = vld [vmem:[#allocation158_spill] sm:$0xff] }
 0x624   :  { %5476 = vperm.xlu1 %7101, %v2842_v20   ;;  %v5157_v5 = vpop.permute.xlu1 %5156  ;;  %v5212_v54 = vpop.permute.xlu0 %5211  ;;  %v18998_v20 = vld [vmem:[#allocation138_spill] sm:$0xff] }
 0x625   :  { %v6198_v53 = vadd.f32 %v5157_v5, %v4830_v37  ;;  %v6209_v8 = vadd.f32 %v5212_v54, %v4841_v10  ;;  %5531 = vperm.xlu0 %7100, %v2853_v52   ;;  %v4838_v52 = vmul.f32 %v14470_v24, %v18998_v20  ;;  %v4849_v37 = vmul.f32 %v14472_v60, %v18999_v49  ;;  %v2852_v24 = vld [vmem:[%s17397_s2 + $0x310] sm:$0xff]  ;;  %v2863_v60 = vld [vmem:[%s17397_s2 + $0x368] sm:$0xff] }
 0x626   :  { %v19009_v20 = vld [vmem:[#allocation3_spill] sm:$0xff] }
 0x627   :  { %6426 = vst.msk [vmem:[%s17398_s3 + $0xc0] sm:$0xff] %vm245_vm0, %v6198_v53  ;;  %6437 = vst.msk [vmem:[%s17398_s3 + $0x118] sm:$0xff] %vm245_vm0, %v6209_v8  ;;  %v19000_v53 = vld [vmem:[#allocation140_spill] sm:$0xff] }
 0x628   :  { %5486 = vperm.xlu1 %7101, %v2844_v30   ;;  %v5167_v23 = vpop.permute.xlu1 %5166  ;;  %v5222_v61 = vpop.permute.xlu0 %5221  ;;  %v4840_v8 = vmul.f32 %v14482_v50, %v19000_v53  ;;  %v19001_v30 = vld [vmem:[#allocation149_spill] sm:$0xff]  ;;  %v2854_v50 = vld [vmem:[%s17397_s2 + $0x320] sm:$0xff] }
 0x629   :  { %v6200_v51 = vadd.f32 %v5167_v23, %v4832_v1  ;;  %v6211_v47 = vadd.f32 %v5222_v61, %v4843_v35  ;;  %5541 = vperm.xlu0 %7100, %v2855_v38   ;;  %v4851_v38 = vmul.f32 %v14484_v0, %v19001_v30  ;;  %v2865_v0 = vld [vmem:[%s17397_s2 + $0x378] sm:$0xff]  ;;  %v19002_v23 = vld [vmem:[#allocation142_spill] sm:$0xff] }
 0x62a   :  { %v4842_v61 = vmul.f32 %v14494_v15, %v19002_v23  ;;  %v2856_v15 = vld [vmem:[%s17397_s2 + $0x330] sm:$0xff]  ;;  %v19014_v30 = vld [vmem:[#allocation310_spill] sm:$0xff] }
 0x62b   :  { %6428 = vst.msk [vmem:[%s17398_s3 + $0xd0] sm:$0xff] %vm245_vm0, %v6200_v51  ;;  %6439 = vst.msk [vmem:[%s17398_s3 + $0x128] sm:$0xff] %vm245_vm0, %v6211_v47  ;;  %v19003_v51 = vld [vmem:[#allocation151_spill] sm:$0xff]  ;;  %v19015_v23 = vld [vmem:[#allocation152_spill] sm:$0xff] }
 0x62c   :  { %5496 = vperm.xlu1 %7101, %v2846_v39   ;;  %v5177_v41 = vpop.permute.xlu1 %5176  ;;  %v5232_v40 = vpop.permute.xlu0 %5231  ;;  %v4853_v47 = vmul.f32 %v14496_v16, %v19003_v51  ;;  %v2867_v16 = vld [vmem:[%s17397_s2 + $0x388] sm:$0xff] }
 0x62d   :  { %v6202_v42 = vadd.f32 %v5177_v41, %v4834_v44  ;;  %v6213_v22 = vadd.f32 %v5232_v40, %v4845_v31  ;;  %5551 = vperm.xlu0 %7100, %v2857_v46   ;;  %v4844_v31 = vmul.f32 %v14506_v25, %v19004_v29  ;;  %v19005_v41 = vld [vmem:[#allocation153_spill] sm:$0xff]  ;;  %v2858_v25 = vld [vmem:[%s17397_s2 + $0x340] sm:$0xff] }
 0x62e   :  { %v4855_v40 = vmul.f32 %v14508_v34, %v19005_v41  ;;  %v2869_v34 = vld [vmem:[%s17397_s2 + $0x398] sm:$0xff]  ;;  %v2866_v29 = vld [vmem:[%s17397_s2 + $0x380] sm:$0xff] }
 0x62f   :  { %6430 = vst.msk [vmem:[%s17398_s3 + $0xe0] sm:$0xff] %vm245_vm0, %v6202_v42  ;;  %6441 = vst.msk [vmem:[%s17398_s3 + $0x138] sm:$0xff] %vm245_vm0, %v6213_v22  ;;  %v19019_v41 = vld [vmem:[#allocation154_spill] sm:$0xff] }
 0x630   :  { %5506 = vperm.xlu1 %7101, %v2848_v21   ;;  %v5187_v33 = vpop.permute.xlu1 %5186  ;;  %v5242_v48 = vpop.permute.xlu0 %5241 }
 0x631   :  { %v6204_v11 = vadd.f32 %v5187_v33, %v4836_v14  ;;  %v6215_v7 = vadd.f32 %v5242_v48, %v4847_v4  ;;  %5561 = vperm.xlu0 %7100, %v2859_v19   ;;  %v4846_v14 = vmul.f32 %v14518_v12, %v19006_v9  ;;  %v4857_v4 = vmul.f32 %v14520_v28, %v19007_v18  ;;  %v2860_v12 = vld [vmem:[%s17397_s2 + $0x350] sm:$0xff]  ;;  %v2871_v28 = vld [vmem:[%s17397_s2 + $0x3a8] sm:$0xff] }
 0x632   :  { %v2868_v18 = vld [vmem:[%s17397_s2 + $0x390] sm:$0xff] }
 0x633   :  { %6432 = vst.msk [vmem:[%s17398_s3 + $0xf0] sm:$0xff] %vm245_vm0, %v6204_v11  ;;  %6443 = vst.msk [vmem:[%s17398_s3 + $0x148] sm:$0xff] %vm245_vm0, %v6215_v7 }
 0x634   :  { %5516 = vperm.xlu1 %7101, %v2850_v55   ;;  %v5197_v3 = vpop.permute.xlu1 %5196  ;;  %v5252_v10 = vpop.permute.xlu0 %5251  ;;  %v19008_v55 = vld [vmem:[#allocation148_spill] sm:$0xff] }
 0x635   :  { %v6206_v5 = vadd.f32 %v5197_v3, %v4838_v52  ;;  %v6217_v54 = vadd.f32 %v5252_v10, %v4849_v37  ;;  %5571 = vperm.xlu0 %7100, %v2861_v63   ;;  %v4848_v63 = vmul.f32 %v14530_v45, %v19008_v55  ;;  %v19010_v52 = vld [vmem:[#allocation257_spill] sm:$0xff]  ;;  %v2862_v45 = vld [vmem:[%s17397_s2 + $0x360] sm:$0xff] }
 0x636   :  { %v4859_v49 = vmul.f32 %v19010_v52, %v19009_v20 }
 0x637   :  { %6434 = vst.msk [vmem:[%s17398_s3 + $0x100] sm:$0xff] %vm245_vm0, %v6206_v5  ;;  %6445 = vst.msk [vmem:[%s17398_s3 + $0x158] sm:$0xff] %vm245_vm0, %v6217_v54  ;;  %v2873_v54 = vld [vmem:[%s17397_s2 + $0x3b8] sm:$0xff] }
 0x638   :  { %5526 = vperm.xlu1 %7101, %v2852_v24   ;;  %v5207_v62 = vpop.permute.xlu1 %5206  ;;  %v5262_v1 = vpop.permute.xlu0 %5261  ;;  %v19011_v24 = vld [vmem:[#allocation150_spill] sm:$0xff] }
 0x639   :  { %v6208_v32 = vadd.f32 %v5207_v62, %v4840_v8  ;;  %v6219_v35 = vadd.f32 %v5262_v1, %v4851_v38  ;;  %5581 = vperm.xlu0 %7100, %v2863_v60   ;;  %v19012_v60 = vld [vmem:[#allocation259_spill] sm:$0xff]  ;;  %v19013_v8 = vld [vmem:[#allocation5_spill] sm:$0xff] }
 0x63a   :  { %v4850_v53 = vmul.f32 %v19012_v60, %v19011_v24  ;;  %v4861_v38 = vmul.f32 %v19014_v30, %v19013_v8 }
 0x63b   :  { %6436 = vst.msk [vmem:[%s17398_s3 + $0x110] sm:$0xff] %vm245_vm0, %v6208_v32  ;;  %6447 = vst.msk [vmem:[%s17398_s3 + $0x168] sm:$0xff] %vm245_vm0, %v6219_v35 }
 0x63c   :  { %5536 = vperm.xlu1 %7101, %v2854_v50   ;;  %v5217_v39 = vpop.permute.xlu1 %5216  ;;  %v5272_v46 = vpop.permute.xlu0 %5271  ;;  %v2864_v50 = vld [vmem:[%s17397_s2 + $0x370] sm:$0xff] }
 0x63d   :  { %v6210_v17 = vadd.f32 %v5217_v39, %v4842_v61  ;;  %v6221_v44 = vadd.f32 %v5272_v46, %v4853_v47  ;;  %5591 = vperm.xlu0 %7100, %v2865_v0   ;;  %v2875_v0 = vld [vmem:[%s17397_s2 + $0x3c8] sm:$0xff]  ;;  %v19018_v39 = vld [vmem:[#allocation312_spill] sm:$0xff] }
 0x63e   :  { %v19016_v61 = vld [vmem:[#allocation299_spill] sm:$0xff] }
 0x63f   :  { %6438 = vst.msk [vmem:[%s17398_s3 + $0x120] sm:$0xff] %vm245_vm0, %v6210_v17  ;;  %6449 = vst.msk [vmem:[%s17398_s3 + $0x178] sm:$0xff] %vm245_vm0, %v6221_v44  ;;  %v4852_v51 = vmul.f32 %v19016_v61, %v19015_v23  ;;  %v19017_v47 = vld [vmem:[#allocation7_spill] sm:$0xff] }
 0x640   :  { %5546 = vperm.xlu1 %7101, %v2856_v15   ;;  %v5227_v42 = vpop.permute.xlu1 %5226  ;;  %v5282_v22 = vpop.permute.xlu0 %5281  ;;  %v4863_v46 = vmul.f32 %v19018_v39, %v19017_v47 }
 0x641   :  { %v6212_v21 = vadd.f32 %v5227_v42, %v4844_v31  ;;  %v6223_v19 = vadd.f32 %v5282_v22, %v4855_v40  ;;  %5601 = vperm.xlu0 %7100, %v2867_v16   ;;  %v2877_v31 = vld [vmem:[%s17397_s2 + $0x3d8] sm:$0xff]  ;;  %v19020_v40 = vld [vmem:[#allocation302_spill] sm:$0xff] }
 0x642   :  { %v4854_v42 = vmul.f32 %v19020_v40, %v19019_v41  ;;  %v19021_v22 = vld [vmem:[#allocation9_spill] sm:$0xff] }
 0x643   :  { %6440 = vst.msk [vmem:[%s17398_s3 + $0x130] sm:$0xff] %vm245_vm0, %v6212_v21  ;;  %6451 = vst.msk [vmem:[%s17398_s3 + $0x188] sm:$0xff] %vm245_vm0, %v6223_v19  ;;  %v19022_v21 = vld [vmem:[#allocation314_spill] sm:$0xff] }
 0x644   :  { %5556 = vperm.xlu1 %7101, %v2858_v25   ;;  %v5237_v33 = vpop.permute.xlu1 %5236  ;;  %v5292_v48 = vpop.permute.xlu0 %5291  ;;  %v4865_v19 = vmul.f32 %v19022_v21, %v19021_v22 }
 0x645   :  { %v6214_v11 = vadd.f32 %v5237_v33, %v4846_v14  ;;  %v6225_v7 = vadd.f32 %v5292_v48, %v4857_v4  ;;  %5611 = vperm.xlu0 %7100, %v2869_v34   ;;  %v2879_v4 = vld [vmem:[%s17397_s2 + $0x3e8] sm:$0xff]  ;;  %v19023_v33 = vld [vmem:[#allocation2_spill] sm:$0xff] }
 0x646   :  { %v19024_v48 = vld [vmem:[#allocation307_spill] sm:$0xff] }
 0x647   :  { %6442 = vst.msk [vmem:[%s17398_s3 + $0x140] sm:$0xff] %vm245_vm0, %v6214_v11  ;;  %6453 = vst.msk [vmem:[%s17398_s3 + $0x198] sm:$0xff] %vm245_vm0, %v6225_v7  ;;  %v4856_v11 = vmul.f32 %v19024_v48, %v19023_v33  ;;  %v19025_v7 = vld [vmem:[#allocation11_spill] sm:$0xff] }
 0x648   :  { %5566 = vperm.xlu1 %7101, %v2860_v12   ;;  %v5247_v37 = vpop.permute.xlu1 %5246  ;;  %v5302_v3 = vpop.permute.xlu0 %5301  ;;  %v19026_v12 = vld [vmem:[#allocation316_spill] sm:$0xff] }
 0x649   :  { %v6216_v10 = vadd.f32 %v5247_v37, %v4848_v63  ;;  %v6227_v5 = vadd.f32 %v5302_v3, %v4859_v49  ;;  %5621 = vperm.xlu0 %7100, %v2871_v28   ;;  %v4867_v28 = vmul.f32 %v19026_v12, %v19025_v7  ;;  %v2870_v49 = vld [vmem:[%s17397_s2 + $0x3a0] sm:$0xff]  ;;  %v2881_v37 = vld [vmem:[%s17397_s2 + $0x3f8] sm:$0xff]  ;;  %v19027_v3 = vld [vmem:[#allocation4_spill] sm:$0xff] }
 0x64b   :  { %6444 = vst.msk [vmem:[%s17398_s3 + $0x150] sm:$0xff] %vm245_vm0, %v6216_v10  ;;  %6455 = vst.msk [vmem:[%s17398_s3 + $0x1a8] sm:$0xff] %vm245_vm0, %v6227_v5  ;;  %v19028_v10 = vld [vmem:[#allocation308_spill] sm:$0xff] }
 0x64c   :  { %5576 = vperm.xlu1 %7101, %v2862_v45   ;;  %v5257_v62 = vpop.permute.xlu1 %5256  ;;  %v5312_v1 = vpop.permute.xlu0 %5311  ;;  %v4858_v5 = vmul.f32 %v19028_v10, %v19027_v3  ;;  %v19029_v45 = vld [vmem:[#allocation13_spill] sm:$0xff] }
 0x64d   :  { %v6218_v32 = vadd.f32 %v5257_v62, %v4850_v53  ;;  %v6229_v35 = vadd.f32 %v5312_v1, %v4861_v38  ;;  %5631 = vperm.xlu0 %7100, %v2873_v54   ;;  %v19030_v54 = vld [vmem:[#allocation318_spill] sm:$0xff]  ;;  %v2872_v38 = vld [vmem:[%s17397_s2 + $0x3b0] sm:$0xff]  ;;  %v2883_v62 = vld [vmem:[%s17397_s2 + $0x408] sm:$0xff] }
 0x64e   :  { %v4869_v24 = vmul.f32 %v19030_v54, %v19029_v45  ;;  %v19031_v1 = vld [vmem:[#allocation6_spill] sm:$0xff] }
 0x64f   :  { %6446 = vst.msk [vmem:[%s17398_s3 + $0x160] sm:$0xff] %vm245_vm0, %v6218_v32  ;;  %6457 = vst.msk [vmem:[%s17398_s3 + $0x1b8] sm:$0xff] %vm245_vm0, %v6229_v35  ;;  %v19032_v32 = vld [vmem:[#allocation311_spill] sm:$0xff] }
 0x650   :  { %5586 = vperm.xlu1 %7101, %v2864_v50   ;;  %v5267_v17 = vpop.permute.xlu1 %5266  ;;  %v5322_v44 = vpop.permute.xlu0 %5321  ;;  %v4860_v35 = vmul.f32 %v19032_v32, %v19031_v1  ;;  %v19033_v50 = vld [vmem:[#allocation15_spill] sm:$0xff] }
 0x651   :  { %v6220_v15 = vadd.f32 %v5267_v17, %v4852_v51  ;;  %v6231_v16 = vadd.f32 %v5322_v44, %v4863_v46  ;;  %5641 = vperm.xlu0 %7100, %v2875_v0   ;;  %v19034_v0 = vld [vmem:[#allocation320_spill] sm:$0xff]  ;;  %v2874_v46 = vld [vmem:[%s17397_s2 + $0x3c0] sm:$0xff]  ;;  %v2885_v17 = vld [vmem:[%s17397_s2 + $0x418] sm:$0xff] }
 0x652   :  { %v4871_v23 = vmul.f32 %v19034_v0, %v19033_v50  ;;  %v19035_v44 = vld [vmem:[#allocation8_spill] sm:$0xff] }
 0x653   :  { %6448 = vst.msk [vmem:[%s17398_s3 + $0x170] sm:$0xff] %vm245_vm0, %v6220_v15  ;;  %6459 = vst.msk [vmem:[%s17398_s3 + $0x1c8] sm:$0xff] %vm245_vm0, %v6231_v16  ;;  %v19036_v15 = vld [vmem:[#allocation313_spill] sm:$0xff] }
 0x654   :  { %5596 = vperm.xlu1 %7101, %v2866_v29   ;;  %v5277_v25 = vpop.permute.xlu1 %5276  ;;  %v5332_v34 = vpop.permute.xlu0 %5331  ;;  %v4862_v16 = vmul.f32 %v19036_v15, %v19035_v44  ;;  %v19037_v29 = vld [vmem:[#allocation17_spill] sm:$0xff] }
 0x655   :  { %v6222_v9 = vadd.f32 %v5277_v25, %v4854_v42  ;;  %v6233_v14 = vadd.f32 %v5332_v34, %v4865_v19  ;;  %5651 = vperm.xlu0 %7100, %v2877_v31   ;;  %v19038_v31 = vld [vmem:[#allocation322_spill] sm:$0xff]  ;;  %v2876_v19 = vld [vmem:[%s17397_s2 + $0x3d0] sm:$0xff]  ;;  %v2887_v25 = vld [vmem:[%s17397_s2 + $0x428] sm:$0xff] }
 0x656   :  { %v4873_v41 = vmul.f32 %v19038_v31, %v19037_v29  ;;  %v19039_v34 = vld [vmem:[#allocation10_spill] sm:$0xff] }
 0x657   :  { %6450 = vst.msk [vmem:[%s17398_s3 + $0x180] sm:$0xff] %vm245_vm0, %v6222_v9  ;;  %6461 = vst.msk [vmem:[%s17398_s3 + $0x1d8] sm:$0xff] %vm245_vm0, %v6233_v14  ;;  %v19040_v9 = vld [vmem:[#allocation315_spill] sm:$0xff] }
 0x658   :  { %5606 = vperm.xlu1 %7101, %v2868_v18   ;;  %v5287_v55 = vpop.permute.xlu1 %5286  ;;  %v5342_v63 = vpop.permute.xlu0 %5341  ;;  %v4864_v14 = vmul.f32 %v19040_v9, %v19039_v34  ;;  %v19041_v18 = vld [vmem:[#allocation19_spill] sm:$0xff] }
 0x659   :  { %v6224_v20 = vadd.f32 %v5287_v55, %v4856_v11  ;;  %v6235_v52 = vadd.f32 %v5342_v63, %v4867_v28  ;;  %5661 = vperm.xlu0 %7100, %v2879_v4   ;;  %v19042_v4 = vld [vmem:[#allocation324_spill] sm:$0xff]  ;;  %v2878_v28 = vld [vmem:[%s17397_s2 + $0x3e0] sm:$0xff]  ;;  %v2889_v55 = vld [vmem:[%s17397_s2 + $0x438] sm:$0xff] }
 0x65a   :  { %v4875_v33 = vmul.f32 %v19042_v4, %v19041_v18  ;;  %v19043_v63 = vld [vmem:[#allocation12_spill] sm:$0xff] }
 0x65b   :  { %6452 = vst.msk [vmem:[%s17398_s3 + $0x190] sm:$0xff] %vm245_vm0, %v6224_v20  ;;  %6463 = vst.msk [vmem:[%s17398_s3 + $0x1e8] sm:$0xff] %vm245_vm0, %v6235_v52  ;;  %v19044_v20 = vld [vmem:[#allocation317_spill] sm:$0xff] }
 0x65c   :  { %5616 = vperm.xlu1 %7101, %v2870_v49   ;;  %v5297_v60 = vpop.permute.xlu1 %5296  ;;  %v5352_v53 = vpop.permute.xlu0 %5351  ;;  %v4866_v52 = vmul.f32 %v19044_v20, %v19043_v63  ;;  %v19045_v49 = vld [vmem:[#allocation21_spill] sm:$0xff] }
 0x65d   :  { %v6226_v8 = vadd.f32 %v5297_v60, %v4858_v5  ;;  %v6237_v30 = vadd.f32 %v5352_v53, %v4869_v24  ;;  %5671 = vperm.xlu0 %7100, %v2881_v37   ;;  %v19046_v37 = vld [vmem:[#allocation326_spill] sm:$0xff]  ;;  %v2880_v24 = vld [vmem:[%s17397_s2 + $0x3f0] sm:$0xff]  ;;  %v2891_v60 = vld [vmem:[%s17397_s2 + $0x448] sm:$0xff] }
 0x65e   :  { %v4877_v3 = vmul.f32 %v19046_v37, %v19045_v49  ;;  %v19047_v53 = vld [vmem:[#allocation14_spill] sm:$0xff] }
 0x65f   :  { %6454 = vst.msk [vmem:[%s17398_s3 + $0x1a0] sm:$0xff] %vm245_vm0, %v6226_v8  ;;  %6465 = vst.msk [vmem:[%s17398_s3 + $0x1f8] sm:$0xff] %vm245_vm0, %v6237_v30  ;;  %v19048_v8 = vld [vmem:[#allocation319_spill] sm:$0xff] }
 0x660   :  { %5626 = vperm.xlu1 %7101, %v2872_v38   ;;  %v5307_v61 = vpop.permute.xlu1 %5306  ;;  %v5362_v51 = vpop.permute.xlu0 %5361  ;;  %v4868_v30 = vmul.f32 %v19048_v8, %v19047_v53  ;;  %v19049_v38 = vld [vmem:[#allocation23_spill] sm:$0xff] }
 0x661   :  { %v6228_v47 = vadd.f32 %v5307_v61, %v4860_v35  ;;  %v6239_v39 = vadd.f32 %v5362_v51, %v4871_v23  ;;  %5681 = vperm.xlu0 %7100, %v2883_v62   ;;  %v19050_v62 = vld [vmem:[#allocation328_spill] sm:$0xff]  ;;  %v2882_v23 = vld [vmem:[%s17397_s2 + $0x400] sm:$0xff]  ;;  %v2893_v61 = vld [vmem:[%s17397_s2 + $0x458] sm:$0xff] }
 0x662   :  { %v4879_v1 = vmul.f32 %v19050_v62, %v19049_v38  ;;  %v19051_v51 = vld [vmem:[#allocation16_spill] sm:$0xff] }
 0x663   :  { %6456 = vst.msk [vmem:[%s17398_s3 + $0x1b0] sm:$0xff] %vm245_vm0, %v6228_v47  ;;  %6467 = vst.msk [vmem:[%s17398_s3 + $0x208] sm:$0xff] %vm245_vm0, %v6239_v39  ;;  %v19052_v47 = vld [vmem:[#allocation321_spill] sm:$0xff] }
 0x664   :  { %5636 = vperm.xlu1 %7101, %v2874_v46   ;;  %v5317_v40 = vpop.permute.xlu1 %5316  ;;  %v5372_v42 = vpop.permute.xlu0 %5371  ;;  %v4870_v39 = vmul.f32 %v19052_v47, %v19051_v51  ;;  %v19053_v46 = vld [vmem:[#allocation25_spill] sm:$0xff] }
 0x665   :  { %v6230_v22 = vadd.f32 %v5317_v40, %v4862_v16  ;;  %v6241_v21 = vadd.f32 %v5372_v42, %v4873_v41  ;;  %5691 = vperm.xlu0 %7100, %v2885_v17   ;;  %v19054_v17 = vld [vmem:[#allocation330_spill] sm:$0xff]  ;;  %v2884_v41 = vld [vmem:[%s17397_s2 + $0x410] sm:$0xff]  ;;  %v2895_v40 = vld [vmem:[%s17397_s2 + $0x468] sm:$0xff] }
 0x666   :  { %v4881_v44 = vmul.f32 %v19054_v17, %v19053_v46  ;;  %v19055_v42 = vld [vmem:[#allocation18_spill] sm:$0xff] }
 0x667   :  { %6458 = vst.msk [vmem:[%s17398_s3 + $0x1c0] sm:$0xff] %vm245_vm0, %v6230_v22  ;;  %6469 = vst.msk [vmem:[%s17398_s3 + $0x218] sm:$0xff] %vm245_vm0, %v6241_v21  ;;  %v19056_v22 = vld [vmem:[#allocation323_spill] sm:$0xff] }
 0x668   :  { %5646 = vperm.xlu1 %7101, %v2876_v19   ;;  %v5327_v48 = vpop.permute.xlu1 %5326  ;;  %v5382_v11 = vpop.permute.xlu0 %5381  ;;  %v4872_v21 = vmul.f32 %v19056_v22, %v19055_v42  ;;  %v19057_v19 = vld [vmem:[#allocation27_spill] sm:$0xff] }
 0x669   :  { %v6232_v7 = vadd.f32 %v5327_v48, %v4864_v14  ;;  %v6243_v12 = vadd.f32 %v5382_v11, %v4875_v33  ;;  %5701 = vperm.xlu0 %7100, %v2887_v25   ;;  %v19058_v25 = vld [vmem:[#allocation332_spill] sm:$0xff]  ;;  %v2886_v33 = vld [vmem:[%s17397_s2 + $0x420] sm:$0xff]  ;;  %v2897_v48 = vld [vmem:[%s17397_s2 + $0x478] sm:$0xff] }
 0x66a   :  { %v4883_v34 = vmul.f32 %v19058_v25, %v19057_v19  ;;  %v19059_v11 = vld [vmem:[#allocation20_spill] sm:$0xff] }
 0x66b   :  { %6460 = vst.msk [vmem:[%s17398_s3 + $0x1d0] sm:$0xff] %vm245_vm0, %v6232_v7  ;;  %6471 = vst.msk [vmem:[%s17398_s3 + $0x228] sm:$0xff] %vm245_vm0, %v6243_v12  ;;  %v19060_v7 = vld [vmem:[#allocation325_spill] sm:$0xff] }
 0x66c   :  { %5656 = vperm.xlu1 %7101, %v2878_v28   ;;  %v5337_v10 = vpop.permute.xlu1 %5336  ;;  %v5392_v5 = vpop.permute.xlu0 %5391  ;;  %v4874_v12 = vmul.f32 %v19060_v7, %v19059_v11  ;;  %v19061_v28 = vld [vmem:[#allocation29_spill] sm:$0xff] }
 0x66d   :  { %v6234_v45 = vadd.f32 %v5337_v10, %v4866_v52  ;;  %v6245_v54 = vadd.f32 %v5392_v5, %v4877_v3  ;;  %5711 = vperm.xlu0 %7100, %v2889_v55   ;;  %v19062_v55 = vld [vmem:[#allocation334_spill] sm:$0xff]  ;;  %v2888_v3 = vld [vmem:[%s17397_s2 + $0x430] sm:$0xff]  ;;  %v2899_v10 = vld [vmem:[%s17397_s2 + $0x488] sm:$0xff] }
 0x66e   :  { %v4885_v63 = vmul.f32 %v19062_v55, %v19061_v28  ;;  %v19063_v5 = vld [vmem:[#allocation22_spill] sm:$0xff] }
 0x66f   :  { %6462 = vst.msk [vmem:[%s17398_s3 + $0x1e0] sm:$0xff] %vm245_vm0, %v6234_v45  ;;  %6473 = vst.msk [vmem:[%s17398_s3 + $0x238] sm:$0xff] %vm245_vm0, %v6245_v54  ;;  %v19064_v45 = vld [vmem:[#allocation327_spill] sm:$0xff] }
 0x670   :  { %5666 = vperm.xlu1 %7101, %v2880_v24   ;;  %v5347_v32 = vpop.permute.xlu1 %5346  ;;  %v5402_v35 = vpop.permute.xlu0 %5401  ;;  %v4876_v54 = vmul.f32 %v19064_v45, %v19063_v5  ;;  %v19065_v24 = vld [vmem:[#allocation31_spill] sm:$0xff] }
 0x671   :  { %v6236_v50 = vadd.f32 %v5347_v32, %v4868_v30  ;;  %v6247_v0 = vadd.f32 %v5402_v35, %v4879_v1  ;;  %5721 = vperm.xlu0 %7100, %v2891_v60   ;;  %v19066_v60 = vld [vmem:[#allocation336_spill] sm:$0xff]  ;;  %v2890_v1 = vld [vmem:[%s17397_s2 + $0x440] sm:$0xff]  ;;  %v2901_v32 = vld [vmem:[%s17397_s2 + $0x498] sm:$0xff] }
 0x672   :  { %v4887_v53 = vmul.f32 %v19066_v60, %v19065_v24  ;;  %v19067_v35 = vld [vmem:[#allocation24_spill] sm:$0xff] }
 0x673   :  { %6464 = vst.msk [vmem:[%s17398_s3 + $0x1f0] sm:$0xff] %vm245_vm0, %v6236_v50  ;;  %6475 = vst.msk [vmem:[%s17398_s3 + $0x248] sm:$0xff] %vm245_vm0, %v6247_v0  ;;  %v19068_v50 = vld [vmem:[#allocation329_spill] sm:$0xff] }
 0x674   :  { %5676 = vperm.xlu1 %7101, %v2882_v23   ;;  %v5357_v15 = vpop.permute.xlu1 %5356  ;;  %v5412_v16 = vpop.permute.xlu0 %5411  ;;  %v4878_v0 = vmul.f32 %v19068_v50, %v19067_v35  ;;  %v19069_v23 = vld [vmem:[#allocation33_spill] sm:$0xff] }
 0x675   :  { %v6238_v29 = vadd.f32 %v5357_v15, %v4870_v39  ;;  %v6249_v31 = vadd.f32 %v5412_v16, %v4881_v44  ;;  %5731 = vperm.xlu0 %7100, %v2893_v61   ;;  %v19070_v61 = vld [vmem:[#allocation183_spill] sm:$0xff]  ;;  %v2892_v44 = vld [vmem:[%s17397_s2 + $0x450] sm:$0xff]  ;;  %v19071_v16 = vld [vmem:[#allocation26_spill] sm:$0xff] }
 0x676   :  { %v4889_v51 = vmul.f32 %v19070_v61, %v19069_v23  ;;  %v2903_v15 = vld [vmem:[%s17397_s2 + $0x4a8] sm:$0xff] }
 0x677   :  { %6466 = vst.msk [vmem:[%s17398_s3 + $0x200] sm:$0xff] %vm245_vm0, %v6238_v29  ;;  %6477 = vst.msk [vmem:[%s17398_s3 + $0x258] sm:$0xff] %vm245_vm0, %v6249_v31  ;;  %v19072_v29 = vld [vmem:[#allocation331_spill] sm:$0xff] }
 0x678   :  { %5686 = vperm.xlu1 %7101, %v2884_v41   ;;  %v5367_v9 = vpop.permute.xlu1 %5366  ;;  %v5422_v14 = vpop.permute.xlu0 %5421  ;;  %v4880_v31 = vmul.f32 %v19072_v29, %v19071_v16  ;;  %v19073_v41 = vld [vmem:[#allocation35_spill] sm:$0xff] }
 0x679   :  { %v6240_v18 = vadd.f32 %v5367_v9, %v4872_v21  ;;  %v6251_v4 = vadd.f32 %v5422_v14, %v4883_v34  ;;  %5741 = vperm.xlu0 %7100, %v2895_v40   ;;  %v19074_v40 = vld [vmem:[#allocation186_spill] sm:$0xff]  ;;  %v2905_v9 = vld [vmem:[%s17397_s2 + $0x4b8] sm:$0xff]  ;;  %v19075_v14 = vld [vmem:[#allocation28_spill] sm:$0xff] }
 0x67a   :  { %v4891_v42 = vmul.f32 %v19074_v40, %v19073_v41  ;;  %v2894_v34 = vld [vmem:[%s17397_s2 + $0x460] sm:$0xff] }
 0x67b   :  { %6468 = vst.msk [vmem:[%s17398_s3 + $0x210] sm:$0xff] %vm245_vm0, %v6240_v18  ;;  %6479 = vst.msk [vmem:[%s17398_s3 + $0x268] sm:$0xff] %vm245_vm0, %v6251_v4  ;;  %v19076_v18 = vld [vmem:[#allocation333_spill] sm:$0xff] }
 0x67c   :  { %5696 = vperm.xlu1 %7101, %v2886_v33   ;;  %v5377_v20 = vpop.permute.xlu1 %5376  ;;  %v5432_v52 = vpop.permute.xlu0 %5431  ;;  %v4882_v4 = vmul.f32 %v19076_v18, %v19075_v14  ;;  %v19077_v33 = vld [vmem:[#allocation37_spill] sm:$0xff] }
 0x67d   :  { %v6242_v49 = vadd.f32 %v5377_v20, %v4874_v12  ;;  %v6253_v37 = vadd.f32 %v5432_v52, %v4885_v63  ;;  %5751 = vperm.xlu0 %7100, %v2897_v48   ;;  %v19078_v48 = vld [vmem:[#allocation184_spill] sm:$0xff]  ;;  %v2907_v20 = vld [vmem:[%s17397_s2 + $0x4c8] sm:$0xff]  ;;  %v19079_v52 = vld [vmem:[#allocation30_spill] sm:$0xff] }
 0x67e   :  { %v4893_v11 = vmul.f32 %v19078_v48, %v19077_v33  ;;  %v2896_v63 = vld [vmem:[%s17397_s2 + $0x470] sm:$0xff] }
 0x67f   :  { %6470 = vst.msk [vmem:[%s17398_s3 + $0x220] sm:$0xff] %vm245_vm0, %v6242_v49  ;;  %6481 = vst.msk [vmem:[%s17398_s3 + $0x278] sm:$0xff] %vm245_vm0, %v6253_v37  ;;  %v19080_v49 = vld [vmem:[#allocation335_spill] sm:$0xff] }
 0x680   :  { %5706 = vperm.xlu1 %7101, %v2888_v3   ;;  %v5387_v8 = vpop.permute.xlu1 %5386  ;;  %v5442_v30 = vpop.permute.xlu0 %5441  ;;  %v4884_v37 = vmul.f32 %v19080_v49, %v19079_v52  ;;  %v19081_v3 = vld [vmem:[#allocation39_spill] sm:$0xff] }
 0x681   :  { %v6244_v38 = vadd.f32 %v5387_v8, %v4876_v54  ;;  %v6255_v62 = vadd.f32 %v5442_v30, %v4887_v53  ;;  %5761 = vperm.xlu0 %7100, %v2899_v10   ;;  %v19082_v10 = vld [vmem:[#allocation191_spill] sm:$0xff]  ;;  %v2898_v53 = vld [vmem:[%s17397_s2 + $0x480] sm:$0xff]  ;;  %v2909_v8 = vld [vmem:[%s17397_s2 + $0x4d8] sm:$0xff] }
 0x682   :  { %v4895_v5 = vmul.f32 %v19082_v10, %v19081_v3  ;;  %v19083_v30 = vld [vmem:[#allocation32_spill] sm:$0xff] }
 0x683   :  { %6472 = vst.msk [vmem:[%s17398_s3 + $0x230] sm:$0xff] %vm245_vm0, %v6244_v38  ;;  %6483 = vst.msk [vmem:[%s17398_s3 + $0x288] sm:$0xff] %vm245_vm0, %v6255_v62  ;;  %v19084_v38 = vld [vmem:[#allocation337_spill] sm:$0xff] }
 0x684   :  { %5716 = vperm.xlu1 %7101, %v2890_v1   ;;  %v5397_v47 = vpop.permute.xlu1 %5396  ;;  %v5452_v39 = vpop.permute.xlu0 %5451  ;;  %v4886_v62 = vmul.f32 %v19084_v38, %v19083_v30  ;;  %v19085_v1 = vld [vmem:[#allocation41_spill] sm:$0xff] }
 0x685   :  { %v6246_v46 = vadd.f32 %v5397_v47, %v4878_v0  ;;  %v6257_v17 = vadd.f32 %v5452_v39, %v4889_v51  ;;  %5771 = vperm.xlu0 %7100, %v2901_v32   ;;  %v19086_v32 = vld [vmem:[#allocation193_spill] sm:$0xff]  ;;  %v2900_v51 = vld [vmem:[%s17397_s2 + $0x490] sm:$0xff]  ;;  %v2911_v47 = vld [vmem:[%s17397_s2 + $0x4e8] sm:$0xff] }
 0x686   :  { %v4897_v35 = vmul.f32 %v19086_v32, %v19085_v1  ;;  %v19087_v39 = vld [vmem:[#allocation34_spill] sm:$0xff] }
 0x687   :  { %6474 = vst.msk [vmem:[%s17398_s3 + $0x240] sm:$0xff] %vm245_vm0, %v6246_v46  ;;  %6485 = vst.msk [vmem:[%s17398_s3 + $0x298] sm:$0xff] %vm245_vm0, %v6257_v17  ;;  %v19088_v46 = vld [vmem:[#allocation338_spill] sm:$0xff] }
 0x688   :  { %5726 = vperm.xlu1 %7101, %v2892_v44   ;;  %v5407_v22 = vpop.permute.xlu1 %5406  ;;  %v5462_v21 = vpop.permute.xlu0 %5461  ;;  %v4888_v17 = vmul.f32 %v19088_v46, %v19087_v39  ;;  %v19089_v44 = vld [vmem:[#allocation43_spill] sm:$0xff] }
 0x689   :  { %v6248_v19 = vadd.f32 %v5407_v22, %v4880_v31  ;;  %v6259_v25 = vadd.f32 %v5462_v21, %v4891_v42  ;;  %5781 = vperm.xlu0 %7100, %v2903_v15   ;;  %v19090_v15 = vld [vmem:[#allocation195_spill] sm:$0xff]  ;;  %v2902_v42 = vld [vmem:[%s17397_s2 + $0x4a0] sm:$0xff]  ;;  %v2913_v22 = vld [vmem:[%s17397_s2 + $0x4f8] sm:$0xff] }
 0x68a   :  { %v4899_v16 = vmul.f32 %v19090_v15, %v19089_v44  ;;  %v19091_v21 = vld [vmem:[#allocation36_spill] sm:$0xff] }
 0x68b   :  { %6476 = vst.msk [vmem:[%s17398_s3 + $0x250] sm:$0xff] %vm245_vm0, %v6248_v19  ;;  %6487 = vst.msk [vmem:[%s17398_s3 + $0x2a8] sm:$0xff] %vm245_vm0, %v6259_v25  ;;  %v19092_v19 = vld [vmem:[#allocation339_spill] sm:$0xff] }
 0x68c   :  { %5736 = vperm.xlu1 %7101, %v2894_v34   ;;  %v5417_v7 = vpop.permute.xlu1 %5416  ;;  %v5472_v12 = vpop.permute.xlu0 %5471  ;;  %v4890_v25 = vmul.f32 %v19092_v19, %v19091_v21  ;;  %v19093_v34 = vld [vmem:[#allocation45_spill] sm:$0xff] }
 0x68d   :  { %v6250_v28 = vadd.f32 %v5417_v7, %v4882_v4  ;;  %v6261_v55 = vadd.f32 %v5472_v12, %v4893_v11  ;;  %5791 = vperm.xlu0 %7100, %v2905_v9   ;;  %v19094_v9 = vld [vmem:[#allocation197_spill] sm:$0xff]  ;;  %v2904_v11 = vld [vmem:[%s17397_s2 + $0x4b0] sm:$0xff]  ;;  %v2915_v7 = vld [vmem:[%s17397_s2 + $0x508] sm:$0xff] }
 0x68e   :  { %v4901_v14 = vmul.f32 %v19094_v9, %v19093_v34  ;;  %v19095_v12 = vld [vmem:[#allocation38_spill] sm:$0xff] }
 0x68f   :  { %6478 = vst.msk [vmem:[%s17398_s3 + $0x260] sm:$0xff] %vm245_vm0, %v6250_v28  ;;  %6489 = vst.msk [vmem:[%s17398_s3 + $0x2b8] sm:$0xff] %vm245_vm0, %v6261_v55  ;;  %v19096_v28 = vld [vmem:[#allocation185_spill] sm:$0xff] }
 0x690   :  { %5746 = vperm.xlu1 %7101, %v2896_v63   ;;  %v5427_v45 = vpop.permute.xlu1 %5426  ;;  %v5482_v54 = vpop.permute.xlu0 %5481  ;;  %v4892_v55 = vmul.f32 %v19096_v28, %v19095_v12  ;;  %v19097_v63 = vld [vmem:[#allocation47_spill] sm:$0xff] }
 0x691   :  { %v6252_v24 = vadd.f32 %v5427_v45, %v4884_v37  ;;  %v6263_v60 = vadd.f32 %v5482_v54, %v4895_v5  ;;  %5801 = vperm.xlu0 %7100, %v2907_v20   ;;  %v19098_v20 = vld [vmem:[#allocation199_spill] sm:$0xff]  ;;  %v2906_v5 = vld [vmem:[%s17397_s2 + $0x4c0] sm:$0xff]  ;;  %v2917_v45 = vld [vmem:[%s17397_s2 + $0x518] sm:$0xff] }
 0x692   :  { %v4903_v52 = vmul.f32 %v19098_v20, %v19097_v63  ;;  %v19099_v54 = vld [vmem:[#allocation40_spill] sm:$0xff] }
 0x693   :  { %6480 = vst.msk [vmem:[%s17398_s3 + $0x270] sm:$0xff] %vm245_vm0, %v6252_v24  ;;  %6491 = vst.msk [vmem:[%s17398_s3 + $0x2c8] sm:$0xff] %vm245_vm0, %v6263_v60  ;;  %v19100_v24 = vld [vmem:[#allocation188_spill] sm:$0xff] }
 0x694   :  { %5756 = vperm.xlu1 %7101, %v2898_v53   ;;  %v5437_v50 = vpop.permute.xlu1 %5436  ;;  %v5492_v0 = vpop.permute.xlu0 %5491  ;;  %v4894_v60 = vmul.f32 %v19100_v24, %v19099_v54  ;;  %v19101_v53 = vld [vmem:[#allocation49_spill] sm:$0xff] }
 0x695   :  { %v6254_v23 = vadd.f32 %v5437_v50, %v4886_v62  ;;  %v6265_v61 = vadd.f32 %v5492_v0, %v4897_v35  ;;  %5811 = vperm.xlu0 %7100, %v2909_v8   ;;  %v19102_v8 = vld [vmem:[#allocation201_spill] sm:$0xff]  ;;  %v2908_v35 = vld [vmem:[%s17397_s2 + $0x4d0] sm:$0xff]  ;;  %v2919_v50 = vld [vmem:[%s17397_s2 + $0x528] sm:$0xff] }
 0x696   :  { %v4905_v30 = vmul.f32 %v19102_v8, %v19101_v53  ;;  %v19103_v0 = vld [vmem:[#allocation42_spill] sm:$0xff] }
 0x697   :  { %6482 = vst.msk [vmem:[%s17398_s3 + $0x280] sm:$0xff] %vm245_vm0, %v6254_v23  ;;  %6493 = vst.msk [vmem:[%s17398_s3 + $0x2d8] sm:$0xff] %vm245_vm0, %v6265_v61  ;;  %v19104_v23 = vld [vmem:[#allocation187_spill] sm:$0xff] }
 0x698   :  { %5766 = vperm.xlu1 %7101, %v2900_v51   ;;  %v5447_v29 = vpop.permute.xlu1 %5446  ;;  %v5502_v31 = vpop.permute.xlu0 %5501  ;;  %v4896_v61 = vmul.f32 %v19104_v23, %v19103_v0  ;;  %v19105_v51 = vld [vmem:[#allocation51_spill] sm:$0xff] }
 0x699   :  { %v6256_v41 = vadd.f32 %v5447_v29, %v4888_v17  ;;  %v6267_v40 = vadd.f32 %v5502_v31, %v4899_v16  ;;  %5821 = vperm.xlu0 %7100, %v2911_v47   ;;  %v19106_v47 = vld [vmem:[#allocation203_spill] sm:$0xff]  ;;  %v2910_v16 = vld [vmem:[%s17397_s2 + $0x4e0] sm:$0xff]  ;;  %v2921_v29 = vld [vmem:[%s17397_s2 + $0x538] sm:$0xff] }
 0x69a   :  { %v4907_v39 = vmul.f32 %v19106_v47, %v19105_v51  ;;  %v19107_v31 = vld [vmem:[#allocation44_spill] sm:$0xff] }
 0x69b   :  { %6484 = vst.msk [vmem:[%s17398_s3 + $0x290] sm:$0xff] %vm245_vm0, %v6256_v41  ;;  %6495 = vst.msk [vmem:[%s17398_s3 + $0x2e8] sm:$0xff] %vm245_vm0, %v6267_v40  ;;  %v19108_v41 = vld [vmem:[#allocation190_spill] sm:$0xff] }
 0x69c   :  { %5776 = vperm.xlu1 %7101, %v2902_v42   ;;  %v5457_v18 = vpop.permute.xlu1 %5456  ;;  %v5512_v4 = vpop.permute.xlu0 %5511  ;;  %v4898_v40 = vmul.f32 %v19108_v41, %v19107_v31  ;;  %v19109_v42 = vld [vmem:[#allocation53_spill] sm:$0xff] }
 0x69d   :  { %v6258_v33 = vadd.f32 %v5457_v18, %v4890_v25  ;;  %v6269_v48 = vadd.f32 %v5512_v4, %v4901_v14  ;;  %5831 = vperm.xlu0 %7100, %v2913_v22   ;;  %v19110_v22 = vld [vmem:[#allocation205_spill] sm:$0xff]  ;;  %v2912_v14 = vld [vmem:[%s17397_s2 + $0x4f0] sm:$0xff]  ;;  %v2923_v18 = vld [vmem:[%s17397_s2 + $0x548] sm:$0xff] }
 0x69e   :  { %v4909_v21 = vmul.f32 %v19110_v22, %v19109_v42  ;;  %v19111_v4 = vld [vmem:[#allocation46_spill] sm:$0xff] }
 0x69f   :  { %6486 = vst.msk [vmem:[%s17398_s3 + $0x2a0] sm:$0xff] %vm245_vm0, %v6258_v33  ;;  %6497 = vst.msk [vmem:[%s17398_s3 + $0x2f8] sm:$0xff] %vm245_vm0, %v6269_v48  ;;  %v19112_v33 = vld [vmem:[#allocation189_spill] sm:$0xff] }
 0x6a0   :  { %5786 = vperm.xlu1 %7101, %v2904_v11   ;;  %v5467_v49 = vpop.permute.xlu1 %5466  ;;  %v5522_v37 = vpop.permute.xlu0 %5521  ;;  %v4900_v48 = vmul.f32 %v19112_v33, %v19111_v4  ;;  %v19113_v11 = vld [vmem:[#allocation55_spill] sm:$0xff] }
 0x6a1   :  { %v6260_v3 = vadd.f32 %v5467_v49, %v4892_v55  ;;  %v6271_v10 = vadd.f32 %v5522_v37, %v4903_v52  ;;  %5841 = vperm.xlu0 %7100, %v2915_v7   ;;  %v19114_v7 = vld [vmem:[#allocation207_spill] sm:$0xff]  ;;  %v2914_v52 = vld [vmem:[%s17397_s2 + $0x500] sm:$0xff]  ;;  %v2925_v49 = vld [vmem:[%s17397_s2 + $0x558] sm:$0xff] }
 0x6a2   :  { %v4911_v12 = vmul.f32 %v19114_v7, %v19113_v11  ;;  %v19115_v37 = vld [vmem:[#allocation48_spill] sm:$0xff] }
 0x6a3   :  { %6488 = vst.msk [vmem:[%s17398_s3 + $0x2b0] sm:$0xff] %vm245_vm0, %v6260_v3  ;;  %6499 = vst.msk [vmem:[%s17398_s3 + $0x308] sm:$0xff] %vm245_vm0, %v6271_v10  ;;  %v19116_v3 = vld [vmem:[#allocation192_spill] sm:$0xff] }
 0x6a4   :  { %5796 = vperm.xlu1 %7101, %v2906_v5   ;;  %v5477_v38 = vpop.permute.xlu1 %5476  ;;  %v5532_v62 = vpop.permute.xlu0 %5531  ;;  %v4902_v10 = vmul.f32 %v19116_v3, %v19115_v37  ;;  %v19117_v5 = vld [vmem:[#allocation57_spill] sm:$0xff] }
 0x6a5   :  { %v6262_v1 = vadd.f32 %v5477_v38, %v4894_v60  ;;  %v6273_v32 = vadd.f32 %v5532_v62, %v4905_v30  ;;  %5851 = vperm.xlu0 %7100, %v2917_v45   ;;  %v19118_v45 = vld [vmem:[#allocation209_spill] sm:$0xff]  ;;  %v2916_v30 = vld [vmem:[%s17397_s2 + $0x510] sm:$0xff]  ;;  %v2927_v38 = vld [vmem:[%s17397_s2 + $0x568] sm:$0xff] }
 0x6a6   :  { %v4913_v54 = vmul.f32 %v19118_v45, %v19117_v5  ;;  %v19119_v62 = vld [vmem:[#allocation50_spill] sm:$0xff] }
 0x6a7   :  { %6490 = vst.msk [vmem:[%s17398_s3 + $0x2c0] sm:$0xff] %vm245_vm0, %v6262_v1  ;;  %6501 = vst.msk [vmem:[%s17398_s3 + $0x318] sm:$0xff] %vm245_vm0, %v6273_v32  ;;  %v19120_v1 = vld [vmem:[#allocation194_spill] sm:$0xff] }
 0x6a8   :  { %5806 = vperm.xlu1 %7101, %v2908_v35   ;;  %v5487_v46 = vpop.permute.xlu1 %5486  ;;  %v5542_v17 = vpop.permute.xlu0 %5541  ;;  %v4904_v32 = vmul.f32 %v19120_v1, %v19119_v62  ;;  %v19121_v35 = vld [vmem:[#allocation59_spill] sm:$0xff] }
 0x6a9   :  { %v6264_v44 = vadd.f32 %v5487_v46, %v4896_v61  ;;  %v6275_v15 = vadd.f32 %v5542_v17, %v4907_v39  ;;  %5861 = vperm.xlu0 %7100, %v2919_v50   ;;  %v19122_v50 = vld [vmem:[#allocation211_spill] sm:$0xff]  ;;  %v2918_v39 = vld [vmem:[%s17397_s2 + $0x520] sm:$0xff]  ;;  %v2929_v46 = vld [vmem:[%s17397_s2 + $0x578] sm:$0xff] }
 0x6aa   :  { %v4915_v0 = vmul.f32 %v19122_v50, %v19121_v35  ;;  %v19123_v17 = vld [vmem:[#allocation52_spill] sm:$0xff] }
 0x6ab   :  { %6492 = vst.msk [vmem:[%s17398_s3 + $0x2d0] sm:$0xff] %vm245_vm0, %v6264_v44  ;;  %6503 = vst.msk [vmem:[%s17398_s3 + $0x328] sm:$0xff] %vm245_vm0, %v6275_v15  ;;  %v19124_v44 = vld [vmem:[#allocation196_spill] sm:$0xff] }
 0x6ac   :  { %5816 = vperm.xlu1 %7101, %v2910_v16   ;;  %v5497_v19 = vpop.permute.xlu1 %5496  ;;  %v5552_v25 = vpop.permute.xlu0 %5551  ;;  %v4906_v15 = vmul.f32 %v19124_v44, %v19123_v17  ;;  %v19125_v16 = vld [vmem:[#allocation61_spill] sm:$0xff] }
 0x6ad   :  { %v6266_v34 = vadd.f32 %v5497_v19, %v4898_v40  ;;  %v6277_v9 = vadd.f32 %v5552_v25, %v4909_v21  ;;  %5871 = vperm.xlu0 %7100, %v2921_v29   ;;  %v19126_v29 = vld [vmem:[#allocation213_spill] sm:$0xff]  ;;  %v2920_v21 = vld [vmem:[%s17397_s2 + $0x530] sm:$0xff]  ;;  %v2931_v19 = vld [vmem:[%s17397_s2 + $0x588] sm:$0xff] }
 0x6ae   :  { %v4917_v31 = vmul.f32 %v19126_v29, %v19125_v16  ;;  %v19127_v25 = vld [vmem:[#allocation54_spill] sm:$0xff] }
 0x6af   :  { %6494 = vst.msk [vmem:[%s17398_s3 + $0x2e0] sm:$0xff] %vm245_vm0, %v6266_v34  ;;  %6505 = vst.msk [vmem:[%s17398_s3 + $0x338] sm:$0xff] %vm245_vm0, %v6277_v9  ;;  %v19128_v34 = vld [vmem:[#allocation198_spill] sm:$0xff] }
 0x6b0   :  { %5826 = vperm.xlu1 %7101, %v2912_v14   ;;  %v5507_v28 = vpop.permute.xlu1 %5506  ;;  %v5562_v55 = vpop.permute.xlu0 %5561  ;;  %v4908_v9 = vmul.f32 %v19128_v34, %v19127_v25  ;;  %v19129_v14 = vld [vmem:[#allocation63_spill] sm:$0xff] }
 0x6b1   :  { %v6268_v63 = vadd.f32 %v5507_v28, %v4900_v48  ;;  %v6279_v20 = vadd.f32 %v5562_v55, %v4911_v12  ;;  %5881 = vperm.xlu0 %7100, %v2923_v18   ;;  %v19130_v18 = vld [vmem:[#allocation215_spill] sm:$0xff]  ;;  %v2922_v12 = vld [vmem:[%s17397_s2 + $0x540] sm:$0xff]  ;;  %v2933_v28 = vld [vmem:[%s17397_s2 + $0x598] sm:$0xff] }
 0x6b2   :  { %v4919_v4 = vmul.f32 %v19130_v18, %v19129_v14  ;;  %v19131_v55 = vld [vmem:[#allocation56_spill] sm:$0xff] }
 0x6b3   :  { %6496 = vst.msk [vmem:[%s17398_s3 + $0x2f0] sm:$0xff] %vm245_vm0, %v6268_v63  ;;  %6507 = vst.msk [vmem:[%s17398_s3 + $0x348] sm:$0xff] %vm245_vm0, %v6279_v20  ;;  %v19132_v63 = vld [vmem:[#allocation200_spill] sm:$0xff] }
 0x6b4   :  { %5836 = vperm.xlu1 %7101, %v2914_v52   ;;  %v5517_v24 = vpop.permute.xlu1 %5516  ;;  %v5572_v60 = vpop.permute.xlu0 %5571  ;;  %v4910_v20 = vmul.f32 %v19132_v63, %v19131_v55  ;;  %v19133_v52 = vld [vmem:[#allocation65_spill] sm:$0xff] }
 0x6b5   :  { %v6270_v53 = vadd.f32 %v5517_v24, %v4902_v10  ;;  %v6281_v8 = vadd.f32 %v5572_v60, %v4913_v54  ;;  %5891 = vperm.xlu0 %7100, %v2925_v49   ;;  %v19134_v49 = vld [vmem:[#allocation217_spill] sm:$0xff]  ;;  %v2924_v54 = vld [vmem:[%s17397_s2 + $0x550] sm:$0xff]  ;;  %v2935_v24 = vld [vmem:[%s17397_s2 + $0x5a8] sm:$0xff] }
 0x6b6   :  { %v4921_v37 = vmul.f32 %v19134_v49, %v19133_v52  ;;  %v19135_v60 = vld [vmem:[#allocation58_spill] sm:$0xff] }
 0x6b7   :  { %6498 = vst.msk [vmem:[%s17398_s3 + $0x300] sm:$0xff] %vm245_vm0, %v6270_v53  ;;  %6509 = vst.msk [vmem:[%s17398_s3 + $0x358] sm:$0xff] %vm245_vm0, %v6281_v8  ;;  %v19136_v53 = vld [vmem:[#allocation202_spill] sm:$0xff] }
 0x6b8   :  { %5846 = vperm.xlu1 %7101, %v2916_v30   ;;  %v5527_v23 = vpop.permute.xlu1 %5526  ;;  %v5582_v61 = vpop.permute.xlu0 %5581  ;;  %v4912_v8 = vmul.f32 %v19136_v53, %v19135_v60  ;;  %v19137_v30 = vld [vmem:[#allocation67_spill] sm:$0xff] }
 0x6b9   :  { %v6272_v51 = vadd.f32 %v5527_v23, %v4904_v32  ;;  %v6283_v47 = vadd.f32 %v5582_v61, %v4915_v0  ;;  %5901 = vperm.xlu0 %7100, %v2927_v38   ;;  %v19138_v38 = vld [vmem:[#allocation219_spill] sm:$0xff]  ;;  %v2926_v0 = vld [vmem:[%s17397_s2 + $0x560] sm:$0xff]  ;;  %v2937_v23 = vld [vmem:[%s17397_s2 + $0x5b8] sm:$0xff] }
 0x6ba   :  { %v4923_v62 = vmul.f32 %v19138_v38, %v19137_v30  ;;  %v19139_v61 = vld [vmem:[#allocation60_spill] sm:$0xff] }
 0x6bb   :  { %6500 = vst.msk [vmem:[%s17398_s3 + $0x310] sm:$0xff] %vm245_vm0, %v6272_v51  ;;  %6511 = vst.msk [vmem:[%s17398_s3 + $0x368] sm:$0xff] %vm245_vm0, %v6283_v47  ;;  %v19140_v51 = vld [vmem:[#allocation204_spill] sm:$0xff] }
 0x6bc   :  { %5856 = vperm.xlu1 %7101, %v2918_v39   ;;  %v5537_v41 = vpop.permute.xlu1 %5536  ;;  %v5592_v40 = vpop.permute.xlu0 %5591  ;;  %v4914_v47 = vmul.f32 %v19140_v51, %v19139_v61  ;;  %v19141_v39 = vld [vmem:[#allocation69_spill] sm:$0xff] }
 0x6bd   :  { %v6274_v42 = vadd.f32 %v5537_v41, %v4906_v15  ;;  %v6285_v22 = vadd.f32 %v5592_v40, %v4917_v31  ;;  %5911 = vperm.xlu0 %7100, %v2929_v46   ;;  %v19142_v46 = vld [vmem:[#allocation221_spill] sm:$0xff]  ;;  %v2928_v31 = vld [vmem:[%s17397_s2 + $0x570] sm:$0xff]  ;;  %v2939_v41 = vld [vmem:[%s17397_s2 + $0x5c8] sm:$0xff] }
 0x6be   :  { %v4925_v17 = vmul.f32 %v19142_v46, %v19141_v39  ;;  %v19143_v40 = vld [vmem:[#allocation62_spill] sm:$0xff] }
 0x6bf   :  { %6502 = vst.msk [vmem:[%s17398_s3 + $0x320] sm:$0xff] %vm245_vm0, %v6274_v42  ;;  %6513 = vst.msk [vmem:[%s17398_s3 + $0x378] sm:$0xff] %vm245_vm0, %v6285_v22  ;;  %v19144_v42 = vld [vmem:[#allocation206_spill] sm:$0xff] }
 0x6c0   :  { %5866 = vperm.xlu1 %7101, %v2920_v21   ;;  %v5547_v33 = vpop.permute.xlu1 %5546  ;;  %v5602_v48 = vpop.permute.xlu0 %5601  ;;  %v4916_v22 = vmul.f32 %v19144_v42, %v19143_v40  ;;  %v19145_v21 = vld [vmem:[#allocation71_spill] sm:$0xff] }
 0x6c1   :  { %v6276_v11 = vadd.f32 %v5547_v33, %v4908_v9  ;;  %v6287_v7 = vadd.f32 %v5602_v48, %v4919_v4  ;;  %5921 = vperm.xlu0 %7100, %v2931_v19   ;;  %v19146_v19 = vld [vmem:[#allocation223_spill] sm:$0xff]  ;;  %v2930_v4 = vld [vmem:[%s17397_s2 + $0x580] sm:$0xff]  ;;  %v2941_v33 = vld [vmem:[%s17397_s2 + $0x5d8] sm:$0xff] }
 0x6c2   :  { %v4927_v25 = vmul.f32 %v19146_v19, %v19145_v21  ;;  %v19147_v48 = vld [vmem:[#allocation64_spill] sm:$0xff] }
 0x6c3   :  { %6504 = vst.msk [vmem:[%s17398_s3 + $0x330] sm:$0xff] %vm245_vm0, %v6276_v11  ;;  %6515 = vst.msk [vmem:[%s17398_s3 + $0x388] sm:$0xff] %vm245_vm0, %v6287_v7  ;;  %v19148_v11 = vld [vmem:[#allocation208_spill] sm:$0xff] }
 0x6c4   :  { %5876 = vperm.xlu1 %7101, %v2922_v12   ;;  %v5557_v3 = vpop.permute.xlu1 %5556  ;;  %v5612_v10 = vpop.permute.xlu0 %5611  ;;  %v4918_v7 = vmul.f32 %v19148_v11, %v19147_v48  ;;  %v19149_v12 = vld [vmem:[#allocation73_spill] sm:$0xff] }
 0x6c5   :  { %v6278_v5 = vadd.f32 %v5557_v3, %v4910_v20  ;;  %v6289_v45 = vadd.f32 %v5612_v10, %v4921_v37  ;;  %5931 = vperm.xlu0 %7100, %v2933_v28   ;;  %v19150_v28 = vld [vmem:[#allocation225_spill] sm:$0xff]  ;;  %v2932_v37 = vld [vmem:[%s17397_s2 + $0x590] sm:$0xff]  ;;  %v2943_v3 = vld [vmem:[%s17397_s2 + $0x5e8] sm:$0xff] }
 0x6c6   :  { %v4929_v55 = vmul.f32 %v19150_v28, %v19149_v12  ;;  %v19151_v10 = vld [vmem:[#allocation66_spill] sm:$0xff] }
 0x6c7   :  { %6506 = vst.msk [vmem:[%s17398_s3 + $0x340] sm:$0xff] %vm245_vm0, %v6278_v5  ;;  %6517 = vst.msk [vmem:[%s17398_s3 + $0x398] sm:$0xff] %vm245_vm0, %v6289_v45  ;;  %v19152_v5 = vld [vmem:[#allocation210_spill] sm:$0xff] }
 0x6c8   :  { %5886 = vperm.xlu1 %7101, %v2924_v54   ;;  %v5567_v1 = vpop.permute.xlu1 %5566  ;;  %v5622_v32 = vpop.permute.xlu0 %5621  ;;  %v4920_v45 = vmul.f32 %v19152_v5, %v19151_v10  ;;  %v19153_v54 = vld [vmem:[#allocation75_spill] sm:$0xff] }
 0x6c9   :  { %v6280_v35 = vadd.f32 %v5567_v1, %v4912_v8  ;;  %v6291_v50 = vadd.f32 %v5622_v32, %v4923_v62  ;;  %5941 = vperm.xlu0 %7100, %v2935_v24   ;;  %v19154_v24 = vld [vmem:[#allocation227_spill] sm:$0xff]  ;;  %v2934_v62 = vld [vmem:[%s17397_s2 + $0x5a0] sm:$0xff]  ;;  %v2945_v1 = vld [vmem:[%s17397_s2 + $0x5f8] sm:$0xff] }
 0x6ca   :  { %v4931_v60 = vmul.f32 %v19154_v24, %v19153_v54  ;;  %v19155_v32 = vld [vmem:[#allocation68_spill] sm:$0xff] }
 0x6cb   :  { %6508 = vst.msk [vmem:[%s17398_s3 + $0x350] sm:$0xff] %vm245_vm0, %v6280_v35  ;;  %6519 = vst.msk [vmem:[%s17398_s3 + $0x3a8] sm:$0xff] %vm245_vm0, %v6291_v50  ;;  %v19156_v35 = vld [vmem:[#allocation212_spill] sm:$0xff] }
 0x6cc   :  { %5896 = vperm.xlu1 %7101, %v2926_v0   ;;  %v5577_v44 = vpop.permute.xlu1 %5576  ;;  %v5632_v15 = vpop.permute.xlu0 %5631  ;;  %v4922_v50 = vmul.f32 %v19156_v35, %v19155_v32  ;;  %v19157_v0 = vld [vmem:[#allocation77_spill] sm:$0xff] }
 0x6cd   :  { %v6282_v16 = vadd.f32 %v5577_v44, %v4914_v47  ;;  %v6293_v29 = vadd.f32 %v5632_v15, %v4925_v17  ;;  %5951 = vperm.xlu0 %7100, %v2937_v23   ;;  %v19158_v23 = vld [vmem:[#allocation229_spill] sm:$0xff]  ;;  %v2936_v17 = vld [vmem:[%s17397_s2 + $0x5b0] sm:$0xff]  ;;  %v2947_v44 = vld [vmem:[%s17397_s2 + $0x608] sm:$0xff] }
 0x6ce   :  { %v4933_v61 = vmul.f32 %v19158_v23, %v19157_v0  ;;  %v19159_v15 = vld [vmem:[#allocation70_spill] sm:$0xff] }
 0x6cf   :  { %6510 = vst.msk [vmem:[%s17398_s3 + $0x360] sm:$0xff] %vm245_vm0, %v6282_v16  ;;  %6521 = vst.msk [vmem:[%s17398_s3 + $0x3b8] sm:$0xff] %vm245_vm0, %v6293_v29  ;;  %v19160_v16 = vld [vmem:[#allocation214_spill] sm:$0xff] }
 0x6d0   :  { %5906 = vperm.xlu1 %7101, %v2928_v31   ;;  %v5587_v34 = vpop.permute.xlu1 %5586  ;;  %v5642_v9 = vpop.permute.xlu0 %5641  ;;  %v4924_v29 = vmul.f32 %v19160_v16, %v19159_v15  ;;  %v19161_v31 = vld [vmem:[#allocation79_spill] sm:$0xff] }
 0x6d1   :  { %v6284_v14 = vadd.f32 %v5587_v34, %v4916_v22  ;;  %v6295_v18 = vadd.f32 %v5642_v9, %v4927_v25  ;;  %5961 = vperm.xlu0 %7100, %v2939_v41   ;;  %v19162_v41 = vld [vmem:[#allocation231_spill] sm:$0xff]  ;;  %v2938_v25 = vld [vmem:[%s17397_s2 + $0x5c0] sm:$0xff]  ;;  %v2949_v34 = vld [vmem:[%s17397_s2 + $0x618] sm:$0xff] }
 0x6d2   :  { %v4935_v40 = vmul.f32 %v19162_v41, %v19161_v31  ;;  %v19163_v9 = vld [vmem:[#allocation72_spill] sm:$0xff] }
 0x6d3   :  { %6512 = vst.msk [vmem:[%s17398_s3 + $0x370] sm:$0xff] %vm245_vm0, %v6284_v14  ;;  %6523 = vst.msk [vmem:[%s17398_s3 + $0x3c8] sm:$0xff] %vm245_vm0, %v6295_v18  ;;  %v19164_v14 = vld [vmem:[#allocation216_spill] sm:$0xff] }
 0x6d4   :  { %5916 = vperm.xlu1 %7101, %v2930_v4   ;;  %v5597_v63 = vpop.permute.xlu1 %5596  ;;  %v5652_v20 = vpop.permute.xlu0 %5651  ;;  %v4926_v18 = vmul.f32 %v19164_v14, %v19163_v9  ;;  %v19165_v4 = vld [vmem:[#allocation81_spill] sm:$0xff] }
 0x6d5   :  { %v6286_v52 = vadd.f32 %v5597_v63, %v4918_v7  ;;  %v6297_v49 = vadd.f32 %v5652_v20, %v4929_v55  ;;  %5971 = vperm.xlu0 %7100, %v2941_v33   ;;  %v19166_v33 = vld [vmem:[#allocation233_spill] sm:$0xff]  ;;  %v2940_v55 = vld [vmem:[%s17397_s2 + $0x5d0] sm:$0xff]  ;;  %v2951_v63 = vld [vmem:[%s17397_s2 + $0x628] sm:$0xff] }
 0x6d6   :  { %v4937_v48 = vmul.f32 %v19166_v33, %v19165_v4  ;;  %v19167_v20 = vld [vmem:[#allocation74_spill] sm:$0xff] }
 0x6d7   :  { %6514 = vst.msk [vmem:[%s17398_s3 + $0x380] sm:$0xff] %vm245_vm0, %v6286_v52  ;;  %6525 = vst.msk [vmem:[%s17398_s3 + $0x3d8] sm:$0xff] %vm245_vm0, %v6297_v49  ;;  %v19168_v52 = vld [vmem:[#allocation218_spill] sm:$0xff] }
 0x6d8   :  { %5926 = vperm.xlu1 %7101, %v2932_v37   ;;  %v5607_v53 = vpop.permute.xlu1 %5606  ;;  %v5662_v8 = vpop.permute.xlu0 %5661  ;;  %v4928_v49 = vmul.f32 %v19168_v52, %v19167_v20  ;;  %v19169_v37 = vld [vmem:[#allocation83_spill] sm:$0xff] }
 0x6d9   :  { %v6288_v30 = vadd.f32 %v5607_v53, %v4920_v45  ;;  %v6299_v38 = vadd.f32 %v5662_v8, %v4931_v60  ;;  %5981 = vperm.xlu0 %7100, %v2943_v3   ;;  %v19170_v3 = vld [vmem:[#allocation235_spill] sm:$0xff]  ;;  %v2942_v60 = vld [vmem:[%s17397_s2 + $0x5e0] sm:$0xff]  ;;  %v2953_v53 = vld [vmem:[%s17397_s2 + $0x638] sm:$0xff] }
 0x6da   :  { %v4939_v10 = vmul.f32 %v19170_v3, %v19169_v37  ;;  %v19171_v8 = vld [vmem:[#allocation76_spill] sm:$0xff] }
 0x6db   :  { %6516 = vst.msk [vmem:[%s17398_s3 + $0x390] sm:$0xff] %vm245_vm0, %v6288_v30  ;;  %6527 = vst.msk [vmem:[%s17398_s3 + $0x3e8] sm:$0xff] %vm245_vm0, %v6299_v38  ;;  %v19172_v30 = vld [vmem:[#allocation220_spill] sm:$0xff] }
 0x6dc   :  { %5936 = vperm.xlu1 %7101, %v2934_v62   ;;  %v5617_v51 = vpop.permute.xlu1 %5616  ;;  %v5672_v47 = vpop.permute.xlu0 %5671  ;;  %v4930_v38 = vmul.f32 %v19172_v30, %v19171_v8  ;;  %v19173_v62 = vld [vmem:[#allocation85_spill] sm:$0xff] }
 0x6dd   :  { %v6290_v39 = vadd.f32 %v5617_v51, %v4922_v50  ;;  %v6301_v46 = vadd.f32 %v5672_v47, %v4933_v61  ;;  %5991 = vperm.xlu0 %7100, %v2945_v1   ;;  %v19174_v1 = vld [vmem:[#allocation237_spill] sm:$0xff]  ;;  %v2944_v61 = vld [vmem:[%s17397_s2 + $0x5f0] sm:$0xff]  ;;  %v2955_v51 = vld [vmem:[%s17397_s2 + $0x648] sm:$0xff] }
 0x6de   :  { %v4941_v32 = vmul.f32 %v19174_v1, %v19173_v62  ;;  %v19175_v47 = vld [vmem:[#allocation78_spill] sm:$0xff] }
 0x6df   :  { %6518 = vst.msk [vmem:[%s17398_s3 + $0x3a0] sm:$0xff] %vm245_vm0, %v6290_v39  ;;  %6529 = vst.msk [vmem:[%s17398_s3 + $0x3f8] sm:$0xff] %vm245_vm0, %v6301_v46  ;;  %v19176_v39 = vld [vmem:[#allocation222_spill] sm:$0xff] }
 0x6e0   :  { %5946 = vperm.xlu1 %7101, %v2936_v17   ;;  %v5627_v42 = vpop.permute.xlu1 %5626  ;;  %v5682_v22 = vpop.permute.xlu0 %5681  ;;  %v4932_v46 = vmul.f32 %v19176_v39, %v19175_v47  ;;  %v19177_v17 = vld [vmem:[#allocation87_spill] sm:$0xff] }
 0x6e1   :  { %v6292_v21 = vadd.f32 %v5627_v42, %v4924_v29  ;;  %v6303_v19 = vadd.f32 %v5682_v22, %v4935_v40  ;;  %6001 = vperm.xlu0 %7100, %v2947_v44   ;;  %v19178_v44 = vld [vmem:[#allocation239_spill] sm:$0xff]  ;;  %v2946_v40 = vld [vmem:[%s17397_s2 + $0x600] sm:$0xff]  ;;  %v2957_v42 = vld [vmem:[%s17397_s2 + $0x658] sm:$0xff] }
 0x6e2   :  { %v4943_v15 = vmul.f32 %v19178_v44, %v19177_v17  ;;  %v19179_v22 = vld [vmem:[#allocation80_spill] sm:$0xff] }
 0x6e3   :  { %6520 = vst.msk [vmem:[%s17398_s3 + $0x3b0] sm:$0xff] %vm245_vm0, %v6292_v21  ;;  %6531 = vst.msk [vmem:[%s17398_s3 + $0x408] sm:$0xff] %vm245_vm0, %v6303_v19  ;;  %v19180_v21 = vld [vmem:[#allocation224_spill] sm:$0xff] }
 0x6e4   :  { %5956 = vperm.xlu1 %7101, %v2938_v25   ;;  %v5637_v11 = vpop.permute.xlu1 %5636  ;;  %v5692_v7 = vpop.permute.xlu0 %5691  ;;  %v4934_v19 = vmul.f32 %v19180_v21, %v19179_v22  ;;  %v19181_v25 = vld [vmem:[#allocation89_spill] sm:$0xff] }
 0x6e5   :  { %v6294_v12 = vadd.f32 %v5637_v11, %v4926_v18  ;;  %v6305_v28 = vadd.f32 %v5692_v7, %v4937_v48  ;;  %6011 = vperm.xlu0 %7100, %v2949_v34   ;;  %v19182_v34 = vld [vmem:[#allocation241_spill] sm:$0xff]  ;;  %v2948_v48 = vld [vmem:[%s17397_s2 + $0x610] sm:$0xff]  ;;  %v2959_v11 = vld [vmem:[%s17397_s2 + $0x668] sm:$0xff] }
 0x6e6   :  { %v4945_v9 = vmul.f32 %v19182_v34, %v19181_v25  ;;  %v19183_v7 = vld [vmem:[#allocation82_spill] sm:$0xff] }
 0x6e7   :  { %6522 = vst.msk [vmem:[%s17398_s3 + $0x3c0] sm:$0xff] %vm245_vm0, %v6294_v12  ;;  %6533 = vst.msk [vmem:[%s17398_s3 + $0x418] sm:$0xff] %vm245_vm0, %v6305_v28  ;;  %v19184_v12 = vld [vmem:[#allocation226_spill] sm:$0xff] }
 0x6e8   :  { %5966 = vperm.xlu1 %7101, %v2940_v55   ;;  %v5647_v5 = vpop.permute.xlu1 %5646  ;;  %v5702_v45 = vpop.permute.xlu0 %5701  ;;  %v4936_v28 = vmul.f32 %v19184_v12, %v19183_v7  ;;  %v19185_v55 = vld [vmem:[#allocation91_spill] sm:$0xff] }
 0x6e9   :  { %v6296_v54 = vadd.f32 %v5647_v5, %v4928_v49  ;;  %v6307_v24 = vadd.f32 %v5702_v45, %v4939_v10  ;;  %6021 = vperm.xlu0 %7100, %v2951_v63   ;;  %v19186_v63 = vld [vmem:[#allocation243_spill] sm:$0xff]  ;;  %v2950_v10 = vld [vmem:[%s17397_s2 + $0x620] sm:$0xff]  ;;  %v2961_v5 = vld [vmem:[%s17397_s2 + $0x678] sm:$0xff] }
 0x6ea   :  { %v4947_v20 = vmul.f32 %v19186_v63, %v19185_v55  ;;  %v19187_v45 = vld [vmem:[#allocation84_spill] sm:$0xff]  ;;  %v2969_v63 = vld [vmem:[%s17397_s2 + $0x6b8] sm:$0xff] }
 0x6eb   :  { %6524 = vst.msk [vmem:[%s17398_s3 + $0x3d0] sm:$0xff] %vm245_vm0, %v6296_v54  ;;  %6535 = vst.msk [vmem:[%s17398_s3 + $0x428] sm:$0xff] %vm245_vm0, %v6307_v24  ;;  %v19188_v54 = vld [vmem:[#allocation228_spill] sm:$0xff] }
 0x6ec   :  { %5976 = vperm.xlu1 %7101, %v2942_v60   ;;  %v5657_v35 = vpop.permute.xlu1 %5656  ;;  %v5712_v50 = vpop.permute.xlu0 %5711  ;;  %v4938_v24 = vmul.f32 %v19188_v54, %v19187_v45  ;;  %v19189_v60 = vld [vmem:[#allocation93_spill] sm:$0xff] }
 0x6ed   :  { %v6298_v0 = vadd.f32 %v5657_v35, %v4930_v38  ;;  %v6309_v23 = vadd.f32 %v5712_v50, %v4941_v32  ;;  %6031 = vperm.xlu0 %7100, %v2953_v53   ;;  %v19190_v53 = vld [vmem:[#allocation245_spill] sm:$0xff]  ;;  %v2952_v32 = vld [vmem:[%s17397_s2 + $0x630] sm:$0xff]  ;;  %v2963_v35 = vld [vmem:[%s17397_s2 + $0x688] sm:$0xff] }
 0x6ee   :  { %v4949_v8 = vmul.f32 %v19190_v53, %v19189_v60  ;;  %v19191_v50 = vld [vmem:[#allocation86_spill] sm:$0xff] }
 0x6ef   :  { %6526 = vst.msk [vmem:[%s17398_s3 + $0x3e0] sm:$0xff] %vm245_vm0, %v6298_v0  ;;  %6537 = vst.msk [vmem:[%s17398_s3 + $0x438] sm:$0xff] %vm245_vm0, %v6309_v23  ;;  %v19192_v0 = vld [vmem:[#allocation230_spill] sm:$0xff] }
 0x6f0   :  { %5986 = vperm.xlu1 %7101, %v2944_v61   ;;  %v5667_v16 = vpop.permute.xlu1 %5666  ;;  %v5722_v29 = vpop.permute.xlu0 %5721  ;;  %v4940_v23 = vmul.f32 %v19192_v0, %v19191_v50  ;;  %v19193_v61 = vld [vmem:[#allocation95_spill] sm:$0xff]  ;;  %v19205_v60 = vld [vmem:[#allocation94_spill] sm:$0xff]  ;;  %v2973_v50 = vld [vmem:[%s17397_s2 + $0x6d8] sm:$0xff] }
 0x6f1   :  { %v6300_v31 = vadd.f32 %v5667_v16, %v4932_v46  ;;  %v6311_v41 = vadd.f32 %v5722_v29, %v4943_v15  ;;  %6041 = vperm.xlu0 %7100, %v2955_v51   ;;  %v19194_v51 = vld [vmem:[#allocation247_spill] sm:$0xff]  ;;  %v2954_v15 = vld [vmem:[%s17397_s2 + $0x640] sm:$0xff]  ;;  %v2965_v16 = vld [vmem:[%s17397_s2 + $0x698] sm:$0xff]  ;;  %v4948_v53 = vmul.f32 %v15130_v26, %v19205_v60 }
 0x6f2   :  { %v4951_v47 = vmul.f32 %v19194_v51, %v19193_v61  ;;  %v19195_v29 = vld [vmem:[#allocation88_spill] sm:$0xff]  ;;  %v2962_v26 = vld [vmem:[%s17397_s2 + $0x680] sm:$0xff] }
 0x6f3   :  { %6528 = vst.msk [vmem:[%s17398_s3 + $0x3f0] sm:$0xff] %vm245_vm0, %v6300_v31  ;;  %6539 = vst.msk [vmem:[%s17398_s3 + $0x448] sm:$0xff] %vm245_vm0, %v6311_v41  ;;  %v19196_v31 = vld [vmem:[#allocation232_spill] sm:$0xff] }
 0x6f4   :  { %5996 = vperm.xlu1 %7101, %v2946_v40   ;;  %v5677_v14 = vpop.permute.xlu1 %5676  ;;  %v5732_v18 = vpop.permute.xlu0 %5731  ;;  %v4942_v41 = vmul.f32 %v19196_v31, %v19195_v29  ;;  %v19197_v40 = vld [vmem:[#allocation97_spill] sm:$0xff]  ;;  %v19208_v0 = vld [vmem:[#allocation96_spill] sm:$0xff]  ;;  %v19212_v29 = vld [vmem:[#allocation262_spill] sm:$0xff] }
 0x6f5   :  { %v6302_v4 = vadd.f32 %v5677_v14, %v4934_v19  ;;  %v6313_v33 = vadd.f32 %v5732_v18, %v4945_v9  ;;  %6051 = vperm.xlu0 %7100, %v2957_v42   ;;  %v19198_v42 = vld [vmem:[#allocation249_spill] sm:$0xff]  ;;  %v2956_v9 = vld [vmem:[%s17397_s2 + $0x650] sm:$0xff]  ;;  %v2967_v14 = vld [vmem:[%s17397_s2 + $0x6a8] sm:$0xff] }
 0x6f6   :  { %v4953_v22 = vmul.f32 %v19198_v42, %v19197_v40  ;;  %v19199_v18 = vld [vmem:[#allocation90_spill] sm:$0xff]  ;;  %v19209_v61 = vld [vmem:[#allocation260_spill] sm:$0xff] }
 0x6f7   :  { %6530 = vst.msk [vmem:[%s17398_s3 + $0x400] sm:$0xff] %vm245_vm0, %v6302_v4  ;;  %6541 = vst.msk [vmem:[%s17398_s3 + $0x458] sm:$0xff] %vm245_vm0, %v6313_v33  ;;  %v4944_v4 = vmul.f32 %v15106_v56, %v19199_v18  ;;  %v19200_v33 = vld [vmem:[#allocation99_spill] sm:$0xff]  ;;  %v2958_v56 = vld [vmem:[%s17397_s2 + $0x660] sm:$0xff]  ;;  %v4961_v51 = vmul.f32 %v15144_v2, %v19209_v61 }
 0x6f8   :  { %6006 = vperm.xlu1 %7101, %v2948_v48   ;;  %v5687_v52 = vpop.permute.xlu1 %5686  ;;  %v5742_v49 = vpop.permute.xlu0 %5741  ;;  %v19201_v48 = vld [vmem:[#allocation234_spill] sm:$0xff]  ;;  %v2964_v2 = vld [vmem:[%s17397_s2 + $0x690] sm:$0xff]  ;;  %v19216_v18 = vld [vmem:[#allocation263_spill] sm:$0xff] }
 0x6f9   :  { %v6304_v37 = vadd.f32 %v5687_v52, %v4936_v28  ;;  %v6315_v3 = vadd.f32 %v5742_v49, %v4947_v20  ;;  %6061 = vperm.xlu0 %7100, %v2959_v11   ;;  %v4955_v11 = vmul.f32 %v19201_v48, %v19200_v33  ;;  %v19202_v20 = vld [vmem:[#allocation92_spill] sm:$0xff]  ;;  %v19203_v49 = vld [vmem:[#allocation101_spill] sm:$0xff] }
 0x6fa   :  { %v4946_v52 = vmul.f32 %v15118_v57, %v19202_v20  ;;  %v2960_v57 = vld [vmem:[%s17397_s2 + $0x670] sm:$0xff] }
 0x6fb   :  { %6532 = vst.msk [vmem:[%s17398_s3 + $0x410] sm:$0xff] %vm245_vm0, %v6304_v37  ;;  %6543 = vst.msk [vmem:[%s17398_s3 + $0x468] sm:$0xff] %vm245_vm0, %v6315_v3  ;;  %v19204_v37 = vld [vmem:[#allocation251_spill] sm:$0xff]  ;;  %v19213_v31 = vld [vmem:[#allocation240_spill] sm:$0xff] }
 0x6fc   :  { %6016 = vperm.xlu1 %7101, %v2950_v10   ;;  %v5697_v30 = vpop.permute.xlu1 %5696  ;;  %v5752_v38 = vpop.permute.xlu0 %5751  ;;  %v4957_v3 = vmul.f32 %v19204_v37, %v19203_v49  ;;  %v19221_v49 = vld [vmem:[#allocation340_spill] sm:$0xff] }
 0x6fd   :  { %v6306_v62 = vadd.f32 %v5697_v30, %v4938_v24  ;;  %v6317_v1 = vadd.f32 %v5752_v38, %v4949_v8  ;;  %6071 = vperm.xlu0 %7100, %v2961_v5   ;;  %v2971_v24 = vld [vmem:[%s17397_s2 + $0x6c8] sm:$0xff]  ;;  %v19206_v8 = vld [vmem:[#allocation104_spill] sm:$0xff] }
 0x6fe   :  { %v19207_v30 = vld [vmem:[#allocation236_spill] sm:$0xff] }
 0x6ff   :  { %6534 = vst.msk [vmem:[%s17398_s3 + $0x420] sm:$0xff] %vm245_vm0, %v6306_v62  ;;  %6545 = vst.msk [vmem:[%s17398_s3 + $0x478] sm:$0xff] %vm245_vm0, %v6317_v1  ;;  %v4959_v38 = vmul.f32 %v19207_v30, %v19206_v8 }
 0x700   :  { %6026 = vperm.xlu1 %7101, %v2952_v32   ;;  %v5707_v39 = vpop.permute.xlu1 %5706  ;;  %v5762_v46 = vpop.permute.xlu0 %5761 }
 0x701   :  { %v6308_v17 = vadd.f32 %v5707_v39, %v4940_v23  ;;  %v6319_v44 = vadd.f32 %v5762_v46, %v4951_v47  ;;  %6081 = vperm.xlu0 %7100, %v2963_v35   ;;  %v4950_v23 = vmul.f32 %v15142_v27, %v19208_v0  ;;  %v2975_v27 = vld [vmem:[%s17397_s2 + $0x6e8] sm:$0xff] }
 0x703   :  { %6536 = vst.msk [vmem:[%s17398_s3 + $0x430] sm:$0xff] %vm245_vm0, %v6308_v17  ;;  %6547 = vst.msk [vmem:[%s17398_s3 + $0x488] sm:$0xff] %vm245_vm0, %v6319_v44  ;;  %v19210_v44 = vld [vmem:[#allocation98_spill] sm:$0xff] }
 0x704   :  { %6036 = vperm.xlu1 %7101, %v2954_v15   ;;  %v5717_v21 = vpop.permute.xlu1 %5716  ;;  %v5772_v19 = vpop.permute.xlu0 %5771  ;;  %v19211_v15 = vld [vmem:[#allocation238_spill] sm:$0xff] }
 0x705   :  { %v6310_v25 = vadd.f32 %v5717_v21, %v4942_v41  ;;  %v6321_v34 = vadd.f32 %v5772_v19, %v4953_v22  ;;  %6091 = vperm.xlu0 %7100, %v2965_v16   ;;  %v4952_v16 = vmul.f32 %v19211_v15, %v19210_v44  ;;  %v4963_v41 = vmul.f32 %v19213_v31, %v19212_v29  ;;  %v2966_v19 = vld [vmem:[%s17397_s2 + $0x6a0] sm:$0xff]  ;;  %v19230_v29 = vld [vmem:[#allocation264_spill] sm:$0xff]  ;;  %v19231_v31 = vld [vmem:[#allocation341_spill] sm:$0xff] }
 0x707   :  { %6538 = vst.msk [vmem:[%s17398_s3 + $0x440] sm:$0xff] %vm245_vm0, %v6310_v25  ;;  %6549 = vst.msk [vmem:[%s17398_s3 + $0x498] sm:$0xff] %vm245_vm0, %v6321_v34  ;;  %v2977_v25 = vld [vmem:[%s17397_s2 + $0x6f8] sm:$0xff]  ;;  %v19214_v34 = vld [vmem:[#allocation100_spill] sm:$0xff] }
 0x708   :  { %6046 = vperm.xlu1 %7101, %v2956_v9   ;;  %v5727_v7 = vpop.permute.xlu1 %5726  ;;  %v5782_v12 = vpop.permute.xlu0 %5781  ;;  %v19215_v9 = vld [vmem:[#allocation242_spill] sm:$0xff] }
 0x709   :  { %v6312_v28 = vadd.f32 %v5727_v7, %v4944_v4  ;;  %v6323_v55 = vadd.f32 %v5782_v12, %v4955_v11  ;;  %6101 = vperm.xlu0 %7100, %v2967_v14   ;;  %v4954_v14 = vmul.f32 %v19215_v9, %v19214_v34  ;;  %v19217_v4 = vld [vmem:[#allocation244_spill] sm:$0xff]  ;;  %v2978_v9 = vld [vmem:[%s17397_s2 + $0x700] sm:$0xff] }
 0x70a   :  { %v4965_v33 = vmul.f32 %v19217_v4, %v19216_v18  ;;  %v19235_v18 = vld [vmem:[#allocation343_spill] sm:$0xff] }
 0x70b   :  { %6540 = vst.msk [vmem:[%s17398_s3 + $0x450] sm:$0xff] %vm245_vm0, %v6312_v28  ;;  %6551 = vst.msk [vmem:[%s17398_s3 + $0x4a8] sm:$0xff] %vm245_vm0, %v6323_v55  ;;  %v2968_v28 = vld [vmem:[%s17397_s2 + $0x6b0] sm:$0xff]  ;;  %v2979_v55 = vld [vmem:[%s17397_s2 + $0x708] sm:$0xff] }
 0x70c   :  { %6056 = vperm.xlu1 %7101, %v2958_v56   ;;  %v5737_v10 = vpop.permute.xlu1 %5736  ;;  %v5792_v5 = vpop.permute.xlu0 %5791  ;;  %v19218_v56 = vld [vmem:[#allocation102_spill] sm:$0xff] }
 0x70d   :  { %v6314_v45 = vadd.f32 %v5737_v10, %v4946_v52  ;;  %v6325_v54 = vadd.f32 %v5792_v5, %v4957_v3  ;;  %6111 = vperm.xlu0 %7100, %v2969_v63   ;;  %v19219_v63 = vld [vmem:[#allocation253_spill] sm:$0xff] }
 0x70e   :  { %v4956_v20 = vmul.f32 %v19219_v63, %v19218_v56  ;;  %v19220_v52 = vld [vmem:[#allocation265_spill] sm:$0xff]  ;;  %v2980_v56 = vld [vmem:[%s17397_s2 + $0x710] sm:$0xff] }
 0x70f   :  { %6542 = vst.msk [vmem:[%s17398_s3 + $0x460] sm:$0xff] %vm245_vm0, %v6314_v45  ;;  %6553 = vst.msk [vmem:[%s17398_s3 + $0x4b8] sm:$0xff] %vm245_vm0, %v6325_v54  ;;  %v4967_v37 = vmul.f32 %v19221_v49, %v19220_v52  ;;  %v2970_v54 = vld [vmem:[%s17397_s2 + $0x6c0] sm:$0xff]  ;;  %v19238_v63 = vld [vmem:[#allocation268_spill] sm:$0xff] }
 0x710   :  { %6066 = vperm.xlu1 %7101, %v2960_v57   ;;  %v5747_v62 = vpop.permute.xlu1 %5746  ;;  %v5802_v1 = vpop.permute.xlu0 %5801  ;;  %v2981_v57 = vld [vmem:[%s17397_s2 + $0x718] sm:$0xff] }
 0x711   :  { %v6316_v32 = vadd.f32 %v5747_v62, %v4948_v53  ;;  %v6327_v35 = vadd.f32 %v5802_v1, %v4959_v38  ;;  %6121 = vperm.xlu0 %7100, %v2971_v24   ;;  %v19222_v24 = vld [vmem:[#allocation258_spill] sm:$0xff]  ;;  %v19223_v53 = vld [vmem:[#allocation267_spill] sm:$0xff]  ;;  %v19240_v49 = vld [vmem:[#allocation277_spill] sm:$0xff] }
 0x712   :  { %v4958_v60 = vmul.f32 %v15186_v59, %v19222_v24  ;;  %v4969_v8 = vmul.f32 %v15188_v36, %v19223_v53  ;;  %v2972_v59 = vld [vmem:[%s17397_s2 + $0x6d0] sm:$0xff]  ;;  %v19224_v36 = vld [vmem:[#allocation261_spill] sm:$0xff]  ;;  %v19243_v24 = vld [vmem:[#allocation347_spill] sm:$0xff] }
 0x713   :  { %6544 = vst.msk [vmem:[%s17398_s3 + $0x470] sm:$0xff] %vm245_vm0, %v6316_v32  ;;  %6555 = vst.msk [vmem:[%s17398_s3 + $0x4c8] sm:$0xff] %vm245_vm0, %v6327_v35  ;;  %v4960_v32 = vmul.f32 %v15197_v43, %v19224_v36  ;;  %v19225_v35 = vld [vmem:[#allocation269_spill] sm:$0xff]  ;;  %v2974_v43 = vld [vmem:[%s17397_s2 + $0x6e0] sm:$0xff] }
 0x714   :  { %6076 = vperm.xlu1 %7101, %v2962_v26   ;;  %v5757_v47 = vpop.permute.xlu1 %5756  ;;  %v5812_v39 = vpop.permute.xlu0 %5811  ;;  %v4971_v26 = vmul.f32 %v15199_v58, %v19225_v35  ;;  %v19226_v58 = vld [vmem:[#allocation108_spill] sm:$0xff]  ;;  %v19244_v53 = vld [vmem:[#allocation279_spill] sm:$0xff] }
 0x715   :  { %v6318_v46 = vadd.f32 %v5757_v47, %v4950_v23  ;;  %v6329_v17 = vadd.f32 %v5812_v39, %v4961_v51  ;;  %6131 = vperm.xlu0 %7100, %v2973_v50   ;;  %v19227_v51 = vld [vmem:[#allocation246_spill] sm:$0xff]  ;;  %v19228_v39 = vld [vmem:[#allocation271_spill] sm:$0xff]  ;;  %v19246_v36 = vld [vmem:[#allocation272_spill] sm:$0xff] }
 0x716   :  { %v4962_v47 = vmul.f32 %v19227_v51, %v19226_v58  ;;  %v19250_v51 = vld [vmem:[#allocation274_spill] sm:$0xff] }
 0x717   :  { %6546 = vst.msk [vmem:[%s17398_s3 + $0x480] sm:$0xff] %vm245_vm0, %v6318_v46  ;;  %6557 = vst.msk [vmem:[%s17398_s3 + $0x4d8] sm:$0xff] %vm245_vm0, %v6329_v17  ;;  %v19229_v46 = vld [vmem:[#allocation255_spill] sm:$0xff] }
 0x718   :  { %6086 = vperm.xlu1 %7101, %v2964_v2   ;;  %v5767_v40 = vpop.permute.xlu1 %5766  ;;  %v5822_v42 = vpop.permute.xlu0 %5821  ;;  %v4973_v17 = vmul.f32 %v19229_v46, %v19228_v39  ;;  %v19252_v46 = vld [vmem:[#allocation283_spill] sm:$0xff] }
 0x719   :  { %v6320_v22 = vadd.f32 %v5767_v40, %v4952_v16  ;;  %v6331_v21 = vadd.f32 %v5822_v42, %v4963_v41  ;;  %6141 = vperm.xlu0 %7100, %v2975_v27   ;;  %v2976_v16 = vld [vmem:[%s17397_s2 + $0x6f0] sm:$0xff]  ;;  %v4964_v41 = vmul.f32 %v19231_v31, %v19230_v29  ;;  %v19232_v40 = vld [vmem:[#allocation273_spill] sm:$0xff]  ;;  %v19233_v42 = vld [vmem:[#allocation342_spill] sm:$0xff] }
 0x71a   :  { %v19254_v29 = vld [vmem:[#allocation276_spill] sm:$0xff]  ;;  %v19255_v31 = vld [vmem:[#allocation353_spill] sm:$0xff] }
 0x71b   :  { %6548 = vst.msk [vmem:[%s17398_s3 + $0x490] sm:$0xff] %vm245_vm0, %v6320_v22  ;;  %6559 = vst.msk [vmem:[%s17398_s3 + $0x4e8] sm:$0xff] %vm245_vm0, %v6331_v21  ;;  %v4975_v22 = vmul.f32 %v19233_v42, %v19232_v40  ;;  %v19256_v40 = vld [vmem:[#allocation285_spill] sm:$0xff]  ;;  %v19257_v42 = vld [vmem:[#allocation354_spill] sm:$0xff] }
 0x71c   :  { %6096 = vperm.xlu1 %7101, %v2966_v19   ;;  %v5777_v48 = vpop.permute.xlu1 %5776  ;;  %v5832_v11 = vpop.permute.xlu0 %5831 }
 0x71d   :  { %v6322_v7 = vadd.f32 %v5777_v48, %v4954_v14  ;;  %v6333_v12 = vadd.f32 %v5832_v11, %v4965_v33  ;;  %6151 = vperm.xlu0 %7100, %v2977_v25   ;;  %v19234_v14 = vld [vmem:[#allocation266_spill] sm:$0xff]  ;;  %v19236_v33 = vld [vmem:[#allocation275_spill] sm:$0xff]  ;;  %v19237_v48 = vld [vmem:[#allocation344_spill] sm:$0xff] }
 0x71e   :  { %v4966_v4 = vmul.f32 %v19235_v18, %v19234_v14  ;;  %v4977_v11 = vmul.f32 %v19237_v48, %v19236_v33  ;;  %v19259_v14 = vld [vmem:[#allocation355_spill] sm:$0xff]  ;;  %v19261_v33 = vld [vmem:[#allocation356_spill] sm:$0xff] }
 0x71f   :  { %6550 = vst.msk [vmem:[%s17398_s3 + $0x4a0] sm:$0xff] %vm245_vm0, %v6322_v7  ;;  %6561 = vst.msk [vmem:[%s17398_s3 + $0x4f8] sm:$0xff] %vm245_vm0, %v6333_v12 }
 0x720   :  { %6106 = vperm.xlu1 %7101, %v2968_v28   ;;  %v5787_v3 = vpop.permute.xlu1 %5786  ;;  %v5842_v10 = vpop.permute.xlu0 %5841 }
 0x721   :  { %v6324_v5 = vadd.f32 %v5787_v3, %v4956_v20  ;;  %v6335_v45 = vadd.f32 %v5842_v10, %v4967_v37  ;;  %6161 = vperm.xlu0 %7100, %v2979_v55   ;;  %v19239_v20 = vld [vmem:[#allocation345_spill] sm:$0xff]  ;;  %v19241_v37 = vld [vmem:[#allocation346_spill] sm:$0xff] }
 0x722   :  { %v4968_v52 = vmul.f32 %v19239_v20, %v19238_v63  ;;  %v4979_v3 = vmul.f32 %v19241_v37, %v19240_v49  ;;  %v19264_v20 = vld [vmem:[#allocation289_spill] sm:$0xff] }
 0x723   :  { %6552 = vst.msk [vmem:[%s17398_s3 + $0x4b0] sm:$0xff] %vm245_vm0, %v6324_v5  ;;  %6563 = vst.msk [vmem:[%s17398_s3 + $0x508] sm:$0xff] %vm245_vm0, %v6335_v45 }
 0x724   :  { %6116 = vperm.xlu1 %7101, %v2970_v54   ;;  %v5797_v30 = vpop.permute.xlu1 %5796  ;;  %v5852_v38 = vpop.permute.xlu0 %5851 }
 0x725   :  { %v6326_v62 = vadd.f32 %v5797_v30, %v4958_v60  ;;  %v6337_v1 = vadd.f32 %v5852_v38, %v4969_v8  ;;  %6171 = vperm.xlu0 %7100, %v2981_v57   ;;  %v19242_v57 = vld [vmem:[#allocation270_spill] sm:$0xff]  ;;  %v19245_v8 = vld [vmem:[#allocation348_spill] sm:$0xff] }
 0x726   :  { %v4970_v60 = vmul.f32 %v19243_v24, %v19242_v57  ;;  %v4981_v30 = vmul.f32 %v19245_v8, %v19244_v53  ;;  %v19268_v24 = vld [vmem:[#allocation291_spill] sm:$0xff] }
 0x727   :  { %6554 = vst.msk [vmem:[%s17398_s3 + $0x4c0] sm:$0xff] %vm245_vm0, %v6326_v62  ;;  %6565 = vst.msk [vmem:[%s17398_s3 + $0x518] sm:$0xff] %vm245_vm0, %v6337_v1 }
 0x728   :  { %6126 = vperm.xlu1 %7101, %v2972_v59   ;;  %v5807_v50 = vpop.permute.xlu1 %5806  ;;  %v5862_v0 = vpop.permute.xlu0 %5861 }
 0x729   :  { %v6328_v23 = vadd.f32 %v5807_v50, %v4960_v32  ;;  %v6339_v61 = vadd.f32 %v5862_v0, %v4971_v26  ;;  %v19247_v32 = vld [vmem:[#allocation349_spill] sm:$0xff]  ;;  %v19249_v50 = vld [vmem:[#allocation350_spill] sm:$0xff] }
 0x72a   :  { %v4972_v35 = vmul.f32 %v19247_v32, %v19246_v36  ;;  %v19248_v26 = vld [vmem:[#allocation281_spill] sm:$0xff] }
 0x72b   :  { %6556 = vst.msk [vmem:[%s17398_s3 + $0x4d0] sm:$0xff] %vm245_vm0, %v6328_v23  ;;  %6567 = vst.msk [vmem:[%s17398_s3 + $0x528] sm:$0xff] %vm245_vm0, %v6339_v61  ;;  %v4983_v0 = vmul.f32 %v19249_v50, %v19248_v26  ;;  %v19272_v32 = vld [vmem:[#allocation293_spill] sm:$0xff] }
 0x72c   :  { %6136 = vperm.xlu1 %7101, %v2974_v43   ;;  %v5817_v2 = vpop.permute.xlu1 %5816  ;;  %v5872_v27 = vpop.permute.xlu0 %5871 }
 0x72d   :  { %v6330_v44 = vadd.f32 %v5817_v2, %v4962_v47  ;;  %v6341_v15 = vadd.f32 %v5872_v27, %v4973_v17  ;;  %v19251_v47 = vld [vmem:[#allocation351_spill] sm:$0xff]  ;;  %v19253_v17 = vld [vmem:[#allocation352_spill] sm:$0xff] }
 0x72e   :  { %v4974_v39 = vmul.f32 %v19251_v47, %v19250_v51  ;;  %v4985_v2 = vmul.f32 %v19253_v17, %v19252_v46  ;;  %v19276_v47 = vld [vmem:[#allocation295_spill] sm:$0xff] }
 0x72f   :  { %6558 = vst.msk [vmem:[%s17398_s3 + $0x4e0] sm:$0xff] %vm245_vm0, %v6330_v44  ;;  %6569 = vst.msk [vmem:[%s17398_s3 + $0x538] sm:$0xff] %vm245_vm0, %v6341_v15 }
 0x730   :  { %6146 = vperm.xlu1 %7101, %v2976_v16   ;;  %v5827_v21 = vpop.permute.xlu1 %5826  ;;  %v5882_v19 = vpop.permute.xlu0 %5881 }
 0x731   :  { %v6332_v25 = vadd.f32 %v5827_v21, %v4964_v41  ;;  %v6343_v34 = vadd.f32 %v5882_v19, %v4975_v22  ;;  %v4976_v41 = vmul.f32 %v19255_v31, %v19254_v29  ;;  %v4987_v22 = vmul.f32 %v19257_v42, %v19256_v40  ;;  %v19280_v31 = vld [vmem:[#allocation297_spill] sm:$0xff] }
 0x733   :  { %6560 = vst.msk [vmem:[%s17398_s3 + $0x4f0] sm:$0xff] %vm245_vm0, %v6332_v25  ;;  %6571 = vst.msk [vmem:[%s17398_s3 + $0x548] sm:$0xff] %vm245_vm0, %v6343_v34 }
 0x734   :  { %6156 = vperm.xlu1 %7101, %v2978_v9   ;;  %v5837_v7 = vpop.permute.xlu1 %5836  ;;  %v5892_v12 = vpop.permute.xlu0 %5891  ;;  %v19258_v9 = vld [vmem:[#allocation278_spill] sm:$0xff] }
 0x735   :  { %v6334_v28 = vadd.f32 %v5837_v7, %v4966_v4  ;;  %v6345_v55 = vadd.f32 %v5892_v12, %v4977_v11  ;;  %v4978_v18 = vmul.f32 %v19259_v14, %v19258_v9  ;;  %v19260_v4 = vld [vmem:[#allocation287_spill] sm:$0xff]  ;;  %v19284_v14 = vld [vmem:[#allocation300_spill] sm:$0xff] }
 0x736   :  { %v4989_v48 = vmul.f32 %v19261_v33, %v19260_v4 }
 0x737   :  { %6562 = vst.msk [vmem:[%s17398_s3 + $0x500] sm:$0xff] %vm245_vm0, %v6334_v28  ;;  %6573 = vst.msk [vmem:[%s17398_s3 + $0x558] sm:$0xff] %vm245_vm0, %v6345_v55  ;;  %v19262_v55 = vld [vmem:[#allocation280_spill] sm:$0xff] }
 0x738   :  { %6166 = vperm.xlu1 %7101, %v2980_v56   ;;  %v5847_v10 = vpop.permute.xlu1 %5846  ;;  %v5902_v5 = vpop.permute.xlu0 %5901  ;;  %v19263_v56 = vld [vmem:[#allocation357_spill] sm:$0xff] }
 0x739   :  { %v6336_v45 = vadd.f32 %v5847_v10, %v4968_v52  ;;  %v6347_v54 = vadd.f32 %v5902_v5, %v4979_v3  ;;  %v4980_v63 = vmul.f32 %v19263_v56, %v19262_v55  ;;  %v19265_v52 = vld [vmem:[#allocation358_spill] sm:$0xff]  ;;  %v19288_v56 = vld [vmem:[#allocation303_spill] sm:$0xff] }
 0x73a   :  { %v4991_v49 = vmul.f32 %v19265_v52, %v19264_v20 }
 0x73b   :  { %6564 = vst.msk [vmem:[%s17398_s3 + $0x510] sm:$0xff] %vm245_vm0, %v6336_v45  ;;  %6575 = vst.msk [vmem:[%s17398_s3 + $0x568] sm:$0xff] %vm245_vm0, %v6347_v54  ;;  %v19266_v45 = vld [vmem:[#allocation282_spill] sm:$0xff]  ;;  %v19267_v54 = vld [vmem:[#allocation359_spill] sm:$0xff] }
 0x73c   :  { %v5857_v38 = vpop.permute.xlu1 %5856  ;;  %v5912_v62 = vpop.permute.xlu0 %5911  ;;  %v4982_v57 = vmul.f32 %v19267_v54, %v19266_v45  ;;  %v19292_v54 = vld [vmem:[#allocation305_spill] sm:$0xff] }
 0x73d   :  { %v6338_v1 = vadd.f32 %v5857_v38, %v4970_v60  ;;  %v6349_v59 = vadd.f32 %v5912_v62, %v4981_v30  ;;  %v19269_v60 = vld [vmem:[#allocation360_spill] sm:$0xff] }
 0x73e   :  { %v4993_v53 = vmul.f32 %v19269_v60, %v19268_v24 }
 0x73f   :  { %6566 = vst.msk [vmem:[%s17398_s3 + $0x520] sm:$0xff] %vm245_vm0, %v6338_v1  ;;  %6577 = vst.msk [vmem:[%s17398_s3 + $0x578] sm:$0xff] %vm245_vm0, %v6349_v59  ;;  %v19270_v1 = vld [vmem:[#allocation284_spill] sm:$0xff]  ;;  %v19271_v59 = vld [vmem:[#allocation361_spill] sm:$0xff] }
 0x740   :  { %v5867_v23 = vpop.permute.xlu1 %5866  ;;  %v5922_v61 = vpop.permute.xlu0 %5921  ;;  %v4984_v36 = vmul.f32 %v19271_v59, %v19270_v1  ;;  %v19296_v59 = vld [vmem:[#allocation309_spill] sm:$0xff] }
 0x741   :  { %v6340_v43 = vadd.f32 %v5867_v23, %v4972_v35  ;;  %v6351_v58 = vadd.f32 %v5922_v61, %v4983_v0  ;;  %v19273_v35 = vld [vmem:[#allocation362_spill] sm:$0xff] }
 0x742   :  { %v4995_v26 = vmul.f32 %v19273_v35, %v19272_v32 }
 0x743   :  { %6568 = vst.msk [vmem:[%s17398_s3 + $0x530] sm:$0xff] %vm245_vm0, %v6340_v43  ;;  %6579 = vst.msk [vmem:[%s17398_s3 + $0x588] sm:$0xff] %vm245_vm0, %v6351_v58  ;;  %v19274_v43 = vld [vmem:[#allocation286_spill] sm:$0xff]  ;;  %v19275_v58 = vld [vmem:[#allocation363_spill] sm:$0xff] }
 0x744   :  { %v5877_v27 = vpop.permute.xlu1 %5876  ;;  %v5932_v44 = vpop.permute.xlu0 %5931  ;;  %v4986_v51 = vmul.f32 %v19275_v58, %v19274_v43  ;;  %v19300_v58 = vld [vmem:[#allocation156_spill] sm:$0xff] }
 0x745   :  { %v6342_v15 = vadd.f32 %v5877_v27, %v4974_v39  ;;  %v6353_v16 = vadd.f32 %v5932_v44, %v4985_v2  ;;  %v19277_v39 = vld [vmem:[#allocation364_spill] sm:$0xff] }
 0x746   :  { %v4997_v46 = vmul.f32 %v19277_v39, %v19276_v47 }
 0x747   :  { %6570 = vst.msk [vmem:[%s17398_s3 + $0x540] sm:$0xff] %vm245_vm0, %v6342_v15  ;;  %6581 = vst.msk [vmem:[%s17398_s3 + $0x598] sm:$0xff] %vm245_vm0, %v6353_v16  ;;  %v19278_v15 = vld [vmem:[#allocation288_spill] sm:$0xff]  ;;  %v19279_v16 = vld [vmem:[#allocation365_spill] sm:$0xff] }
 0x748   :  { %v5887_v21 = vpop.permute.xlu1 %5886  ;;  %v5942_v19 = vpop.permute.xlu0 %5941  ;;  %v4988_v29 = vmul.f32 %v19279_v16, %v19278_v15  ;;  %v19304_v16 = vld [vmem:[#allocation159_spill] sm:$0xff] }
 0x749   :  { %v6344_v25 = vadd.f32 %v5887_v21, %v4976_v41  ;;  %v6355_v34 = vadd.f32 %v5942_v19, %v4987_v22  ;;  %v19281_v41 = vld [vmem:[#allocation366_spill] sm:$0xff] }
 0x74a   :  { %v4999_v40 = vmul.f32 %v19281_v41, %v19280_v31 }
 0x74b   :  { %6572 = vst.msk [vmem:[%s17398_s3 + $0x550] sm:$0xff] %vm245_vm0, %v6344_v25  ;;  %6583 = vst.msk [vmem:[%s17398_s3 + $0x5a8] sm:$0xff] %vm245_vm0, %v6355_v34  ;;  %v19282_v25 = vld [vmem:[#allocation290_spill] sm:$0xff]  ;;  %v19283_v34 = vld [vmem:[#allocation367_spill] sm:$0xff] }
 0x74c   :  { %v5897_v11 = vpop.permute.xlu1 %5896  ;;  %v5952_v7 = vpop.permute.xlu0 %5951  ;;  %v4990_v9 = vmul.f32 %v19283_v34, %v19282_v25  ;;  %v19308_v34 = vld [vmem:[#allocation161_spill] sm:$0xff] }
 0x74d   :  { %v6346_v12 = vadd.f32 %v5897_v11, %v4978_v18  ;;  %v6357_v28 = vadd.f32 %v5952_v7, %v4989_v48  ;;  %v19285_v18 = vld [vmem:[#allocation368_spill] sm:$0xff] }
 0x74e   :  { %v5001_v4 = vmul.f32 %v19285_v18, %v19284_v14 }
 0x74f   :  { %6574 = vst.msk [vmem:[%s17398_s3 + $0x560] sm:$0xff] %vm245_vm0, %v6346_v12  ;;  %6585 = vst.msk [vmem:[%s17398_s3 + $0x5b8] sm:$0xff] %vm245_vm0, %v6357_v28  ;;  %v19286_v12 = vld [vmem:[#allocation292_spill] sm:$0xff]  ;;  %v19287_v28 = vld [vmem:[#allocation369_spill] sm:$0xff] }
 0x750   :  { %v5907_v37 = vpop.permute.xlu1 %5906  ;;  %v5962_v3 = vpop.permute.xlu0 %5961  ;;  %v4992_v55 = vmul.f32 %v19287_v28, %v19286_v12  ;;  %v19312_v28 = vld [vmem:[#allocation163_spill] sm:$0xff] }
 0x751   :  { %v6348_v10 = vadd.f32 %v5907_v37, %v4980_v63  ;;  %v6359_v5 = vadd.f32 %v5962_v3, %v4991_v49  ;;  %v19289_v63 = vld [vmem:[#allocation370_spill] sm:$0xff] }
 0x752   :  { %v5003_v20 = vmul.f32 %v19289_v63, %v19288_v56 }
 0x753   :  { %6576 = vst.msk [vmem:[%s17398_s3 + $0x570] sm:$0xff] %vm245_vm0, %v6348_v10  ;;  %6587 = vst.msk [vmem:[%s17398_s3 + $0x5c8] sm:$0xff] %vm245_vm0, %v6359_v5  ;;  %v19290_v10 = vld [vmem:[#allocation294_spill] sm:$0xff]  ;;  %v19291_v5 = vld [vmem:[#allocation371_spill] sm:$0xff] }
 0x754   :  { %v5917_v8 = vpop.permute.xlu1 %5916  ;;  %v5972_v30 = vpop.permute.xlu0 %5971  ;;  %v4994_v45 = vmul.f32 %v19291_v5, %v19290_v10  ;;  %v19316_v5 = vld [vmem:[#allocation165_spill] sm:$0xff] }
 0x755   :  { %v6350_v38 = vadd.f32 %v5917_v8, %v4982_v57  ;;  %v6361_v62 = vadd.f32 %v5972_v30, %v4993_v53  ;;  %v19293_v57 = vld [vmem:[#allocation372_spill] sm:$0xff] }
 0x756   :  { %v5005_v24 = vmul.f32 %v19293_v57, %v19292_v54 }
 0x757   :  { %6578 = vst.msk [vmem:[%s17398_s3 + $0x580] sm:$0xff] %vm245_vm0, %v6350_v38  ;;  %6589 = vst.msk [vmem:[%s17398_s3 + $0x5d8] sm:$0xff] %vm245_vm0, %v6361_v62  ;;  %v19294_v38 = vld [vmem:[#allocation296_spill] sm:$0xff]  ;;  %v19295_v62 = vld [vmem:[#allocation373_spill] sm:$0xff] }
 0x758   :  { %v5927_v50 = vpop.permute.xlu1 %5926  ;;  %v5982_v0 = vpop.permute.xlu0 %5981  ;;  %v4996_v1 = vmul.f32 %v19295_v62, %v19294_v38  ;;  %v19320_v62 = vld [vmem:[#allocation167_spill] sm:$0xff] }
 0x759   :  { %v6352_v23 = vadd.f32 %v5927_v50, %v4984_v36  ;;  %v6363_v61 = vadd.f32 %v5982_v0, %v4995_v26  ;;  %v19297_v36 = vld [vmem:[#allocation374_spill] sm:$0xff] }
 0x75a   :  { %v5007_v32 = vmul.f32 %v19297_v36, %v19296_v59 }
 0x75b   :  { %6580 = vst.msk [vmem:[%s17398_s3 + $0x590] sm:$0xff] %vm245_vm0, %v6352_v23  ;;  %6591 = vst.msk [vmem:[%s17398_s3 + $0x5e8] sm:$0xff] %vm245_vm0, %v6363_v61  ;;  %v19298_v23 = vld [vmem:[#allocation298_spill] sm:$0xff]  ;;  %v19299_v61 = vld [vmem:[#allocation375_spill] sm:$0xff] }
 0x75c   :  { %v5937_v17 = vpop.permute.xlu1 %5936  ;;  %v5992_v2 = vpop.permute.xlu0 %5991  ;;  %v4998_v43 = vmul.f32 %v19299_v61, %v19298_v23  ;;  %v19324_v61 = vld [vmem:[#allocation169_spill] sm:$0xff] }
 0x75d   :  { %v6354_v27 = vadd.f32 %v5937_v17, %v4986_v51  ;;  %v6365_v44 = vadd.f32 %v5992_v2, %v4997_v46  ;;  %v19301_v51 = vld [vmem:[#allocation376_spill] sm:$0xff] }
 0x75e   :  { %v5009_v47 = vmul.f32 %v19301_v51, %v19300_v58 }
 0x75f   :  { %6582 = vst.msk [vmem:[%s17398_s3 + $0x5a0] sm:$0xff] %vm245_vm0, %v6354_v27  ;;  %6593 = vst.msk [vmem:[%s17398_s3 + $0x5f8] sm:$0xff] %vm245_vm0, %v6365_v44  ;;  %v19302_v27 = vld [vmem:[#allocation301_spill] sm:$0xff] }
 0x760   :  { %v5947_v42 = vpop.permute.xlu1 %5946  ;;  %v6002_v22 = vpop.permute.xlu0 %6001  ;;  %v19303_v44 = vld [vmem:[#allocation377_spill] sm:$0xff] }
 0x761   :  { %v6356_v21 = vadd.f32 %v5947_v42, %v4988_v29  ;;  %v6367_v19 = vadd.f32 %v6002_v22, %v4999_v40  ;;  %v5000_v15 = vmul.f32 %v19303_v44, %v19302_v27  ;;  %v19305_v29 = vld [vmem:[#allocation378_spill] sm:$0xff]  ;;  %v19328_v44 = vld [vmem:[#allocation171_spill] sm:$0xff] }
 0x762   :  { %v5011_v31 = vmul.f32 %v19305_v29, %v19304_v16 }
 0x763   :  { %6584 = vst.msk [vmem:[%s17398_s3 + $0x5b0] sm:$0xff] %vm245_vm0, %v6356_v21  ;;  %6595 = vst.msk [vmem:[%s17398_s3 + $0x608] sm:$0xff] %vm245_vm0, %v6367_v19  ;;  %v19306_v21 = vld [vmem:[#allocation304_spill] sm:$0xff]  ;;  %v19307_v19 = vld [vmem:[#allocation379_spill] sm:$0xff] }
 0x764   :  { %v5957_v33 = vpop.permute.xlu1 %5956  ;;  %v6012_v48 = vpop.permute.xlu0 %6011  ;;  %v5002_v25 = vmul.f32 %v19307_v19, %v19306_v21  ;;  %v19332_v19 = vld [vmem:[#allocation173_spill] sm:$0xff] }
 0x765   :  { %v6358_v11 = vadd.f32 %v5957_v33, %v4990_v9  ;;  %v6369_v7 = vadd.f32 %v6012_v48, %v5001_v4  ;;  %v19309_v9 = vld [vmem:[#allocation380_spill] sm:$0xff] }
 0x766   :  { %v5013_v14 = vmul.f32 %v19309_v9, %v19308_v34 }
 0x767   :  { %6586 = vst.msk [vmem:[%s17398_s3 + $0x5c0] sm:$0xff] %vm245_vm0, %v6358_v11  ;;  %6597 = vst.msk [vmem:[%s17398_s3 + $0x618] sm:$0xff] %vm245_vm0, %v6369_v7  ;;  %v19310_v11 = vld [vmem:[#allocation306_spill] sm:$0xff]  ;;  %v19311_v7 = vld [vmem:[#allocation381_spill] sm:$0xff] }
 0x768   :  { %v5967_v52 = vpop.permute.xlu1 %5966  ;;  %v6022_v49 = vpop.permute.xlu0 %6021  ;;  %v5004_v12 = vmul.f32 %v19311_v7, %v19310_v11  ;;  %v19336_v7 = vld [vmem:[#allocation175_spill] sm:$0xff] }
 0x769   :  { %v6360_v37 = vadd.f32 %v5967_v52, %v4992_v55  ;;  %v6371_v3 = vadd.f32 %v6022_v49, %v5003_v20  ;;  %v19313_v55 = vld [vmem:[#allocation382_spill] sm:$0xff] }
 0x76a   :  { %v5015_v56 = vmul.f32 %v19313_v55, %v19312_v28 }
 0x76b   :  { %6588 = vst.msk [vmem:[%s17398_s3 + $0x5d0] sm:$0xff] %vm245_vm0, %v6360_v37  ;;  %6599 = vst.msk [vmem:[%s17398_s3 + $0x628] sm:$0xff] %vm245_vm0, %v6371_v3  ;;  %v19314_v37 = vld [vmem:[#allocation155_spill] sm:$0xff] }
 0x76c   :  { %v5977_v60 = vpop.permute.xlu1 %5976  ;;  %v6032_v53 = vpop.permute.xlu0 %6031  ;;  %v19315_v3 = vld [vmem:[#allocation383_spill] sm:$0xff] }
 0x76d   :  { %v6362_v8 = vadd.f32 %v5977_v60, %v4994_v45  ;;  %v6373_v30 = vadd.f32 %v6032_v53, %v5005_v24  ;;  %v5006_v10 = vmul.f32 %v19315_v3, %v19314_v37  ;;  %v19317_v45 = vld [vmem:[#allocation384_spill] sm:$0xff]  ;;  %v19340_v3 = vld [vmem:[#allocation177_spill] sm:$0xff] }
 0x76e   :  { %v5017_v54 = vmul.f32 %v19317_v45, %v19316_v5 }
 0x76f   :  { %6590 = vst.msk [vmem:[%s17398_s3 + $0x5e0] sm:$0xff] %vm245_vm0, %v6362_v8  ;;  %6601 = vst.msk [vmem:[%s17398_s3 + $0x638] sm:$0xff] %vm245_vm0, %v6373_v30  ;;  %v19318_v8 = vld [vmem:[#allocation157_spill] sm:$0xff] }
 0x770   :  { %v5987_v35 = vpop.permute.xlu1 %5986  ;;  %v6042_v26 = vpop.permute.xlu0 %6041  ;;  %v19319_v30 = vld [vmem:[#allocation385_spill] sm:$0xff] }
 0x771   :  { %v6364_v50 = vadd.f32 %v5987_v35, %v4996_v1  ;;  %v6375_v0 = vadd.f32 %v6042_v26, %v5007_v32  ;;  %v5008_v38 = vmul.f32 %v19319_v30, %v19318_v8  ;;  %v19321_v1 = vld [vmem:[#allocation386_spill] sm:$0xff]  ;;  %v19344_v30 = vld [vmem:[#allocation179_spill] sm:$0xff] }
 0x772   :  { %v5019_v59 = vmul.f32 %v19321_v1, %v19320_v62 }
 0x773   :  { %6592 = vst.msk [vmem:[%s17398_s3 + $0x5f0] sm:$0xff] %vm245_vm0, %v6364_v50  ;;  %6603 = vst.msk [vmem:[%s17398_s3 + $0x648] sm:$0xff] %vm245_vm0, %v6375_v0  ;;  %v19322_v50 = vld [vmem:[#allocation160_spill] sm:$0xff]  ;;  %v19323_v0 = vld [vmem:[#allocation387_spill] sm:$0xff] }
 0x774   :  { %v5997_v39 = vpop.permute.xlu1 %5996  ;;  %v6052_v46 = vpop.permute.xlu0 %6051  ;;  %v5010_v23 = vmul.f32 %v19323_v0, %v19322_v50  ;;  %v19348_v0 = vld [vmem:[#allocation181_spill] sm:$0xff] }
 0x775   :  { %v6366_v17 = vadd.f32 %v5997_v39, %v4998_v43  ;;  %v6377_v2 = vadd.f32 %v6052_v46, %v5009_v47  ;;  %v19325_v43 = vld [vmem:[#allocation388_spill] sm:$0xff] }
 0x776   :  { %v5021_v58 = vmul.f32 %v19325_v43, %v19324_v61 }
 0x777   :  { %6594 = vst.msk [vmem:[%s17398_s3 + $0x600] sm:$0xff] %vm245_vm0, %v6366_v17  ;;  %6605 = vst.msk [vmem:[%s17398_s3 + $0x658] sm:$0xff] %vm245_vm0, %v6377_v2  ;;  %v19326_v17 = vld [vmem:[#allocation162_spill] sm:$0xff]  ;;  %v19327_v2 = vld [vmem:[#allocation389_spill] sm:$0xff] }
 0x778   :  { %v6007_v41 = vpop.permute.xlu1 %6006  ;;  %v6062_v40 = vpop.permute.xlu0 %6061  ;;  %v5012_v27 = vmul.f32 %v19327_v2, %v19326_v17 }
 0x779   :  { %v6368_v42 = vadd.f32 %v6007_v41, %v5000_v15  ;;  %v6379_v22 = vadd.f32 %v6062_v40, %v5011_v31  ;;  %v19329_v15 = vld [vmem:[#allocation390_spill] sm:$0xff] }
 0x77a   :  { %v5023_v16 = vmul.f32 %v19329_v15, %v19328_v44 }
 0x77b   :  { %6596 = vst.msk [vmem:[%s17398_s3 + $0x610] sm:$0xff] %vm245_vm0, %v6368_v42  ;;  %6607 = vst.msk [vmem:[%s17398_s3 + $0x668] sm:$0xff] %vm245_vm0, %v6379_v22  ;;  %v19330_v42 = vld [vmem:[#allocation164_spill] sm:$0xff]  ;;  %v19331_v22 = vld [vmem:[#allocation391_spill] sm:$0xff] }
 0x77c   :  { %v6017_v18 = vpop.permute.xlu1 %6016  ;;  %v6072_v4 = vpop.permute.xlu0 %6071  ;;  %v5014_v21 = vmul.f32 %v19331_v22, %v19330_v42  ;;  %v19354_v42 = vld [vmem:[#allocation180_spill] sm:$0xff] }
 0x77d   :  { %v6370_v33 = vadd.f32 %v6017_v18, %v5002_v25  ;;  %v6381_v48 = vadd.f32 %v6072_v4, %v5013_v14  ;;  %v19333_v25 = vld [vmem:[#allocation392_spill] sm:$0xff] }
 0x77e   :  { %v5025_v34 = vmul.f32 %v19333_v25, %v19332_v19  ;;  %v19355_v22 = vld [vmem:[#allocation248_spill] sm:$0xff]  ;;  %v19356_v25 = vld [vmem:[#allocation182_spill] sm:$0xff] }
 0x77f   :  { %6598 = vst.msk [vmem:[%s17398_s3 + $0x620] sm:$0xff] %vm245_vm0, %v6370_v33  ;;  %6609 = vst.msk [vmem:[%s17398_s3 + $0x678] sm:$0xff] %vm245_vm0, %v6381_v48  ;;  %v19334_v33 = vld [vmem:[#allocation166_spill] sm:$0xff]  ;;  %v19335_v48 = vld [vmem:[#allocation393_spill] sm:$0xff] }
 0x780   :  { %v6027_v63 = vpop.permute.xlu1 %6026  ;;  %v6082_v20 = vpop.permute.xlu0 %6081  ;;  %v5016_v11 = vmul.f32 %v19335_v48, %v19334_v33 }
 0x781   :  { %v6372_v52 = vadd.f32 %v6027_v63, %v5004_v12  ;;  %v6383_v49 = vadd.f32 %v6082_v20, %v5015_v56  ;;  %v19337_v12 = vld [vmem:[#allocation394_spill] sm:$0xff] }
 0x782   :  { %v5027_v28 = vmul.f32 %v19337_v12, %v19336_v7 }
 0x783   :  { %6600 = vst.msk [vmem:[%s17398_s3 + $0x630] sm:$0xff] %vm245_vm0, %v6372_v52  ;;  %6611 = vst.msk [vmem:[%s17398_s3 + $0x688] sm:$0xff] %vm245_vm0, %v6383_v49  ;;  %v19338_v52 = vld [vmem:[#allocation168_spill] sm:$0xff]  ;;  %v19339_v49 = vld [vmem:[#allocation395_spill] sm:$0xff] }
 0x784   :  { %v6037_v57 = vpop.permute.xlu1 %6036  ;;  %v6092_v24 = vpop.permute.xlu0 %6091  ;;  %v5018_v37 = vmul.f32 %v19339_v49, %v19338_v52 }
 0x785   :  { %v6374_v60 = vadd.f32 %v6037_v57, %v5006_v10  ;;  %v6385_v53 = vadd.f32 %v6092_v24, %v5017_v54  ;;  %v19341_v10 = vld [vmem:[#allocation396_spill] sm:$0xff] }
 0x786   :  { %v5029_v5 = vmul.f32 %v19341_v10, %v19340_v3 }
 0x787   :  { %6602 = vst.msk [vmem:[%s17398_s3 + $0x640] sm:$0xff] %vm245_vm0, %v6374_v60  ;;  %6613 = vst.msk [vmem:[%s17398_s3 + $0x698] sm:$0xff] %vm245_vm0, %v6385_v53  ;;  %v19342_v60 = vld [vmem:[#allocation170_spill] sm:$0xff]  ;;  %v19343_v53 = vld [vmem:[#allocation397_spill] sm:$0xff] }
 0x788   :  { %v6047_v36 = vpop.permute.xlu1 %6046  ;;  %v6102_v32 = vpop.permute.xlu0 %6101  ;;  %v5020_v8 = vmul.f32 %v19343_v53, %v19342_v60 }
 0x789   :  { %v6376_v35 = vadd.f32 %v6047_v36, %v5008_v38  ;;  %v6387_v26 = vadd.f32 %v6102_v32, %v5019_v59  ;;  %v19345_v38 = vld [vmem:[#allocation398_spill] sm:$0xff] }
 0x78a   :  { %v5031_v62 = vmul.f32 %v19345_v38, %v19344_v30 }
 0x78b   :  { %6604 = vst.msk [vmem:[%s17398_s3 + $0x650] sm:$0xff] %vm245_vm0, %v6376_v35  ;;  %6615 = vst.msk [vmem:[%s17398_s3 + $0x6a8] sm:$0xff] %vm245_vm0, %v6387_v26  ;;  %v19346_v35 = vld [vmem:[#allocation172_spill] sm:$0xff]  ;;  %v19347_v26 = vld [vmem:[#allocation399_spill] sm:$0xff] }
 0x78c   :  { %v6057_v51 = vpop.permute.xlu1 %6056  ;;  %v6112_v47 = vpop.permute.xlu0 %6111  ;;  %v5022_v50 = vmul.f32 %v19347_v26, %v19346_v35 }
 0x78d   :  { %v6378_v39 = vadd.f32 %v6057_v51, %v5010_v23  ;;  %v6389_v46 = vadd.f32 %v6112_v47, %v5021_v58  ;;  %v19349_v23 = vld [vmem:[#allocation400_spill] sm:$0xff] }
 0x78e   :  { %v5033_v61 = vmul.f32 %v19349_v23, %v19348_v0 }
 0x78f   :  { %6606 = vst.msk [vmem:[%s17398_s3 + $0x660] sm:$0xff] %vm245_vm0, %v6378_v39  ;;  %6617 = vst.msk [vmem:[%s17398_s3 + $0x6b8] sm:$0xff] %vm245_vm0, %v6389_v46  ;;  %v19350_v39 = vld [vmem:[#allocation174_spill] sm:$0xff] }
 0x790   :  { %v6067_v29 = vpop.permute.xlu1 %6066  ;;  %v6122_v31 = vpop.permute.xlu0 %6121  ;;  %v5024_v46 = vmul.f32 %v15516_v6, %v19350_v39 }
 0x791   :  { %v6380_v41 = vadd.f32 %v6067_v29, %v5012_v27  ;;  %v6391_v40 = vadd.f32 %v6122_v31, %v5023_v16  ;;  %v19351_v27 = vld [vmem:[#allocation176_spill] sm:$0xff]  ;;  %v19352_v16 = vld [vmem:[#allocation178_spill] sm:$0xff]  ;;  %v19353_v29 = vld [vmem:[#allocation105_spill] sm:$0xff] }
 0x792   :  { %v5026_v44 = vmul.f32 %v15530_v13, %v19351_v27  ;;  %v5028_v31 = vmul.f32 %v19353_v29, %v19352_v16  ;;  %v5030_v13 = vmul.f32 %v19355_v22, %v19354_v42 }
 0x793   :  { %6608 = vst.msk [vmem:[%s17398_s3 + $0x670] sm:$0xff] %vm245_vm0, %v6380_v41  ;;  %6619 = vst.msk [vmem:[%s17398_s3 + $0x6c8] sm:$0xff] %vm245_vm0, %v6391_v40 }
 0x794   :  { %v6077_v9 = vpop.permute.xlu1 %6076  ;;  %v6132_v14 = vpop.permute.xlu0 %6131 }
 0x795   :  { %v6382_v18 = vadd.f32 %v6077_v9, %v5014_v21  ;;  %v6393_v4 = vadd.f32 %v6132_v14, %v5025_v34  ;;  %v19357_v34 = vld [vmem:[#allocation107_spill] sm:$0xff] }
 0x796   :  { %v5032_v9 = vmul.f32 %v19357_v34, %v19356_v25 }
 0x797   :  { %6610 = vst.msk [vmem:[%s17398_s3 + $0x680] sm:$0xff] %vm245_vm0, %v6382_v18  ;;  %6621 = vst.msk [vmem:[%s17398_s3 + $0x6d8] sm:$0xff] %vm245_vm0, %v6393_v4 }
 0x798   :  { %v6087_v55 = vpop.permute.xlu1 %6086  ;;  %v6142_v56 = vpop.permute.xlu0 %6141 }
 0x799   :  { %v6384_v63 = vadd.f32 %v6087_v55, %v5016_v11  ;;  %v6395_v20 = vadd.f32 %v6142_v56, %v5027_v28 }
 0x79b   :  { %6612 = vst.msk [vmem:[%s17398_s3 + $0x690] sm:$0xff] %vm245_vm0, %v6384_v63  ;;  %6623 = vst.msk [vmem:[%s17398_s3 + $0x6e8] sm:$0xff] %vm245_vm0, %v6395_v20 }
 0x79c   :  { %v6097_v45 = vpop.permute.xlu1 %6096  ;;  %v6152_v54 = vpop.permute.xlu0 %6151 }
 0x79d   :  { %v6386_v57 = vadd.f32 %v6097_v45, %v5018_v37  ;;  %v6397_v24 = vadd.f32 %v6152_v54, %v5029_v5 }
 0x79f   :  { %6614 = vst.msk [vmem:[%s17398_s3 + $0x6a0] sm:$0xff] %vm245_vm0, %v6386_v57  ;;  %6625 = vst.msk [vmem:[%s17398_s3 + $0x6f8] sm:$0xff] %vm245_vm0, %v6397_v24 }
 0x7a0   :  { %v6107_v1 = vpop.permute.xlu1 %6106  ;;  %v6162_v59 = vpop.permute.xlu0 %6161 }
 0x7a1   :  { %v6388_v36 = vadd.f32 %v6107_v1, %v5020_v8  ;;  %v6399_v32 = vadd.f32 %v6162_v59, %v5031_v62 }
 0x7a3   :  { %6616 = vst.msk [vmem:[%s17398_s3 + $0x6b0] sm:$0xff] %vm245_vm0, %v6388_v36  ;;  %6627 = vst.msk [vmem:[%s17398_s3 + $0x708] sm:$0xff] %vm245_vm0, %v6399_v32 }
 0x7a4   :  { %v6117_v43 = vpop.permute.xlu1 %6116  ;;  %v6172_v58 = vpop.permute.xlu0 %6171 }
 0x7a5   :  { %v6390_v51 = vadd.f32 %v6117_v43, %v5022_v50  ;;  %v6401_v47 = vadd.f32 %v6172_v58, %v5033_v61 }
 0x7a7   :  { %6618 = vst.msk [vmem:[%s17398_s3 + $0x6c0] sm:$0xff] %vm245_vm0, %v6390_v51  ;;  %6629 = vst.msk [vmem:[%s17398_s3 + $0x718] sm:$0xff] %vm245_vm0, %v6401_v47 }
 0x7a8   :  { %v6127_v17 = vpop.permute.xlu1 %6126 }
 0x7a9   :  { %v6392_v2 = vadd.f32 %v6127_v17, %v5024_v46 }
 0x7ab   :  { %6620 = vst.msk [vmem:[%s17398_s3 + $0x6d0] sm:$0xff] %vm245_vm0, %v6392_v2 }
 0x7ac   :  { %v6137_v6 = vpop.permute.xlu1 %6136 }
 0x7ad   :  { %v6394_v15 = vadd.f32 %v6137_v6, %v5026_v44 }
 0x7af   :  { %6622 = vst.msk [vmem:[%s17398_s3 + $0x6e0] sm:$0xff] %vm245_vm0, %v6394_v15 }
 0x7b0   :  { %v6147_v41 = vpop.permute.xlu1 %6146 }
 0x7b1   :  { %v6396_v40 = vadd.f32 %v6147_v41, %v5028_v31 }
 0x7b3   :  { %6624 = vst.msk [vmem:[%s17398_s3 + $0x6f0] sm:$0xff] %vm245_vm0, %v6396_v40 }
 0x7b4   :  { %v6157_v21 = vpop.permute.xlu1 %6156 }
 0x7b5   :  { %v6398_v19 = vadd.f32 %v6157_v21, %v5030_v13 }
 0x7b7   :  { %6626 = vst.msk [vmem:[%s17398_s3 + $0x700] sm:$0xff] %vm245_vm0, %v6398_v19 }
 0x7b8   :  { %v6167_v14 = vpop.permute.xlu1 %6166 }
 0x7b9   :  { %v6400_v18 = vadd.f32 %v6167_v14, %v5032_v9 }
 0x7bb   :  { %6628 = vst.msk [vmem:[%s17398_s3 + $0x710] sm:$0xff] %vm245_vm0, %v6400_v18 }

</bundles_post_ra>
